<compile_context>
chip_gen: v6e
topology: v6e:2x2x1
jax: 0.10.0
libtpu: 0.0.40
codegen_flags: <defaults>
</compile_context>

<pallas_src>
import functools

import jax
import jax.numpy as jnp
from jax.experimental import pallas as pl
from jax.experimental.pallas import tpu as pltpu

BN_EPS = 1e-5


# ----------------------------------------------------------------------------
# Generation-aware VMEM budget
# ----------------------------------------------------------------------------
@functools.lru_cache(maxsize=None)
def _vmem_limit():
    cap = 64 * 1024 * 1024
    try:
        cap = int(pltpu.get_tpu_info().vmem_capacity_bytes)
    except Exception:
        pass
    # leave headroom: ~48 MiB on v7x (64 MiB phys), ~96 MiB on v5e/v6e (128 MiB phys)
    return int(min(cap * 3 // 4, 100 * 1024 * 1024))


def _pick_row_tile(h, target=8):
    if h <= target:
        return h
    rt = target
    while h % rt:
        rt -= 1
    return rt


def _pick_cout_tile(cout, target=256):
    # keep the output lane dim full or a multiple of 128 (avoid masked vst.msk stores)
    if cout <= 128 or cout % 128 != 0:
        return cout
    t = min(target - target % 128, cout)
    while cout % t:
        t -= 128
    return t


# ----------------------------------------------------------------------------
# In-kernel helper: im2col of a halo-padded tile (taps packed into K = 9*C)
# ----------------------------------------------------------------------------
def _im2col_3x3(xt, rt, w):
    """xt: (rt+2, w+2, C) tile with a 1-px zero halo.  Returns a (rt*w, 9*C) tap matrix
    whose (dy, dx, c) ordering matches weight.reshape(9*C, Cout) of an HWIO weight."""
    taps = [xt[dy:dy + rt, dx:dx + w] for dy in range(3) for dx in range(3)]
    c = xt.shape[-1]
    return jnp.concatenate(taps, axis=-1).reshape(rt * w, 9 * c)


# ----------------------------------------------------------------------------
# Pallas kernels
# ----------------------------------------------------------------------------
def _conv3x3_bn_relu_kernel(x_ref, w_ref, b_ref, o_ref):
    """conv3x3 (stride 1, 'same') + folded-BN bias + ReLU.

    Grid: (N, row_tiles, cout_tiles)      all axes independent ("parallel").
    x_ref: (1, H+2, W+2, Cin) bf16  halo-padded image, resident per sample
    w_ref: (9*Cin, tco)       bf16  taps packed into K, BN scale folded
    b_ref: (1, tco)           f32   folded BN bias
    o_ref: (1, rt, W, tco)    bf16
    """
    cin = x_ref.shape[3]
    rt, w, tco = o_ref.shape[1], o_ref.shape[2], o_ref.shape[3]

    r0 = pl.multiple_of(pl.program_id(1) * rt, rt)
    xt = x_ref[0, pl.ds(r0, rt + 2), :, :]                  # (rt+2, W+2, cin) bf16
    patches = _im2col_3x3(xt, rt, w)                        # (rt*W, 9*cin) bf16

    acc = jnp.dot(patches, w_ref[...], preferred_element_type=jnp.float32)
    y = jnp.maximum(acc + b_ref[...], 0.0)                  # folded-BN bias + ReLU
    o_ref[0] = y.reshape(rt, w, tco).astype(o_ref.dtype)


def _fa_branch_kernel(x_ref, w1s_ref, w2_ref, w3_ref, o_ref):
    """Fused feature-adaptation branch (one row tile of one image):

        o = conv1x1_3( conv3x3_2( conv1x1_1( att ⊙ x ) ) ) + x       (fa_res=True)

    The SE gate is pre-folded into w1 (w1s = att[:,None] * w1), so no full-tile VPU
    multiply is needed.  The 1-px zero halo of x stays zero through the bias-free 1x1,
    providing exactly the 'same' zero padding the fused 3x3 needs.

    x_ref:   (1, H+2, W+2, C) bf16   w1s_ref: (1, C, Cmid) bf16 (gate folded)
    w2_ref:  (9*Cmid, Cmid)  bf16    w3_ref:  (Cmid, C)    bf16
    o_ref:   (1, rt, W, C)   f32
    """
    wp2, c = x_ref.shape[2], x_ref.shape[3]
    rt, w = o_ref.shape[1], o_ref.shape[2]
    cmid = w1s_ref.shape[2]

    r0 = pl.multiple_of(pl.program_id(1) * rt, rt)
    xt = x_ref[0, pl.ds(r0, rt + 2), :, :]                  # (rt+2, W+2, C) bf16

    # 1x1 conv with the per-sample SE gate folded into the weight.
    y1 = jnp.dot(xt.reshape((rt + 2) * wp2, c), w1s_ref[0],
                 preferred_element_type=jnp.float32)
    y1 = y1.astype(jnp.bfloat16).reshape(rt + 2, wp2, cmid)

    # 3x3 conv as a single K=9*Cmid MXU dot on the packed im2col tile.
    patches = _im2col_3x3(y1, rt, w)                        # (rt*W, 9*cmid) bf16
    y2 = jnp.dot(patches, w2_ref[...], preferred_element_type=jnp.float32)

    # final 1x1 conv + residual add (residual in f32).
    y3 = jnp.dot(y2.astype(jnp.bfloat16), w3_ref[...],
                 preferred_element_type=jnp.float32)        # (rt*W, C)
    res = xt[1:rt + 1, 1:w + 1].reshape(rt * w, c).astype(jnp.float32)
    o_ref[0] = (y3 + res).reshape(rt, w, c)


# ----------------------------------------------------------------------------
# Wrappers
# ----------------------------------------------------------------------------
def conv3x3_bn_relu(x_padded, w_packed, bias, *, row_tile=8):
    """x_padded: (N, H+2, W+2, Cin) bf16; w_packed: (9*Cin, Cout) bf16; bias: (Cout,) f32."""
    n, hp2, wp2, cin = x_padded.shape
    h, w = hp2 - 2, wp2 - 2
    cout = w_packed.shape[1]
    rt = _pick_row_tile(h, row_tile)
    tco = _pick_cout_tile(cout)

    flops = int(2 * n * h * w * 9 * cin * cout)
    bytes_accessed = int(x_padded.size * 2 + w_packed.size * 2
                         + bias.size * 4 + n * h * w * cout * 2)

    return pl.pallas_call(
        _conv3x3_bn_relu_kernel,
        out_shape=jax.ShapeDtypeStruct((n, h, w, cout), jnp.bfloat16),
        grid=(n, h // rt, cout // tco),
        in_specs=[
            pl.BlockSpec((1, hp2, wp2, cin), lambda b, i, j: (b, 0, 0, 0)),
            pl.BlockSpec((9 * cin, tco), lambda b, i, j: (0, j)),
            pl.BlockSpec((1, tco), lambda b, i, j: (0, j)),
        ],
        out_specs=pl.BlockSpec((1, rt, w, tco), lambda b, i, j: (b, i, 0, j)),
        compiler_params=pltpu.CompilerParams(
            dimension_semantics=("parallel", "parallel", "parallel"),
            vmem_limit_bytes=_vmem_limit()),
        cost_estimate=pl.CostEstimate(flops=flops, transcendentals=0,
                                      bytes_accessed=bytes_accessed),
    )(x_padded, w_packed, bias.reshape(1, -1).astype(jnp.float32))


def fa_branch(x_padded, w1s, w2_packed, w3, *, row_tile=8):
    """x_padded: (N, H+2, W+2, C) bf16; w1s: (N, C, Cmid) bf16 (SE gate folded);
    w2_packed: (9*Cmid, Cmid) bf16; w3: (Cmid, C) bf16."""
    n, hp2, wp2, c = x_padded.shape
    h, w = hp2 - 2, wp2 - 2
    cmid = w1s.shape[2]
    assert w3.shape == (cmid, c)                       # residual requires Cin == Cout
    rt = _pick_row_tile(h, row_tile)

    flops = int(2 * n * (hp2 * wp2 * c * cmid + h * w * 9 * cmid * cmid
                         + h * w * cmid * c))
    bytes_accessed = int(x_padded.size * 2 + (w1s.size + w2_packed.size + w3.size) * 2
                         + n * h * w * c * 4)

    return pl.pallas_call(
        _fa_branch_kernel,
        out_shape=jax.ShapeDtypeStruct((n, h, w, c), jnp.float32),
        grid=(n, h // rt),
        in_specs=[
            pl.BlockSpec((1, hp2, wp2, c), lambda b, i: (b, 0, 0, 0)),
            pl.BlockSpec((1, c, cmid), lambda b, i: (b, 0, 0)),
            pl.BlockSpec((9 * cmid, cmid), lambda b, i: (0, 0)),
            pl.BlockSpec((cmid, c), lambda b, i: (0, 0)),
        ],
        out_specs=pl.BlockSpec((1, rt, w, c), lambda b, i: (b, i, 0, 0)),
        compiler_params=pltpu.CompilerParams(
            dimension_semantics=("parallel", "parallel"),
            vmem_limit_bytes=_vmem_limit()),
        cost_estimate=pl.CostEstimate(flops=flops, transcendentals=0,
                                      bytes_accessed=bytes_accessed),
    )(x_padded, w1s, w2_packed, w3)


def se_attention(t_nhwc, w1, b1, w2, b2):
    """adaptive_avg_pool2d(1,1) + fc -> relu -> fc -> sigmoid.  Kept in XLA per the
    perf review (tiny FCs; overlapped with the Pallas kernels via the cost estimates)."""
    m = jnp.mean(t_nhwc, axis=(1, 2))                       # (N, C)
    hdn = jax.nn.relu(jnp.dot(m, w1) + b1)
    return jax.nn.sigmoid(jnp.dot(hdn, w2) + b2)            # (N, C)


def fold_bn(gamma, beta, mean, var):
    scale = gamma / jnp.sqrt(var + BN_EPS)
    return scale, beta - mean * scale


def pack_conv3x3(w, scale=None):
    """HWIO (3,3,Cin,Cout) -> (9*Cin, Cout) bf16, optional per-Cout BN scale folded."""
    if scale is not None:
        w = w * scale
    cin, cout = w.shape[2], w.shape[3]
    return w.reshape(9 * cin, cout).astype(jnp.bfloat16)


def dorefa_quant_act(v):
    # TODO(synk): DorefaQuantizeActivation(feature_dtype=None) treated as identity.
    return v


def _pad1(x):
    """1-px zero halo on H and W (NHWC).  Single cheap XLA pad shared by both the
    following conv stage and the fa branch; replaces the in-kernel staging copy."""
    return jnp.pad(x, ((0, 0), (1, 1), (1, 1), (0, 0)))


# ----------------------------------------------------------------------------
# Full forward (is_train=True path)
# ----------------------------------------------------------------------------
def quantize_bottleneck_v2_forward(p, teacher_outputs, x_nchw):
    to_nhwc = lambda a: jnp.transpose(a, (0, 2, 3, 1))
    to_nchw = lambda a: jnp.transpose(a, (0, 3, 1, 2))
    x = to_nhwc(x_nchw).astype(jnp.bfloat16)
    t = [to_nhwc(ti) for ti in teacher_outputs]

    def conv_stage(x_pad, conv_w, bn):
        scale, bias = fold_bn(*bn)
        out = conv3x3_bn_relu(x_pad, pack_conv3x3(conv_w, scale), bias)
        return dorefa_quant_act(out)

    def fa_stage(out_pad, teacher, fcw1, fcb1, fcw2, fcb2, w1, w2, w3):
        att = se_attention(teacher, fcw1, fcb1, fcw2, fcb2)          # (N, C) f32
        w1s = (att[:, :, None] * w1[None, :, :]).astype(jnp.bfloat16)  # gate folded
        return fa_branch(out_pad, w1s, pack_conv3x3(w2), w3.astype(jnp.bfloat16))

    # ---- stage 1: conv1 -> bn1 -> relu -> quantize, plus fused fa branch ----
    out = conv_stage(_pad1(x), p['conv1_w'], p['bn1'])
    out_p = _pad1(out)
    fa1 = fa_stage(out_p, t[0], p['fc1_1_w'], p['fc1_1_b'], p['fc1_2_w'], p['fc1_2_b'],
                   p['fa_1_1_w'], p['fa_1_2_w'], p['fa_1_3_w'])

    # ---- stage 2 ----
    out = conv_stage(out_p, p['conv2_w'], p['bn2'])
    out_p = _pad1(out)
    fa2 = fa_stage(out_p, t[1], p['fc2_1_w'], p['fc2_1_b'], p['fc2_2_w'], p['fc2_2_b'],
                   p['fa_2_1_w'], p['fa_2_2_w'], p['fa_2_3_w'])

    # ---- stage 3 ----
    out = conv_stage(out_p, p['conv3_w'], p['bn3'])
    out_p = _pad1(out)
    fa3 = fa_stage(out_p, t[2], p['fc3_1_w'], p['fc3_1_b'], p['fc3_2_w'], p['fc3_2_b'],
                   p['fa_3_1_w'], p['fa_3_2_w'], p['fa_3_3_w'])

    # NOTE: the reference's split/concat branch (concat_conv_1/2 + BN + ReLU) produces a
    # tensor that is never used on the is_train=True return path; it is elided here —
    # the returned values are identical.

    # ---- stage 4 feature adaptation (on `out`, matching the reference) ----
    fa4 = fa_stage(out_p, t[3], p['fc4_1_w'], p['fc4_1_b'], p['fc4_2_w'], p['fc4_2_b'],
                   p['fa_4_1_w'], p['fa_4_2_w'], p['fa_4_3_w'])

    return [to_nchw(fa1), to_nchw(fa2), to_nchw(fa3), to_nchw(fa4),
            to_nchw(out.astype(jnp.float32))]


# ----------------------------------------------------------------------------
# Deterministic parameter init (shapes from the module __init__)
# ----------------------------------------------------------------------------
def init_params(key, inplanes, planes, expansion=4, squeeze_factor=8):
    wide = planes * expansion
    sq = max(planes // squeeze_factor, 1)
    keys = iter(jax.random.split(key, 48))

    def nrm(shape):
        return 0.1 * jax.random.normal(next(keys), shape, jnp.float32)

    def bn(c):  # gamma, beta, running_mean, running_var
        return (1.0 + nrm((c,)), nrm((c,)), nrm((c,)), 1.0 + jnp.abs(nrm((c,))))

    return {
        'conv1_w': nrm((3, 3, inplanes, planes)), 'bn1': bn(planes),
        'conv2_w': nrm((3, 3, planes, planes)),   'bn2': bn(planes),
        'conv3_w': nrm((3, 3, planes, wide)),     'bn3': bn(wide),
        'fa_1_1_w': nrm((planes, planes)), 'fa_1_2_w': nrm((3, 3, planes, planes)), 'fa_1_3_w': nrm((planes, planes)),
        'fa_2_1_w': nrm((planes, planes)), 'fa_2_2_w': nrm((3, 3, planes, planes)), 'fa_2_3_w': nrm((planes, planes)),
        'fa_3_1_w': nrm((wide, planes)),   'fa_3_2_w': nrm((3, 3, planes, planes)), 'fa_3_3_w': nrm((planes, wide)),
        'fa_4_1_w': nrm((wide, planes)),   'fa_4_2_w': nrm((3, 3, planes, planes)), 'fa_4_3_w': nrm((planes, wide)),
        'fc1_1_w': nrm((planes, sq)), 'fc1_1_b': nrm((sq,)), 'fc1_2_w': nrm((sq, planes)), 'fc1_2_b': nrm((planes,)),
        'fc2_1_w': nrm((planes, sq)), 'fc2_1_b': nrm((sq,)), 'fc2_2_w': nrm((sq, planes)), 'fc2_2_b': nrm((planes,)),
        'fc3_1_w': nrm((wide, sq)),   'fc3_1_b': nrm((sq,)), 'fc3_2_w': nrm((sq, wide)),   'fc3_2_b': nrm((wide,)),
        'fc4_1_w': nrm((wide, sq)),   'fc4_1_b': nrm((sq,)), 'fc4_2_w': nrm((sq, wide)),   'fc4_2_b': nrm((wide,)),
    }


if __name__ == "__main__":
    key = jax.random.PRNGKey(0)
    kp, kx, kt0, kt1, kt2, kt3 = jax.random.split(key, 6)

    N, H, W = 2, 16, 16                # W multiple of 8 keeps in-kernel reshapes free
    planes, expansion, squeeze = 16, 4, 8
    wide = planes * expansion          # 64
    inplanes = wide                    # downsample=None ⇒ residual channels must match

    params = init_params(kp, inplanes, planes, expansion, squeeze)

    # inputs (NCHW, like PyTorch): x plus the 4 teacher middle outputs
    x = jax.random.normal(kx, (N, inplanes, H, W), jnp.float32)
    teacher = [
        jax.random.normal(kt0, (N, planes, H, W), jnp.float32),
        jax.random.normal(kt1, (N, planes, H, W), jnp.float32),
        jax.random.normal(kt2, (N, wide, H, W), jnp.float32),
        jax.random.normal(kt3, (N, wide, H, W), jnp.float32),
    ]

    fwd = jax.jit(quantize_bottleneck_v2_forward)
    outs = jax.block_until_ready(fwd(params, teacher, x))
    assert [tuple(o.shape) for o in outs] == [
        (N, planes, H, W), (N, planes, H, W),
        (N, wide, H, W), (N, wide, H, W), (N, wide, H, W)]
    assert all(bool(jnp.isfinite(o).all()) for o in outs)
    print("KERNEL_OK")
</pallas_src>

<mosaic_0001>
module attributes {stable_mosaic.version = 11 : i64} {
  func.func @_conv3x3_bn_relu_kernel(%arg0: i32, %arg1: i32, %arg2: i32, %arg3: memref<1x18x18x64xbf16, #tpu.memory_space<vmem>>, %arg4: memref<576x16xbf16, #tpu.memory_space<vmem>>, %arg5: memref<1x16xf32, #tpu.memory_space<vmem>>, %arg6: memref<1x8x16x16xbf16, #tpu.memory_space<vmem>>) attributes {dimension_semantics = [#tpu.dimension_semantics<parallel>, #tpu.dimension_semantics<parallel>, #tpu.dimension_semantics<parallel>], iteration_bounds = array<i64: 2, 2, 1>, scalar_prefetch = 0 : i64, scratch_operands = 0 : i64, tpu.core_type = #tpu.core_type<tc>, window_params = [{transform_indices = @transform_0, window_bounds = array<i64: 1, 18, 18, 64>}, {transform_indices = @transform_1, window_bounds = array<i64: 576, 16>}, {transform_indices = @transform_2, window_bounds = array<i64: 1, 16>}, {transform_indices = @transform_3, window_bounds = array<i64: 1, 8, 16, 16>}]} {
    %c8_i32 = arith.constant 8 : i32
    %0 = arith.muli %arg1, %c8_i32 : i32
    %1 = tpu.assume_multiple %0, 8 : i32
    %c0 = arith.constant 0 : index
    %2 = arith.index_cast %1 : i32 to index
    %c0_0 = arith.constant 0 : index
    %c0_1 = arith.constant 0 : index
    %3 = vector.load %arg3[%c0, %2, %c0_0, %c0_1] : memref<1x18x18x64xbf16, #tpu.memory_space<vmem>>, vector<1x10x18x64xbf16>
    %4 = vector.shape_cast %3 : vector<1x10x18x64xbf16> to vector<10x18x64xbf16>
    %5 = vector.extract_strided_slice %4 {offsets = [0, 0, 0], sizes = [8, 16, 64], strides = [1, 1, 1]} : vector<10x18x64xbf16> to vector<8x16x64xbf16>
    %6 = vector.extract_strided_slice %4 {offsets = [0, 1, 0], sizes = [8, 16, 64], strides = [1, 1, 1]} : vector<10x18x64xbf16> to vector<8x16x64xbf16>
    %7 = vector.extract_strided_slice %4 {offsets = [0, 2, 0], sizes = [8, 16, 64], strides = [1, 1, 1]} : vector<10x18x64xbf16> to vector<8x16x64xbf16>
    %8 = vector.extract_strided_slice %4 {offsets = [1, 0, 0], sizes = [8, 16, 64], strides = [1, 1, 1]} : vector<10x18x64xbf16> to vector<8x16x64xbf16>
    %9 = vector.extract_strided_slice %4 {offsets = [1, 1, 0], sizes = [8, 16, 64], strides = [1, 1, 1]} : vector<10x18x64xbf16> to vector<8x16x64xbf16>
    %10 = vector.extract_strided_slice %4 {offsets = [1, 2, 0], sizes = [8, 16, 64], strides = [1, 1, 1]} : vector<10x18x64xbf16> to vector<8x16x64xbf16>
    %11 = vector.extract_strided_slice %4 {offsets = [2, 0, 0], sizes = [8, 16, 64], strides = [1, 1, 1]} : vector<10x18x64xbf16> to vector<8x16x64xbf16>
    %12 = vector.extract_strided_slice %4 {offsets = [2, 1, 0], sizes = [8, 16, 64], strides = [1, 1, 1]} : vector<10x18x64xbf16> to vector<8x16x64xbf16>
    %13 = vector.extract_strided_slice %4 {offsets = [2, 2, 0], sizes = [8, 16, 64], strides = [1, 1, 1]} : vector<10x18x64xbf16> to vector<8x16x64xbf16>
    %14 = tpu.concatenate %5, %6, %7, %8, %9, %10, %11, %12, %13 in 2 : vector<8x16x64xbf16>, vector<8x16x64xbf16>, vector<8x16x64xbf16>, vector<8x16x64xbf16>, vector<8x16x64xbf16>, vector<8x16x64xbf16>, vector<8x16x64xbf16>, vector<8x16x64xbf16>, vector<8x16x64xbf16> -> vector<8x16x576xbf16>
    %15 = vector.shape_cast %14 : vector<8x16x576xbf16> to vector<128x576xbf16>
    %c0_2 = arith.constant 0 : index
    %c0_3 = arith.constant 0 : index
    %16 = vector.load %arg4[%c0_2, %c0_3] : memref<576x16xbf16, #tpu.memory_space<vmem>>, vector<576x16xbf16>
    %cst = arith.constant dense<0.000000e+00> : vector<128x16xf32>
    %17 = tpu.matmul %15, %16, %cst {dimension_numbers = #tpu.dot_dimension_numbers<[1], [0], [0], [1], [0, 0, 1, 1], [], []>} : vector<128x576xbf16>, vector<576x16xbf16>, vector<128x16xf32> -> vector<128x16xf32>
    %c0_4 = arith.constant 0 : index
    %c0_5 = arith.constant 0 : index
    %18 = vector.load %arg5[%c0_4, %c0_5] : memref<1x16xf32, #tpu.memory_space<vmem>>, vector<1x16xf32>
    %19 = vector.broadcast %18 : vector<1x16xf32> to vector<128x16xf32>
    %20 = arith.addf %17, %19 : vector<128x16xf32>
    %cst_6 = arith.constant 0.000000e+00 : f32
    %21 = vector.broadcast %cst_6 : f32 to vector<128x16xf32>
    %22 = arith.maximumf %20, %21 : vector<128x16xf32>
    %23 = vector.shape_cast %22 : vector<128x16xf32> to vector<8x16x16xf32>
    %24 = arith.truncf %23 : vector<8x16x16xf32> to vector<8x16x16xbf16>
    %c0_7 = arith.constant 0 : index
    %c0_8 = arith.constant 0 : index
    %c0_9 = arith.constant 0 : index
    %c0_10 = arith.constant 0 : index
    %25 = vector.load %arg6[%c0_7, %c0_8, %c0_9, %c0_10] : memref<1x8x16x16xbf16, #tpu.memory_space<vmem>>, vector<1x8x16x16xbf16>
    %26 = vector.shape_cast %25 : vector<1x8x16x16xbf16> to vector<8x16x16xbf16>
    %27 = vector.shape_cast %24 : vector<8x16x16xbf16> to vector<1x8x16x16xbf16>
    tpu.vector_store %arg6[%c0_7, %c0_8, %c0_9, %c0_10], %27 {strides = array<i32>} : memref<1x8x16x16xbf16, #tpu.memory_space<vmem>>, vector<1x8x16x16xbf16>,
    return
  }
  func.func @transform_0(%arg0: i32, %arg1: i32, %arg2: i32) -> (i32, i32, i32, i32) {
    %c0_i32 = arith.constant 0 : i32
    %c0_i32_0 = arith.constant 0 : i32
    %c0_i32_1 = arith.constant 0 : i32
    %c0_i32_2 = arith.constant 0 : i32
    return %arg0, %c0_i32, %c0_i32_0, %c0_i32_1 : i32, i32, i32, i32
  }
  func.func @transform_1(%arg0: i32, %arg1: i32, %arg2: i32) -> (i32, i32) {
    %c0_i32 = arith.constant 0 : i32
    %c0_i32_0 = arith.constant 0 : i32
    return %c0_i32, %arg2 : i32, i32
  }
  func.func @transform_2(%arg0: i32, %arg1: i32, %arg2: i32) -> (i32, i32) {
    %c0_i32 = arith.constant 0 : i32
    %c0_i32_0 = arith.constant 0 : i32
    return %c0_i32, %arg2 : i32, i32
  }
  func.func @transform_3(%arg0: i32, %arg1: i32, %arg2: i32) -> (i32, i32, i32, i32) {
    %c0_i32 = arith.constant 0 : i32
    %c0_i32_0 = arith.constant 0 : i32
    return %arg0, %arg1, %c0_i32, %arg2 : i32, i32, i32, i32
  }
}

module attributes {stable_mosaic.version = 11 : i64} {
  func.func @_conv3x3_bn_relu_kernel(%arg0: i32, %arg1: i32, %arg2: i32, %arg3: memref<1x18x18x16xbf16, #tpu.memory_space<vmem>>, %arg4: memref<144x16xbf16, #tpu.memory_space<vmem>>, %arg5: memref<1x16xf32, #tpu.memory_space<vmem>>, %arg6: memref<1x8x16x16xbf16, #tpu.memory_space<vmem>>) attributes {dimension_semantics = [#tpu.dimension_semantics<parallel>, #tpu.dimension_semantics<parallel>, #tpu.dimension_semantics<parallel>], iteration_bounds = array<i64: 2, 2, 1>, scalar_prefetch = 0 : i64, scratch_operands = 0 : i64, tpu.core_type = #tpu.core_type<tc>, window_params = [{transform_indices = @transform_0, window_bounds = array<i64: 1, 18, 18, 16>}, {transform_indices = @transform_1, window_bounds = array<i64: 144, 16>}, {transform_indices = @transform_2, window_bounds = array<i64: 1, 16>}, {transform_indices = @transform_3, window_bounds = array<i64: 1, 8, 16, 16>}]} {
    %c8_i32 = arith.constant 8 : i32
    %0 = arith.muli %arg1, %c8_i32 : i32
    %1 = tpu.assume_multiple %0, 8 : i32
    %c0 = arith.constant 0 : index
    %2 = arith.index_cast %1 : i32 to index
    %c0_0 = arith.constant 0 : index
    %c0_1 = arith.constant 0 : index
    %3 = vector.load %arg3[%c0, %2, %c0_0, %c0_1] : memref<1x18x18x16xbf16, #tpu.memory_space<vmem>>, vector<1x10x18x16xbf16>
    %4 = vector.shape_cast %3 : vector<1x10x18x16xbf16> to vector<10x18x16xbf16>
    %5 = vector.extract_strided_slice %4 {offsets = [0, 0, 0], sizes = [8, 16, 16], strides = [1, 1, 1]} : vector<10x18x16xbf16> to vector<8x16x16xbf16>
    %6 = vector.extract_strided_slice %4 {offsets = [0, 1, 0], sizes = [8, 16, 16], strides = [1, 1, 1]} : vector<10x18x16xbf16> to vector<8x16x16xbf16>
    %7 = vector.extract_strided_slice %4 {offsets = [0, 2, 0], sizes = [8, 16, 16], strides = [1, 1, 1]} : vector<10x18x16xbf16> to vector<8x16x16xbf16>
    %8 = vector.extract_strided_slice %4 {offsets = [1, 0, 0], sizes = [8, 16, 16], strides = [1, 1, 1]} : vector<10x18x16xbf16> to vector<8x16x16xbf16>
    %9 = vector.extract_strided_slice %4 {offsets = [1, 1, 0], sizes = [8, 16, 16], strides = [1, 1, 1]} : vector<10x18x16xbf16> to vector<8x16x16xbf16>
    %10 = vector.extract_strided_slice %4 {offsets = [1, 2, 0], sizes = [8, 16, 16], strides = [1, 1, 1]} : vector<10x18x16xbf16> to vector<8x16x16xbf16>
    %11 = vector.extract_strided_slice %4 {offsets = [2, 0, 0], sizes = [8, 16, 16], strides = [1, 1, 1]} : vector<10x18x16xbf16> to vector<8x16x16xbf16>
    %12 = vector.extract_strided_slice %4 {offsets = [2, 1, 0], sizes = [8, 16, 16], strides = [1, 1, 1]} : vector<10x18x16xbf16> to vector<8x16x16xbf16>
    %13 = vector.extract_strided_slice %4 {offsets = [2, 2, 0], sizes = [8, 16, 16], strides = [1, 1, 1]} : vector<10x18x16xbf16> to vector<8x16x16xbf16>
    %14 = tpu.concatenate %5, %6, %7, %8, %9, %10, %11, %12, %13 in 2 : vector<8x16x16xbf16>, vector<8x16x16xbf16>, vector<8x16x16xbf16>, vector<8x16x16xbf16>, vector<8x16x16xbf16>, vector<8x16x16xbf16>, vector<8x16x16xbf16>, vector<8x16x16xbf16>, vector<8x16x16xbf16> -> vector<8x16x144xbf16>
    %15 = vector.shape_cast %14 : vector<8x16x144xbf16> to vector<128x144xbf16>
    %c0_2 = arith.constant 0 : index
    %c0_3 = arith.constant 0 : index
    %16 = vector.load %arg4[%c0_2, %c0_3] : memref<144x16xbf16, #tpu.memory_space<vmem>>, vector<144x16xbf16>
    %cst = arith.constant dense<0.000000e+00> : vector<128x16xf32>
    %17 = tpu.matmul %15, %16, %cst {dimension_numbers = #tpu.dot_dimension_numbers<[1], [0], [0], [1], [0, 0, 1, 1], [], []>} : vector<128x144xbf16>, vector<144x16xbf16>, vector<128x16xf32> -> vector<128x16xf32>
    %c0_4 = arith.constant 0 : index
    %c0_5 = arith.constant 0 : index
    %18 = vector.load %arg5[%c0_4, %c0_5] : memref<1x16xf32, #tpu.memory_space<vmem>>, vector<1x16xf32>
    %19 = vector.broadcast %18 : vector<1x16xf32> to vector<128x16xf32>
    %20 = arith.addf %17, %19 : vector<128x16xf32>
    %cst_6 = arith.constant 0.000000e+00 : f32
    %21 = vector.broadcast %cst_6 : f32 to vector<128x16xf32>
    %22 = arith.maximumf %20, %21 : vector<128x16xf32>
    %23 = vector.shape_cast %22 : vector<128x16xf32> to vector<8x16x16xf32>
    %24 = arith.truncf %23 : vector<8x16x16xf32> to vector<8x16x16xbf16>
    %c0_7 = arith.constant 0 : index
    %c0_8 = arith.constant 0 : index
    %c0_9 = arith.constant 0 : index
    %c0_10 = arith.constant 0 : index
    %25 = vector.load %arg6[%c0_7, %c0_8, %c0_9, %c0_10] : memref<1x8x16x16xbf16, #tpu.memory_space<vmem>>, vector<1x8x16x16xbf16>
    %26 = vector.shape_cast %25 : vector<1x8x16x16xbf16> to vector<8x16x16xbf16>
    %27 = vector.shape_cast %24 : vector<8x16x16xbf16> to vector<1x8x16x16xbf16>
    tpu.vector_store %arg6[%c0_7, %c0_8, %c0_9, %c0_10], %27 {strides = array<i32>} : memref<1x8x16x16xbf16, #tpu.memory_space<vmem>>, vector<1x8x16x16xbf16>,
    return
  }
  func.func @transform_0(%arg0: i32, %arg1: i32, %arg2: i32) -> (i32, i32, i32, i32) {
    %c0_i32 = arith.constant 0 : i32
    %c0_i32_0 = arith.constant 0 : i32
    %c0_i32_1 = arith.constant 0 : i32
    %c0_i32_2 = arith.constant 0 : i32
    return %arg0, %c0_i32, %c0_i32_0, %c0_i32_1 : i32, i32, i32, i32
  }
  func.func @transform_1(%arg0: i32, %arg1: i32, %arg2: i32) -> (i32, i32) {
    %c0_i32 = arith.constant 0 : i32
    %c0_i32_0 = arith.constant 0 : i32
    return %c0_i32, %arg2 : i32, i32
  }
  func.func @transform_2(%arg0: i32, %arg1: i32, %arg2: i32) -> (i32, i32) {
    %c0_i32 = arith.constant 0 : i32
    %c0_i32_0 = arith.constant 0 : i32
    return %c0_i32, %arg2 : i32, i32
  }
  func.func @transform_3(%arg0: i32, %arg1: i32, %arg2: i32) -> (i32, i32, i32, i32) {
    %c0_i32 = arith.constant 0 : i32
    %c0_i32_0 = arith.constant 0 : i32
    return %arg0, %arg1, %c0_i32, %arg2 : i32, i32, i32, i32
  }
}

module attributes {stable_mosaic.version = 11 : i64} {
  func.func @_fa_branch_kernel(%arg0: i32, %arg1: i32, %arg2: memref<1x18x18x16xbf16, #tpu.memory_space<vmem>>, %arg3: memref<1x16x16xbf16, #tpu.memory_space<vmem>>, %arg4: memref<144x16xbf16, #tpu.memory_space<vmem>>, %arg5: memref<16x16xbf16, #tpu.memory_space<vmem>>, %arg6: memref<1x8x16x16xf32, #tpu.memory_space<vmem>>) attributes {dimension_semantics = [#tpu.dimension_semantics<parallel>, #tpu.dimension_semantics<parallel>], iteration_bounds = array<i64: 2, 2>, scalar_prefetch = 0 : i64, scratch_operands = 0 : i64, tpu.core_type = #tpu.core_type<tc>, window_params = [{transform_indices = @transform_0, window_bounds = array<i64: 1, 18, 18, 16>}, {transform_indices = @transform_1, window_bounds = array<i64: 1, 16, 16>}, {pipeline_mode = #tpu.pipeline_mode<synchronous>, transform_indices = @transform_2, window_bounds = array<i64: 144, 16>}, {pipeline_mode = #tpu.pipeline_mode<synchronous>, transform_indices = @transform_3, window_bounds = array<i64: 16, 16>}, {transform_indices = @transform_4, window_bounds = array<i64: 1, 8, 16, 16>}]} {
    %c8_i32 = arith.constant 8 : i32
    %0 = arith.muli %arg1, %c8_i32 : i32
    %1 = tpu.assume_multiple %0, 8 : i32
    %c0 = arith.constant 0 : index
    %2 = arith.index_cast %1 : i32 to index
    %c0_0 = arith.constant 0 : index
    %c0_1 = arith.constant 0 : index
    %3 = vector.load %arg2[%c0, %2, %c0_0, %c0_1] : memref<1x18x18x16xbf16, #tpu.memory_space<vmem>>, vector<1x10x18x16xbf16>
    %4 = vector.shape_cast %3 : vector<1x10x18x16xbf16> to vector<10x18x16xbf16>
    %5 = vector.shape_cast %4 : vector<10x18x16xbf16> to vector<180x16xbf16>
    %c0_2 = arith.constant 0 : index
    %c0_3 = arith.constant 0 : index
    %c0_4 = arith.constant 0 : index
    %6 = vector.load %arg3[%c0_2, %c0_3, %c0_4] : memref<1x16x16xbf16, #tpu.memory_space<vmem>>, vector<1x16x16xbf16>
    %7 = vector.shape_cast %6 : vector<1x16x16xbf16> to vector<16x16xbf16>
    %cst = arith.constant dense<0.000000e+00> : vector<180x16xf32>
    %8 = tpu.matmul %5, %7, %cst {dimension_numbers = #tpu.dot_dimension_numbers<[1], [0], [0], [1], [0, 0, 1, 1], [], []>} : vector<180x16xbf16>, vector<16x16xbf16>, vector<180x16xf32> -> vector<180x16xf32>
    %9 = arith.truncf %8 : vector<180x16xf32> to vector<180x16xbf16>
    %10 = vector.shape_cast %9 : vector<180x16xbf16> to vector<10x18x16xbf16>
    %11 = vector.extract_strided_slice %10 {offsets = [0, 0, 0], sizes = [8, 16, 16], strides = [1, 1, 1]} : vector<10x18x16xbf16> to vector<8x16x16xbf16>
    %12 = vector.extract_strided_slice %10 {offsets = [0, 1, 0], sizes = [8, 16, 16], strides = [1, 1, 1]} : vector<10x18x16xbf16> to vector<8x16x16xbf16>
    %13 = vector.extract_strided_slice %10 {offsets = [0, 2, 0], sizes = [8, 16, 16], strides = [1, 1, 1]} : vector<10x18x16xbf16> to vector<8x16x16xbf16>
    %14 = vector.extract_strided_slice %10 {offsets = [1, 0, 0], sizes = [8, 16, 16], strides = [1, 1, 1]} : vector<10x18x16xbf16> to vector<8x16x16xbf16>
    %15 = vector.extract_strided_slice %10 {offsets = [1, 1, 0], sizes = [8, 16, 16], strides = [1, 1, 1]} : vector<10x18x16xbf16> to vector<8x16x16xbf16>
    %16 = vector.extract_strided_slice %10 {offsets = [1, 2, 0], sizes = [8, 16, 16], strides = [1, 1, 1]} : vector<10x18x16xbf16> to vector<8x16x16xbf16>
    %17 = vector.extract_strided_slice %10 {offsets = [2, 0, 0], sizes = [8, 16, 16], strides = [1, 1, 1]} : vector<10x18x16xbf16> to vector<8x16x16xbf16>
    %18 = vector.extract_strided_slice %10 {offsets = [2, 1, 0], sizes = [8, 16, 16], strides = [1, 1, 1]} : vector<10x18x16xbf16> to vector<8x16x16xbf16>
    %19 = vector.extract_strided_slice %10 {offsets = [2, 2, 0], sizes = [8, 16, 16], strides = [1, 1, 1]} : vector<10x18x16xbf16> to vector<8x16x16xbf16>
    %20 = tpu.concatenate %11, %12, %13, %14, %15, %16, %17, %18, %19 in 2 : vector<8x16x16xbf16>, vector<8x16x16xbf16>, vector<8x16x16xbf16>, vector<8x16x16xbf16>, vector<8x16x16xbf16>, vector<8x16x16xbf16>, vector<8x16x16xbf16>, vector<8x16x16xbf16>, vector<8x16x16xbf16> -> vector<8x16x144xbf16>
    %21 = vector.shape_cast %20 : vector<8x16x144xbf16> to vector<128x144xbf16>
    %c0_5 = arith.constant 0 : index
    %c0_6 = arith.constant 0 : index
    %22 = vector.load %arg4[%c0_5, %c0_6] : memref<144x16xbf16, #tpu.memory_space<vmem>>, vector<144x16xbf16>
    %cst_7 = arith.constant dense<0.000000e+00> : vector<128x16xf32>
    %23 = tpu.matmul %21, %22, %cst_7 {dimension_numbers = #tpu.dot_dimension_numbers<[1], [0], [0], [1], [0, 0, 1, 1], [], []>} : vector<128x144xbf16>, vector<144x16xbf16>, vector<128x16xf32> -> vector<128x16xf32>
    %24 = arith.truncf %23 : vector<128x16xf32> to vector<128x16xbf16>
    %c0_8 = arith.constant 0 : index
    %c0_9 = arith.constant 0 : index
    %25 = vector.load %arg5[%c0_8, %c0_9] : memref<16x16xbf16, #tpu.memory_space<vmem>>, vector<16x16xbf16>
    %cst_10 = arith.constant dense<0.000000e+00> : vector<128x16xf32>
    %26 = tpu.matmul %24, %25, %cst_10 {dimension_numbers = #tpu.dot_dimension_numbers<[1], [0], [0], [1], [0, 0, 1, 1], [], []>} : vector<128x16xbf16>, vector<16x16xbf16>, vector<128x16xf32> -> vector<128x16xf32>
    %27 = vector.extract_strided_slice %4 {offsets = [1, 1, 0], sizes = [8, 16, 16], strides = [1, 1, 1]} : vector<10x18x16xbf16> to vector<8x16x16xbf16>
    %28 = vector.shape_cast %27 : vector<8x16x16xbf16> to vector<128x16xbf16>
    %29 = arith.extf %28 : vector<128x16xbf16> to vector<128x16xf32>
    %30 = arith.addf %26, %29 : vector<128x16xf32>
    %31 = vector.shape_cast %30 : vector<128x16xf32> to vector<8x16x16xf32>
    %c0_11 = arith.constant 0 : index
    %c0_12 = arith.constant 0 : index
    %c0_13 = arith.constant 0 : index
    %c0_14 = arith.constant 0 : index
    %32 = vector.load %arg6[%c0_11, %c0_12, %c0_13, %c0_14] : memref<1x8x16x16xf32, #tpu.memory_space<vmem>>, vector<1x8x16x16xf32>
    %33 = vector.shape_cast %32 : vector<1x8x16x16xf32> to vector<8x16x16xf32>
    %34 = vector.shape_cast %31 : vector<8x16x16xf32> to vector<1x8x16x16xf32>
    tpu.vector_store %arg6[%c0_11, %c0_12, %c0_13, %c0_14], %34 {strides = array<i32>} : memref<1x8x16x16xf32, #tpu.memory_space<vmem>>, vector<1x8x16x16xf32>,
    return
  }
  func.func @transform_0(%arg0: i32, %arg1: i32) -> (i32, i32, i32, i32) {
    %c0_i32 = arith.constant 0 : i32
    %c0_i32_0 = arith.constant 0 : i32
    %c0_i32_1 = arith.constant 0 : i32
    %c0_i32_2 = arith.constant 0 : i32
    return %arg0, %c0_i32, %c0_i32_0, %c0_i32_1 : i32, i32, i32, i32
  }
  func.func @transform_1(%arg0: i32, %arg1: i32) -> (i32, i32, i32) {
    %c0_i32 = arith.constant 0 : i32
    %c0_i32_0 = arith.constant 0 : i32
    %c0_i32_1 = arith.constant 0 : i32
    return %arg0, %c0_i32, %c0_i32_0 : i32, i32, i32
  }
  func.func @transform_2(%arg0: i32, %arg1: i32) -> (i32, i32) {
    %c0_i32 = arith.constant 0 : i32
    %c0_i32_0 = arith.constant 0 : i32
    %c0_i32_1 = arith.constant 0 : i32
    return %c0_i32, %c0_i32_0 : i32, i32
  }
  func.func @transform_3(%arg0: i32, %arg1: i32) -> (i32, i32) {
    %c0_i32 = arith.constant 0 : i32
    %c0_i32_0 = arith.constant 0 : i32
    %c0_i32_1 = arith.constant 0 : i32
    return %c0_i32, %c0_i32_0 : i32, i32
  }
  func.func @transform_4(%arg0: i32, %arg1: i32) -> (i32, i32, i32, i32) {
    %c0_i32 = arith.constant 0 : i32
    %c0_i32_0 = arith.constant 0 : i32
    %c0_i32_1 = arith.constant 0 : i32
    return %arg0, %arg1, %c0_i32, %c0_i32_0 : i32, i32, i32, i32
  }
}

module attributes {stable_mosaic.version = 11 : i64} {
  func.func @_conv3x3_bn_relu_kernel(%arg0: i32, %arg1: i32, %arg2: i32, %arg3: memref<1x18x18x16xbf16, #tpu.memory_space<vmem>>, %arg4: memref<144x64xbf16, #tpu.memory_space<vmem>>, %arg5: memref<1x64xf32, #tpu.memory_space<vmem>>, %arg6: memref<1x8x16x64xbf16, #tpu.memory_space<vmem>>) attributes {dimension_semantics = [#tpu.dimension_semantics<parallel>, #tpu.dimension_semantics<parallel>, #tpu.dimension_semantics<parallel>], iteration_bounds = array<i64: 2, 2, 1>, scalar_prefetch = 0 : i64, scratch_operands = 0 : i64, tpu.core_type = #tpu.core_type<tc>, window_params = [{transform_indices = @transform_0, window_bounds = array<i64: 1, 18, 18, 16>}, {transform_indices = @transform_1, window_bounds = array<i64: 144, 64>}, {transform_indices = @transform_2, window_bounds = array<i64: 1, 64>}, {transform_indices = @transform_3, window_bounds = array<i64: 1, 8, 16, 64>}]} {
    %c8_i32 = arith.constant 8 : i32
    %0 = arith.muli %arg1, %c8_i32 : i32
    %1 = tpu.assume_multiple %0, 8 : i32
    %c0 = arith.constant 0 : index
    %2 = arith.index_cast %1 : i32 to index
    %c0_0 = arith.constant 0 : index
    %c0_1 = arith.constant 0 : index
    %3 = vector.load %arg3[%c0, %2, %c0_0, %c0_1] : memref<1x18x18x16xbf16, #tpu.memory_space<vmem>>, vector<1x10x18x16xbf16>
    %4 = vector.shape_cast %3 : vector<1x10x18x16xbf16> to vector<10x18x16xbf16>
    %5 = vector.extract_strided_slice %4 {offsets = [0, 0, 0], sizes = [8, 16, 16], strides = [1, 1, 1]} : vector<10x18x16xbf16> to vector<8x16x16xbf16>
    %6 = vector.extract_strided_slice %4 {offsets = [0, 1, 0], sizes = [8, 16, 16], strides = [1, 1, 1]} : vector<10x18x16xbf16> to vector<8x16x16xbf16>
    %7 = vector.extract_strided_slice %4 {offsets = [0, 2, 0], sizes = [8, 16, 16], strides = [1, 1, 1]} : vector<10x18x16xbf16> to vector<8x16x16xbf16>
    %8 = vector.extract_strided_slice %4 {offsets = [1, 0, 0], sizes = [8, 16, 16], strides = [1, 1, 1]} : vector<10x18x16xbf16> to vector<8x16x16xbf16>
    %9 = vector.extract_strided_slice %4 {offsets = [1, 1, 0], sizes = [8, 16, 16], strides = [1, 1, 1]} : vector<10x18x16xbf16> to vector<8x16x16xbf16>
    %10 = vector.extract_strided_slice %4 {offsets = [1, 2, 0], sizes = [8, 16, 16], strides = [1, 1, 1]} : vector<10x18x16xbf16> to vector<8x16x16xbf16>
    %11 = vector.extract_strided_slice %4 {offsets = [2, 0, 0], sizes = [8, 16, 16], strides = [1, 1, 1]} : vector<10x18x16xbf16> to vector<8x16x16xbf16>
    %12 = vector.extract_strided_slice %4 {offsets = [2, 1, 0], sizes = [8, 16, 16], strides = [1, 1, 1]} : vector<10x18x16xbf16> to vector<8x16x16xbf16>
    %13 = vector.extract_strided_slice %4 {offsets = [2, 2, 0], sizes = [8, 16, 16], strides = [1, 1, 1]} : vector<10x18x16xbf16> to vector<8x16x16xbf16>
    %14 = tpu.concatenate %5, %6, %7, %8, %9, %10, %11, %12, %13 in 2 : vector<8x16x16xbf16>, vector<8x16x16xbf16>, vector<8x16x16xbf16>, vector<8x16x16xbf16>, vector<8x16x16xbf16>, vector<8x16x16xbf16>, vector<8x16x16xbf16>, vector<8x16x16xbf16>, vector<8x16x16xbf16> -> vector<8x16x144xbf16>
    %15 = vector.shape_cast %14 : vector<8x16x144xbf16> to vector<128x144xbf16>
    %c0_2 = arith.constant 0 : index
    %c0_3 = arith.constant 0 : index
    %16 = vector.load %arg4[%c0_2, %c0_3] : memref<144x64xbf16, #tpu.memory_space<vmem>>, vector<144x64xbf16>
    %cst = arith.constant dense<0.000000e+00> : vector<128x64xf32>
    %17 = tpu.matmul %15, %16, %cst {dimension_numbers = #tpu.dot_dimension_numbers<[1], [0], [0], [1], [0, 0, 1, 1], [], []>} : vector<128x144xbf16>, vector<144x64xbf16>, vector<128x64xf32> -> vector<128x64xf32>
    %c0_4 = arith.constant 0 : index
    %c0_5 = arith.constant 0 : index
    %18 = vector.load %arg5[%c0_4, %c0_5] : memref<1x64xf32, #tpu.memory_space<vmem>>, vector<1x64xf32>
    %19 = vector.broadcast %18 : vector<1x64xf32> to vector<128x64xf32>
    %20 = arith.addf %17, %19 : vector<128x64xf32>
    %cst_6 = arith.constant 0.000000e+00 : f32
    %21 = vector.broadcast %cst_6 : f32 to vector<128x64xf32>
    %22 = arith.maximumf %20, %21 : vector<128x64xf32>
    %23 = vector.shape_cast %22 : vector<128x64xf32> to vector<8x16x64xf32>
    %24 = arith.truncf %23 : vector<8x16x64xf32> to vector<8x16x64xbf16>
    %c0_7 = arith.constant 0 : index
    %c0_8 = arith.constant 0 : index
    %c0_9 = arith.constant 0 : index
    %c0_10 = arith.constant 0 : index
    %25 = vector.load %arg6[%c0_7, %c0_8, %c0_9, %c0_10] : memref<1x8x16x64xbf16, #tpu.memory_space<vmem>>, vector<1x8x16x64xbf16>
    %26 = vector.shape_cast %25 : vector<1x8x16x64xbf16> to vector<8x16x64xbf16>
    %27 = vector.shape_cast %24 : vector<8x16x64xbf16> to vector<1x8x16x64xbf16>
    tpu.vector_store %arg6[%c0_7, %c0_8, %c0_9, %c0_10], %27 {strides = array<i32>} : memref<1x8x16x64xbf16, #tpu.memory_space<vmem>>, vector<1x8x16x64xbf16>,
    return
  }
  func.func @transform_0(%arg0: i32, %arg1: i32, %arg2: i32) -> (i32, i32, i32, i32) {
    %c0_i32 = arith.constant 0 : i32
    %c0_i32_0 = arith.constant 0 : i32
    %c0_i32_1 = arith.constant 0 : i32
    %c0_i32_2 = arith.constant 0 : i32
    return %arg0, %c0_i32, %c0_i32_0, %c0_i32_1 : i32, i32, i32, i32
  }
  func.func @transform_1(%arg0: i32, %arg1: i32, %arg2: i32) -> (i32, i32) {
    %c0_i32 = arith.constant 0 : i32
    %c0_i32_0 = arith.constant 0 : i32
    return %c0_i32, %arg2 : i32, i32
  }
  func.func @transform_2(%arg0: i32, %arg1: i32, %arg2: i32) -> (i32, i32) {
    %c0_i32 = arith.constant 0 : i32
    %c0_i32_0 = arith.constant 0 : i32
    return %c0_i32, %arg2 : i32, i32
  }
  func.func @transform_3(%arg0: i32, %arg1: i32, %arg2: i32) -> (i32, i32, i32, i32) {
    %c0_i32 = arith.constant 0 : i32
    %c0_i32_0 = arith.constant 0 : i32
    return %arg0, %arg1, %c0_i32, %arg2 : i32, i32, i32, i32
  }
}

module attributes {stable_mosaic.version = 11 : i64} {
  func.func @_fa_branch_kernel(%arg0: i32, %arg1: i32, %arg2: memref<1x18x18x64xbf16, #tpu.memory_space<vmem>>, %arg3: memref<1x64x16xbf16, #tpu.memory_space<vmem>>, %arg4: memref<144x16xbf16, #tpu.memory_space<vmem>>, %arg5: memref<16x64xbf16, #tpu.memory_space<vmem>>, %arg6: memref<1x8x16x64xf32, #tpu.memory_space<vmem>>) attributes {dimension_semantics = [#tpu.dimension_semantics<parallel>, #tpu.dimension_semantics<parallel>], iteration_bounds = array<i64: 2, 2>, scalar_prefetch = 0 : i64, scratch_operands = 0 : i64, tpu.core_type = #tpu.core_type<tc>, window_params = [{transform_indices = @transform_0, window_bounds = array<i64: 1, 18, 18, 64>}, {transform_indices = @transform_1, window_bounds = array<i64: 1, 64, 16>}, {pipeline_mode = #tpu.pipeline_mode<synchronous>, transform_indices = @transform_2, window_bounds = array<i64: 144, 16>}, {pipeline_mode = #tpu.pipeline_mode<synchronous>, transform_indices = @transform_3, window_bounds = array<i64: 16, 64>}, {transform_indices = @transform_4, window_bounds = array<i64: 1, 8, 16, 64>}]} {
    %c8_i32 = arith.constant 8 : i32
    %0 = arith.muli %arg1, %c8_i32 : i32
    %1 = tpu.assume_multiple %0, 8 : i32
    %c0 = arith.constant 0 : index
    %2 = arith.index_cast %1 : i32 to index
    %c0_0 = arith.constant 0 : index
    %c0_1 = arith.constant 0 : index
    %3 = vector.load %arg2[%c0, %2, %c0_0, %c0_1] : memref<1x18x18x64xbf16, #tpu.memory_space<vmem>>, vector<1x10x18x64xbf16>
    %4 = vector.shape_cast %3 : vector<1x10x18x64xbf16> to vector<10x18x64xbf16>
    %5 = vector.shape_cast %4 : vector<10x18x64xbf16> to vector<180x64xbf16>
    %c0_2 = arith.constant 0 : index
    %c0_3 = arith.constant 0 : index
    %c0_4 = arith.constant 0 : index
    %6 = vector.load %arg3[%c0_2, %c0_3, %c0_4] : memref<1x64x16xbf16, #tpu.memory_space<vmem>>, vector<1x64x16xbf16>
    %7 = vector.shape_cast %6 : vector<1x64x16xbf16> to vector<64x16xbf16>
    %cst = arith.constant dense<0.000000e+00> : vector<180x16xf32>
    %8 = tpu.matmul %5, %7, %cst {dimension_numbers = #tpu.dot_dimension_numbers<[1], [0], [0], [1], [0, 0, 1, 1], [], []>} : vector<180x64xbf16>, vector<64x16xbf16>, vector<180x16xf32> -> vector<180x16xf32>
    %9 = arith.truncf %8 : vector<180x16xf32> to vector<180x16xbf16>
    %10 = vector.shape_cast %9 : vector<180x16xbf16> to vector<10x18x16xbf16>
    %11 = vector.extract_strided_slice %10 {offsets = [0, 0, 0], sizes = [8, 16, 16], strides = [1, 1, 1]} : vector<10x18x16xbf16> to vector<8x16x16xbf16>
    %12 = vector.extract_strided_slice %10 {offsets = [0, 1, 0], sizes = [8, 16, 16], strides = [1, 1, 1]} : vector<10x18x16xbf16> to vector<8x16x16xbf16>
    %13 = vector.extract_strided_slice %10 {offsets = [0, 2, 0], sizes = [8, 16, 16], strides = [1, 1, 1]} : vector<10x18x16xbf16> to vector<8x16x16xbf16>
    %14 = vector.extract_strided_slice %10 {offsets = [1, 0, 0], sizes = [8, 16, 16], strides = [1, 1, 1]} : vector<10x18x16xbf16> to vector<8x16x16xbf16>
    %15 = vector.extract_strided_slice %10 {offsets = [1, 1, 0], sizes = [8, 16, 16], strides = [1, 1, 1]} : vector<10x18x16xbf16> to vector<8x16x16xbf16>
    %16 = vector.extract_strided_slice %10 {offsets = [1, 2, 0], sizes = [8, 16, 16], strides = [1, 1, 1]} : vector<10x18x16xbf16> to vector<8x16x16xbf16>
    %17 = vector.extract_strided_slice %10 {offsets = [2, 0, 0], sizes = [8, 16, 16], strides = [1, 1, 1]} : vector<10x18x16xbf16> to vector<8x16x16xbf16>
    %18 = vector.extract_strided_slice %10 {offsets = [2, 1, 0], sizes = [8, 16, 16], strides = [1, 1, 1]} : vector<10x18x16xbf16> to vector<8x16x16xbf16>
    %19 = vector.extract_strided_slice %10 {offsets = [2, 2, 0], sizes = [8, 16, 16], strides = [1, 1, 1]} : vector<10x18x16xbf16> to vector<8x16x16xbf16>
    %20 = tpu.concatenate %11, %12, %13, %14, %15, %16, %17, %18, %19 in 2 : vector<8x16x16xbf16>, vector<8x16x16xbf16>, vector<8x16x16xbf16>, vector<8x16x16xbf16>, vector<8x16x16xbf16>, vector<8x16x16xbf16>, vector<8x16x16xbf16>, vector<8x16x16xbf16>, vector<8x16x16xbf16> -> vector<8x16x144xbf16>
    %21 = vector.shape_cast %20 : vector<8x16x144xbf16> to vector<128x144xbf16>
    %c0_5 = arith.constant 0 : index
    %c0_6 = arith.constant 0 : index
    %22 = vector.load %arg4[%c0_5, %c0_6] : memref<144x16xbf16, #tpu.memory_space<vmem>>, vector<144x16xbf16>
    %cst_7 = arith.constant dense<0.000000e+00> : vector<128x16xf32>
    %23 = tpu.matmul %21, %22, %cst_7 {dimension_numbers = #tpu.dot_dimension_numbers<[1], [0], [0], [1], [0, 0, 1, 1], [], []>} : vector<128x144xbf16>, vector<144x16xbf16>, vector<128x16xf32> -> vector<128x16xf32>
    %24 = arith.truncf %23 : vector<128x16xf32> to vector<128x16xbf16>
    %c0_8 = arith.constant 0 : index
    %c0_9 = arith.constant 0 : index
    %25 = vector.load %arg5[%c0_8, %c0_9] : memref<16x64xbf16, #tpu.memory_space<vmem>>, vector<16x64xbf16>
    %cst_10 = arith.constant dense<0.000000e+00> : vector<128x64xf32>
    %26 = tpu.matmul %24, %25, %cst_10 {dimension_numbers = #tpu.dot_dimension_numbers<[1], [0], [0], [1], [0, 0, 1, 1], [], []>} : vector<128x16xbf16>, vector<16x64xbf16>, vector<128x64xf32> -> vector<128x64xf32>
    %27 = vector.extract_strided_slice %4 {offsets = [1, 1, 0], sizes = [8, 16, 64], strides = [1, 1, 1]} : vector<10x18x64xbf16> to vector<8x16x64xbf16>
    %28 = vector.shape_cast %27 : vector<8x16x64xbf16> to vector<128x64xbf16>
    %29 = arith.extf %28 : vector<128x64xbf16> to vector<128x64xf32>
    %30 = arith.addf %26, %29 : vector<128x64xf32>
    %31 = vector.shape_cast %30 : vector<128x64xf32> to vector<8x16x64xf32>
    %c0_11 = arith.constant 0 : index
    %c0_12 = arith.constant 0 : index
    %c0_13 = arith.constant 0 : index
    %c0_14 = arith.constant 0 : index
    %32 = vector.load %arg6[%c0_11, %c0_12, %c0_13, %c0_14] : memref<1x8x16x64xf32, #tpu.memory_space<vmem>>, vector<1x8x16x64xf32>
    %33 = vector.shape_cast %32 : vector<1x8x16x64xf32> to vector<8x16x64xf32>
    %34 = vector.shape_cast %31 : vector<8x16x64xf32> to vector<1x8x16x64xf32>
    tpu.vector_store %arg6[%c0_11, %c0_12, %c0_13, %c0_14], %34 {strides = array<i32>} : memref<1x8x16x64xf32, #tpu.memory_space<vmem>>, vector<1x8x16x64xf32>,
    return
  }
  func.func @transform_0(%arg0: i32, %arg1: i32) -> (i32, i32, i32, i32) {
    %c0_i32 = arith.constant 0 : i32
    %c0_i32_0 = arith.constant 0 : i32
    %c0_i32_1 = arith.constant 0 : i32
    %c0_i32_2 = arith.constant 0 : i32
    return %arg0, %c0_i32, %c0_i32_0, %c0_i32_1 : i32, i32, i32, i32
  }
  func.func @transform_1(%arg0: i32, %arg1: i32) -> (i32, i32, i32) {
    %c0_i32 = arith.constant 0 : i32
    %c0_i32_0 = arith.constant 0 : i32
    %c0_i32_1 = arith.constant 0 : i32
    return %arg0, %c0_i32, %c0_i32_0 : i32, i32, i32
  }
  func.func @transform_2(%arg0: i32, %arg1: i32) -> (i32, i32) {
    %c0_i32 = arith.constant 0 : i32
    %c0_i32_0 = arith.constant 0 : i32
    %c0_i32_1 = arith.constant 0 : i32
    return %c0_i32, %c0_i32_0 : i32, i32
  }
  func.func @transform_3(%arg0: i32, %arg1: i32) -> (i32, i32) {
    %c0_i32 = arith.constant 0 : i32
    %c0_i32_0 = arith.constant 0 : i32
    %c0_i32_1 = arith.constant 0 : i32
    return %c0_i32, %c0_i32_0 : i32, i32
  }
  func.func @transform_4(%arg0: i32, %arg1: i32) -> (i32, i32, i32, i32) {
    %c0_i32 = arith.constant 0 : i32
    %c0_i32_0 = arith.constant 0 : i32
    %c0_i32_1 = arith.constant 0 : i32
    return %arg0, %arg1, %c0_i32, %c0_i32_0 : i32, i32, i32, i32
  }
}

</mosaic_0001>

<bundles_post_ra>
// kernel: quantize_bottleneck_v2_forward.9
= control target key start
LH: loop header
LB: loop body
LE: loop exit
PB: predicated region body
PF: predicated region fallthrough
CT: control target
= control target key end

     0   :  { %s1429_s12 = smov 0   ;;  %s1431_s13 = smov 0   ;;  %s1888_s0 = inlined_call_operand.vmem [shape: bf16[2,18,18,16], index: 0, kind: input, shape index: {}]   ;;  %s1889_s1 = inlined_call_operand.vmem [shape: bf16[144,16], index: 1, kind: input, shape index: {}]   ;;  %s1890_s2 = inlined_call_operand.vmem [shape: f32[1,16], index: 2, kind: input, shape index: {}]   ;;  %s1891_s3 = inlined_call_operand.vmem [shape: bf16[2,16,16,16], index: 3, kind: output, shape index: {}]  }
   0x1   :  { %s1433_s14 = smov 0   ;;  %s1435_s15 = smov 0  }
   0x2   :  { %s1437_s16 = smov 0  }
   0x3 LB: > { %s28_s17 = sadd.s32 1, %s1391_s14  ;;  %s32_s18 = sadd.s32 1, %s1395_s15  ;;  %s1399_s16 = sphi %s1437_s16, %s13_s16   ;;  %s1395_s15 = sphi %s1435_s15, %s1895_s15   ;;  %s1391_s14 = sphi %s1433_s14, %s1894_s14   ;;  %s1387_s13 = sphi %s1431_s13, %s1893_s13   ;;  %s1383_s12 = sphi %s1429_s12, %s1892_s12  }
   0x4   : > { %p30_p0 = scmp.ge.s32.totalorder %s28_s17, 2  ;;  %p1183_p1 = scmp.ge.s32.totalorder %s1399_s16, 1 }
   0x5   : > { %p177_p2 = scmp.lt.s32.totalorder %s1399_s16, 5 }
   0x6   : > { %s1897_s17 = smov (%p30_p0, %s28_s17), 0  ;;  %s1899_s18 = smov (!%p30_p0, %s32_s18), %s1395_s15 }
   0x7   : > { %p178_p3 = pnand %p1183_p1, %p177_p2  ;;  %p34_p4 = scmp.ge.s32.totalorder %s1899_s18, 2 }
   0x8   : > { %p216_p5 = scmp.lt.s32.totalorder (!%p178_p3), %s1387_s13, 1  ;;  %s1248_s21 = smul.u32 (!%p178_p3), 96, %s1383_s12 }
   0x9   : > { %s1901_s18 = smov (%p34_p4, %s1899_s18), 0  ;;  %181 = sbr.rel (%p178_p3) target bundleno = 450 (0x1c2), region = 32 }
   0xa   : > { %s1402_s4 = smov (!%p178_p3), 48   ;;  %s1403_s9 = smov (!%p178_p3), 80  }
   0xb   : > { %s1404_s10 = smov (!%p178_p3), 32   ;;  %s1405_s11 = smov (!%p178_p3), 16  }
   0xc   : > { %s1406_s19 = smov (!%p178_p3), 64   ;;  %s1407_s20 = smov (!%p178_p3), 96  }
   0xd   : > { %s1408_s25 = smov (!%p178_p3), 112  }
   0xe   : > { %v1401_v0 = vmov 0   ;;  %s1903_s13 = smov (!%p216_p5, %s1387_s13), 1  ;;  %v1351_v1 = vld [vmem:[%s1889_s1 + $0x38] sm:$0xff]   ;;  %v1353_v2 = vld [vmem:[%s1889_s1 + $0x30] sm:$0xff]   ;;  %vm454_vm0 = vcmask 1046528   ;;  %v1354_v3 = vld [vmem:[%s1889_s1 + $0x28] sm:$0xff]  }
   0xf   : > { %851 = vmatprep.subr.bf16.mxu0 %v1401_v0  ;;  %1265 = vmatprep.subr.bf16.mxu1 %v1401_v0  ;;  %s1283_s22 = smul.u32 216, %s1903_s13  ;;  %vm341_vm1 = vsmask.f32 7424  ;;  %v1355_v8 = vld [vmem:[%s1889_s1 + $0x20] sm:$0xff]   ;;  %v1356_v18 = vld [vmem:[%s1889_s1 + $0x18] sm:$0xff]   ;;  %vm621_vm2 = vcmask 130048  }
  0x10   : > { %852 = vmatpush1.bf16.msra.mxu0 %v1351_v1  ;;  %1274 = vmatpush1.bf16.msra.mxu1 %v1351_v1  ;;  %vm638_vm3 = vcmask 261120   ;;  %vm655_vm4 = vcmask 392192   ;;  %vm672_vm5 = vcmask 523264   ;;  %vm689_vm6 = vcmask 654336   ;;  %s1187_s5 = sshll.u32 %s1903_s13, 5 }
  0x11   : > { %853 = vmatprep.subr.bf16.mxu0 %v1401_v0  ;;  %1266 = vmatprep.subr.bf16.mxu1 %v1401_v0  ;;  %s220_s27 = scalar_lea.vmem %s1888_s0, %s1283_s22  ;;  %vm706_vm7 = vcmask 785408   ;;  %vm723_vm8 = vcmask 916480   ;;  %vm1028_vm9 = vcmask 125952  }
  0x12   : > { %s1478_s28 = scalar_lea.vmem %s220_s27, %s1248_s21 }
  0x13   : > { %v1484_v4 = vld [vmem:[%s1478_s28 + $0x3c] sm:$0xff]   ;;  %v1487_v5 = vld [vmem:[%s1478_s28 + $0xc] sm:$0xff]   ;;  %v1494_v6 = vld [vmem:[%s1478_s28 + $0x14] ss:$0 sps:$4 sm:$0x11]  }
  0x14   : > { %854 = vmatpush1.bf16.msra.mxu0 %v1353_v2  ;;  %1275 = vmatpush1.bf16.msra.mxu1 %v1353_v2  ;;  %v1497_v7 = vld [vmem:[%s1478_s28] sm:$0xff]   ;;  %v458_v9 = vrot.slane %v1487_v5, 1  ;;  %v1506_v10 = vld [vmem:[%s1478_s28 + $0x30] sm:$0xff]   ;;  %v459_v11 = vrot.slane %v1494_v6, 1  ;;  %v470_v22 = vrot.slane %v1484_v4, 1  ;;  %v403_v31 = vshrl.u32 %v1484_v4, 16 }
  0x15   : > { %855 = vmatprep.subr.bf16.mxu0 %v1401_v0  ;;  %1267 = vmatprep.subr.bf16.mxu1 %v1401_v0  ;;  %v1336_v12 = vld [vmem:[%s1478_s28 + $0x8] ss:$0 sps:$4 sm:$0x11]   ;;  %v455_v13 = vrot.slane %v1497_v7, 1  ;;  %v467_v14 = vrot.slane %v1506_v10, 1  ;;  %v343_v19 = vshrl.u32 %v1497_v7, 16 }
  0x16   : > { %508 = vrot.lane.b32.xlu1 %v1484_v4, %s1402_s4  ;;  %500 = vrot.lane.b32.xlu0 %v1487_v5, %s1402_s4  ;;  %v1515_v15 = vsel %vm454_vm0, %v458_v9, %v459_v11  ;;  %v456_v16 = vrot.slane %v1336_v12, 1  ;;  %v1338_v17 = vld [vmem:[%s1478_s28 + $0x38] ss:$0 sps:$4 sm:$0x11]   ;;  %v345_v20 = vshll.u32 %v1497_v7, 16  ;;  %v350_v21 = vshll.u32 %v1336_v12, 16 }
  0x17   : > { %v468_v24 = vrot.slane %v1338_v17, 1  ;;  %v1339_v25 = vld [vmem:[%s1478_s28 + $0x44] ss:$0 sps:$4 sm:$0x11]   ;;  %v391_v26 = vshrl.u32 %v1506_v10, 16  ;;  %v393_v27 = vshll.u32 %v1506_v10, 16 }
  0x18   : > { %856 = vmatpush1.bf16.msra.mxu0 %v1354_v3  ;;  %1276 = vmatpush1.bf16.msra.mxu1 %v1354_v3  ;;  %v457_v23 = vsel %vm454_vm0, %v455_v13, %v456_v16  ;;  %v347_v28 = vrot.slane %v345_v20, 1  ;;  %v352_v29 = vrot.slane %v350_v21, 1  ;;  %v398_v30 = vshll.u32 %v1338_v17, 16  ;;  %v1538_v36 = vld [vmem:[%s1478_s28 + $0x48] sm:$0xff]   ;;  %v1543_v41 = vld [vmem:[%s1478_s28 + $0x18] sm:$0xff]   ;;  %v1586_v13 = vld [vmem:[%s1478_s28 + $0x60] sm:$0xff]  }
  0x19   : > { %857 = vmatprep.subr.bf16.mxu0 %v1401_v0  ;;  %1268 = vmatprep.subr.bf16.mxu1 %v1401_v0  ;;  %v1534_v32 = vsel %vm454_vm0, %v467_v14, %v468_v24  ;;  %v471_v33 = vrot.slane %v1339_v25, 1  ;;  %v395_v34 = vrot.slane %v393_v27, 1  ;;  %v405_v35 = vshll.u32 %v1484_v4, 16  ;;  %v1342_v48 = vld [vmem:[%s1478_s28 + $0x50] ss:$0 sps:$4 sm:$0x11]  }
  0x1a   : > { %550 = vrot.lane.b32.xlu0 %v1515_v15, %s1403_s9  ;;  %479 = vrot.lane.b32.xlu1 %v457_v23, %s1404_s10  ;;  %v348_v37 = vor.u32 %v347_v28, %v343_v19  ;;  %v400_v38 = vrot.slane %v398_v30, 1  ;;  %v410_v39 = vshll.u32 %v1339_v25, 16  ;;  %v355_v40 = vshrl.u32 %v1487_v5, 16  ;;  %v1343_v55 = vld [vmem:[%s1478_s28 + $0x20] ss:$0 sps:$4 sm:$0x11]  }
  0x1b   : > { %v396_v42 = vor.u32 %v395_v34, %v391_v26  ;;  %v407_v43 = vrot.slane %v405_v35, 1  ;;  %v357_v44 = vshll.u32 %v1487_v5, 16  ;;  %v362_v47 = vshll.u32 %v1494_v6, 16  ;;  %v1592_v19 = vld [vmem:[%s1478_s28 + $0x68] ss:$0 sps:$4 sm:$0x11]  }
  0x1c   : > { %858 = vmatpush1.bf16.msra.mxu0 %v1355_v8  ;;  %1277 = vmatpush1.bf16.msra.mxu1 %v1355_v8  ;;  %v353_v45 = vsel %vm341_vm1, %v348_v37, %v352_v29  ;;  %v412_v46 = vrot.slane %v410_v39, 1  ;;  %v1554_v49 = vsel %vm454_vm0, %v470_v22, %v471_v33  ;;  %v417_v52 = vshll.u32 %v1538_v36, 16  ;;  %v1357_v24 = vld [vmem:[%s1889_s1 + $0x10] sm:$0xff]   ;;  %v1358_v28 = vld [vmem:[%s1889_s1 + $0x8] sm:$0xff]   ;;  %v1360_v33 = vld [vmem:[%s1889_s1 + $0x40] sm:$0xff]  }
  0x1d   : > { %859 = vmatprep.subr.bf16.mxu0 %v1401_v0  ;;  %1269 = vmatprep.subr.bf16.mxu1 %v1401_v0  ;;  %v408_v50 = vor.u32 %v407_v43, %v403_v31  ;;  %v359_v51 = vrot.slane %v357_v44, 1  ;;  %v1559_v53 = vsel %vm341_vm1, %v396_v42, %v400_v38  ;;  %v364_v54 = vrot.slane %v362_v47, 1  ;;  %v1359_v31 = vld [vmem:[%s1889_s1] sm:$0xff]   ;;  %v1633_v34 = vld [vmem:[%s1478_s28 + $0x54] sm:$0xff]  }
  0x1e   : > { %487 = vrot.lane.b32.xlu1 %v1534_v32, %s1404_s10  ;;  %438 = vrot.lane.b32.xlu0 %v353_v45, %s1405_s11  ;;  %v415_v57 = vshrl.u32 %v1538_v36, 16  ;;  %v422_v58 = vshll.u32 %v1342_v48, 16  ;;  %v369_v59 = vshll.u32 %v1543_v41, 16  ;;  %v419_v60 = vrot.slane %v417_v52, 1  ;;  %v1637_v35 = vld [vmem:[%s1478_s28 + $0x24] sm:$0xff]  }
  0x1f   : > { %v360_v56 = vor.u32 %v359_v51, %v355_v40  ;;  %v367_v61 = vshrl.u32 %v1543_v41, 16  ;;  %v473_v62 = vrot.slane %v1538_v36, 1  ;;  %v474_v63 = vrot.slane %v1342_v48, 1  ;;  %v1346_v37 = vld [vmem:[%s1478_s28 + $0x5c] ss:$0 sps:$4 sm:$0x11]  }
  0x20   : > { %860 = vmatpush1.bf16.msra.mxu0 %v1356_v18  ;;  %1278 = vmatpush1.bf16.msra.mxu1 %v1356_v18  ;;  %v1571_v1 = vsel %vm341_vm1, %v408_v50, %v412_v46  ;;  %v374_v2 = vshll.u32 %v1343_v55, 16  ;;  %v461_v3 = vrot.slane %v1543_v41, 1  ;;  %v371_v8 = vrot.slane %v369_v59, 1  ;;  %v1347_v39 = vld [vmem:[%s1478_s28 + $0x2c] ss:$0 sps:$4 sm:$0x11]  }
  0x21   : > { %861 = vmatprep.subr.bf16.mxu0 %v1401_v0  ;;  %1270 = vmatprep.subr.bf16.mxu1 %v1401_v0  ;;  %v365_v6 = vsel %vm341_vm1, %v360_v56, %v364_v54  ;;  %v1576_v9 = vsel %vm454_vm0, %v473_v62, %v474_v63  ;;  %v462_v11 = vrot.slane %v1343_v55, 1  ;;  %v420_v14 = vor.u32 %v419_v60, %v415_v57  ;;  %v1702_v60 = vld [vmem:[%s1478_s28 + $0x6c] sm:$0xff]   ;;  %v1711_v63 = vld [vmem:[%s1478_s28 + $0x74] ss:$0 sps:$4 sm:$0x11]   ;;  %s1185_s28 = sshll.u32 %s1383_s12, 3 }
  0x22   : > { %558 = vrot.lane.b32.xlu1 %v1554_v49, %s1403_s9  ;;  %446 = vrot.lane.b32.xlu0 %v1559_v53, %s1405_s11  ;;  %v424_v16 = vrot.slane %v422_v58, 1  ;;  %v372_v17 = vor.u32 %v371_v8, %v367_v61  ;;  %v376_v18 = vrot.slane %v374_v2, 1  ;;  %v520_v20 = vshrl.u32 %v1586_v13, 16  ;;  %p231_p6 = scmp.lt.s32.totalorder %s1185_s28, 15 }
  0x23   : > { %1226 = vmatprep.mubr.msk.bf16.mxu1 %vm621_vm2, %v1576_v9  ;;  %v1583_v12 = vsel %vm454_vm0, %v461_v3, %v462_v11  ;;  %v522_v21 = vshll.u32 %v1586_v13, 16  ;;  %v527_v23 = vshll.u32 %v1592_v19, 16  ;;  %v429_v38 = vshll.u32 %v1633_v34, 16 }
  0x24   : > { %1222 = vmatprep.mubr.msk.bf16.mxu0 %vm621_vm2, %v1583_v12  ;;  %v425_v22 = vsel %vm341_vm1, %v420_v14, %v424_v16  ;;  %v377_v25 = vsel %vm341_vm1, %v372_v17, %v376_v18  ;;  %862 = vmatpush1.bf16.msra.mxu0 %v1357_v24  ;;  %v434_v42 = vshll.u32 %v1346_v37, 16  ;;  %v379_v43 = vshrl.u32 %v1637_v35, 16  ;;  %s1905_s28 = smov (!%p231_p6, %s1185_s28), 15 }
  0x25   : > { %v524_v26 = vrot.slane %v522_v21, 1  ;;  %v529_v27 = vrot.slane %v527_v23, 1  ;;  %1279 = vmatpush1.bf16.msra.mxu1 %v1357_v24  ;;  %863 = vmatprep.subr.bf16.mxu0 %v1401_v0  ;;  %v431_v40 = vrot.slane %v429_v38, 1  ;;  %v386_v45 = vshll.u32 %v1347_v39, 16 }
  0x26   : > { %539 = vrot.lane.b32.xlu1 %v1571_v1, %s1406_s19  ;;  %531 = vrot.lane.b32.xlu0 %v365_v6, %s1406_s19  ;;  %v436_v47 = vrot.slane %v434_v42, 1  ;;  %v476_v54 = vrot.slane %v1633_v34, 1  ;;  %v477_v55 = vrot.slane %v1346_v37, 1  ;;  %v464_v56 = vrot.slane %v1637_v35, 1 }
  0x27   : > { %v525_v29 = vor.u32 %v524_v26, %v520_v20  ;;  %1271 = vmatprep.subr.bf16.mxu1 %v1401_v0  ;;  %v388_v50 = vrot.slane %v386_v45, 1  ;;  %v465_v57 = vrot.slane %v1347_v39, 1  ;;  %v547_v61 = vrot.slane %v1586_v13, 1 }
  0x28   : > { %864 = vmatpush1.bf16.msra.mxu0 %v1358_v28  ;;  %v1678_v58 = vsel %vm454_vm0, %v476_v54, %v477_v55  ;;  %v548_v62 = vrot.slane %v1592_v19, 1  ;;  %v593_v2 = vshll.u32 %v1702_v60, 16 }
  0x29   : > { %v1614_v30 = vsel %vm341_vm1, %v525_v29, %v529_v27  ;;  %1280 = vmatpush1.bf16.msra.mxu1 %v1358_v28  ;;  %865 = vmatprep.subr.bf16.mxu0 %v1401_v0  ;;  %v1681_v59 = vsel %vm454_vm0, %v464_v56, %v465_v57 }
  0x2a   : > { %579 = vrot.lane.b32.xlu1 %v1538_v36, %s1407_s20  ;;  %571 = vrot.lane.b32.xlu0 %v1543_v41, %s1407_s20  ;;  %v1719_v3 = vsel %vm454_vm0, %v547_v61, %v548_v62  ;;  %v595_v8 = vrot.slane %v593_v2, 1 }
  0x2b   : > { %1272 = vmatprep.subr.bf16.mxu1 %v1401_v0 }
  0x2c   : > { %866 = vmatpush1.bf16.msra.mxu0 %v1359_v31 }
  0x2d   : > { %1281 = vmatpush1.bf16.msra.mxu1 %v1359_v31  ;;  %881 = vmatprep.subr.bf16.mxu0 %v1401_v0 }
  0x2e   : > { %610 = vrot.lane.b32.xlu1 %v425_v22, %s1408_s25  ;;  %602 = vrot.lane.b32.xlu0 %v377_v25, %s1408_s25 }
  0x2f   : > { %1273 = vmatprep.subr.bf16.mxu1 %v1401_v0  ;;  %v427_v0 = vshrl.u32 %v1633_v34, 16 }
  0x30   : > { %882 = vmatpush2.bf16.msra.mxu0 %v1360_v33 }
  0x31   : > { %1282 = vmatpush2.bf16.msra.mxu1 %v1360_v33  ;;  %v432_v46 = vor.u32 %v431_v40, %v427_v0 }
  0x32   : > { %448 = vrot.lane.b32.xlu1 %v1571_v1, %s1405_s11  ;;  %440 = vrot.lane.b32.xlu0 %v365_v6, %s1405_s11  ;;  %v591_v6 = vshrl.u32 %v1702_v60, 16 }
  0x33   : > { %v437_v51 = vsel %vm341_vm1, %v432_v46, %v436_v47 }
  0x34   : > { %v596_v11 = vor.u32 %v595_v8, %v591_v6 }
  0x36   : > { %489 = vrot.lane.b32.xlu1 %v1554_v49, %s1404_s10  ;;  %481 = vrot.lane.b32.xlu0 %v1515_v15, %s1404_s10  ;;  %v381_v15 = vshll.u32 %v1637_v35, 16 }
  0x38   : > { %v383_v44 = vrot.slane %v381_v15, 1 }
  0x3a   : > { %510 = vrot.lane.b32.xlu1 %v1538_v36, %s1402_s4  ;;  %502 = vrot.lane.b32.xlu0 %v1543_v41, %s1402_s4  ;;  %v384_v48 = vor.u32 %v383_v44, %v379_v43 }
  0x3c   : > { %v389_v52 = vsel %vm341_vm1, %v384_v48, %v388_v50 }
  0x3e   : > { %541 = vrot.lane.b32.xlu1 %v425_v22, %s1406_s19  ;;  %533 = vrot.lane.b32.xlu0 %v377_v25, %s1406_s19 }
  0x42   : > { %560 = vrot.lane.b32.xlu1 %v1576_v9, %s1403_s9  ;;  %552 = vrot.lane.b32.xlu0 %v1583_v12, %s1403_s9 }
  0x46   : > { %581 = vrot.lane.b32.xlu1 %v1633_v34, %s1407_s20  ;;  %573 = vrot.lane.b32.xlu0 %v1637_v35, %s1407_s20 }
  0x4a   : > { %612 = vrot.lane.b32.xlu1 %v437_v51, %s1408_s25  ;;  %604 = vrot.lane.b32.xlu0 %v389_v52, %s1408_s25 }
  0x4e   : > { %450 = vrot.lane.b32.xlu1 %v425_v22, %s1405_s11  ;;  %442 = vrot.lane.b32.xlu0 %v377_v25, %s1405_s11 }
  0x52   : > { %491 = vrot.lane.b32.xlu1 %v1576_v9, %s1404_s10  ;;  %483 = vrot.lane.b32.xlu0 %v1583_v12, %s1404_s10  ;;  %v598_v9 = vshll.u32 %v1711_v63, 16 }
  0x54   : > { %v600_v12 = vrot.slane %v598_v9, 1 }
  0x56   : > { %512 = vrot.lane.b32.xlu1 %v1633_v34, %s1402_s4  ;;  %504 = vrot.lane.b32.xlu0 %v1637_v35, %s1402_s4 }
  0x5a   : > { %543 = vrot.lane.b32.xlu1 %v437_v51, %s1406_s19  ;;  %535 = vrot.lane.b32.xlu0 %v389_v52, %s1406_s19 }
  0x5e   : > { %562 = vrot.lane.b32.xlu1 %v1678_v58, %s1403_s9  ;;  %554 = vrot.lane.b32.xlu0 %v1681_v59, %s1403_s9 }
  0x62   : > { %583 = vrot.lane.b32.xlu1 %v1586_v13, %s1407_s20  ;;  %575 = vrot.lane.b32.xlu0 %v1506_v10, %s1407_s20 }
  0x66   : > { %614 = vrot.lane.b32.xlu1 %v1614_v30, %s1408_s25  ;;  %606 = vrot.lane.b32.xlu0 %v1559_v53, %s1408_s25 }
  0x6a   : > { %452 = vrot.lane.b32.xlu1 %v437_v51, %s1405_s11  ;;  %444 = vrot.lane.b32.xlu0 %v389_v52, %s1405_s11 }
  0x6e   : > { %493 = vrot.lane.b32.xlu1 %v1678_v58, %s1404_s10  ;;  %485 = vrot.lane.b32.xlu0 %v1681_v59, %s1404_s10 }
  0x72   : > { %514 = vrot.lane.b32.xlu1 %v1586_v13, %s1402_s4  ;;  %506 = vrot.lane.b32.xlu0 %v1506_v10, %s1402_s4  ;;  %s1186_s4 = sshll.u32 %s1905_s28, 1 }
  0x73   : > { %s238_s6 = sadd.s32 %s1187_s5, %s1186_s4 }
  0x76   : > { %545 = vrot.lane.b32.xlu1 %v1614_v30, %s1406_s19  ;;  %537 = vrot.lane.b32.xlu0 %v1559_v53, %s1406_s19  ;;  %v601_v53 = vsel %vm341_vm1, %v596_v11, %v600_v12 }
  0x7a   : > { %564 = vrot.lane.b32.xlu1 %v1719_v3, %s1403_s9  ;;  %556 = vrot.lane.b32.xlu0 %v1534_v32, %s1403_s9  ;;  %s1188_s9 = sshll.u32 %s238_s6, 2 }
  0x7b   : > { %s1825_s13 = scalar_lea.vmem %s1891_s3, %s1188_s9 }
  0x7e   : > { %585 = vrot.lane.b32.xlu1 %v1702_v60, %s1407_s20  ;;  %577 = vrot.lane.b32.xlu0 %v1484_v4, %s1407_s20 }
  0x82   : > { %616 = vrot.lane.b32.xlu1 %v601_v53, %s1408_s25  ;;  %608 = vrot.lane.b32.xlu0 %v1571_v1, %s1408_s25 }
  0x88   : > { %v509_v13 = vpop.permute.xlu1 %508  ;;  %v501_v14 = vpop.permute.xlu0 %500 }
  0x8c   : > { %v551_v16 = vpop.permute.xlu0 %550  ;;  %v480_v17 = vpop.permute.xlu1 %479 }
  0x90   : > { %v488_v18 = vpop.permute.xlu1 %487  ;;  %v439_v19 = vpop.permute.xlu0 %438 }
  0x91   : > { %v623_v22 = vsel %vm621_vm2, %v1497_v7, %v439_v19 }
  0x92   : > { %v640_v1 = vsel %vm638_vm3, %v623_v22, %v480_v17 }
  0x93   : > { %v657_v29 = vsel %vm655_vm4, %v640_v1, %v501_v14 }
  0x94   : > { %v559_v20 = vpop.permute.xlu1 %558  ;;  %v447_v21 = vpop.permute.xlu0 %446 }
  0x95   : > { %v631_v23 = vsel %vm621_vm2, %v1506_v10, %v447_v21 }
  0x96   : > { %v648_v24 = vsel %vm638_vm3, %v631_v23, %v488_v18 }
  0x97   : > { %v665_v26 = vsel %vm655_vm4, %v648_v24, %v509_v13 }
  0x98   : > { %v540_v25 = vpop.permute.xlu1 %539  ;;  %v532_v27 = vpop.permute.xlu0 %531 }
  0x99   : > { %v682_v28 = vsel %vm672_vm5, %v665_v26, %v540_v25  ;;  %v674_v7 = vsel %vm672_vm5, %v657_v29, %v532_v27  ;;  %v619_v27 = vrot.slane %v1711_v63, 1 }
  0x9a   : > { %v699_v31 = vsel %vm689_vm6, %v682_v28, %v559_v20  ;;  %v691_v37 = vsel %vm689_vm6, %v674_v7, %v551_v16 }
  0x9c   : > { %v580_v30 = vpop.permute.xlu1 %579  ;;  %v572_v10 = vpop.permute.xlu0 %571 }
  0x9d   : > { %v716_v33 = vsel %vm706_vm7, %v699_v31, %v580_v30  ;;  %v708_v39 = vsel %vm706_vm7, %v691_v37, %v572_v10 }
  0xa0   : > { %v611_v38 = vpop.permute.xlu1 %610  ;;  %v603_v15 = vpop.permute.xlu0 %602 }
  0xa1   : > { %v737_v0 = vsel %vm723_vm8, %v716_v33, %v611_v38  ;;  %v725_v40 = vsel %vm723_vm8, %v708_v39, %v603_v15 }
  0xa2   : > { %916 = vmatmul.mubr.bf16.vlgmr.msra.gmra.mxu1 %v737_v0  ;;  %884 = vmatmul.mubr.bf16.vlgmr.msra.gmra.mxu0 %v725_v40 }
  0xa3   : > { %1227 = vmatprep.mubr.msk.bf16.mxu1 %vm621_vm2, %v1678_v58  ;;  %1223 = vmatprep.mubr.msk.bf16.mxu0 %vm621_vm2, %v1681_v59 }
  0xa4   : > { %v449_v42 = vpop.permute.xlu1 %448  ;;  %v441_v43 = vpop.permute.xlu0 %440 }
  0xa5   : > { %v633_v54 = vsel %vm621_vm2, %v1484_v4, %v449_v42  ;;  %v625_v55 = vsel %vm621_vm2, %v1487_v5, %v441_v43 }
  0xa8   : > { %v490_v44 = vpop.permute.xlu1 %489  ;;  %v482_v45 = vpop.permute.xlu0 %481 }
  0xa9   : > { %v650_v56 = vsel %vm638_vm3, %v633_v54, %v490_v44  ;;  %v642_v58 = vsel %vm638_vm3, %v625_v55, %v482_v45 }
  0xac   : > { %v511_v46 = vpop.permute.xlu1 %510  ;;  %v503_v47 = vpop.permute.xlu0 %502 }
  0xad   : > { %v667_v59 = vsel %vm655_vm4, %v650_v56, %v511_v46  ;;  %v659_v62 = vsel %vm655_vm4, %v642_v58, %v503_v47 }
  0xb0   : > { %v542_v48 = vpop.permute.xlu1 %541  ;;  %v534_v50 = vpop.permute.xlu0 %533 }
  0xb1   : > { %v684_v2 = vsel %vm672_vm5, %v667_v59, %v542_v48  ;;  %v676_v6 = vsel %vm672_vm5, %v659_v62, %v534_v50 }
  0xb4   : > { %v561_v51 = vpop.permute.xlu1 %560  ;;  %v553_v52 = vpop.permute.xlu0 %552 }
  0xb5   : > { %v701_v8 = vsel %vm689_vm6, %v684_v2, %v561_v51  ;;  %v693_v4 = vsel %vm689_vm6, %v676_v6, %v553_v52 }
  0xb8   : > { %v582_v57 = vpop.permute.xlu1 %581  ;;  %v574_v61 = vpop.permute.xlu0 %573 }
  0xb9   : > { %v718_v5 = vsel %vm706_vm7, %v701_v8, %v582_v57  ;;  %v710_v11 = vsel %vm706_vm7, %v693_v4, %v574_v61 }
  0xbc   : > { %v613_v9 = vpop.permute.xlu1 %612  ;;  %v605_v12 = vpop.permute.xlu0 %604 }
  0xbd   : > { %v740_v53 = vsel %vm723_vm8, %v718_v5, %v613_v9  ;;  %v728_v13 = vsel %vm723_vm8, %v710_v11, %v605_v12  ;;  %v1818_v9 = vld [vmem:[%s1890_s2] ss:$0 sm:$0xff] }
  0xbe   : > { %924 = vmatmul.mubr.bf16.gmra.mxu1 %v740_v53  ;;  %892 = vmatmul.mubr.bf16.gmra.mxu0 %v728_v13 }
  0xbf   : > { %1228 = vmatprep.mubr.msk.bf16.mxu1 %vm621_vm2, %v1719_v3  ;;  %1224 = vmatprep.mubr.msk.bf16.mxu0 %vm621_vm2, %v1534_v32  ;;  %v618_v32 = vrot.slane %v1702_v60, 1 }
  0xc0   : > { %v451_v14 = vpop.permute.xlu1 %450  ;;  %v443_v16 = vpop.permute.xlu0 %442 }
  0xc1   : > { %v635_v25 = vsel %vm621_vm2, %v1538_v36, %v451_v14  ;;  %v627_v1 = vsel %vm621_vm2, %v1543_v41, %v443_v16  ;;  %v620_v63 = vsel %vm454_vm0, %v618_v32, %v619_v27 }
  0xc4   : > { %v492_v17 = vpop.permute.xlu1 %491  ;;  %v484_v18 = vpop.permute.xlu0 %483 }
  0xc5   : > { %v652_v3 = vsel %vm638_vm3, %v635_v25, %v492_v17  ;;  %v644_v28 = vsel %vm638_vm3, %v627_v1, %v484_v18 }
  0xc8   : > { %v513_v19 = vpop.permute.xlu1 %512  ;;  %v505_v20 = vpop.permute.xlu0 %504 }
  0xc9   : > { %v669_v29 = vsel %vm655_vm4, %v652_v3, %v513_v19  ;;  %v661_v7 = vsel %vm655_vm4, %v644_v28, %v505_v20 }
  0xcc   : > { %v544_v21 = vpop.permute.xlu1 %543  ;;  %v536_v22 = vpop.permute.xlu0 %535 }
  0xcd   : > { %v686_v10 = vsel %vm672_vm5, %v669_v29, %v544_v21  ;;  %v678_v36 = vsel %vm672_vm5, %v661_v7, %v536_v22 }
  0xd0   : > { %v563_v23 = vpop.permute.xlu1 %562  ;;  %v555_v24 = vpop.permute.xlu0 %554 }
  0xd1   : > { %v703_v41 = vsel %vm689_vm6, %v686_v10, %v563_v23  ;;  %v695_v31 = vsel %vm689_vm6, %v678_v36, %v555_v24 }
  0xd4   : > { %v584_v26 = vpop.permute.xlu1 %583  ;;  %v576_v30 = vpop.permute.xlu0 %575 }
  0xd5   : > { %v720_v33 = vsel %vm706_vm7, %v703_v41, %v584_v26  ;;  %v712_v37 = vsel %vm706_vm7, %v695_v31, %v576_v30 }
  0xd8   : > { %v615_v60 = vpop.permute.xlu1 %614  ;;  %v607_v38 = vpop.permute.xlu0 %606 }
  0xd9   : > { %v743_v39 = vsel %vm723_vm8, %v720_v33, %v615_v60  ;;  %v731_v15 = vsel %vm723_vm8, %v712_v37, %v607_v38 }
  0xda   : > { %932 = vmatmul.mubr.bf16.gmra.mxu1 %v743_v39  ;;  %900 = vmatmul.mubr.bf16.gmra.mxu0 %v731_v15 }
  0xdb   : > { %1229 = vmatprep.mubr.msk.bf16.mxu1 %vm621_vm2, %v620_v63  ;;  %1225 = vmatprep.mubr.msk.bf16.mxu0 %vm621_vm2, %v1554_v49 }
  0xdc   : > { %v453_v0 = vpop.permute.xlu1 %452  ;;  %v445_v40 = vpop.permute.xlu0 %444 }
  0xdd   : > { %v637_v51 = vsel %vm621_vm2, %v1633_v34, %v453_v0  ;;  %v629_v52 = vsel %vm621_vm2, %v1637_v35, %v445_v40 }
  0xe0   : > { %v494_v42 = vpop.permute.xlu1 %493  ;;  %v486_v43 = vpop.permute.xlu0 %485 }
  0xe1   : > { %v654_v54 = vsel %vm638_vm3, %v637_v51, %v494_v42  ;;  %v646_v49 = vsel %vm638_vm3, %v629_v52, %v486_v43 }
  0xe4   : > { %v515_v44 = vpop.permute.xlu1 %514  ;;  %v507_v45 = vpop.permute.xlu0 %506 }
  0xe5   : > { %v671_v56 = vsel %vm655_vm4, %v654_v54, %v515_v44  ;;  %v663_v58 = vsel %vm655_vm4, %v646_v49, %v507_v45 }
  0xe8   : > { %v546_v46 = vpop.permute.xlu1 %545  ;;  %v538_v47 = vpop.permute.xlu0 %537 }
  0xe9   : > { %v688_v59 = vsel %vm672_vm5, %v671_v56, %v546_v46  ;;  %v680_v61 = vsel %vm672_vm5, %v663_v58, %v538_v47 }
  0xec   : > { %v565_v48 = vpop.permute.xlu1 %564  ;;  %v557_v50 = vpop.permute.xlu0 %556 }
  0xed   : > { %v705_v34 = vsel %vm689_vm6, %v688_v59, %v565_v48  ;;  %v697_v35 = vsel %vm689_vm6, %v680_v61, %v557_v50 }
  0xf0   : > { %v586_v55 = vpop.permute.xlu1 %585  ;;  %v578_v57 = vpop.permute.xlu0 %577 }
  0xf1   : > { %v722_v62 = vsel %vm706_vm7, %v705_v34, %v586_v55  ;;  %v714_v6 = vsel %vm706_vm7, %v697_v35, %v578_v57 }
  0xf4   : > { %v617_v2 = vpop.permute.xlu1 %616  ;;  %v609_v8 = vpop.permute.xlu0 %608 }
  0xf5   : > { %v746_v4 = vsel %vm723_vm8, %v722_v62, %v617_v2  ;;  %v734_v5 = vsel %vm723_vm8, %v714_v6, %v609_v8 }
  0xf6   : > { %940 = vmatmul.mubr.bf16.gmra.mxu1 %v746_v4  ;;  %908 = vmatmul.mubr.bf16.gmra.mxu0 %v734_v5 }
 0x162   : > { %v917_v11 = vpop.f32.mrf.mxu1  ;;  %v885_v12 = vpop.f32.mrf.mxu0 }
 0x163   : > { %v918_v53 = vadd.f32 %v1818_v9, %v917_v11  ;;  %v886_v13 = vadd.f32 %v1818_v9, %v885_v12 }
 0x164   : > { %v919_v14 = vpop.f32.mrf.mxu1  ;;  %v887_v17 = vpop.f32.mrf.mxu0 }
 0x165   : > { %v956_v16 = vmax.f32 %v918_v53, 0.0  ;;  %v948_v18 = vmax.f32 %v886_v13, 0.0 }
 0x166   : > { %v920_v19 = vpop.f32.mrf.mxu1  ;;  %v888_v21 = vpop.f32.mrf.mxu0 }
 0x167   : > { %v1257_v20 = vpack.c.bf16 %v956_v16, %v956_v16  ;;  %v921_v22 = vadd.f32 %v1818_v9, %v920_v19  ;;  %v1249_v23 = vpack.c.bf16 %v948_v18, %v948_v18  ;;  %v889_v24 = vadd.f32 %v1818_v9, %v888_v21 }
 0x168   : > { %v922_v25 = vpop.f32.mrf.mxu1  ;;  %v890_v3 = vpop.f32.mrf.mxu0 }
 0x169   : > { %1037 = vst.msk [vmem:[%s1825_s13 + $0x20] sm:$0xf] %vm1028_vm9, %v1257_v20  ;;  %v957_v1 = vmax.f32 %v921_v22, 0.0  ;;  %1029 = vst.msk [vmem:[%s1825_s13] sm:$0xf] %vm1028_vm9, %v1249_v23  ;;  %v949_v26 = vmax.f32 %v889_v24, 0.0 }
 0x16b   : > { %v1258_v32 = vpack.c.bf16 %v957_v1, %v957_v1  ;;  %v1250_v27 = vpack.c.bf16 %v949_v26, %v949_v26 }
 0x16d   : > { %1038 = vst.msk [vmem:[%s1825_s13 + $0x24] sm:$0xf] %vm1028_vm9, %v1258_v32  ;;  %1030 = vst.msk [vmem:[%s1825_s13 + $0x4] sm:$0xf] %vm1028_vm9, %v1250_v27 }
 0x17e   : > { %v925_v28 = vpop.f32.mrf.mxu1  ;;  %v893_v29 = vpop.f32.mrf.mxu0 }
 0x17f   : > { %v926_v30 = vadd.f32 %v1818_v9, %v925_v28  ;;  %v894_v7 = vadd.f32 %v1818_v9, %v893_v29 }
 0x180   : > { %v927_v10 = vpop.f32.mrf.mxu1  ;;  %v895_v41 = vpop.f32.mrf.mxu0 }
 0x181   : > { %v958_v36 = vmax.f32 %v926_v30, 0.0  ;;  %v950_v31 = vmax.f32 %v894_v7, 0.0 }
 0x182   : > { %v928_v33 = vpop.f32.mrf.mxu1  ;;  %v896_v63 = vpop.f32.mrf.mxu0 }
 0x183   : > { %v1259_v60 = vpack.c.bf16 %v958_v36, %v958_v36  ;;  %v929_v37 = vadd.f32 %v1818_v9, %v928_v33  ;;  %v1251_v38 = vpack.c.bf16 %v950_v31, %v950_v31  ;;  %v897_v39 = vadd.f32 %v1818_v9, %v896_v63 }
 0x184   : > { %v930_v15 = vpop.f32.mrf.mxu1  ;;  %v898_v40 = vpop.f32.mrf.mxu0 }
 0x185   : > { %1039 = vst.msk [vmem:[%s1825_s13 + $0x28] sm:$0xf] %vm1028_vm9, %v1259_v60  ;;  %v959_v0 = vmax.f32 %v929_v37, 0.0  ;;  %1031 = vst.msk [vmem:[%s1825_s13 + $0x8] sm:$0xf] %vm1028_vm9, %v1251_v38  ;;  %v951_v42 = vmax.f32 %v897_v39, 0.0 }
 0x187   : > { %v1260_v43 = vpack.c.bf16 %v959_v0, %v959_v0  ;;  %v1252_v44 = vpack.c.bf16 %v951_v42, %v951_v42 }
 0x189   : > { %1040 = vst.msk [vmem:[%s1825_s13 + $0x2c] sm:$0xf] %vm1028_vm9, %v1260_v43  ;;  %1032 = vst.msk [vmem:[%s1825_s13 + $0xc] sm:$0xf] %vm1028_vm9, %v1252_v44 }
 0x19a   : > { %v933_v45 = vpop.f32.mrf.mxu1  ;;  %v901_v46 = vpop.f32.mrf.mxu0 }
 0x19b   : > { %v934_v47 = vadd.f32 %v1818_v9, %v933_v45  ;;  %v902_v48 = vadd.f32 %v1818_v9, %v901_v46 }
 0x19c   : > { %v935_v50 = vpop.f32.mrf.mxu1  ;;  %v903_v52 = vpop.f32.mrf.mxu0 }
 0x19d   : > { %v960_v51 = vmax.f32 %v934_v47, 0.0  ;;  %v952_v54 = vmax.f32 %v902_v48, 0.0 }
 0x19e   : > { %v936_v55 = vpop.f32.mrf.mxu1  ;;  %v904_v56 = vpop.f32.mrf.mxu0 }
 0x19f   : > { %v1261_v49 = vpack.c.bf16 %v960_v51, %v960_v51  ;;  %v937_v57 = vadd.f32 %v1818_v9, %v936_v55  ;;  %v1253_v58 = vpack.c.bf16 %v952_v54, %v952_v54  ;;  %v905_v59 = vadd.f32 %v1818_v9, %v904_v56 }
 0x1a0   : > { %v938_v61 = vpop.f32.mrf.mxu1  ;;  %v906_v35 = vpop.f32.mrf.mxu0 }
 0x1a1   : > { %1041 = vst.msk [vmem:[%s1825_s13 + $0x30] sm:$0xf] %vm1028_vm9, %v1261_v49  ;;  %v961_v34 = vmax.f32 %v937_v57, 0.0  ;;  %1033 = vst.msk [vmem:[%s1825_s13 + $0x10] sm:$0xf] %vm1028_vm9, %v1253_v58  ;;  %v953_v62 = vmax.f32 %v905_v59, 0.0 }
 0x1a3   : > { %v1262_v2 = vpack.c.bf16 %v961_v34, %v961_v34  ;;  %v1254_v6 = vpack.c.bf16 %v953_v62, %v953_v62 }
 0x1a5   : > { %1042 = vst.msk [vmem:[%s1825_s13 + $0x34] sm:$0xf] %vm1028_vm9, %v1262_v2  ;;  %1034 = vst.msk [vmem:[%s1825_s13 + $0x14] sm:$0xf] %vm1028_vm9, %v1254_v6 }
 0x1b6   : > { %v941_v8 = vpop.f32.mrf.mxu1  ;;  %v909_v4 = vpop.f32.mrf.mxu0 }
 0x1b7   : > { %v942_v5 = vadd.f32 %v1818_v9, %v941_v8  ;;  %v910_v11 = vadd.f32 %v1818_v9, %v909_v4 }
 0x1b8   : > { %v943_v12 = vpop.f32.mrf.mxu1  ;;  %v911_v13 = vpop.f32.mrf.mxu0 }
 0x1b9   : > { %v962_v53 = vmax.f32 %v942_v5, 0.0  ;;  %v954_v14 = vmax.f32 %v910_v11, 0.0 }
 0x1ba   : > { %v944_v16 = vpop.f32.mrf.mxu1  ;;  %v912_v18 = vpop.f32.mrf.mxu0 }
 0x1bb   : > { %v1263_v17 = vpack.c.bf16 %v962_v53, %v962_v53  ;;  %v945_v19 = vadd.f32 %v1818_v9, %v944_v16  ;;  %v1255_v20 = vpack.c.bf16 %v954_v14, %v954_v14  ;;  %v913_v21 = vadd.f32 %v1818_v9, %v912_v18 }
 0x1bc   : > { %v946_v22 = vpop.f32.mrf.mxu1  ;;  %v914_v24 = vpop.f32.mrf.mxu0 }
 0x1bd   : > { %1043 = vst.msk [vmem:[%s1825_s13 + $0x38] sm:$0xf] %vm1028_vm9, %v1263_v17  ;;  %v963_v23 = vmax.f32 %v945_v19, 0.0  ;;  %1035 = vst.msk [vmem:[%s1825_s13 + $0x18] sm:$0xf] %vm1028_vm9, %v1255_v20  ;;  %v955_v25 = vmax.f32 %v913_v21, 0.0 }
 0x1bf   : > { %v1264_v1 = vpack.c.bf16 %v963_v23, %v963_v23  ;;  %v1256_v3 = vpack.c.bf16 %v955_v25, %v955_v25 }
 0x1c1   : > { %1044 = vst.msk [vmem:[%s1825_s13 + $0x3c] sm:$0xf] %vm1028_vm9, %v1264_v1  ;;  %1036 = vst.msk [vmem:[%s1825_s13 + $0x1c] sm:$0xf] %vm1028_vm9, %v1256_v3 }
 0x1c2 PF: > { %s13_s16 = sadd.s32 1, %s1399_s16   ;;  %s1892_s12 = smov %s1391_s14 }
 0x1c3   : > { %p10_p7 = scmp.ge.s32.totalorder %s13_s16, 6   ;;  %s1893_s13 = smov %s1395_s15 }
 0x1c4   : > { %s1894_s14 = smov %s1897_s17  ;;  %s1895_s15 = smov %s1901_s18 }
 0x1c5   :  { %12 = sbr.rel (!%p10_p7) target bundleno = 3 (0x3), region = 69 }

// kernel: quantize_bottleneck_v2_forward.7
= control target key start
LH: loop header
LB: loop body
LE: loop exit
PB: predicated region body
PF: predicated region fallthrough
CT: control target
= control target key end

     0   :  { %s1935_s12 = smov 0   ;;  %s1937_s13 = smov 0   ;;  %s2543_s0 = inlined_call_operand.vmem [shape: bf16[2,18,18,64], index: 0, kind: input, shape index: {}]   ;;  %s2544_s1 = inlined_call_operand.vmem [shape: bf16[576,16], index: 1, kind: input, shape index: {}]   ;;  %s2545_s2 = inlined_call_operand.vmem [shape: f32[1,16], index: 2, kind: input, shape index: {}]   ;;  %s2546_s3 = inlined_call_operand.vmem [shape: bf16[2,16,16,16], index: 3, kind: output, shape index: {}]  }
   0x1   :  { %s1939_s14 = smov 0   ;;  %s1941_s15 = smov 0  }
   0x2   :  { %s1943_s16 = smov 0  }
   0x3 LB: > { %s28_s17 = sadd.s32 1, %s1904_s14  ;;  %s32_s18 = sadd.s32 1, %s1908_s15  ;;  %s1912_s16 = sphi %s1943_s16, %s13_s16   ;;  %s1908_s15 = sphi %s1941_s15, %s2550_s15   ;;  %s1904_s14 = sphi %s1939_s14, %s2549_s14   ;;  %s1900_s13 = sphi %s1937_s13, %s2548_s13   ;;  %s1896_s12 = sphi %s1935_s12, %s2547_s12  }
   0x4   : > { %p30_p0 = scmp.ge.s32.totalorder %s28_s17, 2  ;;  %p1495_p1 = scmp.ge.s32.totalorder %s1912_s16, 1 }
   0x5   : > { %p177_p2 = scmp.lt.s32.totalorder %s1912_s16, 5 }
   0x6   : > { %s2552_s17 = smov (%p30_p0, %s28_s17), 0  ;;  %s2554_s18 = smov (!%p30_p0, %s32_s18), %s1908_s15 }
   0x7   : > { %p178_p3 = pnand %p1495_p1, %p177_p2  ;;  %p34_p4 = scmp.ge.s32.totalorder %s2554_s18, 2 }
   0x8   : > { %p216_p5 = scmp.lt.s32.totalorder (!%p178_p3), %s1900_s13, 1  ;;  %s1587_s21 = smul.u32 (!%p178_p3), 96, %s1896_s12 }
   0x9   : > { %s2556_s18 = smov (%p34_p4, %s2554_s18), 0  ;;  %181 = sbr.rel (%p178_p3) target bundleno = 427 (0x1ab), region = 32 }
   0xa   : > { %s1914_s19 = smov (!%p178_p3), 64  }
   0xe   : > { %v1838_v0 = vld [vmem:[%s2544_s1 + $0xf8] sm:$0xff]   ;;  %s2558_s13 = smov (!%p216_p5, %s1900_s13), 1  ;;  %v1842_v4 = vld [vmem:[%s2544_s1 + $0xf0] sm:$0xff]   ;;  %vm454_vm0 = vcmask 1046528   ;;  %vm341_vm1 = vsmask.f32 7424 }
   0xf   : > { %v1839_v1 = vld [vmem:[%s2544_s1 + $0xb8] sm:$0xff]   ;;  %1668 = vmatprep.subr.bf16.mxu1 %v1838_v0  ;;  %s1776_s26 = smul.u32 216, %s2558_s13  ;;  %v1843_v5 = vld [vmem:[%s2544_s1 + $0xb0] sm:$0xff]   ;;  %vm561_vm2 = vcmask 523264   ;;  %s1499_s24 = sshll.u32 %s2558_s13, 5  ;;  %vm1340_vm3 = vcmask 125952  }
  0x10   : > { %v1840_v2 = vld [vmem:[%s2544_s1 + $0x78] sm:$0xff]   ;;  %1669 = vmatpush3.bf16.msra.mxu1 %v1839_v1  ;;  %v1844_v6 = vld [vmem:[%s2544_s1 + $0x70] sm:$0xff]  }
  0x11   : > { %1604 = vmatprep.subr.bf16.mxu0 %v1840_v2  ;;  %v1841_v3 = vld [vmem:[%s2544_s1 + $0x38] sm:$0xff]   ;;  %s220_s6 = scalar_lea.vmem %s2543_s0, %s1776_s26  ;;  %1670 = vmatprep.subr.bf16.mxu1 %v1842_v4 }
  0x12   : > { %1605 = vmatpush3.bf16.msra.mxu0 %v1841_v3  ;;  %s1992_s9 = scalar_lea.vmem %s220_s6, %s1587_s21  ;;  %s1497_s21 = sshll.u32 %s1896_s12, 3 }
  0x13   : > { %v1998_v7 = vld [vmem:[%s1992_s9 + $0xc] sm:$0xff]   ;;  %v1819_v8 = vld [vmem:[%s1992_s9 + $0x14] ss:$0 sps:$4 sm:$0x11]   ;;  %1606 = vmatprep.subr.bf16.mxu0 %v1844_v6  ;;  %v2002_v9 = vld [vmem:[%s1992_s9 + $0x18] sm:$0xff]   ;;  %p231_p6 = scmp.lt.s32.totalorder %s1497_s21, 15 }
  0x14   : > { %1671 = vmatpush3.bf16.msra.mxu1 %v1843_v5  ;;  %v458_v10 = vrot.slane %v1998_v7, 1  ;;  %v459_v11 = vrot.slane %v1819_v8, 1  ;;  %v1821_v12 = vld [vmem:[%s1992_s9 + $0x20] ss:$0 sps:$4 sm:$0x11]   ;;  %v367_v14 = vshrl.u32 %v2002_v9, 16 }
  0x15   : > { %v2007_v13 = vld [vmem:[%s1992_s9] sm:$0xff]   ;;  %v369_v15 = vshll.u32 %v2002_v9, 16  ;;  %v374_v17 = vshll.u32 %v1821_v12, 16  ;;  %v2015_v18 = vld [vmem:[%s1992_s9 + $0x8] ss:$0 sps:$4 sm:$0x11]  }
  0x16   : > { %v2012_v16 = vsel %vm454_vm0, %v458_v10, %v459_v11  ;;  %v343_v20 = vshrl.u32 %v2007_v13, 16  ;;  %v345_v21 = vshll.u32 %v2007_v13, 16  ;;  %v2022_v22 = vld [vmem:[%s1992_s9 + $0x24] sm:$0xff]   ;;  %v350_v24 = vshll.u32 %v2015_v18, 16  ;;  %v2038_v37 = vld [vmem:[%s1992_s9 + $0x30] sm:$0xff]   ;;  %v2049_v47 = vld [vmem:[%s1992_s9 + $0x3c] sm:$0xff]  }
  0x17   : > { %518 = vrot.lane.b32.xlu1 %v2012_v16, %s1914_s19  ;;  %v371_v19 = vrot.slane %v369_v15, 1  ;;  %v376_v23 = vrot.slane %v374_v17, 1  ;;  %v2026_v27 = vld [vmem:[%s1992_s9 + $0x2c] ss:$0 sps:$4 sm:$0x11]   ;;  %v379_v28 = vshrl.u32 %v2022_v22, 16 }
  0x18   : > { %v347_v26 = vrot.slane %v345_v21, 1  ;;  %v381_v29 = vshll.u32 %v2022_v22, 16  ;;  %v352_v30 = vrot.slane %v350_v24, 1  ;;  %v386_v34 = vshll.u32 %v2026_v27, 16  ;;  %v2072_v60 = vld [vmem:[%s1992_s9 + $0x48] sm:$0xff]   ;;  %v2080_v2 = vld [vmem:[%s1992_s9 + $0x54] sm:$0xff]  }
  0x19   : > { %v372_v25 = vor.u32 %v371_v19, %v367_v14  ;;  %v357_v35 = vshll.u32 %v1998_v7, 16  ;;  %v362_v36 = vshll.u32 %v1819_v8, 16  ;;  %v2041_v38 = vld [vmem:[%s1992_s9 + $0x38] ss:$0 sps:$4 sm:$0x11]   ;;  %v355_v42 = vshrl.u32 %v1998_v7, 16 }
  0x1a   : > { %v348_v32 = vor.u32 %v347_v26, %v343_v20  ;;  %v383_v33 = vrot.slane %v381_v29, 1  ;;  %v388_v41 = vrot.slane %v386_v34, 1  ;;  %v393_v44 = vshll.u32 %v2038_v37, 16  ;;  %v2052_v48 = vld [vmem:[%s1992_s9 + $0x44] ss:$0 sps:$4 sm:$0x11]  }
  0x1b   : > { %v2031_v31 = vsel %vm341_vm1, %v372_v25, %v376_v23  ;;  %v359_v43 = vrot.slane %v357_v35, 1  ;;  %v461_v45 = vrot.slane %v2002_v9, 1  ;;  %v462_v46 = vrot.slane %v1821_v12, 1  ;;  %v2087_v5 = vld [vmem:[%s1992_s9 + $0x50] ss:$0 sps:$4 sm:$0x11]  }
  0x1c   : > { %442 = vrot.lane.b32.xlu0 %v2031_v31, %s1914_s19  ;;  %v353_v39 = vsel %vm341_vm1, %v348_v32, %v352_v30  ;;  %v384_v40 = vor.u32 %v383_v33, %v379_v28  ;;  %v364_v50 = vrot.slane %v362_v36, 1  ;;  %v391_v51 = vshrl.u32 %v2038_v37, 16  ;;  %v2094_v10 = vld [vmem:[%s1992_s9 + $0x5c] ss:$0 sps:$4 sm:$0x11]   ;;  %v1845_v11 = vld [vmem:[%s2544_s1 + $0x30] sm:$0xff]  }
  0x1d   : > { %438 = vrot.lane.b32.xlu1 %v353_v39, %s1914_s19  ;;  %v360_v52 = vor.u32 %v359_v43, %v355_v42  ;;  %v395_v53 = vrot.slane %v393_v44, 1  ;;  %v398_v54 = vshll.u32 %v2041_v38, 16  ;;  %v405_v55 = vshll.u32 %v2049_v47, 16  ;;  %1607 = vmatpush3.bf16.msra.mxu0 %v1845_v11  ;;  %v1846_v28 = vld [vmem:[%s2544_s1 + $0xe8] sm:$0xff]   ;;  %v1851_v43 = vld [vmem:[%s2544_s1 + $0xa0] sm:$0xff]   ;;  %s2560_s21 = smov (!%p231_p6, %s1497_s21), 15 }
  0x1e   : > { %v2057_v49 = vsel %vm341_vm1, %v384_v40, %v388_v41  ;;  %v2065_v56 = vsel %vm454_vm0, %v461_v45, %v462_v46  ;;  %v403_v57 = vshrl.u32 %v2049_v47, 16  ;;  %v410_v59 = vshll.u32 %v2052_v48, 16  ;;  %v1847_v30 = vld [vmem:[%s2544_s1 + $0xa8] sm:$0xff]   ;;  %1672 = vmatprep.subr.bf16.mxu1 %v1846_v28  ;;  %v1850_v41 = vld [vmem:[%s2544_s1 + $0xe0] sm:$0xff]   ;;  %s1498_s12 = sshll.u32 %s2560_s21, 1 }
  0x1f   : > { %v407_v58 = vrot.slane %v405_v55, 1  ;;  %v2075_v61 = vsel %vm341_vm1, %v360_v52, %v364_v50  ;;  %v396_v62 = vor.u32 %v395_v53, %v391_v51  ;;  %v400_v63 = vrot.slane %v398_v54, 1  ;;  %v1848_v34 = vld [vmem:[%s2544_s1 + $0x68] sm:$0xff]   ;;  %1673 = vmatpush3.bf16.msra.mxu1 %v1847_v30  ;;  %v1852_v46 = vld [vmem:[%s2544_s1 + $0x60] sm:$0xff]   ;;  %v1854_v53 = vld [vmem:[%s2544_s1 + $0xd8] sm:$0xff]   ;;  %s2452_s13 = sadd.s32 %s1499_s24, %s1498_s12 }
  0x20   : > { %484 = vrot.lane.b32.xlu0 %v1998_v7, %s1914_s19  ;;  %v412_v1 = vrot.slane %v410_v59, 1  ;;  %v464_v3 = vrot.slane %v2022_v22, 1  ;;  %v465_v4 = vrot.slane %v2026_v27, 1  ;;  %v417_v6 = vshll.u32 %v2072_v60, 16  ;;  %v2118_v27 = vld [vmem:[%s1992_s9 + $0x60] sm:$0xff]   ;;  %1608 = vmatprep.subr.bf16.mxu0 %v1848_v34  ;;  %v2173_v55 = vld [vmem:[%s1992_s9 + $0x6c] sm:$0xff]  }
  0x21   : > { %486 = vrot.lane.b32.xlu1 %v2002_v9, %s1914_s19  ;;  %v408_v0 = vor.u32 %v407_v58, %v403_v57  ;;  %v2091_v8 = vsel %vm341_vm1, %v396_v62, %v400_v63  ;;  %v467_v12 = vrot.slane %v2038_v37, 1  ;;  %v468_v14 = vrot.slane %v2041_v38, 1  ;;  %v2138_v36 = vld [vmem:[%s1992_s9 + $0x68] ss:$0 sps:$4 sm:$0x11]   ;;  %1674 = vmatprep.subr.bf16.mxu1 %v1850_v41  ;;  %v1853_v50 = vld [vmem:[%s2544_s1 + $0x20] sm:$0xff]  }
  0x22   : > { %v415_v17 = vshrl.u32 %v2072_v60, 16  ;;  %v470_v19 = vrot.slane %v2049_v47, 1  ;;  %v429_v20 = vshll.u32 %v2080_v2, 16  ;;  %v422_v21 = vshll.u32 %v2087_v5, 16  ;;  %v1849_v38 = vld [vmem:[%s2544_s1 + $0x28] sm:$0xff]   ;;  %v1855_v57 = vld [vmem:[%s2544_s1 + $0x98] sm:$0xff]  }
  0x23   : > { %v2104_v15 = vsel %vm341_vm1, %v408_v0, %v412_v1  ;;  %v471_v23 = vrot.slane %v2052_v48, 1  ;;  %v2114_v24 = vsel %vm454_vm0, %v464_v3, %v465_v4  ;;  %v419_v25 = vrot.slane %v417_v6, 1  ;;  %1609 = vmatpush3.bf16.msra.mxu0 %v1849_v38  ;;  %1675 = vmatpush3.bf16.msra.mxu1 %v1851_v43  ;;  %v1856_v62 = vld [vmem:[%s2544_s1 + $0x58] sm:$0xff]   ;;  %v1858_v1 = vld [vmem:[%s2544_s1 + $0xd0] sm:$0xff]   ;;  %v1864_v28 = vld [vmem:[%s2544_s1 + $0x48] sm:$0xff]   ;;  %s1500_s25 = sshll.u32 %s2452_s13, 2 }
  0x24   : > { %444 = vrot.lane.b32.xlu0 %v2057_v49, %s1914_s19  ;;  %v427_v26 = vshrl.u32 %v2080_v2, 16  ;;  %v434_v29 = vshll.u32 %v2094_v10, 16  ;;  %v2130_v32 = vsel %vm454_vm0, %v467_v12, %v468_v14  ;;  %v431_v33 = vrot.slane %v429_v20, 1  ;;  %1610 = vmatprep.subr.bf16.mxu0 %v1852_v46  ;;  %v1857_v63 = vld [vmem:[%s2544_s1 + $0x18] sm:$0xff]   ;;  %v1859_v3 = vld [vmem:[%s2544_s1 + $0x90] sm:$0xff]   ;;  %v1862_v20 = vld [vmem:[%s2544_s1 + $0xc8] sm:$0xff]   ;;  %s2483_s28 = scalar_lea.vmem %s2546_s3, %s1500_s25 }
  0x25   : > { %520 = vrot.lane.b32.xlu1 %v2065_v56, %s1914_s19  ;;  %v424_v35 = vrot.slane %v422_v21, 1  ;;  %v420_v39 = vor.u32 %v419_v25, %v415_v17  ;;  %v473_v40 = vrot.slane %v2072_v60, 1  ;;  %v506_v45 = vshll.u32 %v2118_v27, 16  ;;  %1676 = vmatprep.subr.bf16.mxu1 %v1854_v53  ;;  %v2204_v11 = vld [vmem:[%s1992_s9 + $0x74] ss:$0 sps:$4 sm:$0x11]  }
  0x26   : > { %v436_v42 = vrot.slane %v434_v29, 1  ;;  %v432_v44 = vor.u32 %v431_v33, %v427_v26  ;;  %v474_v48 = vrot.slane %v2087_v5, 1  ;;  %v504_v52 = vshrl.u32 %v2118_v27, 16  ;;  %v1860_v12 = vld [vmem:[%s2544_s1 + $0x50] sm:$0xff]   ;;  %v1866_v33 = vld [vmem:[%s2544_s1 + $0xc0] sm:$0xff]  }
  0x27   : > { %v2163_v51 = vsel %vm341_vm1, %v420_v39, %v424_v35  ;;  %v511_v54 = vshll.u32 %v2138_v36, 16  ;;  %1611 = vmatpush3.bf16.msra.mxu0 %v1853_v50  ;;  %v508_v59 = vrot.slane %v506_v45, 1  ;;  %1677 = vmatpush3.bf16.msra.mxu1 %v1855_v57  ;;  %v2190_v0 = vsel %vm454_vm0, %v470_v19, %v471_v23  ;;  %v1861_v17 = vld [vmem:[%s2544_s1 + $0x10] sm:$0xff]   ;;  %v1863_v23 = vld [vmem:[%s2544_s1 + $0x88] sm:$0xff]   ;;  %v1867_v35 = vld [vmem:[%s2544_s1 + $0x80] sm:$0xff]  }
  0x28   : > { %440 = vrot.lane.b32.xlu0 %v2075_v61, %s1914_s19  ;;  %v2179_v58 = vsel %vm341_vm1, %v432_v44, %v436_v42  ;;  %1612 = vmatprep.subr.bf16.mxu0 %v1856_v62  ;;  %v2201_v4 = vsel %vm454_vm0, %v473_v40, %v474_v48  ;;  %v545_v14 = vshll.u32 %v2173_v55, 16  ;;  %v476_v19 = vrot.slane %v2080_v2, 1  ;;  %v1868_v39 = vld [vmem:[%s2544_s1 + $0x40] sm:$0xff]   ;;  %v1871_v57 = vld [vmem:[%s2544_s1 + $0x110] sm:$0xff]  }
  0x29   : > { %488 = vrot.lane.b32.xlu1 %v2022_v22, %s1914_s19  ;;  %v509_v5 = vor.u32 %v508_v59, %v504_v52  ;;  %v513_v6 = vrot.slane %v511_v54, 1  ;;  %1678 = vmatprep.subr.bf16.mxu1 %v1858_v1  ;;  %v477_v21 = vrot.slane %v2094_v10, 1  ;;  %v543_v26 = vshrl.u32 %v2173_v55, 16  ;;  %v1865_v10 = vld [vmem:[%s2544_s1 + $0x8] sm:$0xff]   ;;  %v1869_v40 = vld [vmem:[%s2544_s1] sm:$0xff]  }
  0x2a   : > { %v547_v29 = vrot.slane %v545_v14, 1  ;;  %v550_v30 = vshll.u32 %v2204_v11, 16  ;;  %v515_v34 = vrot.slane %v2118_v27, 1  ;;  %v516_v38 = vrot.slane %v2138_v36, 1  ;;  %v1870_v36 = vld [vmem:[%s2544_s1 + $0x118] sm:$0xff]  }
  0x2b   : > { %1613 = vmatpush3.bf16.msra.mxu0 %v1857_v63  ;;  %1679 = vmatpush3.bf16.msra.mxu1 %v1859_v3  ;;  %v2226_v25 = vsel %vm341_vm1, %v509_v5, %v513_v6  ;;  %v2257_v41 = vsel %vm454_vm0, %v476_v19, %v477_v21  ;;  %v455_v48 = vrot.slane %v2007_v13, 1  ;;  %v456_v50 = vrot.slane %v2015_v18, 1 }
  0x2c   : > { %446 = vrot.lane.b32.xlu0 %v2091_v8, %s1914_s19  ;;  %1614 = vmatprep.subr.bf16.mxu0 %v1860_v12  ;;  %v548_v42 = vor.u32 %v547_v29, %v543_v26  ;;  %v552_v43 = vrot.slane %v550_v30, 1  ;;  %v2265_v44 = vsel %vm454_vm0, %v515_v34, %v516_v38  ;;  %v1873_v12 = vld [vmem:[%s2544_s1 + $0x100] sm:$0xff]  }
  0x2d   : > { %448 = vrot.lane.b32.xlu1 %v2104_v15, %s1914_s19  ;;  %1680 = vmatprep.subr.bf16.mxu1 %v1862_v20  ;;  %v457_v62 = vsel %vm454_vm0, %v455_v48, %v456_v50 }
  0x2e   : > { %v553_v45 = vsel %vm341_vm1, %v548_v42, %v552_v43 }
  0x2f   : > { %1615 = vmatpush3.bf16.msra.mxu0 %v1861_v17  ;;  %1681 = vmatpush3.bf16.msra.mxu1 %v1863_v23 }
  0x30   : > { %522 = vrot.lane.b32.xlu0 %v2114_v24, %s1914_s19  ;;  %1616 = vmatprep.subr.bf16.mxu0 %v1864_v28 }
  0x31   : > { %524 = vrot.lane.b32.xlu1 %v2130_v32, %s1914_s19  ;;  %1682 = vmatprep.subr.bf16.mxu1 %v1866_v33 }
  0x33   : > { %1617 = vmatpush3.bf16.msra.mxu0 %v1865_v10  ;;  %1683 = vmatpush3.bf16.msra.mxu1 %v1867_v35 }
  0x34   : > { %490 = vrot.lane.b32.xlu0 %v2038_v37, %s1914_s19  ;;  %1618 = vmatprep.subr.bf16.mxu0 %v1868_v39 }
  0x35   : > { %492 = vrot.lane.b32.xlu1 %v2049_v47, %s1914_s19  ;;  %1768 = vmatprep.subr.bf16.mxu1 %v1870_v36 }
  0x37   : > { %1619 = vmatpush3.bf16.msra.mxu0 %v1869_v40 }
  0x38   : > { %450 = vrot.lane.b32.xlu0 %v2163_v51, %s1914_s19  ;;  %1744 = vmatprep.subr.bf16.mxu0 %v1870_v36 }
  0x39   : > { %452 = vrot.lane.b32.xlu1 %v2179_v58, %s1914_s19 }
  0x3c   : > { %526 = vrot.lane.b32.xlu0 %v2190_v0, %s1914_s19 }
  0x3d   : > { %528 = vrot.lane.b32.xlu1 %v2201_v4, %s1914_s19 }
  0x40   : > { %494 = vrot.lane.b32.xlu0 %v2072_v60, %s1914_s19 }
  0x41   : > { %554 = vrot.lane.b32.xlu1 %v2226_v25, %s1914_s19 }
  0x44   : > { %496 = vrot.lane.b32.xlu0 %v2080_v2, %s1914_s19 }
  0x45   : > { %498 = vrot.lane.b32.xlu1 %v2118_v27, %s1914_s19 }
  0x48   : > { %530 = vrot.lane.b32.xlu0 %v2257_v41, %s1914_s19 }
  0x49   : > { %532 = vrot.lane.b32.xlu1 %v2265_v44, %s1914_s19 }
  0x4c   : > { %556 = vrot.lane.b32.xlu0 %v553_v45, %s1914_s19 }
  0x89   : > { %v519_v46 = vpop.permute.xlu1 %518 }
  0x8a   : > { %v620_v53 = vsel %vm561_vm2, %v2075_v61, %v519_v46 }
  0x8e   : > { %v443_v52 = vpop.permute.xlu0 %442 }
  0x8f   : > { %v569_v54 = vsel %vm561_vm2, %v2002_v9, %v443_v52  ;;  %v439_v59 = vpop.permute.xlu1 %438  ;;  %v1872_v9 = vld [vmem:[%s2544_s1 + $0x108] sm:$0xff]  }
  0x90   : > { %1098 = vmatprep.mubr.bf16.mxu1 %v569_v54  ;;  %v563_v18 = vsel %vm561_vm2, %v2007_v13, %v439_v59 }
  0x91   : > { %1099 = vmatmul.mubr.bf16.vlgmr.msra.gmra.mxu1 %v620_v53 }
  0x92   : > { %v485_v63 = vpop.permute.xlu0 %484  ;;  %1772 = vmatpush3.bf16.msra.mxu1 %v1870_v36 }
  0x93   : > { %v588_v1 = vsel %vm561_vm2, %v457_v62, %v485_v63  ;;  %1769 = vmatprep.subr.bf16.mxu1 %v1871_v57  ;;  %v487_v61 = vpop.permute.xlu1 %486 }
  0x94   : > { %1001 = vmatprep.mubr.bf16.mxu0 %v588_v1  ;;  %v592_v3 = vsel %vm561_vm2, %v2012_v16, %v487_v61 }
  0x95   : > { %1002 = vmatmul.mubr.bf16.vlgmr.msra.gmra.mxu0 %v563_v18 }
  0x96   : > { %1745 = vmatpush3.bf16.msra.mxu0 %v1870_v36  ;;  %v445_v5 = vpop.permute.xlu0 %444  ;;  %1009 = vmatprep.mubr.bf16.mxu0 %v592_v3 }
  0x97   : > { %v572_v13 = vsel %vm561_vm2, %v2022_v22, %v445_v5  ;;  %1746 = vmatprep.subr.bf16.mxu0 %v1871_v57  ;;  %1773 = vmatpush3.bf16.msra.mxu1 %v1871_v57  ;;  %v521_v6 = vpop.permute.xlu1 %520 }
  0x98   : > { %1106 = vmatprep.mubr.bf16.mxu1 %v572_v13  ;;  %1770 = vmatprep.subr.bf16.mxu1 %v1872_v9  ;;  %v624_v14 = vsel %vm561_vm2, %v2031_v31, %v521_v6 }
  0x99   : > { %1107 = vmatmul.mubr.bf16.gmra.mxu1 %v624_v14 }
  0x9a   : > { %v441_v16 = vpop.permute.xlu0 %440  ;;  %1747 = vmatpush3.bf16.msra.mxu0 %v1871_v57 }
  0x9b   : > { %v566_v17 = vsel %vm561_vm2, %v1998_v7, %v441_v16  ;;  %1748 = vmatprep.subr.bf16.mxu0 %v1872_v9  ;;  %1774 = vmatpush3.bf16.msra.mxu1 %v1872_v9  ;;  %v489_v22 = vpop.permute.xlu1 %488 }
  0x9c   : > { %1771 = vmatprep.subr.bf16.mxu1 %v1873_v12  ;;  %v596_v19 = vsel %vm561_vm2, %v2065_v56, %v489_v22 }
  0x9d   : > { %1010 = vmatmul.mubr.bf16.gmra.mxu0 %v566_v17 }
  0x9e   : > { %v447_v20 = vpop.permute.xlu0 %446  ;;  %1017 = vmatprep.mubr.bf16.mxu0 %v596_v19  ;;  %1749 = vmatpush3.bf16.msra.mxu0 %v1872_v9 }
  0x9f   : > { %v575_v31 = vsel %vm561_vm2, %v2038_v37, %v447_v20  ;;  %1750 = vmatprep.subr.bf16.mxu0 %v1873_v12  ;;  %1775 = vmatpush3.bf16.msra.mxu1 %v1873_v12  ;;  %v449_v21 = vpop.permute.xlu1 %448 }
  0xa0   : > { %1114 = vmatprep.mubr.bf16.mxu1 %v575_v31  ;;  %v578_v7 = vsel %vm561_vm2, %v2049_v47, %v449_v21 }
  0xa2   : > { %v523_v23 = vpop.permute.xlu0 %522  ;;  %1751 = vmatpush3.bf16.msra.mxu0 %v1873_v12 }
  0xa3   : > { %v628_v26 = vsel %vm561_vm2, %v2057_v49, %v523_v23  ;;  %v525_v28 = vpop.permute.xlu1 %524 }
  0xa4   : > { %1115 = vmatmul.mubr.bf16.gmra.mxu1 %v628_v26  ;;  %v632_v30 = vsel %vm561_vm2, %v2091_v8, %v525_v28 }
  0xa5   : > { %1018 = vmatmul.mubr.bf16.gmra.mxu0 %v569_v54  ;;  %1122 = vmatprep.mubr.bf16.mxu1 %v578_v7 }
  0xa6   : > { %v491_v29 = vpop.permute.xlu0 %490 }
  0xa7   : > { %v600_v37 = vsel %vm561_vm2, %v2114_v24, %v491_v29  ;;  %v493_v10 = vpop.permute.xlu1 %492 }
  0xa8   : > { %1025 = vmatprep.mubr.bf16.mxu0 %v600_v37  ;;  %v604_v49 = vsel %vm561_vm2, %v2130_v32, %v493_v10 }
  0xaa   : > { %v451_v33 = vpop.permute.xlu0 %450 }
  0xab   : > { %v581_v47 = vsel %vm561_vm2, %v2072_v60, %v451_v33  ;;  %v453_v34 = vpop.permute.xlu1 %452 }
  0xac   : > { %1123 = vmatmul.mubr.bf16.gmra.mxu1 %v632_v30  ;;  %v584_v39 = vsel %vm561_vm2, %v2080_v2, %v453_v34 }
  0xad   : > { %1026 = vmatmul.mubr.bf16.gmra.mxu0 %v572_v13  ;;  %1130 = vmatprep.mubr.bf16.mxu1 %v581_v47 }
  0xae   : > { %v527_v35 = vpop.permute.xlu0 %526  ;;  %1033 = vmatprep.mubr.bf16.mxu0 %v604_v49 }
  0xaf   : > { %v636_v38 = vsel %vm561_vm2, %v2104_v15, %v527_v35  ;;  %v529_v40 = vpop.permute.xlu1 %528 }
  0xb0   : > { %v640_v36 = vsel %vm561_vm2, %v2163_v51, %v529_v40 }
  0xb2   : > { %v495_v8 = vpop.permute.xlu0 %494 }
  0xb3   : > { %v608_v60 = vsel %vm561_vm2, %v2190_v0, %v495_v8  ;;  %v555_v43 = vpop.permute.xlu1 %554 }
  0xb4   : > { %1131 = vmatmul.mubr.bf16.gmra.mxu1 %v636_v38  ;;  %v651_v15 = vsel %vm561_vm2, %v2118_v27, %v555_v43 }
  0xb5   : > { %1034 = vmatmul.mubr.bf16.gmra.mxu0 %v575_v31  ;;  %1138 = vmatprep.mubr.bf16.mxu1 %v584_v39 }
  0xb6   : > { %1041 = vmatprep.mubr.bf16.mxu0 %v608_v60  ;;  %v497_v42 = vpop.permute.xlu0 %496 }
  0xb7   : > { %v612_v2 = vsel %vm561_vm2, %v2201_v4, %v497_v42  ;;  %v499_v48 = vpop.permute.xlu1 %498 }
  0xb8   : > { %v616_v51 = vsel %vm561_vm2, %v2257_v41, %v499_v48 }
  0xba   : > { %v531_v45 = vpop.permute.xlu0 %530 }
  0xbb   : > { %v644_v50 = vsel %vm561_vm2, %v2179_v58, %v531_v45  ;;  %v533_v27 = vpop.permute.xlu1 %532  ;;  %v558_v58 = vrot.slane %v2173_v55, 1 }
  0xbc   : > { %1139 = vmatmul.mubr.bf16.gmra.mxu1 %v640_v36  ;;  %v648_v53 = vsel %vm561_vm2, %v2226_v25, %v533_v27  ;;  %v559_v25 = vrot.slane %v2204_v11, 1 }
  0xbd   : > { %1042 = vmatmul.mubr.bf16.gmra.mxu0 %v578_v7  ;;  %1146 = vmatprep.mubr.bf16.mxu1 %v651_v15  ;;  %v2406_v15 = vld [vmem:[%s2545_s2] ss:$0 sm:$0xff] }
  0xbe   : > { %1049 = vmatprep.mubr.bf16.mxu0 %v612_v2  ;;  %v557_v46 = vpop.permute.xlu0 %556 }
  0xbf   : > { %v654_v52 = vsel %vm561_vm2, %v2173_v55, %v557_v46 }
  0xc4   : > { %1147 = vmatmul.mubr.bf16.gmra.mxu1 %v644_v50 }
  0xc5   : > { %1050 = vmatmul.mubr.bf16.gmra.mxu0 %v581_v47  ;;  %1154 = vmatprep.mubr.bf16.mxu1 %v654_v52 }
  0xc6   : > { %1057 = vmatprep.mubr.bf16.mxu0 %v616_v51 }
  0xcc   : > { %1155 = vmatmul.mubr.bf16.gmra.mxu1 %v648_v53 }
  0xcd   : > { %1058 = vmatmul.mubr.bf16.gmra.mxu0 %v584_v39  ;;  %1760 = vmatprep.mubr.msk.bf16.mxu1 %vm561_vm2, %v2201_v4  ;;  %v560_v4 = vsel %vm454_vm0, %v558_v58, %v559_v25 }
  0xce   : > { %1752 = vmatprep.mubr.msk.bf16.mxu0 %vm561_vm2, %v2065_v56 }
  0xd4   : > { %1761 = vmatmul.mubr.msk.bf16.vlgmr.msra.gmra.mxu1 %vm561_vm2, %v2257_v41 }
  0xd5   : > { %1753 = vmatmul.mubr.msk.bf16.vlgmr.msra.gmra.mxu0 %vm561_vm2, %v2114_v24  ;;  %1764 = vmatprep.mubr.msk.bf16.mxu1 %vm561_vm2, %v2265_v44 }
  0xd6   : > { %1756 = vmatprep.mubr.msk.bf16.mxu0 %vm561_vm2, %v2130_v32 }
  0xdc   : > { %1765 = vmatmul.mubr.msk.bf16.gmra.mxu1 %vm561_vm2, %v560_v4 }
  0xdd   : > { %1757 = vmatmul.mubr.msk.bf16.gmra.mxu0 %vm561_vm2, %v2190_v0 }
 0x151   : > { %v2354_v56 = vpop.f32.mrf.mxu1 }
 0x153   : > { %v2356_v24 = vpop.f32.mrf.mxu1 }
 0x154   : > { %v1686_v4 = vadd.f32 %v2356_v24, %v2354_v56 }
 0x155   : > { %v1620_v41 = vpop.f32.mrf.mxu0  ;;  %v2358_v44 = vpop.f32.mrf.mxu1 }
 0x157   : > { %v1621_v55 = vpop.f32.mrf.mxu0  ;;  %v2360_v54 = vpop.f32.mrf.mxu1 }
 0x158   : > { %v1622_v43 = vadd.f32 %v1621_v55, %v1620_v41 }
 0x159   : > { %v1623_v11 = vpop.f32.mrf.mxu0  ;;  %v2362_v57 = vpop.f32.mrf.mxu1 }
 0x15a   : > { %v1004_v51 = vadd.f32 %v1622_v43, %v2406_v15 }
 0x15b   : > { %v1624_v32 = vpop.f32.mrf.mxu0  ;;  %v2364_v59 = vpop.f32.mrf.mxu1 }
 0x15c   : > { %v1625_v2 = vadd.f32 %v1624_v32, %v1623_v11  ;;  %v1689_v32 = vadd.f32 %v2360_v54, %v2358_v44 }
 0x15d   : > { %v1626_v62 = vpop.f32.mrf.mxu0  ;;  %v2366_v63 = vpop.f32.mrf.mxu1 }
 0x15e   : > { %v1007_v53 = vadd.f32 %v1625_v2, %v2406_v15 }
 0x15f   : > { %v1627_v0 = vpop.f32.mrf.mxu0  ;;  %v2368_v1 = vpop.f32.mrf.mxu1 }
 0x160   : > { %v1628_v46 = vadd.f32 %v1627_v0, %v1626_v62  ;;  %v2433_v44 = vadd.f32 %v1689_v32, %v1007_v53 }
 0x161   : > { %v1629_v18 = vpop.f32.mrf.mxu0 }
 0x162   : > { %v1012_v41 = vadd.f32 %v1628_v46, %v2406_v15 }
 0x163   : > { %v1630_v61 = vpop.f32.mrf.mxu0 }
 0x164   : > { %v2370_v9 = vpop.f32.mrf.mxu1  ;;  %v1631_v50 = vadd.f32 %v1630_v61, %v1629_v18  ;;  %v1692_v61 = vadd.f32 %v2364_v59, %v2362_v57 }
 0x165   : > { %v1632_v3 = vpop.f32.mrf.mxu0 }
 0x166   : > { %v2372_v5 = vpop.f32.mrf.mxu1  ;;  %v1015_v62 = vadd.f32 %v1631_v50, %v2406_v15  ;;  %v1109_v57 = vadd.f32 %v1692_v61, %v1012_v41 }
 0x167   : > { %v1633_v13 = vpop.f32.mrf.mxu0  ;;  %v1698_v59 = vadd.f32 %v2372_v5, %v2370_v9 }
 0x168   : > { %v2374_v6 = vpop.f32.mrf.mxu1  ;;  %v1634_v58 = vadd.f32 %v1633_v13, %v1632_v3  ;;  %v1101_v3 = vadd.f32 %v1686_v4, %v1004_v51  ;;  %v1695_v13 = vadd.f32 %v2368_v1, %v2366_v63 }
 0x169   : > { %v1635_v12 = vpop.f32.mrf.mxu0 }
 0x16a   : > { %v2376_v14 = vpop.f32.mrf.mxu1 }
 0x16b   : > { %v1636_v16 = vpop.f32.mrf.mxu0 }
 0x16c   : > { %v2378_v17 = vpop.f32.mrf.mxu1  ;;  %v1637_v54 = vadd.f32 %v1636_v16, %v1635_v12  ;;  %v2446_v12 = vadd.f32 %v2376_v14, %v2374_v6 }
 0x16d   : > { %v1638_v22 = vpop.f32.mrf.mxu0 }
 0x16e   : > { %v2380_v19 = vpop.f32.mrf.mxu1  ;;  %v2457_v6 = vadd.f32 %v1637_v54, %v2406_v15 }
 0x16f   : > { %v1639_v20 = vpop.f32.mrf.mxu0  ;;  %v1704_v9 = vadd.f32 %v2380_v19, %v2378_v17 }
 0x170   : > { %v2382_v31 = vpop.f32.mrf.mxu1  ;;  %v1640_v0 = vadd.f32 %v1639_v20, %v1638_v22 }
 0x171   : > { %v2384_v21 = vpop.f32.mrf.mxu0 }
 0x172   : > { %v2386_v23 = vpop.f32.mrf.mxu1 }
 0x173   : > { %v1642_v7 = vpop.f32.mrf.mxu0  ;;  %v2464_v17 = vadd.f32 %v2386_v23, %v2382_v31 }
 0x174   : > { %v2388_v26 = vpop.f32.mrf.mxu1  ;;  %v1643_v63 = vadd.f32 %v1642_v7, %v2384_v21 }
 0x175   : > { %v1644_v28 = vpop.f32.mrf.mxu0 }
 0x176   : > { %v2390_v29 = vpop.f32.mrf.mxu1  ;;  %v2467_v19 = vadd.f32 %v1643_v63, %v2406_v15 }
 0x177   : > { %v1645_v37 = vpop.f32.mrf.mxu0  ;;  %v1710_v14 = vadd.f32 %v2390_v29, %v2388_v26 }
 0x178   : > { %v2392_v10 = vpop.f32.mrf.mxu1  ;;  %v1646_v56 = vadd.f32 %v1645_v37, %v1644_v28  ;;  %v1028_v28 = vadd.f32 %v1640_v0, %v2406_v15  ;;  %v1112_v37 = vadd.f32 %v1695_v13, %v1015_v62 }
 0x179   : > { %v1647_v30 = vpop.f32.mrf.mxu0 }
 0x17a   : > { %v2394_v33 = vpop.f32.mrf.mxu1  ;;  %v1036_v16 = vadd.f32 %v1646_v56, %v2406_v15  ;;  %v1125_v50 = vadd.f32 %v1704_v9, %v1028_v28 }
 0x17b   : > { %v1648_v47 = vpop.f32.mrf.mxu0  ;;  %v1713_v46 = vadd.f32 %v2394_v33, %v2392_v10 }
 0x17c   : > { %v1714_v49 = vpop.f32.mrf.mxu1 }
 0x17d   : > { %v1650_v34 = vpop.f32.mrf.mxu0 }
 0x17e   : > { %v1715_v35 = vpop.f32.mrf.mxu1 }
 0x17f   : > { %v1651_v38 = vpop.f32.mrf.mxu0 }
 0x180   : > { %v2396_v39 = vpop.f32.mrf.mxu1  ;;  %v1652_v55 = vadd.f32 %v1651_v38, %v1650_v34  ;;  %v1020_v34 = vadd.f32 %v1634_v58, %v2406_v15  ;;  %v1649_v38 = vadd.f32 %v1648_v47, %v1647_v30  ;;  %v1716_v30 = vadd.f32 %v1715_v35, %v1714_v49 }
 0x181   : > { %v1653_v8 = vpop.f32.mrf.mxu0  ;;  %v1133_v58 = vadd.f32 %v1710_v14, %v1036_v16 }
 0x182   : > { %v2398_v40 = vpop.f32.mrf.mxu1  ;;  %v1044_v22 = vadd.f32 %v1652_v55, %v2406_v15  ;;  %v1039_v5 = vadd.f32 %v1649_v38, %v2406_v15  ;;  %v2454_v7 = vadd.f32 %v1698_v59, %v1020_v34 }
 0x183   : > { %v1654_v60 = vpop.f32.mrf.mxu0  ;;  %v1719_v51 = vadd.f32 %v2398_v40, %v2396_v39 }
 0x184   : > { %v2400_v42 = vpop.f32.mrf.mxu1  ;;  %v1655_v20 = vadd.f32 %v1654_v60, %v1653_v8  ;;  %v1136_v55 = vadd.f32 %v1713_v46, %v1039_v5 }
 0x185   : > { %v1656_v36 = vpop.f32.mrf.mxu0 }
 0x186   : > { %v2408_v45 = vpop.f32.mrf.mxu1  ;;  %v1047_v49 = vadd.f32 %v1655_v20, %v2406_v15 }
 0x187   : > { %v1657_v48 = vpop.f32.mrf.mxu0  ;;  %v1722_v31 = vadd.f32 %v2408_v45, %v2400_v42 }
 0x188   : > { %v2410_v52 = vpop.f32.mrf.mxu1  ;;  %v1658_v47 = vadd.f32 %v1657_v48, %v1656_v36  ;;  %v1141_v36 = vadd.f32 %v1716_v30, %v1044_v22  ;;  %v1144_v0 = vadd.f32 %v1719_v51, %v1047_v49 }
 0x189   : > { %v2413_v27 = vpop.f32.mrf.mxu0 }
 0x18a   : > { %v2416_v25 = vpop.f32.mrf.mxu1  ;;  %v1052_v26 = vadd.f32 %v1658_v47, %v2406_v15 }
 0x18b   : > { %v2421_v11 = vpop.f32.mrf.mxu0 }
 0x18c   : > { %v1726_v18 = vpop.f32.mrf.mxu1  ;;  %v1661_v39 = vadd.f32 %v2421_v11, %v2413_v27  ;;  %v1149_v38 = vadd.f32 %v1722_v31, %v1052_v26 }
 0x18d   : > { %v1662_v24 = vpop.f32.mrf.mxu0 }
 0x18e   : > { %v1727_v43 = vpop.f32.mrf.mxu1  ;;  %v1055_v59 = vadd.f32 %v1661_v39, %v2406_v15 }
 0x18f   : > { %v1663_v2 = vpop.f32.mrf.mxu0  ;;  %v1728_v40 = vadd.f32 %v1727_v43, %v1726_v18 }
 0x190   : > { %v2442_v1 = vpop.f32.mrf.mxu1  ;;  %v1664_v60 = vadd.f32 %v1663_v2, %v1662_v24 }
 0x191   : > { %v1665_v8 = vpop.f32.mrf.mxu0 }
 0x192   : > { %v1730_v21 = vpop.f32.mrf.mxu1  ;;  %v1060_v23 = vadd.f32 %v1664_v60, %v2406_v15 }
 0x193   : > { %v1666_v35 = vpop.f32.mrf.mxu0  ;;  %v1731_v30 = vadd.f32 %v1730_v21, %v2442_v1 }
 0x194   : > { %v1762_v48 = vpop.f32.mrf.mxu1  ;;  %v1667_v10 = vadd.f32 %v1666_v35, %v1665_v8  ;;  %v1157_v11 = vadd.f32 %v1728_v40, %v1060_v23 }
 0x195   : > { %v1238_v29 = vadd.f32 %v1762_v48, %v1141_v36  ;;  %v1754_v53 = vpop.f32.mrf.mxu0 }
 0x196   : > { %v1206_v4 = vadd.f32 %v1754_v53, %v1109_v57  ;;  %v1229_v41 = vpop.f32.mrf.mxu1  ;;  %v1063_v18 = vadd.f32 %v1667_v10, %v2406_v15  ;;  %v1725_v15 = vadd.f32 %v2416_v25, %v2410_v52 }
 0x197   : > { %v1270_v33 = vmax.f32 %v1238_v29, 0.0  ;;  %v1230_v32 = vadd.f32 %v1229_v41, %v1133_v58  ;;  %v1197_v62 = vpop.f32.mrf.mxu0 }
 0x198   : > { %v1262_v42 = vmax.f32 %v1206_v4, 0.0  ;;  %v1198_v45 = vadd.f32 %v1197_v62, %v1101_v3  ;;  %v1763_v61 = vpop.f32.mrf.mxu1  ;;  %v1160_v46 = vadd.f32 %v1731_v30, %v1063_v18  ;;  %v1152_v31 = vadd.f32 %v1725_v15, %v1055_v59 }
 0x199   : > { %v1598_v56 = vpack.c.bf16 %v1270_v33, %v1270_v33  ;;  %v1268_v24 = vmax.f32 %v1230_v32, 0.0  ;;  %v1241_v13 = vadd.f32 %v1763_v61, %v1144_v0  ;;  %v1755_v34 = vpop.f32.mrf.mxu0 }
 0x19a   : > { %v1590_v54 = vpack.c.bf16 %v1262_v42, %v1262_v42  ;;  %v1260_v22 = vmax.f32 %v1198_v45, 0.0  ;;  %v1209_v20 = vadd.f32 %v1755_v34, %v1112_v37  ;;  %v1232_v27 = vpop.f32.mrf.mxu1 }
 0x19b   : > { %1351 = vst.msk [vmem:[%s2483_s28 + $0x28] sm:$0xf] %vm1340_vm3, %v1598_v56  ;;  %v1596_v43 = vpack.c.bf16 %v1268_v24, %v1268_v24  ;;  %v1271_v2 = vmax.f32 %v1241_v13, 0.0  ;;  %v1233_v3 = vadd.f32 %v1232_v27, %v1136_v55  ;;  %v1200_v57 = vpop.f32.mrf.mxu0  ;;  %v1120_v55 = vadd.f32 %v2446_v12, %v2457_v6 }
 0x19c   : > { %1343 = vst.msk [vmem:[%s2483_s28 + $0x8] sm:$0xf] %vm1340_vm3, %v1590_v54  ;;  %v1588_v28 = vpack.c.bf16 %v1260_v22, %v1260_v22  ;;  %v1263_v63 = vmax.f32 %v1209_v20, 0.0  ;;  %v1201_v37 = vadd.f32 %v1200_v57, %v2433_v44  ;;  %v1766_v16 = vpop.f32.mrf.mxu1 }
 0x19d   : > { %1349 = vst.msk [vmem:[%s2483_s28 + $0x20] sm:$0xf] %vm1340_vm3, %v1596_v43  ;;  %v1599_v47 = vpack.c.bf16 %v1271_v2, %v1271_v2  ;;  %v1269_v8 = vmax.f32 %v1233_v3, 0.0  ;;  %v1254_v9 = vadd.f32 %v1766_v16, %v1157_v11  ;;  %v1758_v5 = vpop.f32.mrf.mxu0 }
 0x19e   : > { %1341 = vst.msk [vmem:[%s2483_s28] sm:$0xf] %vm1340_vm3, %v1588_v28  ;;  %v1591_v60 = vpack.c.bf16 %v1263_v63, %v1263_v63  ;;  %v1261_v14 = vmax.f32 %v1201_v37, 0.0  ;;  %v1222_v49 = vadd.f32 %v1758_v5, %v1125_v50  ;;  %v1245_v44 = vpop.f32.mrf.mxu1  ;;  %v1128_v50 = vadd.f32 %v2464_v17, %v2467_v19 }
 0x19f   : > { %1352 = vst.msk [vmem:[%s2483_s28 + $0x2c] sm:$0xf] %vm1340_vm3, %v1599_v47  ;;  %v1597_v1 = vpack.c.bf16 %v1269_v8, %v1269_v8  ;;  %v1274_v21 = vmax.f32 %v1254_v9, 0.0  ;;  %v1246_v35 = vadd.f32 %v1245_v44, %v1149_v38  ;;  %v1213_v36 = vpop.f32.mrf.mxu0 }
 0x1a0   : > { %1344 = vst.msk [vmem:[%s2483_s28 + $0xc] sm:$0xf] %vm1340_vm3, %v1591_v60  ;;  %v1589_v48 = vpack.c.bf16 %v1261_v14, %v1261_v14  ;;  %v1266_v51 = vmax.f32 %v1222_v49, 0.0  ;;  %v1214_v52 = vadd.f32 %v1213_v36, %v2454_v7  ;;  %v1767_v25 = vpop.f32.mrf.mxu1 }
 0x1a1   : > { %1350 = vst.msk [vmem:[%s2483_s28 + $0x24] sm:$0xf] %vm1340_vm3, %v1597_v1  ;;  %v1602_v26 = vpack.c.bf16 %v1274_v21, %v1274_v21  ;;  %v1272_v29 = vmax.f32 %v1246_v35, 0.0  ;;  %v1257_v53 = vadd.f32 %v1767_v25, %v1160_v46  ;;  %v1759_v58 = vpop.f32.mrf.mxu0 }
 0x1a2   : > { %1342 = vst.msk [vmem:[%s2483_s28 + $0x4] sm:$0xf] %vm1340_vm3, %v1589_v48  ;;  %v1594_v23 = vpack.c.bf16 %v1266_v51, %v1266_v51  ;;  %v1264_v4 = vmax.f32 %v1214_v52, 0.0  ;;  %v1225_v41 = vadd.f32 %v1759_v58, %v1128_v50  ;;  %v1248_v7 = vpop.f32.mrf.mxu1 }
 0x1a3   : > { %1355 = vst.msk [vmem:[%s2483_s28 + $0x38] sm:$0xf] %vm1340_vm3, %v1602_v26  ;;  %v1600_v17 = vpack.c.bf16 %v1272_v29, %v1272_v29  ;;  %v1275_v19 = vmax.f32 %v1257_v53, 0.0  ;;  %v1249_v10 = vadd.f32 %v1248_v7, %v1152_v31  ;;  %v1216_v33 = vpop.f32.mrf.mxu0 }
 0x1a4   : > { %1347 = vst.msk [vmem:[%s2483_s28 + $0x18] sm:$0xf] %vm1340_vm3, %v1594_v23  ;;  %v1592_v32 = vpack.c.bf16 %v1264_v4, %v1264_v4  ;;  %v1267_v62 = vmax.f32 %v1225_v41, 0.0  ;;  %v1217_v0 = vadd.f32 %v1216_v33, %v1120_v55 }
 0x1a5   : > { %1353 = vst.msk [vmem:[%s2483_s28 + $0x30] sm:$0xf] %vm1340_vm3, %v1600_v17  ;;  %v1603_v39 = vpack.c.bf16 %v1275_v19, %v1275_v19  ;;  %v1273_v40 = vmax.f32 %v1249_v10, 0.0 }
 0x1a6   : > { %1345 = vst.msk [vmem:[%s2483_s28 + $0x10] sm:$0xf] %vm1340_vm3, %v1592_v32  ;;  %v1595_v12 = vpack.c.bf16 %v1267_v62, %v1267_v62  ;;  %v1265_v6 = vmax.f32 %v1217_v0, 0.0 }
 0x1a7   : > { %1356 = vst.msk [vmem:[%s2483_s28 + $0x3c] sm:$0xf] %vm1340_vm3, %v1603_v39  ;;  %v1601_v42 = vpack.c.bf16 %v1273_v40, %v1273_v40 }
 0x1a8   : > { %1348 = vst.msk [vmem:[%s2483_s28 + $0x1c] sm:$0xf] %vm1340_vm3, %v1595_v12  ;;  %v1593_v45 = vpack.c.bf16 %v1265_v6, %v1265_v6 }
 0x1a9   : > { %1354 = vst.msk [vmem:[%s2483_s28 + $0x34] sm:$0xf] %vm1340_vm3, %v1601_v42 }
 0x1aa   : > { %1346 = vst.msk [vmem:[%s2483_s28 + $0x14] sm:$0xf] %vm1340_vm3, %v1593_v45 }
 0x1ab PF: > { %s13_s16 = sadd.s32 1, %s1912_s16   ;;  %s2547_s12 = smov %s1904_s14 }
 0x1ac   : > { %p10_p7 = scmp.ge.s32.totalorder %s13_s16, 6   ;;  %s2548_s13 = smov %s1908_s15 }
 0x1ad   : > { %s2549_s14 = smov %s2552_s17  ;;  %s2550_s15 = smov %s2556_s18 }
 0x1ae   :  { %12 = sbr.rel (!%p10_p7) target bundleno = 3 (0x3), region = 69 }

// kernel: quantize_bottleneck_v2_forward.11
= control target key start
LH: loop header
LB: loop body
LE: loop exit
PB: predicated region body
PF: predicated region fallthrough
CT: control target
= control target key end

     0   :  { %s1429_s12 = smov 0   ;;  %s1431_s13 = smov 0   ;;  %s1888_s0 = inlined_call_operand.vmem [shape: bf16[2,18,18,16], index: 0, kind: input, shape index: {}]   ;;  %s1889_s1 = inlined_call_operand.vmem [shape: bf16[144,64], index: 1, kind: input, shape index: {}]   ;;  %s1890_s2 = inlined_call_operand.vmem [shape: f32[1,64], index: 2, kind: input, shape index: {}]   ;;  %s1891_s3 = inlined_call_operand.vmem [shape: bf16[2,16,16,64], index: 3, kind: output, shape index: {}]  }
   0x1   :  { %s1433_s14 = smov 0   ;;  %s1435_s15 = smov 0  }
   0x2   :  { %s1437_s16 = smov 0  }
   0x3 LB: > { %s28_s17 = sadd.s32 1, %s1391_s14  ;;  %s32_s18 = sadd.s32 1, %s1395_s15  ;;  %s1399_s16 = sphi %s1437_s16, %s13_s16   ;;  %s1395_s15 = sphi %s1435_s15, %s1895_s15   ;;  %s1391_s14 = sphi %s1433_s14, %s1894_s14   ;;  %s1387_s13 = sphi %s1431_s13, %s1893_s13   ;;  %s1383_s12 = sphi %s1429_s12, %s1892_s12  }
   0x4   : > { %p30_p0 = scmp.ge.s32.totalorder %s28_s17, 2  ;;  %p1183_p1 = scmp.ge.s32.totalorder %s1399_s16, 1 }
   0x5   : > { %p177_p2 = scmp.lt.s32.totalorder %s1399_s16, 5 }
   0x6   : > { %s1897_s17 = smov (%p30_p0, %s28_s17), 0  ;;  %s1899_s18 = smov (!%p30_p0, %s32_s18), %s1395_s15 }
   0x7   : > { %p178_p3 = pnand %p1183_p1, %p177_p2  ;;  %p34_p4 = scmp.ge.s32.totalorder %s1899_s18, 2 }
   0x8   : > { %p216_p5 = scmp.lt.s32.totalorder (!%p178_p3), %s1387_s13, 1  ;;  %s1248_s21 = smul.u32 (!%p178_p3), 96, %s1383_s12 }
   0x9   : > { %s1901_s18 = smov (%p34_p4, %s1899_s18), 0  ;;  %181 = sbr.rel (%p178_p3) target bundleno = 450 (0x1c2), region = 32 }
   0xa   : > { %s1402_s4 = smov (!%p178_p3), 48   ;;  %s1403_s9 = smov (!%p178_p3), 80  }
   0xb   : > { %s1404_s10 = smov (!%p178_p3), 32   ;;  %s1405_s11 = smov (!%p178_p3), 16  }
   0xc   : > { %s1406_s19 = smov (!%p178_p3), 64   ;;  %s1407_s20 = smov (!%p178_p3), 96  }
   0xd   : > { %s1408_s25 = smov (!%p178_p3), 112  }
   0xe   : > { %v1401_v0 = vmov 0   ;;  %s1903_s13 = smov (!%p216_p5, %s1387_s13), 1  ;;  %v1351_v1 = vld [vmem:[%s1889_s1 + $0x38] sm:$0xff]   ;;  %v1353_v2 = vld [vmem:[%s1889_s1 + $0x30] sm:$0xff]   ;;  %vm454_vm0 = vcmask 1046528   ;;  %v1354_v3 = vld [vmem:[%s1889_s1 + $0x28] sm:$0xff]  }
   0xf   : > { %851 = vmatprep.subr.bf16.mxu0 %v1401_v0  ;;  %1265 = vmatprep.subr.bf16.mxu1 %v1401_v0  ;;  %s1283_s22 = smul.u32 216, %s1903_s13  ;;  %vm341_vm1 = vsmask.f32 7424  ;;  %v1355_v8 = vld [vmem:[%s1889_s1 + $0x20] sm:$0xff]   ;;  %v1356_v18 = vld [vmem:[%s1889_s1 + $0x18] sm:$0xff]   ;;  %vm621_vm2 = vcmask 130048  }
  0x10   : > { %852 = vmatpush1.bf16.msra.mxu0 %v1351_v1  ;;  %1274 = vmatpush1.bf16.msra.mxu1 %v1351_v1  ;;  %vm638_vm3 = vcmask 261120   ;;  %vm655_vm4 = vcmask 392192   ;;  %vm672_vm5 = vcmask 523264   ;;  %vm689_vm6 = vcmask 654336   ;;  %s1187_s5 = sshll.u32 %s1903_s13, 5 }
  0x11   : > { %853 = vmatprep.subr.bf16.mxu0 %v1401_v0  ;;  %1266 = vmatprep.subr.bf16.mxu1 %v1401_v0  ;;  %s220_s27 = scalar_lea.vmem %s1888_s0, %s1283_s22  ;;  %vm706_vm7 = vcmask 785408   ;;  %vm723_vm8 = vcmask 916480   ;;  %vm1028_vm9 = vcmask 519168  }
  0x12   : > { %s1478_s28 = scalar_lea.vmem %s220_s27, %s1248_s21 }
  0x13   : > { %v1484_v4 = vld [vmem:[%s1478_s28 + $0x3c] sm:$0xff]   ;;  %v1487_v5 = vld [vmem:[%s1478_s28 + $0xc] sm:$0xff]   ;;  %v1494_v6 = vld [vmem:[%s1478_s28 + $0x14] ss:$0 sps:$4 sm:$0x11]  }
  0x14   : > { %854 = vmatpush1.bf16.msra.mxu0 %v1353_v2  ;;  %1275 = vmatpush1.bf16.msra.mxu1 %v1353_v2  ;;  %v1497_v7 = vld [vmem:[%s1478_s28] sm:$0xff]   ;;  %v458_v9 = vrot.slane %v1487_v5, 1  ;;  %v1506_v10 = vld [vmem:[%s1478_s28 + $0x30] sm:$0xff]   ;;  %v459_v11 = vrot.slane %v1494_v6, 1  ;;  %v470_v22 = vrot.slane %v1484_v4, 1  ;;  %v403_v31 = vshrl.u32 %v1484_v4, 16 }
  0x15   : > { %855 = vmatprep.subr.bf16.mxu0 %v1401_v0  ;;  %1267 = vmatprep.subr.bf16.mxu1 %v1401_v0  ;;  %v1336_v12 = vld [vmem:[%s1478_s28 + $0x8] ss:$0 sps:$4 sm:$0x11]   ;;  %v455_v13 = vrot.slane %v1497_v7, 1  ;;  %v467_v14 = vrot.slane %v1506_v10, 1  ;;  %v343_v19 = vshrl.u32 %v1497_v7, 16 }
  0x16   : > { %508 = vrot.lane.b32.xlu1 %v1484_v4, %s1402_s4  ;;  %500 = vrot.lane.b32.xlu0 %v1487_v5, %s1402_s4  ;;  %v1515_v15 = vsel %vm454_vm0, %v458_v9, %v459_v11  ;;  %v456_v16 = vrot.slane %v1336_v12, 1  ;;  %v1338_v17 = vld [vmem:[%s1478_s28 + $0x38] ss:$0 sps:$4 sm:$0x11]   ;;  %v345_v20 = vshll.u32 %v1497_v7, 16  ;;  %v350_v21 = vshll.u32 %v1336_v12, 16 }
  0x17   : > { %v468_v24 = vrot.slane %v1338_v17, 1  ;;  %v1339_v25 = vld [vmem:[%s1478_s28 + $0x44] ss:$0 sps:$4 sm:$0x11]   ;;  %v391_v26 = vshrl.u32 %v1506_v10, 16  ;;  %v393_v27 = vshll.u32 %v1506_v10, 16 }
  0x18   : > { %856 = vmatpush1.bf16.msra.mxu0 %v1354_v3  ;;  %1276 = vmatpush1.bf16.msra.mxu1 %v1354_v3  ;;  %v457_v23 = vsel %vm454_vm0, %v455_v13, %v456_v16  ;;  %v347_v28 = vrot.slane %v345_v20, 1  ;;  %v352_v29 = vrot.slane %v350_v21, 1  ;;  %v398_v30 = vshll.u32 %v1338_v17, 16  ;;  %v1538_v36 = vld [vmem:[%s1478_s28 + $0x48] sm:$0xff]   ;;  %v1543_v41 = vld [vmem:[%s1478_s28 + $0x18] sm:$0xff]   ;;  %v1586_v13 = vld [vmem:[%s1478_s28 + $0x60] sm:$0xff]  }
  0x19   : > { %857 = vmatprep.subr.bf16.mxu0 %v1401_v0  ;;  %1268 = vmatprep.subr.bf16.mxu1 %v1401_v0  ;;  %v1534_v32 = vsel %vm454_vm0, %v467_v14, %v468_v24  ;;  %v471_v33 = vrot.slane %v1339_v25, 1  ;;  %v395_v34 = vrot.slane %v393_v27, 1  ;;  %v405_v35 = vshll.u32 %v1484_v4, 16  ;;  %v1342_v48 = vld [vmem:[%s1478_s28 + $0x50] ss:$0 sps:$4 sm:$0x11]  }
  0x1a   : > { %550 = vrot.lane.b32.xlu0 %v1515_v15, %s1403_s9  ;;  %479 = vrot.lane.b32.xlu1 %v457_v23, %s1404_s10  ;;  %v348_v37 = vor.u32 %v347_v28, %v343_v19  ;;  %v400_v38 = vrot.slane %v398_v30, 1  ;;  %v410_v39 = vshll.u32 %v1339_v25, 16  ;;  %v355_v40 = vshrl.u32 %v1487_v5, 16  ;;  %v1343_v55 = vld [vmem:[%s1478_s28 + $0x20] ss:$0 sps:$4 sm:$0x11]  }
  0x1b   : > { %v396_v42 = vor.u32 %v395_v34, %v391_v26  ;;  %v407_v43 = vrot.slane %v405_v35, 1  ;;  %v357_v44 = vshll.u32 %v1487_v5, 16  ;;  %v362_v47 = vshll.u32 %v1494_v6, 16  ;;  %v1592_v19 = vld [vmem:[%s1478_s28 + $0x68] ss:$0 sps:$4 sm:$0x11]  }
  0x1c   : > { %858 = vmatpush1.bf16.msra.mxu0 %v1355_v8  ;;  %1277 = vmatpush1.bf16.msra.mxu1 %v1355_v8  ;;  %v353_v45 = vsel %vm341_vm1, %v348_v37, %v352_v29  ;;  %v412_v46 = vrot.slane %v410_v39, 1  ;;  %v1554_v49 = vsel %vm454_vm0, %v470_v22, %v471_v33  ;;  %v417_v52 = vshll.u32 %v1538_v36, 16  ;;  %v1357_v24 = vld [vmem:[%s1889_s1 + $0x10] sm:$0xff]   ;;  %v1358_v28 = vld [vmem:[%s1889_s1 + $0x8] sm:$0xff]   ;;  %v1360_v33 = vld [vmem:[%s1889_s1 + $0x40] sm:$0xff]  }
  0x1d   : > { %859 = vmatprep.subr.bf16.mxu0 %v1401_v0  ;;  %1269 = vmatprep.subr.bf16.mxu1 %v1401_v0  ;;  %v408_v50 = vor.u32 %v407_v43, %v403_v31  ;;  %v359_v51 = vrot.slane %v357_v44, 1  ;;  %v1559_v53 = vsel %vm341_vm1, %v396_v42, %v400_v38  ;;  %v364_v54 = vrot.slane %v362_v47, 1  ;;  %v1359_v31 = vld [vmem:[%s1889_s1] sm:$0xff]   ;;  %v1633_v34 = vld [vmem:[%s1478_s28 + $0x54] sm:$0xff]  }
  0x1e   : > { %487 = vrot.lane.b32.xlu1 %v1534_v32, %s1404_s10  ;;  %438 = vrot.lane.b32.xlu0 %v353_v45, %s1405_s11  ;;  %v415_v57 = vshrl.u32 %v1538_v36, 16  ;;  %v422_v58 = vshll.u32 %v1342_v48, 16  ;;  %v369_v59 = vshll.u32 %v1543_v41, 16  ;;  %v419_v60 = vrot.slane %v417_v52, 1  ;;  %v1637_v35 = vld [vmem:[%s1478_s28 + $0x24] sm:$0xff]  }
  0x1f   : > { %v360_v56 = vor.u32 %v359_v51, %v355_v40  ;;  %v367_v61 = vshrl.u32 %v1543_v41, 16  ;;  %v473_v62 = vrot.slane %v1538_v36, 1  ;;  %v474_v63 = vrot.slane %v1342_v48, 1  ;;  %v1346_v37 = vld [vmem:[%s1478_s28 + $0x5c] ss:$0 sps:$4 sm:$0x11]  }
  0x20   : > { %860 = vmatpush1.bf16.msra.mxu0 %v1356_v18  ;;  %1278 = vmatpush1.bf16.msra.mxu1 %v1356_v18  ;;  %v1571_v1 = vsel %vm341_vm1, %v408_v50, %v412_v46  ;;  %v374_v2 = vshll.u32 %v1343_v55, 16  ;;  %v461_v3 = vrot.slane %v1543_v41, 1  ;;  %v371_v8 = vrot.slane %v369_v59, 1  ;;  %v1347_v39 = vld [vmem:[%s1478_s28 + $0x2c] ss:$0 sps:$4 sm:$0x11]  }
  0x21   : > { %861 = vmatprep.subr.bf16.mxu0 %v1401_v0  ;;  %1270 = vmatprep.subr.bf16.mxu1 %v1401_v0  ;;  %v365_v6 = vsel %vm341_vm1, %v360_v56, %v364_v54  ;;  %v1576_v9 = vsel %vm454_vm0, %v473_v62, %v474_v63  ;;  %v462_v11 = vrot.slane %v1343_v55, 1  ;;  %v420_v14 = vor.u32 %v419_v60, %v415_v57  ;;  %v1702_v60 = vld [vmem:[%s1478_s28 + $0x6c] sm:$0xff]   ;;  %v1711_v63 = vld [vmem:[%s1478_s28 + $0x74] ss:$0 sps:$4 sm:$0x11]   ;;  %s1185_s28 = sshll.u32 %s1383_s12, 3 }
  0x22   : > { %558 = vrot.lane.b32.xlu1 %v1554_v49, %s1403_s9  ;;  %446 = vrot.lane.b32.xlu0 %v1559_v53, %s1405_s11  ;;  %v424_v16 = vrot.slane %v422_v58, 1  ;;  %v372_v17 = vor.u32 %v371_v8, %v367_v61  ;;  %v376_v18 = vrot.slane %v374_v2, 1  ;;  %v520_v20 = vshrl.u32 %v1586_v13, 16  ;;  %p231_p6 = scmp.lt.s32.totalorder %s1185_s28, 15 }
  0x23   : > { %1226 = vmatprep.mubr.msk.bf16.mxu1 %vm621_vm2, %v1576_v9  ;;  %v1583_v12 = vsel %vm454_vm0, %v461_v3, %v462_v11  ;;  %v522_v21 = vshll.u32 %v1586_v13, 16  ;;  %v527_v23 = vshll.u32 %v1592_v19, 16  ;;  %v429_v38 = vshll.u32 %v1633_v34, 16 }
  0x24   : > { %1222 = vmatprep.mubr.msk.bf16.mxu0 %vm621_vm2, %v1583_v12  ;;  %v425_v22 = vsel %vm341_vm1, %v420_v14, %v424_v16  ;;  %v377_v25 = vsel %vm341_vm1, %v372_v17, %v376_v18  ;;  %862 = vmatpush1.bf16.msra.mxu0 %v1357_v24  ;;  %v434_v42 = vshll.u32 %v1346_v37, 16  ;;  %v379_v43 = vshrl.u32 %v1637_v35, 16  ;;  %s1905_s28 = smov (!%p231_p6, %s1185_s28), 15 }
  0x25   : > { %v524_v26 = vrot.slane %v522_v21, 1  ;;  %v529_v27 = vrot.slane %v527_v23, 1  ;;  %1279 = vmatpush1.bf16.msra.mxu1 %v1357_v24  ;;  %863 = vmatprep.subr.bf16.mxu0 %v1401_v0  ;;  %v431_v40 = vrot.slane %v429_v38, 1  ;;  %v386_v45 = vshll.u32 %v1347_v39, 16 }
  0x26   : > { %539 = vrot.lane.b32.xlu1 %v1571_v1, %s1406_s19  ;;  %531 = vrot.lane.b32.xlu0 %v365_v6, %s1406_s19  ;;  %v436_v47 = vrot.slane %v434_v42, 1  ;;  %v476_v54 = vrot.slane %v1633_v34, 1  ;;  %v477_v55 = vrot.slane %v1346_v37, 1  ;;  %v464_v56 = vrot.slane %v1637_v35, 1 }
  0x27   : > { %v525_v29 = vor.u32 %v524_v26, %v520_v20  ;;  %1271 = vmatprep.subr.bf16.mxu1 %v1401_v0  ;;  %v388_v50 = vrot.slane %v386_v45, 1  ;;  %v465_v57 = vrot.slane %v1347_v39, 1  ;;  %v547_v61 = vrot.slane %v1586_v13, 1 }
  0x28   : > { %864 = vmatpush1.bf16.msra.mxu0 %v1358_v28  ;;  %v1678_v58 = vsel %vm454_vm0, %v476_v54, %v477_v55  ;;  %v548_v62 = vrot.slane %v1592_v19, 1  ;;  %v593_v2 = vshll.u32 %v1702_v60, 16 }
  0x29   : > { %v1614_v30 = vsel %vm341_vm1, %v525_v29, %v529_v27  ;;  %1280 = vmatpush1.bf16.msra.mxu1 %v1358_v28  ;;  %865 = vmatprep.subr.bf16.mxu0 %v1401_v0  ;;  %v1681_v59 = vsel %vm454_vm0, %v464_v56, %v465_v57 }
  0x2a   : > { %579 = vrot.lane.b32.xlu1 %v1538_v36, %s1407_s20  ;;  %571 = vrot.lane.b32.xlu0 %v1543_v41, %s1407_s20  ;;  %v1719_v3 = vsel %vm454_vm0, %v547_v61, %v548_v62  ;;  %v595_v8 = vrot.slane %v593_v2, 1 }
  0x2b   : > { %1272 = vmatprep.subr.bf16.mxu1 %v1401_v0 }
  0x2c   : > { %866 = vmatpush1.bf16.msra.mxu0 %v1359_v31 }
  0x2d   : > { %1281 = vmatpush1.bf16.msra.mxu1 %v1359_v31  ;;  %881 = vmatprep.subr.bf16.mxu0 %v1401_v0 }
  0x2e   : > { %610 = vrot.lane.b32.xlu1 %v425_v22, %s1408_s25  ;;  %602 = vrot.lane.b32.xlu0 %v377_v25, %s1408_s25 }
  0x2f   : > { %1273 = vmatprep.subr.bf16.mxu1 %v1401_v0  ;;  %v427_v0 = vshrl.u32 %v1633_v34, 16 }
  0x30   : > { %882 = vmatpush2.bf16.msra.mxu0 %v1360_v33 }
  0x31   : > { %1282 = vmatpush2.bf16.msra.mxu1 %v1360_v33  ;;  %v432_v46 = vor.u32 %v431_v40, %v427_v0 }
  0x32   : > { %448 = vrot.lane.b32.xlu1 %v1571_v1, %s1405_s11  ;;  %440 = vrot.lane.b32.xlu0 %v365_v6, %s1405_s11  ;;  %v591_v6 = vshrl.u32 %v1702_v60, 16 }
  0x33   : > { %v437_v51 = vsel %vm341_vm1, %v432_v46, %v436_v47 }
  0x34   : > { %v596_v11 = vor.u32 %v595_v8, %v591_v6 }
  0x36   : > { %489 = vrot.lane.b32.xlu1 %v1554_v49, %s1404_s10  ;;  %481 = vrot.lane.b32.xlu0 %v1515_v15, %s1404_s10  ;;  %v381_v15 = vshll.u32 %v1637_v35, 16 }
  0x38   : > { %v383_v44 = vrot.slane %v381_v15, 1 }
  0x3a   : > { %510 = vrot.lane.b32.xlu1 %v1538_v36, %s1402_s4  ;;  %502 = vrot.lane.b32.xlu0 %v1543_v41, %s1402_s4  ;;  %v384_v48 = vor.u32 %v383_v44, %v379_v43 }
  0x3c   : > { %v389_v52 = vsel %vm341_vm1, %v384_v48, %v388_v50 }
  0x3e   : > { %541 = vrot.lane.b32.xlu1 %v425_v22, %s1406_s19  ;;  %533 = vrot.lane.b32.xlu0 %v377_v25, %s1406_s19 }
  0x42   : > { %560 = vrot.lane.b32.xlu1 %v1576_v9, %s1403_s9  ;;  %552 = vrot.lane.b32.xlu0 %v1583_v12, %s1403_s9 }
  0x46   : > { %581 = vrot.lane.b32.xlu1 %v1633_v34, %s1407_s20  ;;  %573 = vrot.lane.b32.xlu0 %v1637_v35, %s1407_s20 }
  0x4a   : > { %612 = vrot.lane.b32.xlu1 %v437_v51, %s1408_s25  ;;  %604 = vrot.lane.b32.xlu0 %v389_v52, %s1408_s25 }
  0x4e   : > { %450 = vrot.lane.b32.xlu1 %v425_v22, %s1405_s11  ;;  %442 = vrot.lane.b32.xlu0 %v377_v25, %s1405_s11 }
  0x52   : > { %491 = vrot.lane.b32.xlu1 %v1576_v9, %s1404_s10  ;;  %483 = vrot.lane.b32.xlu0 %v1583_v12, %s1404_s10  ;;  %v598_v9 = vshll.u32 %v1711_v63, 16 }
  0x54   : > { %v600_v12 = vrot.slane %v598_v9, 1 }
  0x56   : > { %512 = vrot.lane.b32.xlu1 %v1633_v34, %s1402_s4  ;;  %504 = vrot.lane.b32.xlu0 %v1637_v35, %s1402_s4 }
  0x5a   : > { %543 = vrot.lane.b32.xlu1 %v437_v51, %s1406_s19  ;;  %535 = vrot.lane.b32.xlu0 %v389_v52, %s1406_s19 }
  0x5e   : > { %562 = vrot.lane.b32.xlu1 %v1678_v58, %s1403_s9  ;;  %554 = vrot.lane.b32.xlu0 %v1681_v59, %s1403_s9 }
  0x62   : > { %583 = vrot.lane.b32.xlu1 %v1586_v13, %s1407_s20  ;;  %575 = vrot.lane.b32.xlu0 %v1506_v10, %s1407_s20 }
  0x66   : > { %614 = vrot.lane.b32.xlu1 %v1614_v30, %s1408_s25  ;;  %606 = vrot.lane.b32.xlu0 %v1559_v53, %s1408_s25 }
  0x6a   : > { %452 = vrot.lane.b32.xlu1 %v437_v51, %s1405_s11  ;;  %444 = vrot.lane.b32.xlu0 %v389_v52, %s1405_s11 }
  0x6e   : > { %493 = vrot.lane.b32.xlu1 %v1678_v58, %s1404_s10  ;;  %485 = vrot.lane.b32.xlu0 %v1681_v59, %s1404_s10 }
  0x72   : > { %514 = vrot.lane.b32.xlu1 %v1586_v13, %s1402_s4  ;;  %506 = vrot.lane.b32.xlu0 %v1506_v10, %s1402_s4  ;;  %s1186_s4 = sshll.u32 %s1905_s28, 1 }
  0x73   : > { %s238_s6 = sadd.s32 %s1187_s5, %s1186_s4 }
  0x76   : > { %545 = vrot.lane.b32.xlu1 %v1614_v30, %s1406_s19  ;;  %537 = vrot.lane.b32.xlu0 %v1559_v53, %s1406_s19  ;;  %v601_v53 = vsel %vm341_vm1, %v596_v11, %v600_v12 }
  0x7a   : > { %564 = vrot.lane.b32.xlu1 %v1719_v3, %s1403_s9  ;;  %556 = vrot.lane.b32.xlu0 %v1534_v32, %s1403_s9  ;;  %s1188_s9 = sshll.u32 %s238_s6, 2 }
  0x7b   : > { %s1825_s13 = scalar_lea.vmem %s1891_s3, %s1188_s9 }
  0x7e   : > { %585 = vrot.lane.b32.xlu1 %v1702_v60, %s1407_s20  ;;  %577 = vrot.lane.b32.xlu0 %v1484_v4, %s1407_s20 }
  0x82   : > { %616 = vrot.lane.b32.xlu1 %v601_v53, %s1408_s25  ;;  %608 = vrot.lane.b32.xlu0 %v1571_v1, %s1408_s25 }
  0x88   : > { %v509_v13 = vpop.permute.xlu1 %508  ;;  %v501_v14 = vpop.permute.xlu0 %500 }
  0x8c   : > { %v551_v16 = vpop.permute.xlu0 %550  ;;  %v480_v17 = vpop.permute.xlu1 %479 }
  0x90   : > { %v488_v18 = vpop.permute.xlu1 %487  ;;  %v439_v19 = vpop.permute.xlu0 %438 }
  0x91   : > { %v623_v22 = vsel %vm621_vm2, %v1497_v7, %v439_v19 }
  0x92   : > { %v640_v1 = vsel %vm638_vm3, %v623_v22, %v480_v17 }
  0x93   : > { %v657_v29 = vsel %vm655_vm4, %v640_v1, %v501_v14 }
  0x94   : > { %v559_v20 = vpop.permute.xlu1 %558  ;;  %v447_v21 = vpop.permute.xlu0 %446 }
  0x95   : > { %v631_v23 = vsel %vm621_vm2, %v1506_v10, %v447_v21 }
  0x96   : > { %v648_v24 = vsel %vm638_vm3, %v631_v23, %v488_v18 }
  0x97   : > { %v665_v26 = vsel %vm655_vm4, %v648_v24, %v509_v13 }
  0x98   : > { %v540_v25 = vpop.permute.xlu1 %539  ;;  %v532_v27 = vpop.permute.xlu0 %531 }
  0x99   : > { %v682_v28 = vsel %vm672_vm5, %v665_v26, %v540_v25  ;;  %v674_v7 = vsel %vm672_vm5, %v657_v29, %v532_v27  ;;  %v619_v27 = vrot.slane %v1711_v63, 1 }
  0x9a   : > { %v699_v31 = vsel %vm689_vm6, %v682_v28, %v559_v20  ;;  %v691_v37 = vsel %vm689_vm6, %v674_v7, %v551_v16 }
  0x9c   : > { %v580_v30 = vpop.permute.xlu1 %579  ;;  %v572_v10 = vpop.permute.xlu0 %571 }
  0x9d   : > { %v716_v33 = vsel %vm706_vm7, %v699_v31, %v580_v30  ;;  %v708_v39 = vsel %vm706_vm7, %v691_v37, %v572_v10 }
  0xa0   : > { %v611_v38 = vpop.permute.xlu1 %610  ;;  %v603_v15 = vpop.permute.xlu0 %602 }
  0xa1   : > { %v737_v0 = vsel %vm723_vm8, %v716_v33, %v611_v38  ;;  %v725_v40 = vsel %vm723_vm8, %v708_v39, %v603_v15 }
  0xa2   : > { %916 = vmatmul.mubr.bf16.vlgmr.msra.gmra.mxu1 %v737_v0  ;;  %884 = vmatmul.mubr.bf16.vlgmr.msra.gmra.mxu0 %v725_v40 }
  0xa3   : > { %1227 = vmatprep.mubr.msk.bf16.mxu1 %vm621_vm2, %v1678_v58  ;;  %1223 = vmatprep.mubr.msk.bf16.mxu0 %vm621_vm2, %v1681_v59 }
  0xa4   : > { %v449_v42 = vpop.permute.xlu1 %448  ;;  %v441_v43 = vpop.permute.xlu0 %440 }
  0xa5   : > { %v633_v54 = vsel %vm621_vm2, %v1484_v4, %v449_v42  ;;  %v625_v55 = vsel %vm621_vm2, %v1487_v5, %v441_v43 }
  0xa8   : > { %v490_v44 = vpop.permute.xlu1 %489  ;;  %v482_v45 = vpop.permute.xlu0 %481 }
  0xa9   : > { %v650_v56 = vsel %vm638_vm3, %v633_v54, %v490_v44  ;;  %v642_v58 = vsel %vm638_vm3, %v625_v55, %v482_v45 }
  0xac   : > { %v511_v46 = vpop.permute.xlu1 %510  ;;  %v503_v47 = vpop.permute.xlu0 %502 }
  0xad   : > { %v667_v59 = vsel %vm655_vm4, %v650_v56, %v511_v46  ;;  %v659_v62 = vsel %vm655_vm4, %v642_v58, %v503_v47 }
  0xb0   : > { %v542_v48 = vpop.permute.xlu1 %541  ;;  %v534_v50 = vpop.permute.xlu0 %533 }
  0xb1   : > { %v684_v2 = vsel %vm672_vm5, %v667_v59, %v542_v48  ;;  %v676_v6 = vsel %vm672_vm5, %v659_v62, %v534_v50 }
  0xb4   : > { %v561_v51 = vpop.permute.xlu1 %560  ;;  %v553_v52 = vpop.permute.xlu0 %552 }
  0xb5   : > { %v701_v8 = vsel %vm689_vm6, %v684_v2, %v561_v51  ;;  %v693_v4 = vsel %vm689_vm6, %v676_v6, %v553_v52 }
  0xb8   : > { %v582_v57 = vpop.permute.xlu1 %581  ;;  %v574_v61 = vpop.permute.xlu0 %573 }
  0xb9   : > { %v718_v5 = vsel %vm706_vm7, %v701_v8, %v582_v57  ;;  %v710_v11 = vsel %vm706_vm7, %v693_v4, %v574_v61 }
  0xbc   : > { %v613_v9 = vpop.permute.xlu1 %612  ;;  %v605_v12 = vpop.permute.xlu0 %604 }
  0xbd   : > { %v740_v53 = vsel %vm723_vm8, %v718_v5, %v613_v9  ;;  %v728_v13 = vsel %vm723_vm8, %v710_v11, %v605_v12  ;;  %v1818_v9 = vld [vmem:[%s1890_s2] ss:$0 sm:$0xff] }
  0xbe   : > { %924 = vmatmul.mubr.bf16.gmra.mxu1 %v740_v53  ;;  %892 = vmatmul.mubr.bf16.gmra.mxu0 %v728_v13 }
  0xbf   : > { %1228 = vmatprep.mubr.msk.bf16.mxu1 %vm621_vm2, %v1719_v3  ;;  %1224 = vmatprep.mubr.msk.bf16.mxu0 %vm621_vm2, %v1534_v32  ;;  %v618_v32 = vrot.slane %v1702_v60, 1 }
  0xc0   : > { %v451_v14 = vpop.permute.xlu1 %450  ;;  %v443_v16 = vpop.permute.xlu0 %442 }
  0xc1   : > { %v635_v25 = vsel %vm621_vm2, %v1538_v36, %v451_v14  ;;  %v627_v1 = vsel %vm621_vm2, %v1543_v41, %v443_v16  ;;  %v620_v63 = vsel %vm454_vm0, %v618_v32, %v619_v27 }
  0xc4   : > { %v492_v17 = vpop.permute.xlu1 %491  ;;  %v484_v18 = vpop.permute.xlu0 %483 }
  0xc5   : > { %v652_v3 = vsel %vm638_vm3, %v635_v25, %v492_v17  ;;  %v644_v28 = vsel %vm638_vm3, %v627_v1, %v484_v18 }
  0xc8   : > { %v513_v19 = vpop.permute.xlu1 %512  ;;  %v505_v20 = vpop.permute.xlu0 %504 }
  0xc9   : > { %v669_v29 = vsel %vm655_vm4, %v652_v3, %v513_v19  ;;  %v661_v7 = vsel %vm655_vm4, %v644_v28, %v505_v20 }
  0xcc   : > { %v544_v21 = vpop.permute.xlu1 %543  ;;  %v536_v22 = vpop.permute.xlu0 %535 }
  0xcd   : > { %v686_v10 = vsel %vm672_vm5, %v669_v29, %v544_v21  ;;  %v678_v36 = vsel %vm672_vm5, %v661_v7, %v536_v22 }
  0xd0   : > { %v563_v23 = vpop.permute.xlu1 %562  ;;  %v555_v24 = vpop.permute.xlu0 %554 }
  0xd1   : > { %v703_v41 = vsel %vm689_vm6, %v686_v10, %v563_v23  ;;  %v695_v31 = vsel %vm689_vm6, %v678_v36, %v555_v24 }
  0xd4   : > { %v584_v26 = vpop.permute.xlu1 %583  ;;  %v576_v30 = vpop.permute.xlu0 %575 }
  0xd5   : > { %v720_v33 = vsel %vm706_vm7, %v703_v41, %v584_v26  ;;  %v712_v37 = vsel %vm706_vm7, %v695_v31, %v576_v30 }
  0xd8   : > { %v615_v60 = vpop.permute.xlu1 %614  ;;  %v607_v38 = vpop.permute.xlu0 %606 }
  0xd9   : > { %v743_v39 = vsel %vm723_vm8, %v720_v33, %v615_v60  ;;  %v731_v15 = vsel %vm723_vm8, %v712_v37, %v607_v38 }
  0xda   : > { %932 = vmatmul.mubr.bf16.gmra.mxu1 %v743_v39  ;;  %900 = vmatmul.mubr.bf16.gmra.mxu0 %v731_v15 }
  0xdb   : > { %1229 = vmatprep.mubr.msk.bf16.mxu1 %vm621_vm2, %v620_v63  ;;  %1225 = vmatprep.mubr.msk.bf16.mxu0 %vm621_vm2, %v1554_v49 }
  0xdc   : > { %v453_v0 = vpop.permute.xlu1 %452  ;;  %v445_v40 = vpop.permute.xlu0 %444 }
  0xdd   : > { %v637_v51 = vsel %vm621_vm2, %v1633_v34, %v453_v0  ;;  %v629_v52 = vsel %vm621_vm2, %v1637_v35, %v445_v40 }
  0xe0   : > { %v494_v42 = vpop.permute.xlu1 %493  ;;  %v486_v43 = vpop.permute.xlu0 %485 }
  0xe1   : > { %v654_v54 = vsel %vm638_vm3, %v637_v51, %v494_v42  ;;  %v646_v49 = vsel %vm638_vm3, %v629_v52, %v486_v43 }
  0xe4   : > { %v515_v44 = vpop.permute.xlu1 %514  ;;  %v507_v45 = vpop.permute.xlu0 %506 }
  0xe5   : > { %v671_v56 = vsel %vm655_vm4, %v654_v54, %v515_v44  ;;  %v663_v58 = vsel %vm655_vm4, %v646_v49, %v507_v45 }
  0xe8   : > { %v546_v46 = vpop.permute.xlu1 %545  ;;  %v538_v47 = vpop.permute.xlu0 %537 }
  0xe9   : > { %v688_v59 = vsel %vm672_vm5, %v671_v56, %v546_v46  ;;  %v680_v61 = vsel %vm672_vm5, %v663_v58, %v538_v47 }
  0xec   : > { %v565_v48 = vpop.permute.xlu1 %564  ;;  %v557_v50 = vpop.permute.xlu0 %556 }
  0xed   : > { %v705_v34 = vsel %vm689_vm6, %v688_v59, %v565_v48  ;;  %v697_v35 = vsel %vm689_vm6, %v680_v61, %v557_v50 }
  0xf0   : > { %v586_v55 = vpop.permute.xlu1 %585  ;;  %v578_v57 = vpop.permute.xlu0 %577 }
  0xf1   : > { %v722_v62 = vsel %vm706_vm7, %v705_v34, %v586_v55  ;;  %v714_v6 = vsel %vm706_vm7, %v697_v35, %v578_v57 }
  0xf4   : > { %v617_v2 = vpop.permute.xlu1 %616  ;;  %v609_v8 = vpop.permute.xlu0 %608 }
  0xf5   : > { %v746_v4 = vsel %vm723_vm8, %v722_v62, %v617_v2  ;;  %v734_v5 = vsel %vm723_vm8, %v714_v6, %v609_v8 }
  0xf6   : > { %940 = vmatmul.mubr.bf16.gmra.mxu1 %v746_v4  ;;  %908 = vmatmul.mubr.bf16.gmra.mxu0 %v734_v5 }
 0x162   : > { %v917_v11 = vpop.f32.mrf.mxu1  ;;  %v885_v12 = vpop.f32.mrf.mxu0 }
 0x163   : > { %v918_v53 = vadd.f32 %v1818_v9, %v917_v11  ;;  %v886_v13 = vadd.f32 %v1818_v9, %v885_v12 }
 0x164   : > { %v919_v14 = vpop.f32.mrf.mxu1  ;;  %v887_v17 = vpop.f32.mrf.mxu0 }
 0x165   : > { %v956_v16 = vmax.f32 %v918_v53, 0.0  ;;  %v948_v18 = vmax.f32 %v886_v13, 0.0 }
 0x166   : > { %v920_v19 = vpop.f32.mrf.mxu1  ;;  %v888_v21 = vpop.f32.mrf.mxu0 }
 0x167   : > { %v1257_v20 = vpack.c.bf16 %v956_v16, %v956_v16  ;;  %v921_v22 = vadd.f32 %v1818_v9, %v920_v19  ;;  %v1249_v23 = vpack.c.bf16 %v948_v18, %v948_v18  ;;  %v889_v24 = vadd.f32 %v1818_v9, %v888_v21 }
 0x168   : > { %v922_v25 = vpop.f32.mrf.mxu1  ;;  %v890_v3 = vpop.f32.mrf.mxu0 }
 0x169   : > { %1037 = vst.msk [vmem:[%s1825_s13 + $0x20] sm:$0xf] %vm1028_vm9, %v1257_v20  ;;  %v957_v1 = vmax.f32 %v921_v22, 0.0  ;;  %1029 = vst.msk [vmem:[%s1825_s13] sm:$0xf] %vm1028_vm9, %v1249_v23  ;;  %v949_v26 = vmax.f32 %v889_v24, 0.0 }
 0x16b   : > { %v1258_v32 = vpack.c.bf16 %v957_v1, %v957_v1  ;;  %v1250_v27 = vpack.c.bf16 %v949_v26, %v949_v26 }
 0x16d   : > { %1038 = vst.msk [vmem:[%s1825_s13 + $0x24] sm:$0xf] %vm1028_vm9, %v1258_v32  ;;  %1030 = vst.msk [vmem:[%s1825_s13 + $0x4] sm:$0xf] %vm1028_vm9, %v1250_v27 }
 0x17e   : > { %v925_v28 = vpop.f32.mrf.mxu1  ;;  %v893_v29 = vpop.f32.mrf.mxu0 }
 0x17f   : > { %v926_v30 = vadd.f32 %v1818_v9, %v925_v28  ;;  %v894_v7 = vadd.f32 %v1818_v9, %v893_v29 }
 0x180   : > { %v927_v10 = vpop.f32.mrf.mxu1  ;;  %v895_v41 = vpop.f32.mrf.mxu0 }
 0x181   : > { %v958_v36 = vmax.f32 %v926_v30, 0.0  ;;  %v950_v31 = vmax.f32 %v894_v7, 0.0 }
 0x182   : > { %v928_v33 = vpop.f32.mrf.mxu1  ;;  %v896_v63 = vpop.f32.mrf.mxu0 }
 0x183   : > { %v1259_v60 = vpack.c.bf16 %v958_v36, %v958_v36  ;;  %v929_v37 = vadd.f32 %v1818_v9, %v928_v33  ;;  %v1251_v38 = vpack.c.bf16 %v950_v31, %v950_v31  ;;  %v897_v39 = vadd.f32 %v1818_v9, %v896_v63 }
 0x184   : > { %v930_v15 = vpop.f32.mrf.mxu1  ;;  %v898_v40 = vpop.f32.mrf.mxu0 }
 0x185   : > { %1039 = vst.msk [vmem:[%s1825_s13 + $0x28] sm:$0xf] %vm1028_vm9, %v1259_v60  ;;  %v959_v0 = vmax.f32 %v929_v37, 0.0  ;;  %1031 = vst.msk [vmem:[%s1825_s13 + $0x8] sm:$0xf] %vm1028_vm9, %v1251_v38  ;;  %v951_v42 = vmax.f32 %v897_v39, 0.0 }
 0x187   : > { %v1260_v43 = vpack.c.bf16 %v959_v0, %v959_v0  ;;  %v1252_v44 = vpack.c.bf16 %v951_v42, %v951_v42 }
 0x189   : > { %1040 = vst.msk [vmem:[%s1825_s13 + $0x2c] sm:$0xf] %vm1028_vm9, %v1260_v43  ;;  %1032 = vst.msk [vmem:[%s1825_s13 + $0xc] sm:$0xf] %vm1028_vm9, %v1252_v44 }
 0x19a   : > { %v933_v45 = vpop.f32.mrf.mxu1  ;;  %v901_v46 = vpop.f32.mrf.mxu0 }
 0x19b   : > { %v934_v47 = vadd.f32 %v1818_v9, %v933_v45  ;;  %v902_v48 = vadd.f32 %v1818_v9, %v901_v46 }
 0x19c   : > { %v935_v50 = vpop.f32.mrf.mxu1  ;;  %v903_v52 = vpop.f32.mrf.mxu0 }
 0x19d   : > { %v960_v51 = vmax.f32 %v934_v47, 0.0  ;;  %v952_v54 = vmax.f32 %v902_v48, 0.0 }
 0x19e   : > { %v936_v55 = vpop.f32.mrf.mxu1  ;;  %v904_v56 = vpop.f32.mrf.mxu0 }
 0x19f   : > { %v1261_v49 = vpack.c.bf16 %v960_v51, %v960_v51  ;;  %v937_v57 = vadd.f32 %v1818_v9, %v936_v55  ;;  %v1253_v58 = vpack.c.bf16 %v952_v54, %v952_v54  ;;  %v905_v59 = vadd.f32 %v1818_v9, %v904_v56 }
 0x1a0   : > { %v938_v61 = vpop.f32.mrf.mxu1  ;;  %v906_v35 = vpop.f32.mrf.mxu0 }
 0x1a1   : > { %1041 = vst.msk [vmem:[%s1825_s13 + $0x30] sm:$0xf] %vm1028_vm9, %v1261_v49  ;;  %v961_v34 = vmax.f32 %v937_v57, 0.0  ;;  %1033 = vst.msk [vmem:[%s1825_s13 + $0x10] sm:$0xf] %vm1028_vm9, %v1253_v58  ;;  %v953_v62 = vmax.f32 %v905_v59, 0.0 }
 0x1a3   : > { %v1262_v2 = vpack.c.bf16 %v961_v34, %v961_v34  ;;  %v1254_v6 = vpack.c.bf16 %v953_v62, %v953_v62 }
 0x1a5   : > { %1042 = vst.msk [vmem:[%s1825_s13 + $0x34] sm:$0xf] %vm1028_vm9, %v1262_v2  ;;  %1034 = vst.msk [vmem:[%s1825_s13 + $0x14] sm:$0xf] %vm1028_vm9, %v1254_v6 }
 0x1b6   : > { %v941_v8 = vpop.f32.mrf.mxu1  ;;  %v909_v4 = vpop.f32.mrf.mxu0 }
 0x1b7   : > { %v942_v5 = vadd.f32 %v1818_v9, %v941_v8  ;;  %v910_v11 = vadd.f32 %v1818_v9, %v909_v4 }
 0x1b8   : > { %v943_v12 = vpop.f32.mrf.mxu1  ;;  %v911_v13 = vpop.f32.mrf.mxu0 }
 0x1b9   : > { %v962_v53 = vmax.f32 %v942_v5, 0.0  ;;  %v954_v14 = vmax.f32 %v910_v11, 0.0 }
 0x1ba   : > { %v944_v16 = vpop.f32.mrf.mxu1  ;;  %v912_v18 = vpop.f32.mrf.mxu0 }
 0x1bb   : > { %v1263_v17 = vpack.c.bf16 %v962_v53, %v962_v53  ;;  %v945_v19 = vadd.f32 %v1818_v9, %v944_v16  ;;  %v1255_v20 = vpack.c.bf16 %v954_v14, %v954_v14  ;;  %v913_v21 = vadd.f32 %v1818_v9, %v912_v18 }
 0x1bc   : > { %v946_v22 = vpop.f32.mrf.mxu1  ;;  %v914_v24 = vpop.f32.mrf.mxu0 }
 0x1bd   : > { %1043 = vst.msk [vmem:[%s1825_s13 + $0x38] sm:$0xf] %vm1028_vm9, %v1263_v17  ;;  %v963_v23 = vmax.f32 %v945_v19, 0.0  ;;  %1035 = vst.msk [vmem:[%s1825_s13 + $0x18] sm:$0xf] %vm1028_vm9, %v1255_v20  ;;  %v955_v25 = vmax.f32 %v913_v21, 0.0 }
 0x1bf   : > { %v1264_v1 = vpack.c.bf16 %v963_v23, %v963_v23  ;;  %v1256_v3 = vpack.c.bf16 %v955_v25, %v955_v25 }
 0x1c1   : > { %1044 = vst.msk [vmem:[%s1825_s13 + $0x3c] sm:$0xf] %vm1028_vm9, %v1264_v1  ;;  %1036 = vst.msk [vmem:[%s1825_s13 + $0x1c] sm:$0xf] %vm1028_vm9, %v1256_v3 }
 0x1c2 PF: > { %s13_s16 = sadd.s32 1, %s1399_s16   ;;  %s1892_s12 = smov %s1391_s14 }
 0x1c3   : > { %p10_p7 = scmp.ge.s32.totalorder %s13_s16, 6   ;;  %s1893_s13 = smov %s1395_s15 }
 0x1c4   : > { %s1894_s14 = smov %s1897_s17  ;;  %s1895_s15 = smov %s1901_s18 }
 0x1c5   :  { %12 = sbr.rel (!%p10_p7) target bundleno = 3 (0x3), region = 69 }

// kernel: quantize_bottleneck_v2_forward.8
= control target key start
LH: loop header
LB: loop body
LE: loop exit
PB: predicated region body
PF: predicated region fallthrough
CT: control target
= control target key end

     0   :  { %s4768_s15 = smov 0   ;;  %s4770_s16 = smov 0   ;;  %s6076_s0 = inlined_call_operand.vmem [shape: bf16[2,18,18,16], index: 0, kind: input, shape index: {}]   ;;  %s6077_s1 = inlined_call_operand.vmem [shape: bf16[2,16,16], index: 1, kind: input, shape index: {}]   ;;  %s6078_s2 = inlined_call_operand.vmem [shape: bf16[144,16], index: 2, kind: input, shape index: {}]   ;;  %s6079_s3 = inlined_call_operand.vmem [shape: bf16[16,16], index: 3, kind: input, shape index: {}]   ;;  %s6080_s4 = inlined_call_operand.vmem [shape: f32[2,16,16,16], index: 4, kind: output, shape index: {}]  }
   0x1   :  { %s4772_s17 = smov 0   ;;  %s4774_s18 = smov 0  }
   0x2   :  { %s4776_s19 = smov 0  }
   0x3 LB: > { %s23_s20 = sadd.s32 1, %s4724_s17  ;;  %s26_s21 = sadd.s32 1, %s4728_s18  ;;  %s4732_s19 = sphi %s4776_s19, %s14_s19   ;;  %s4728_s18 = sphi %s4774_s18, %s6097_s18   ;;  %s4724_s17 = sphi %s4772_s17, %s6096_s17   ;;  %s4720_s16 = sphi %s4770_s16, %s6095_s16   ;;  %s4716_s15 = sphi %s4768_s15, %s6094_s15  }
   0x4   : > { %p24_p0 = scmp.ge.s32.totalorder %s23_s20, 2  ;;  %p4400_p1 = scmp.ge.s32.totalorder %s4732_s19, 1 }
   0x5   : > { %p186_p2 = scmp.lt.s32.totalorder %s4732_s19, 5 }
   0x6   : > { %s6099_s20 = smov (%p24_p0, %s23_s20), 0  ;;  %s6101_s21 = smov (!%p24_p0, %s26_s21), %s4728_s18 }
   0x7   : > { %p187_p3 = pnand %p4400_p1, %p186_p2  ;;  %p28_p4 = scmp.ge.s32.totalorder %s6101_s21, 2 }
   0x8   : > { %p222_p5 = scmp.lt.s32.totalorder (!%p187_p3), %s4720_s16, 1  ;;  %s4500_s22 = smul.u32 (!%p187_p3), 96, %s4716_s15 }
   0x9   : > { %s6103_s21 = smov (%p28_p4, %s6101_s21), 0  ;;  %190 = sbr.rel (%p187_p3) target bundleno = 923 (0x39b), region = 36 }
   0xa   : > { %s4735_s6 = smov (!%p187_p3), 32   ;;  %s4736_s7 = smov (!%p187_p3), 48  }
   0xb   : > { %s4737_s8 = smov (!%p187_p3), 80   ;;  %s4738_s9 = smov (!%p187_p3), 16  }
   0xc   : > { %s4739_s10 = smov (!%p187_p3), 96   ;;  %s4740_s11 = smov (!%p187_p3), 64  }
   0xd   : > { %s4741_s12 = smov (!%p187_p3), 112  }
   0xe   : > { %v319_v0 = vlaneseq  ;;  %v4734_v1 = vmov 1966171168   ;;  %s6105_s16 = smov (!%p222_p5, %s4720_s16), 1  ;;  %vm1490_vm0 = vcmask 130048   ;;  %vm2744_vm1 = vsmask.f32 7424 }
   0xf   : > { %v317_v2 = vunpack.c.l.s4 %v4734_v1  ;;  %s4585_s23 = smul.u32 216, %s6105_s16  ;;  %s4499_s24 = sshll.u32 %s6105_s16, 3  ;;  %vm3609_vm2 = vcmask 261120   ;;  %vm3626_vm3 = vcmask 392192   ;;  %vm3643_vm4 = vcmask 523264  }
  0x10   : > { %v320_v3 = vshrl.u32 %v319_v0, 7  ;;  %s231_s27 = scalar_lea.vmem %s6077_s1, %s4499_s24  ;;  %vm3660_vm5 = vcmask 654336   ;;  %vm3677_vm6 = vcmask 785408   ;;  %vm3694_vm7 = vcmask 916480  }
  0x11   : > { %v318_v4 = vunpack.c.0.s8 %v317_v2  ;;  %s226_s30 = scalar_lea.vmem %s6076_s0, %s4585_s23  ;;  %v4635_v5 = vld [vmem:[%s231_s27] sm:$0xff]   ;;  %vm3922_vm8 = vsmask.f32 3328  ;;  %vm3923_vm9 = vsmask.f32 7440 }
  0x12   : > { %s4813_s5 = scalar_lea.vmem %s226_s30, %s4500_s22  ;;  %4523 = vmatprep.subr.bf16.mxu0 %v4635_v5  ;;  %vm5969_vm10 = vmor %vm3922_vm8, %vm3923_vm9 }
  0x13   : > { %v4811_v6 = vsub.s32 %v318_v4, %v320_v3  ;;  %v4411_v7 = vld.sshfl [vmem:[%s4813_s5] sm:$0x33 pattern:$0x75316420]  ;;  %4524 = vmatpush3.bf16.msra.mxu0 %v4635_v5 }
  0x14   : > { %v4412_v8 = vld.sshfl [vmem:[%s4813_s5 + $0x4] sm:$0x33 pattern:$0x75316420]  ;;  %v315_v9 = vcombine.high %v4411_v7, %v4411_v7 }
  0x15   : > { %v322_v10 = vrot.slane %v4411_v7, %v4811_v6  ;;  %v4670_v11 = vld.sshfl [vmem:[%s4813_s5 + $0xc] sm:$0x33 pattern:$0x75316420]  ;;  %v339_v12 = vcombine.high %v4412_v8, %v4412_v8  ;;  %v346_v13 = vrot.slane %v4412_v8, %v4811_v6 }
  0x16   : > { %v4413_v14 = vld.sshfl [vmem:[%s4813_s5 + $0x8] sm:$0x1 pattern:$0x75316420]  ;;  %v329_v16 = vrot.slane %v315_v9, %v4811_v6  ;;  %v377_v20 = vcombine.high %v4670_v11, %v4670_v11  ;;  %v384_v21 = vrot.slane %v4670_v11, %v4811_v6 }
  0x17   : > { %v4671_v15 = vld.sshfl [vmem:[%s4813_s5 + $0x10] sm:$0x33 pattern:$0x75316420]  ;;  %v369_v17 = vrot.slane %v4413_v14, %v4811_v6  ;;  %v353_v19 = vrot.slane %v339_v12, %v4811_v6 }
  0x18   : > { %v4672_v18 = vld.sshfl [vmem:[%s4813_s5 + $0x14] sm:$0x1 pattern:$0x75316420]  ;;  %v930_v22 = vcombine.low %v322_v10, %v329_v16  ;;  %v4417_v23 = vcombine.high %v322_v10, %v329_v16  ;;  %v401_v24 = vcombine.high %v4671_v15, %v4671_v15  ;;  %v408_v25 = vrot.slane %v4671_v15, %v4811_v6 }
  0x19   : > { %v932_v26 = vcombine.low %v346_v13, %v353_v19  ;;  %v4418_v27 = vcombine.high %v346_v13, %v353_v19  ;;  %v391_v28 = vrot.slane %v377_v20, %v4811_v6  ;;  %v392_v29 = vcombine.high %v384_v21, %v384_v21  ;;  %v4673_v38 = vld.sshfl [vmem:[%s4813_s5 + $0x18] sm:$0x33 pattern:$0x75316420] }
  0x1a   : > { %v940_v30 = vrot.slane %v930_v22, %v4811_v6  ;;  %v947_v31 = vrot.slane %v4417_v23, %v4811_v6  ;;  %v415_v32 = vrot.slane %v401_v24, %v4811_v6  ;;  %v416_v33 = vcombine.high %v408_v25, %v408_v25  ;;  %v4674_v42 = vld.sshfl [vmem:[%s4813_s5 + $0x1c] sm:$0x33 pattern:$0x75316420] }
  0x1b   : > { %v954_v34 = vrot.slane %v932_v26, %v4811_v6  ;;  %v961_v35 = vrot.slane %v4418_v27, %v4811_v6  ;;  %v393_v36 = vcombine.high %v391_v28, %v391_v28  ;;  %v979_v37 = vcombine.low %v369_v17, %v384_v21  ;;  %v4675_v48 = vld.sshfl [vmem:[%s4813_s5 + $0x20] sm:$0x1 pattern:$0x75316420] }
  0x1c   : > { %v962_v39 = vcombine.low %v940_v30, %v947_v31  ;;  %v980_v40 = vcombine.low %v391_v28, %v392_v29  ;;  %v982_v41 = vcombine.low %v415_v32, %v416_v33  ;;  %v417_v43 = vcombine.high %v415_v32, %v415_v32  ;;  %v4676_v52 = vld.sshfl [vmem:[%s4813_s5 + $0x24] sm:$0x33 pattern:$0x75316420] }
  0x1d   : > { %v963_v44 = vcombine.low %v954_v34, %v961_v35  ;;  %v981_v45 = vcombine.low %v393_v36, %v408_v25  ;;  %v989_v46 = vrot.slane %v979_v37, %v4811_v6  ;;  %v431_v47 = vrot.slane %v4672_v18, %v4811_v6  ;;  %v4677_v56 = vld.sshfl [vmem:[%s4813_s5 + $0x28] sm:$0x33 pattern:$0x75316420] }
  0x1e   : > { %v970_v49 = vrot.slane %v962_v39, %v4811_v6  ;;  %v996_v50 = vrot.slane %v980_v40, %v4811_v6  ;;  %v1010_v51 = vrot.slane %v982_v41, %v4811_v6  ;;  %v4678_v57 = vld.sshfl [vmem:[%s4813_s5 + $0x2c] sm:$0x1 pattern:$0x75316420]  ;;  %v439_v59 = vcombine.high %v4673_v38, %v4673_v38 }
  0x1f   : > { %v977_v53 = vrot.slane %v963_v44, %v4811_v6  ;;  %v1003_v54 = vrot.slane %v981_v45, %v4811_v6  ;;  %v1028_v55 = vcombine.low %v417_v43, %v431_v47  ;;  %v446_v60 = vrot.slane %v4673_v38, %v4811_v6  ;;  %v4679_v1 = vld.sshfl [vmem:[%s4813_s5 + $0x30] sm:$0x33 pattern:$0x75316420] }
  0x20   : > { %v1011_v58 = vcombine.low %v989_v46, %v996_v50  ;;  %v463_v63 = vcombine.high %v4674_v42, %v4674_v42  ;;  %v470_v0 = vrot.slane %v4674_v42, %v4811_v6  ;;  %v453_v3 = vrot.slane %v439_v59, %v4811_v6  ;;  %v4680_v35 = vld.sshfl [vmem:[%s4813_s5 + $0x34] sm:$0x33 pattern:$0x75316420] }
  0x21   : > { %v978_v61 = vcombine.low %v970_v49, %v977_v53  ;;  %v1012_v62 = vcombine.low %v1003_v54, %v1010_v51  ;;  %v1038_v4 = vrot.slane %v1028_v55, %v4811_v6  ;;  %v493_v5 = vrot.slane %v4675_v48, %v4811_v6  ;;  %v4681_v44 = vld.sshfl [vmem:[%s4813_s5 + $0x38] sm:$0x1 pattern:$0x75316420] }
  0x22   : > { %v1019_v2 = vrot.slane %v1011_v58, %v4811_v6  ;;  %v477_v8 = vrot.slane %v463_v63, %v4811_v6  ;;  %v1029_v9 = vcombine.low %v446_v60, %v453_v3  ;;  %v4419_v10 = vcombine.high %v446_v60, %v453_v3  ;;  %v4682_v48 = vld.sshfl [vmem:[%s4813_s5 + $0x3c] sm:$0x33 pattern:$0x75316420] }
  0x23   : > { %4525 = vmatprep.mubr.msk.bf16.mxu0 %vm1490_vm0, %v978_v61  ;;  %v1026_v7 = vrot.slane %v1012_v62, %v4811_v6  ;;  %v501_v13 = vcombine.high %v4676_v52, %v4676_v52  ;;  %v508_v14 = vrot.slane %v4676_v52, %v4811_v6  ;;  %v532_v17 = vrot.slane %v4677_v56, %v4811_v6  ;;  %v4683_v53 = vld.sshfl [vmem:[%s4813_s5 + $0x40] sm:$0x33 pattern:$0x75316420] }
  0x24   : > { %v1031_v12 = vcombine.low %v470_v0, %v477_v8  ;;  %v1045_v15 = vrot.slane %v1029_v9, %v4811_v6  ;;  %v1052_v16 = vrot.slane %v4419_v10, %v4811_v6  ;;  %v4420_v18 = vcombine.high %v470_v0, %v477_v8 }
  0x25   : > { %v1027_v11 = vcombine.low %v1019_v2, %v1026_v7  ;;  %v515_v20 = vrot.slane %v501_v13, %v4811_v6  ;;  %v516_v21 = vcombine.high %v508_v14, %v508_v14  ;;  %v1078_v22 = vcombine.low %v493_v5, %v508_v14 }
  0x26   : > { %v1059_v19 = vrot.slane %v1031_v12, %v4811_v6  ;;  %v1060_v23 = vcombine.low %v1038_v4, %v1045_v15  ;;  %v1087_v24 = vrot.slane %v4420_v18, %v4811_v6  ;;  %v525_v25 = vcombine.high %v4677_v56, %v4677_v56  ;;  %v4684_v12 = vld.sshfl [vmem:[%s4813_s5 + $0x44] sm:$0x1 pattern:$0x75316420] }
  0x27   : > { %4526 = vmatmul.mubr.msk.bf16.vlgmr.msra.gmra.mxu0 %vm1490_vm0, %v1027_v11  ;;  %v540_v26 = vcombine.high %v532_v17, %v532_v17  ;;  %v517_v28 = vcombine.high %v515_v20, %v515_v20  ;;  %v1079_v29 = vcombine.low %v515_v20, %v516_v21  ;;  %v1094_v30 = vrot.slane %v1078_v22, %v4811_v6  ;;  %v4686_v22 = vld.sshfl [vmem:[%s4813_s5 + $0x4c] sm:$0x33 pattern:$0x75316420] }
  0x28   : > { %v1061_v27 = vcombine.low %v1052_v16, %v1059_v19  ;;  %v1068_v31 = vrot.slane %v1060_v23, %v4811_v6  ;;  %v539_v32 = vrot.slane %v525_v25, %v4811_v6  ;;  %v555_v33 = vrot.slane %v4678_v57, %v4811_v6  ;;  %v4685_v16 = vld.sshfl [vmem:[%s4813_s5 + $0x48] sm:$0x33 pattern:$0x75316420] }
  0x29   : > { %v563_v34 = vcombine.high %v4679_v1, %v4679_v1  ;;  %v1080_v37 = vcombine.low %v517_v28, %v532_v17  ;;  %v1101_v38 = vrot.slane %v1079_v29, %v4811_v6  ;;  %v1109_v39 = vcombine.low %v1087_v24, %v1094_v30 }
  0x2a   : > { %v1075_v36 = vrot.slane %v1061_v27, %v4811_v6  ;;  %v541_v40 = vcombine.high %v539_v32, %v539_v32  ;;  %v570_v41 = vrot.slane %v4679_v1, %v4811_v6  ;;  %v1126_v43 = vcombine.low %v539_v32, %v540_v26  ;;  %v4687_v32 = vld.sshfl [vmem:[%s4813_s5 + $0x50] sm:$0x1 pattern:$0x75316420] }
  0x2b   : > { %v577_v42 = vrot.slane %v563_v34, %v4811_v6  ;;  %v1108_v46 = vrot.slane %v1080_v37, %v4811_v6  ;;  %v1117_v47 = vrot.slane %v1109_v39, %v4811_v6  ;;  %v587_v55 = vcombine.high %v4680_v35, %v4680_v35 }
  0x2c   : > { %v1076_v45 = vcombine.low %v1068_v31, %v1075_v36  ;;  %v1127_v49 = vcombine.low %v541_v40, %v555_v33  ;;  %v1136_v52 = vrot.slane %v1126_v43, %v4811_v6  ;;  %v594_v56 = vrot.slane %v4680_v35, %v4811_v6  ;;  %v4688_v33 = vld.sshfl [vmem:[%s4813_s5 + $0x54] sm:$0x33 pattern:$0x75316420] }
  0x2d   : > { %v1128_v50 = vcombine.low %v570_v41, %v577_v42  ;;  %v4421_v51 = vcombine.high %v570_v41, %v577_v42  ;;  %v1110_v54 = vcombine.low %v1101_v38, %v1108_v46  ;;  %v601_v61 = vrot.slane %v587_v55, %v4811_v6  ;;  %v4689_v38 = vld.sshfl [vmem:[%s4813_s5 + $0x58] sm:$0x33 pattern:$0x75316420] }
  0x2e   : > { %4529 = vmatprep.mubr.msk.bf16.mxu0 %vm1490_vm0, %v1076_v45  ;;  %v1143_v57 = vrot.slane %v1127_v49, %v4811_v6  ;;  %v617_v62 = vrot.slane %v4681_v44, %v4811_v6  ;;  %v625_v1 = vcombine.high %v4682_v48, %v4682_v48  ;;  %v632_v2 = vrot.slane %v4682_v48, %v4811_v6 }
  0x2f   : > { %v1150_v58 = vrot.slane %v1128_v50, %v4811_v6  ;;  %v1157_v59 = vrot.slane %v4421_v51, %v4811_v6  ;;  %v1124_v60 = vrot.slane %v1110_v54, %v4811_v6  ;;  %v1175_v4 = vcombine.low %v594_v56, %v601_v61 }
  0x30   : > { %v1158_v63 = vcombine.low %v1136_v52, %v1143_v57  ;;  %v4422_v5 = vcombine.high %v594_v56, %v601_v61  ;;  %v649_v7 = vcombine.high %v4683_v53, %v4683_v53  ;;  %v639_v10 = vrot.slane %v625_v1, %v4811_v6  ;;  %v4691_v61 = vld.sshfl [vmem:[%s4813_s5 + $0x60] sm:$0x33 pattern:$0x75316420] }
  0x31   : > { %v1159_v0 = vcombine.low %v1150_v58, %v1157_v59  ;;  %v1125_v3 = vcombine.low %v1117_v47, %v1124_v60  ;;  %v640_v11 = vcombine.high %v632_v2, %v632_v2  ;;  %v1177_v13 = vcombine.low %v617_v62, %v632_v2  ;;  %v4690_v58 = vld.sshfl [vmem:[%s4813_s5 + $0x5c] sm:$0x1 pattern:$0x75316420] }
  0x32   : > { %v1166_v8 = vrot.slane %v1158_v63, %v4811_v6  ;;  %v1185_v14 = vrot.slane %v1175_v4, %v4811_v6  ;;  %v1192_v15 = vrot.slane %v4422_v5, %v4811_v6  ;;  %v656_v17 = vrot.slane %v4683_v53, %v4811_v6 }
  0x33   : > { %v1173_v9 = vrot.slane %v1159_v0, %v4811_v6  ;;  %4530 = vmatmul.mubr.msk.bf16.gmra.mxu0 %vm1490_vm0, %v1125_v3  ;;  %v1178_v19 = vcombine.low %v639_v10, %v640_v11  ;;  %v641_v20 = vcombine.high %v639_v10, %v639_v10  ;;  %v663_v21 = vrot.slane %v649_v7, %v4811_v6 }
  0x34   : > { %v1199_v23 = vrot.slane %v1177_v13, %v4811_v6  ;;  %v1207_v24 = vcombine.low %v1185_v14, %v1192_v15  ;;  %v664_v25 = vcombine.high %v656_v17, %v656_v17  ;;  %v679_v30 = vrot.slane %v4684_v12, %v4811_v6 }
  0x35   : > { %v1174_v18 = vcombine.low %v1166_v8, %v1173_v9  ;;  %v1206_v26 = vrot.slane %v1178_v19, %v4811_v6  ;;  %v665_v27 = vcombine.high %v663_v21, %v663_v21  ;;  %v1224_v28 = vcombine.low %v641_v20, %v656_v17  ;;  %v4692_v17 = vld.sshfl [vmem:[%s4813_s5 + $0x64] sm:$0x33 pattern:$0x75316420] }
  0x36   : > { %v1215_v29 = vrot.slane %v1207_v24, %v4811_v6  ;;  %v1225_v31 = vcombine.low %v663_v21, %v664_v25  ;;  %v687_v35 = vcombine.high %v4685_v16, %v4685_v16  ;;  %v694_v36 = vrot.slane %v4685_v16, %v4811_v6 }
  0x37   : > { %4533 = vmatprep.mubr.msk.bf16.mxu0 %vm1490_vm0, %v1174_v18  ;;  %v1208_v34 = vcombine.low %v1199_v23, %v1206_v26  ;;  %v1234_v37 = vrot.slane %v1224_v28, %v4811_v6  ;;  %v1226_v39 = vcombine.low %v665_v27, %v679_v30  ;;  %v711_v41 = vcombine.high %v4686_v22, %v4686_v22  ;;  %v4414_v23 = vld.sshfl [vmem:[%s4813_s5 + $0x6c] sm:$0x33 pattern:$0x75316420] }
  0x38   : > { %v1241_v40 = vrot.slane %v1225_v31, %v4811_v6  ;;  %v718_v42 = vrot.slane %v4686_v22, %v4811_v6  ;;  %v701_v44 = vrot.slane %v687_v35, %v4811_v6  ;;  %v741_v50 = vrot.slane %v4687_v32, %v4811_v6  ;;  %v4693_v22 = vld.sshfl [vmem:[%s4813_s5 + $0x68] sm:$0x1 pattern:$0x75316420] }
  0x39   : > { %v1222_v43 = vrot.slane %v1208_v34, %v4811_v6  ;;  %v1248_v45 = vrot.slane %v1226_v39, %v4811_v6  ;;  %v725_v47 = vrot.slane %v711_v41, %v4811_v6  ;;  %v756_v51 = vrot.slane %v4688_v33, %v4811_v6 }
  0x3a   : > { %v1256_v46 = vcombine.low %v1234_v37, %v1241_v40  ;;  %v1227_v49 = vcombine.low %v694_v36, %v701_v44  ;;  %v4423_v53 = vcombine.high %v694_v36, %v701_v44  ;;  %v749_v59 = vcombine.high %v4688_v33, %v4688_v33  ;;  %v4415_v37 = vld.sshfl [vmem:[%s4813_s5 + $0x70] sm:$0x33 pattern:$0x75316420] }
  0x3b   : > { %v1223_v48 = vcombine.low %v1215_v29, %v1222_v43  ;;  %v1274_v54 = vcombine.low %v718_v42, %v725_v47  ;;  %v4424_v55 = vcombine.high %v718_v42, %v725_v47  ;;  %v1276_v57 = vcombine.low %v741_v50, %v756_v51 }
  0x3c   : > { %v1264_v52 = vrot.slane %v1256_v46, %v4811_v6  ;;  %v1255_v56 = vrot.slane %v1227_v49, %v4811_v6  ;;  %v764_v60 = vcombine.high %v756_v51, %v756_v51  ;;  %v1283_v62 = vrot.slane %v4423_v53, %v4811_v6 }
  0x3d   : > { %4534 = vmatmul.mubr.msk.bf16.gmra.mxu0 %vm1490_vm0, %v1223_v48  ;;  %v1290_v63 = vrot.slane %v1274_v54, %v4811_v6  ;;  %v1297_v0 = vrot.slane %v4424_v55, %v4811_v6  ;;  %v773_v1 = vcombine.high %v4689_v38, %v4689_v38  ;;  %v1304_v3 = vrot.slane %v1276_v57, %v4811_v6 }
  0x3e   : > { %v1257_v2 = vcombine.low %v1248_v45, %v1255_v56  ;;  %v763_v4 = vrot.slane %v749_v59, %v4811_v6  ;;  %v780_v5 = vrot.slane %v4689_v38, %v4811_v6  ;;  %v803_v15 = vrot.slane %v4690_v58, %v4811_v6  ;;  %v4416_v59 = vld.sshfl [vmem:[%s4813_s5 + $0x74] sm:$0x1 pattern:$0x75316420] }
  0x3f   : > { %v1305_v7 = vcombine.low %v1283_v62, %v1290_v63  ;;  %v787_v8 = vrot.slane %v773_v1, %v4811_v6  ;;  %v1306_v10 = vcombine.low %v1297_v0, %v1304_v3  ;;  %v811_v26 = vcombine.high %v4691_v61, %v4691_v61 }
  0x40   : > { %v1271_v9 = vrot.slane %v1257_v2, %v4811_v6  ;;  %v765_v11 = vcombine.high %v763_v4, %v763_v4  ;;  %v788_v12 = vcombine.high %v780_v5, %v780_v5  ;;  %v1322_v16 = vcombine.low %v763_v4, %v764_v60 }
  0x41   : > { %v1313_v13 = vrot.slane %v1305_v7, %v4811_v6  ;;  %v789_v14 = vcombine.high %v787_v8, %v787_v8  ;;  %v1320_v19 = vrot.slane %v1306_v10, %v4811_v6  ;;  %v818_v27 = vrot.slane %v4691_v61, %v4811_v6 }
  0x42   : > { %v1272_v18 = vcombine.low %v1264_v52, %v1271_v9  ;;  %v1323_v20 = vcombine.low %v765_v11, %v780_v5  ;;  %v1324_v21 = vcombine.low %v787_v8, %v788_v12  ;;  %v1332_v25 = vrot.slane %v1322_v16, %v4811_v6 }
  0x43   : > { %v1325_v24 = vcombine.low %v789_v14, %v803_v15  ;;  %v1321_v28 = vcombine.low %v1313_v13, %v1320_v19  ;;  %v825_v32 = vrot.slane %v811_v26, %v4811_v6  ;;  %v873_v33 = vcombine.high %v4414_v23, %v4414_v23 }
  0x44   : > { %4537 = vmatprep.mubr.msk.bf16.mxu0 %vm1490_vm0, %v1272_v18  ;;  %v1339_v29 = vrot.slane %v1323_v20, %v4811_v6  ;;  %v1346_v30 = vrot.slane %v1324_v21, %v4811_v6  ;;  %v835_v35 = vcombine.high %v4692_v17, %v4692_v17  ;;  %v842_v36 = vrot.slane %v4692_v17, %v4811_v6 }
  0x45   : > { %v1353_v31 = vrot.slane %v1325_v24, %v4811_v6  ;;  %4538 = vmatmul.mubr.msk.bf16.gmra.mxu0 %vm1490_vm0, %v1321_v28  ;;  %v880_v38 = vrot.slane %v4414_v23, %v4811_v6  ;;  %v1371_v40 = vcombine.low %v818_v27, %v825_v32  ;;  %v4425_v41 = vcombine.high %v818_v27, %v825_v32 }
  0x46   : > { %v1354_v34 = vcombine.low %v1332_v25, %v1339_v29  ;;  %v865_v42 = vrot.slane %v4693_v22, %v4811_v6  ;;  %v849_v44 = vrot.slane %v835_v35, %v4811_v6  ;;  %v887_v45 = vrot.slane %v873_v33, %v4811_v6 }
  0x47   : > { %v1355_v39 = vcombine.low %v1346_v30, %v1353_v31  ;;  %v888_v46 = vcombine.high %v880_v38, %v880_v38  ;;  %v1381_v48 = vrot.slane %v1371_v40, %v4811_v6  ;;  %v1388_v49 = vrot.slane %v4425_v41, %v4811_v6 }
  0x48   : > { %v1362_v43 = vrot.slane %v1354_v34, %v4811_v6  ;;  %v897_v50 = vcombine.high %v4415_v37, %v4415_v37  ;;  %v1373_v51 = vcombine.low %v842_v36, %v849_v44  ;;  %v4426_v52 = vcombine.high %v842_v36, %v849_v44 }
  0x49   : > { %v1369_v47 = vrot.slane %v1355_v39, %v4811_v6  ;;  %v889_v53 = vcombine.high %v887_v45, %v887_v45  ;;  %v904_v54 = vrot.slane %v4415_v37, %v4811_v6  ;;  %v1403_v56 = vcombine.low %v1381_v48, %v1388_v49 }
  0x4a   : > { %v911_v57 = vrot.slane %v897_v50, %v4811_v6  ;;  %v1420_v58 = vcombine.low %v865_v42, %v880_v38  ;;  %v1395_v60 = vrot.slane %v1373_v51, %v4811_v6  ;;  %v1402_v61 = vrot.slane %v4426_v52, %v4811_v6 }
  0x4b   : > { %v1370_v55 = vcombine.low %v1362_v43, %v1369_v47  ;;  %v912_v62 = vcombine.high %v904_v54, %v904_v54  ;;  %v1421_v63 = vcombine.low %v887_v45, %v888_v46  ;;  %v1411_v0 = vrot.slane %v1403_v56, %v4811_v6 }
  0x4c   : > { %v1422_v1 = vcombine.low %v889_v53, %v904_v54  ;;  %v1430_v2 = vrot.slane %v1420_v58, %v4811_v6  ;;  %v913_v3 = vcombine.high %v911_v57, %v911_v57  ;;  %v1404_v4 = vcombine.low %v1395_v60, %v1402_v61 }
  0x4d   : > { %4541 = vmatprep.mubr.msk.bf16.mxu0 %vm1490_vm0, %v1370_v55  ;;  %v1423_v5 = vcombine.low %v911_v57, %v912_v62  ;;  %v1437_v7 = vrot.slane %v1421_v63, %v4811_v6  ;;  %v927_v8 = vrot.slane %v4416_v59, %v4811_v6 }
  0x4e   : > { %v1444_v9 = vrot.slane %v1422_v1, %v4811_v6  ;;  %v1418_v10 = vrot.slane %v1404_v4, %v4811_v6 }
  0x4f   : > { %v1451_v11 = vrot.slane %v1423_v5, %v4811_v6  ;;  %v1452_v12 = vcombine.low %v1430_v2, %v1437_v7  ;;  %v1469_v13 = vcombine.low %v913_v3, %v927_v8 }
  0x50   : > { %v1419_v14 = vcombine.low %v1411_v0, %v1418_v10 }
  0x51   : > { %v1453_v15 = vcombine.low %v1444_v9, %v1451_v11  ;;  %v1460_v16 = vrot.slane %v1452_v12, %v4811_v6  ;;  %v1476_v18 = vrot.slane %v1469_v13, %v4811_v6 }
  0x52   : > { %4542 = vmatmul.mubr.msk.bf16.gmra.mxu0 %vm1490_vm0, %v1419_v14 }
  0x53   : > { %v1467_v17 = vrot.slane %v1453_v15, %v4811_v6  ;;  %v1483_v20 = vrot.slane %v1476_v18, %v4811_v6 }
  0x55   : > { %v1468_v19 = vcombine.low %v1460_v16, %v1467_v17 }
  0x57   : > { %4545 = vmatprep.mubr.msk.bf16.mxu0 %vm1490_vm0, %v1468_v19 }
  0x5a   : > { %4546 = vmatmul.mubr.msk.bf16.gmra.mxu0 %vm1490_vm0, %v1483_v20 }
  0xe7   : > { %v4527_v21 = vpop.f32.mrf.mxu0 }
  0xe9   : > { %v1561_v22 = vpop.f32.mrf.mxu0 }
  0xeb   : > { %v4528_v23 = vpop.f32.mrf.mxu0 }
  0xec   : > { %v1656_v24 = vpack.c.bf16 %v4528_v23, %v4527_v21  ;;  %v4441_v25 = vpack.c.bf16 %v4528_v23, %v4528_v23 }
  0xed   : > { %v1564_v26 = vpop.f32.mrf.mxu0 }
  0xee   : > { %v1735_v27 = vrot.slane %v1656_v24, %v4811_v6  ;;  %v1655_v28 = vpack.c.bf16 %v1564_v26, %v1561_v22  ;;  %v4440_v29 = vpack.c.bf16 %v1564_v26, %v1564_v26  ;;  %v1742_v30 = vrot.slane %v4441_v25, %v4811_v6 }
  0xf0   : > { %v1686_v31 = vrot.slane %v1655_v28, %v4811_v6  ;;  %v1693_v32 = vrot.slane %v4440_v29, %v4811_v6  ;;  %v1743_v33 = vcombine.high %v1735_v27, %v1735_v27  ;;  %v1744_v34 = vcombine.high %v1742_v30, %v1742_v30 }
  0xf1   : > { %v4980_v35 = vrot.slane %v1735_v27, %v4811_v6  ;;  %v4983_v39 = vrot.slane %v1742_v30, %v4811_v6 }
  0xf2   : > { %v1694_v36 = vcombine.high %v1686_v31, %v1686_v31  ;;  %v1695_v37 = vcombine.high %v1693_v32, %v1693_v32  ;;  %v4986_v40 = vrot.slane %v1743_v33, %v4811_v6  ;;  %v4989_v41 = vrot.slane %v1744_v34, %v4811_v6 }
  0xf3   : > { %v4531_v38 = vpop.f32.mrf.mxu0  ;;  %v1773_v42 = vcombine.high %v4980_v35, %v4980_v35  ;;  %v1702_v44 = vrot.slane %v1686_v31, %v4811_v6  ;;  %v1709_v46 = vrot.slane %v1693_v32, %v4811_v6  ;;  %v1774_v49 = vcombine.high %v4983_v39, %v4983_v39 }
  0xf4   : > { %v1716_v45 = vrot.slane %v1694_v36, %v4811_v6  ;;  %v1723_v47 = vrot.slane %v1695_v37, %v4811_v6  ;;  %v1775_v50 = vcombine.high %v4986_v40, %v4986_v40  ;;  %v1776_v55 = vcombine.high %v4989_v41, %v4989_v41 }
  0xf5   : > { %v1577_v43 = vpop.f32.mrf.mxu0  ;;  %v2289_v53 = vcombine.low %v4986_v40, %v1773_v42  ;;  %v1724_v56 = vcombine.high %v1702_v44, %v1702_v44  ;;  %v1725_v62 = vcombine.high %v1709_v46, %v1709_v46  ;;  %v5008_v3 = vcombine.low %v4989_v41, %v1774_v49 }
  0xf6   : > { %v1726_v59 = vcombine.high %v1716_v45, %v1716_v45  ;;  %v2240_v60 = vcombine.low %v1702_v44, %v1716_v45  ;;  %v4451_v61 = vcombine.high %v1702_v44, %v1716_v45  ;;  %v1727_v63 = vcombine.high %v1723_v47, %v1723_v47 }
  0xf7   : > { %v4532_v48 = vpop.f32.mrf.mxu0  ;;  %v2290_v0 = vcombine.low %v1775_v50, %v4983_v39  ;;  %v2242_v4 = vcombine.low %v1709_v46, %v1723_v47  ;;  %v4452_v5 = vcombine.high %v1709_v46, %v1723_v47  ;;  %v2299_v8 = vrot.slane %v2289_v53, %v4811_v6 }
  0xf8   : > { %v1658_v51 = vpack.c.bf16 %v4532_v48, %v4531_v38  ;;  %v4443_v52 = vpack.c.bf16 %v4532_v48, %v4532_v48  ;;  %v2857_v12 = vcombine.low %v1716_v45, %v1724_v56  ;;  %v2858_v13 = vcombine.low %v1726_v59, %v1709_v46 }
  0xf9   : > { %v1580_v54 = vpop.f32.mrf.mxu0  ;;  %v5015_v14 = vrot.slane %v2240_v60, %v4811_v6  ;;  %v5018_v15 = vrot.slane %v4451_v61, %v4811_v6  ;;  %v2859_v16 = vcombine.low %v1723_v47, %v1725_v62  ;;  %v2860_v17 = vcombine.low %v1727_v63, %v4980_v35 }
  0xfa   : > { %v1833_v57 = vrot.slane %v1658_v51, %v4811_v6  ;;  %v1840_v58 = vrot.slane %v4443_v52, %v4811_v6  ;;  %v1657_v1 = vpack.c.bf16 %v1580_v54, %v1577_v43  ;;  %v4442_v2 = vpack.c.bf16 %v1580_v54, %v1580_v54 }
  0xfb   : > { %v2306_v22 = vrot.slane %v2290_v0, %v4811_v6  ;;  %v5028_v23 = vrot.slane %v2242_v4, %v4811_v6  ;;  %v2313_v25 = vrot.slane %v5008_v3, %v4811_v6  ;;  %v4459_v26 = vcombine.high %v4980_v35, %v4986_v40 }
  0xfc   : > { %v1841_v7 = vcombine.high %v1833_v57, %v1833_v57  ;;  %v1842_v9 = vcombine.high %v1840_v58, %v1840_v58  ;;  %v5012_v10 = vrot.slane %v1840_v58, %v4811_v6  ;;  %v5022_v18 = vrot.slane %v1833_v57, %v4811_v6 }
  0xfd   : > { %v4535_v11 = vpop.f32.mrf.mxu0  ;;  %v1784_v19 = vrot.slane %v1657_v1, %v4811_v6  ;;  %v1791_v20 = vrot.slane %v4442_v2, %v4811_v6  ;;  %v5038_v27 = vrot.slane %v4452_v5, %v4811_v6  ;;  %v2874_v31 = vrot.slane %v2858_v13, %v4811_v6 }
  0xfe   : > { %v5031_v24 = vrot.slane %v1841_v7, %v4811_v6  ;;  %v5041_v28 = vrot.slane %v1842_v9, %v4811_v6  ;;  %v1872_v29 = vcombine.high %v5012_v10, %v5012_v10  ;;  %v2272_v32 = vcombine.low %v5015_v14, %v5018_v15 }
  0xff   : > { %v1593_v21 = vpop.f32.mrf.mxu0  ;;  %v2867_v33 = vrot.slane %v2857_v12, %v4811_v6  ;;  %v2881_v34 = vrot.slane %v2859_v16, %v4811_v6  ;;  %v2888_v36 = vrot.slane %v2860_v17, %v4811_v6  ;;  %v5053_v37 = vcombine.high %v5022_v18, %v5022_v18 }
 0x100   : > { %v1792_v38 = vcombine.high %v1784_v19, %v1784_v19  ;;  %v1793_v42 = vcombine.high %v1791_v20, %v1791_v20  ;;  %v5055_v44 = vcombine.low %v2299_v8, %v2306_v22  ;;  %v1873_v45 = vcombine.high %v5031_v24, %v5031_v24 }
 0x101   : > { %v4536_v30 = vpop.f32.mrf.mxu0  ;;  %v5060_v46 = vrot.slane %v1791_v20, %v4811_v6  ;;  %v2907_v48 = vcombine.low %v4983_v39, %v4989_v41  ;;  %v2341_v49 = vcombine.low %v5022_v18, %v5031_v24  ;;  %v2388_v50 = vcombine.low %v5041_v28, %v1872_v29 }
 0x102   : > { %v5068_v51 = vrot.slane %v1784_v19, %v4811_v6  ;;  %v2889_v52 = vcombine.low %v2867_v33, %v2874_v31  ;;  %v1660_v53 = vpack.c.bf16 %v4536_v30, %v4535_v11  ;;  %v2890_v57 = vcombine.low %v2881_v34, %v2888_v36 }
 0x103   : > { %v1596_v43 = vpop.f32.mrf.mxu0  ;;  %v5074_v59 = vrot.slane %v1792_v38, %v4811_v6  ;;  %v5077_v60 = vrot.slane %v1793_v42, %v4811_v6  ;;  %v4445_v61 = vpack.c.bf16 %v4536_v30, %v4536_v30  ;;  %v2387_v63 = vcombine.low %v1873_v45, %v5012_v10 }
 0x104   : > { %v1659_v47 = vpack.c.bf16 %v1596_v43, %v1593_v21  ;;  %v4444_v54 = vpack.c.bf16 %v1596_v43, %v1596_v43  ;;  %v1823_v0 = vcombine.high %v5060_v46, %v5060_v46  ;;  %v5084_v4 = vrot.slane %v2341_v49, %v4811_v6 }
 0x105   : > { %v4539_v62 = vpop.f32.mrf.mxu0  ;;  %v2404_v5 = vrot.slane %v2388_v50, %v4811_v6  ;;  %v5091_v7 = vcombine.low %v1776_v55, %v5068_v51  ;;  %v1931_v11 = vrot.slane %v1660_v53, %v4811_v6  ;;  %v2897_v13 = vrot.slane %v2889_v52, %v4811_v6 }
 0x106   : > { %v1882_v56 = vrot.slane %v1659_v47, %v4811_v6  ;;  %v1889_v1 = vrot.slane %v4444_v54, %v4811_v6  ;;  %v2904_v16 = vrot.slane %v2890_v57, %v4811_v6  ;;  %v1938_v17 = vrot.slane %v4445_v61, %v4811_v6 }
 0x107   : > { %v1609_v9 = vpop.f32.mrf.mxu0  ;;  %v1874_v19 = vcombine.high %v5041_v28, %v5041_v28  ;;  %v2397_v22 = vrot.slane %v2387_v63, %v4811_v6  ;;  %v1824_v29 = vcombine.high %v5074_v59, %v5074_v59  ;;  %v4453_v30 = vcombine.high %v5068_v51, %v5074_v59 }
 0x108   : > { %v1890_v2 = vcombine.high %v1882_v56, %v1882_v56  ;;  %v5094_v8 = vrot.slane %v1882_v56, %v4811_v6  ;;  %v1891_v12 = vcombine.high %v1889_v1, %v1889_v1  ;;  %v2339_v31 = vcombine.low %v5060_v46, %v5077_v60 }
 0x109   : > { %v4540_v21 = vpop.f32.mrf.mxu0  ;;  %v5115_v33 = vrot.slane %v1938_v17, %v4811_v6  ;;  %v5118_v34 = vrot.slane %v1889_v1, %v4811_v6  ;;  %v2320_v43 = vrot.slane %v5091_v7, %v4811_v6  ;;  %v1939_v45 = vcombine.high %v1931_v11, %v1931_v11 }
 0x10a   : > { %v5103_v20 = vrot.slane %v1890_v2, %v4811_v6  ;;  %v1920_v55 = vcombine.high %v5094_v8, %v5094_v8  ;;  %v5121_v36 = vrot.slane %v1891_v12, %v4811_v6  ;;  %v2905_v47 = vcombine.low %v2897_v13, %v2904_v16 }
 0x10b   : > { %v4454_v49 = vcombine.high %v5060_v46, %v5077_v60  ;;  %v1940_v50 = vcombine.high %v1938_v17, %v1938_v17  ;;  %v2389_v52 = vcombine.low %v1874_v19, %v5094_v8  ;;  %v1662_v53 = vpack.c.bf16 %v4540_v21, %v4539_v62  ;;  %v1612_v54 = vpop.f32.mrf.mxu0 }
 0x10c   : > { %v2390_v38 = vcombine.low %v5103_v20, %v1920_v55  ;;  %v5131_v56 = vcombine.low %v2397_v22, %v2404_v5  ;;  %v5134_v57 = vrot.slane %v4453_v30, %v4811_v6  ;;  %v5137_v61 = vrot.slane %v2339_v31, %v4811_v6  ;;  %3249 = vrot.lane.b32.xlu1 %v2905_v47, %s4735_s6 }
 0x10d   : > { %v4447_v63 = vpack.c.bf16 %v4540_v21, %v4540_v21  ;;  %v1970_v1 = vcombine.high %v5115_v33, %v5115_v33  ;;  %v2436_v62 = vcombine.low %v5118_v34, %v5121_v36  ;;  %v4455_v5 = vcombine.high %v5118_v34, %v5121_v36 }
 0x10e   : > { %v2418_v2 = vrot.slane %v2390_v38, %v4811_v6  ;;  %v5148_v7 = vrot.slane %v1931_v11, %v4811_v6  ;;  %v5151_v12 = vrot.slane %v1939_v45, %v4811_v6  ;;  %v1661_v13 = vpack.c.bf16 %v1612_v54, %v1609_v9 }
 0x10f   : > { %v4446_v16 = vpack.c.bf16 %v1612_v54, %v1612_v54  ;;  %v5154_v17 = vcombine.low %v1824_v29, %v5060_v46  ;;  %v5157_v19 = vrot.slane %v1940_v50, %v4811_v6  ;;  %v2411_v55 = vrot.slane %v2389_v52, %v4811_v6 }
 0x110   : > { %v2029_v21 = vrot.slane %v1662_v53, %v4811_v6  ;;  %v5162_v22 = vrot.slane %v4454_v49, %v4811_v6  ;;  %v2438_v11 = vcombine.low %v5148_v7, %v5151_v12  ;;  %v4456_v9 = vcombine.high %v5148_v7, %v5151_v12 }
 0x111   : > { %v2036_v30 = vrot.slane %v4447_v63, %v4811_v6  ;;  %v5170_v29 = vcombine.low %v5157_v19, %v1970_v1  ;;  %v5172_v31 = vcombine.low %v2411_v55, %v2418_v2  ;;  %v5175_v38 = vrot.slane %v2436_v62, %v4811_v6 }
 0x112   : > { %v5178_v45 = vrot.slane %v4455_v5, %v4811_v6  ;;  %v5180_v47 = vpop.f32.mrf.mxu0  ;;  %v1980_v52 = vrot.slane %v1661_v13, %v4811_v6  ;;  %v1987_v53 = vrot.slane %v4446_v16, %v4811_v6  ;;  %v2037_v1 = vcombine.high %v2029_v21, %v2029_v21 }
 0x113   : > { %v2322_v2 = vcombine.low %v2313_v25, %v2320_v43  ;;  %v5198_v5 = vrot.slane %v2438_v11, %v4811_v6  ;;  %v5201_v13 = vrot.slane %v4456_v9, %v4811_v6  ;;  %v2038_v55 = vcombine.high %v2036_v30, %v2036_v30 }
 0x114   : > { %v5195_v62 = vpop.f32.mrf.mxu0  ;;  %v2329_v25 = vrot.slane %v5055_v44, %v4811_v6  ;;  %v5216_v11 = vrot.slane %v2029_v21, %v4811_v6  ;;  %v5219_v9 = vrot.slane %v2036_v30, %v4811_v6  ;;  %v1988_v16 = vcombine.high %v1980_v52, %v1980_v52 }
 0x115   : > { %v1989_v63 = vcombine.high %v1987_v53, %v1987_v53  ;;  %v5222_v49 = vrot.slane %v2037_v1, %v4811_v6  ;;  %v5225_v54 = vrot.slane %v1980_v52, %v4811_v6  ;;  %v2336_v3 = vrot.slane %v2322_v2, %v4811_v6 }
 0x116   : > { %v5213_v43 = vpop.f32.mrf.mxu0  ;;  %v4460_v44 = vcombine.high %v4983_v39, %v4989_v41  ;;  %v5233_v21 = vrot.slane %v2038_v55, %v4811_v6  ;;  %v2909_v1 = vcombine.low %v5068_v51, %v5074_v59  ;;  %v2916_v52 = vrot.slane %v4459_v26, %v4811_v6 }
 0x117   : > { %v5245_v2 = vcombine.high %v5219_v9, %v5219_v9  ;;  %v5248_v58 = vrot.slane %v1987_v53, %v4811_v6  ;;  %v5250_v55 = vcombine.low %v2329_v25, %v2336_v3  ;;  %v2923_v30 = vrot.slane %v2907_v48, %v4811_v6 }
 0x118   : > { %v5230_v50 = vpop.f32.mrf.mxu0  ;;  %v2930_v42 = vrot.slane %v4460_v44, %v4811_v6  ;;  %v2937_v40 = vrot.slane %v2909_v1, %v4811_v6  ;;  %v2273_v26 = vcombine.low %v5028_v23, %v5038_v27  ;;  %v2280_v53 = vrot.slane %v2272_v32, %v4811_v6 }
 0x119   : > { %3314 = vrot.lane.b32.xlu1 %v5250_v55, %s4736_s7  ;;  %v2938_v39 = vcombine.low %v2916_v52, %v2923_v30  ;;  %v2638_v41 = vrot.slane %v4980_v35, %v4811_v6  ;;  %v2956_v48 = vcombine.low %v5077_v60, %v1823_v0  ;;  %v6081_v23 = vcombine.high %v5077_v60, %v5077_v60 }
 0x11a   : > { %v5256_v51 = vpop.f32.mrf.mxu0  ;;  %v5281_v27 = vrot.slane %v1988_v16, %v4811_v6  ;;  %v2939_v32 = vcombine.low %v2930_v42, %v2937_v40  ;;  %v2287_v3 = vrot.slane %v2273_v26, %v4811_v6  ;;  %v2965_v35 = vrot.slane %v5154_v17, %v4811_v6 }
 0x11b   : > { %v2957_v14 = vcombine.low %v6081_v23, %v5022_v18  ;;  %v2645_v46 = vrot.slane %v2638_v41, %v4811_v6  ;;  %v2972_v0 = vrot.slane %v2956_v48, %v4811_v6  ;;  %v6082_v18 = vcombine.low %v5031_v24, %v5053_v37 }
 0x11c   : > { %v5278_v15 = vpop.f32.mrf.mxu0  ;;  %v5294_v16 = vrot.slane %v1989_v63, %v4811_v6  ;;  %v2946_v42 = vrot.slane %v2938_v39, %v4811_v6  ;;  %v2953_v30 = vrot.slane %v2939_v32, %v4811_v6  ;;  %v5298_v17 = vcombine.low %v2280_v53, %v2287_v3 }
 0x11d   : > { %v2979_v25 = vrot.slane %v2957_v14, %v4811_v6  ;;  %v2986_v60 = vrot.slane %v6082_v18, %v4811_v6  ;;  %v2018_v1 = vcombine.high %v5225_v54, %v5225_v54  ;;  %v2987_v52 = vcombine.low %v2965_v35, %v2972_v0 }
 0x11e   : > { %v4548_v44 = vpop.f32.mrf.mxu0  ;;  %v3004_v26 = vcombine.low %v5012_v10, %v5041_v28  ;;  %v5304_v24 = vcombine.low %v2946_v42, %v2953_v30  ;;  %v2748_v41 = vshll.u32 %v5298_v17, 16  ;;  %v2753_v63 = vshll.u32 %v2645_v46, 16 }
 0x11f   : > { %v2988_v40 = vcombine.low %v2979_v25, %v2986_v60  ;;  %v2371_v39 = vcombine.low %v5162_v22, %v5084_v4  ;;  %v2995_v48 = vrot.slane %v2987_v52, %v4811_v6  ;;  %v6083_v23 = vcombine.low %v5134_v57, %v5137_v61 }
 0x120   : > { %v4461_v32 = vcombine.high %v5012_v10, %v5041_v28  ;;  %3251 = vrot.lane.b32.xlu0 %v5304_v24, %s4735_s6  ;;  %v2746_v3 = vshrl.u32 %v5298_v17, 16  ;;  %v2750_v35 = vrot.slane %v2748_v41, 1  ;;  %v3006_v4 = vcombine.low %v5094_v8, %v5103_v20 }
 0x121   : > { %v3002_v53 = vrot.slane %v2988_v40, %v4811_v6  ;;  %v2378_v14 = vrot.slane %v6083_v23, %v4811_v6  ;;  %v4462_v22 = vcombine.high %v5094_v8, %v5103_v20  ;;  %v3014_v0 = vrot.slane %v3004_v26, %v4811_v6 }
 0x122   : > { %v3021_v57 = vrot.slane %v4461_v32, %v4811_v6  ;;  %v2652_v10 = vrot.slane %v5074_v59, %v4811_v6  ;;  %v2751_v28 = vor.u32 %v2750_v35, %v2746_v3  ;;  %v2755_v61 = vrot.slane %v2753_v63, 1 }
 0x123   : > { %v3003_v46 = vcombine.low %v2995_v48, %v3002_v53  ;;  %v3028_v25 = vrot.slane %v3006_v4, %v4811_v6  ;;  %v3035_v18 = vrot.slane %v4462_v22, %v4811_v6  ;;  %v2385_v60 = vrot.slane %v2371_v39, %v4811_v6 }
 0x124   : > { %v3036_v44 = vcombine.low %v3014_v0, %v3021_v57  ;;  %v2659_v8 = vrot.slane %v2652_v10, %v4811_v6  ;;  %v2760_v42 = vshll.u32 %v5250_v55, 16  ;;  %v2069_v30 = vcombine.high %v5222_v49, %v5222_v49 }
 0x125   : > { %4480 = vmatprep.mubr.msk.bf16.mxu0 %vm1490_vm0, %v3003_v46  ;;  %v2756_v59 = vsel %vm2744_vm1, %v2751_v28, %v2755_v61  ;;  %3423 = vrot.lane.b32.xlu0 %v3003_v46, %s4737_s8  ;;  %v3037_v52 = vcombine.low %v3028_v25, %v3035_v18  ;;  %v1664_v40 = vpack.c.bf16 %v5213_v43, %v5180_v47  ;;  %v2758_v41 = vshrl.u32 %v5250_v55, 16 }
 0x126   : > { %v2070_v26 = vcombine.high %v5233_v21, %v5233_v21  ;;  %2841 = vrot.lane.b32.xlu1 %v2756_v59, %s4738_s9  ;;  %v2762_v63 = vrot.slane %v2760_v42, 1  ;;  %v2765_v39 = vshll.u32 %v2659_v8, 16  ;;  %v3044_v48 = vrot.slane %v3036_v44, %v4811_v6 }
 0x127   : > { %v3051_v53 = vrot.slane %v3037_v52, %v4811_v6  ;;  %v2469_v23 = vcombine.low %v5198_v5, %v5201_v13  ;;  %v1663_v47 = vpack.c.bf16 %v5230_v50, %v5195_v62  ;;  %v2535_v32 = vcombine.low %v5216_v11, %v5222_v49 }
 0x128   : > { %v5352_v3 = vcombine.low %v2378_v14, %v2385_v60  ;;  %v2763_v35 = vor.u32 %v2762_v63, %v2758_v41  ;;  %v4448_v4 = vpack.c.bf16 %v5230_v50, %v5230_v50  ;;  %v4458_v22 = vcombine.high %v5216_v11, %v5222_v49 }
 0x129   : > { %v2537_v0 = vcombine.low %v5219_v9, %v5233_v21  ;;  %v2020_v5 = vcombine.high %v5281_v27, %v5281_v27  ;;  %3253 = vrot.lane.b32.xlu0 %v3003_v46, %s4735_s6  ;;  %v5363_v62 = vcombine.low %v3044_v48, %v3051_v53  ;;  %v6084_v13 = vcombine.high %v5157_v19, %v5157_v19 }
 0x12a   : > { %3316 = vrot.lane.b32.xlu1 %v5352_v3, %s4736_s7  ;;  %v2767_v50 = vrot.slane %v2765_v39, 1  ;;  %v2078_v57 = vrot.slane %v1663_v47, %v4811_v6  ;;  %v2085_v10 = vrot.slane %v4448_v4, %v4811_v6  ;;  %v5376_v28 = vcombine.low %v5281_v27, %v2018_v1 }
 0x12b   : > { %v5369_v14 = vcombine.low %v6084_v13, %v5225_v54  ;;  %v4457_v46 = vcombine.high %v5248_v58, %v5294_v16  ;;  %4481 = vmatprep.mubr.msk.bf16.mxu1 %vm1490_vm0, %v5363_v62  ;;  %v6085_v61 = vcombine.low %v5175_v38, %v5178_v45  ;;  %v2483_v18 = vrot.slane %v2469_v23, %v4811_v6 }
 0x12c   : > { %v2768_v60 = vsel %vm2744_vm1, %v2763_v35, %v2767_v50  ;;  %v2086_v44 = vcombine.high %v2078_v57, %v2078_v57  ;;  %v2087_v8 = vcombine.high %v2085_v10, %v2085_v10  ;;  %v5389_v1 = vrot.slane %v2085_v10, %v4811_v6 }
 0x12d   : > { %v2476_v25 = vrot.slane %v6085_v61, %v4811_v6  ;;  %v5392_v42 = vrot.slane %v2535_v32, %v4811_v6  ;;  %v5395_v59 = vrot.slane %v4458_v22, %v4811_v6  ;;  %v5398_v52 = vcombine.low %v2069_v30, %v5219_v9  ;;  %2843 = vrot.lane.b32.xlu0 %v2768_v60, %s4738_s9 }
 0x12e   : > { %v2666_v38 = vrot.slane %v5053_v37, %v4811_v6  ;;  %v5404_v45 = vrot.slane %v2537_v0, %v4811_v6  ;;  %3421 = vrot.lane.b32.xlu1 %v5304_v24, %s4737_s8  ;;  %v5409_v41 = vrot.slane %v2086_v44, %v4811_v6  ;;  %v5412_v63 = vrot.slane %v2087_v8, %v4811_v6 }
 0x12f   : > { %v2117_v9 = vcombine.high %v5389_v1, %v5389_v1  ;;  %v2488_v30 = vcombine.low %v2020_v5, %v5248_v58  ;;  %v2502_v37 = vrot.slane %v5369_v14, %v4811_v6  ;;  %v2509_v39 = vrot.slane %v5376_v28, %v4811_v6 }
 0x130   : > { %v5421_v48 = vcombine.low %v2476_v25, %v2483_v18  ;;  %v5424_v24 = vrot.slane %v4457_v46, %v4811_v6  ;;  %v3105_v53 = vcombine.low %v5248_v58, %v5294_v16  ;;  %v2118_v23 = vcombine.high %v5409_v41, %v5409_v41 }
 0x131   : > { %v2586_v47 = vcombine.low %v5412_v63, %v2117_v9  ;;  %v4449_v32 = vpack.c.bf16 %v5213_v43, %v5213_v43  ;;  %v2673_v35 = vrot.slane %v2666_v38, %v4811_v6  ;;  %v2772_v4 = vshll.u32 %v5352_v3, 16 }
 0x132   : > { %3490 = vrot.lane.b32.xlu0 %v5421_v48, %s4739_s10  ;;  %v1923_v22 = vcombine.high %v5121_v36, %v5121_v36  ;;  %3486 = vrot.lane.b32.xlu1 %v5352_v3, %s4739_s10  ;;  %v2127_v0 = vrot.slane %v1664_v40, %v4811_v6  ;;  %v2585_v5 = vcombine.low %v2118_v23, %v5389_v1  ;;  %v2770_v50 = vshrl.u32 %v5352_v3, 16 }
 0x133   : > { %v2614_v13 = vrot.slane %v2586_v47, %v4811_v6  ;;  %v2774_v10 = vrot.slane %v2772_v4, 1  ;;  %v2777_v43 = vshll.u32 %v2673_v35, 16  ;;  %v1971_v28 = vcombine.high %v5151_v12, %v5151_v12 }
 0x134   : > { %v6086_v46 = vcombine.high %v5118_v34, %v5118_v34  ;;  %v5452_v25 = vrot.slane %v2078_v57, %v4811_v6  ;;  %v2607_v40 = vrot.slane %v2585_v5, %v4811_v6  ;;  %v3054_v18 = vcombine.low %v1923_v22, %v5148_v7 }
 0x135   : > { %v6087_v44 = vcombine.high %v5148_v7, %v5148_v7  ;;  %v2134_v38 = vrot.slane %v4449_v32, %v4811_v6  ;;  %v2775_v34 = vor.u32 %v2774_v10, %v2770_v50  ;;  %v2135_v9 = vcombine.high %v2127_v0, %v2127_v0 }
 0x136   : > { %v3053_v61 = vcombine.low %v5121_v36, %v6086_v46  ;;  %3320 = vrot.lane.b32.xlu0 %v5421_v48, %s4736_s7  ;;  %v3056_v36 = vcombine.low %v1971_v28, %v5115_v33  ;;  %3356 = vrot.lane.b32.xlu1 %v2768_v60, %s4740_s11  ;;  %v5466_v23 = vcombine.low %v2607_v40, %v2614_v13  ;;  %v2779_v47 = vrot.slane %v2777_v43, 1 }
 0x137   : > { %v3055_v8 = vcombine.low %v5151_v12, %v6087_v44  ;;  %v3070_v7 = vrot.slane %v3054_v18, %v4811_v6  ;;  %v1922_v35 = vcombine.high %v5103_v20, %v5103_v20  ;;  %v6088_v4 = vrot.slane %v5172_v31, %v4811_v6 }
 0x138   : > { %v3063_v57 = vrot.slane %v3053_v61, %v4811_v6  ;;  %v3084_v32 = vrot.slane %v3056_v36, %v4811_v6  ;;  %v6089_v22 = vrot.slane %v5131_v56, %v4811_v6  ;;  %v2516_v5 = vrot.slane %v2488_v30, %v4811_v6 }
 0x139   : > { %v3077_v12 = vrot.slane %v3055_v8, %v4811_v6  ;;  %v5483_v13 = vrot.slane %v2127_v0, %v4811_v6  ;;  %v2116_v50 = vcombine.high %v5452_v25, %v5452_v25  ;;  %v2780_v43 = vsel %vm2744_vm1, %v2775_v34, %v2779_v47 }
 0x13a   : > { %v5479_v60 = vcombine.low %v6089_v22, %v6088_v4  ;;  %v3085_v10 = vcombine.low %v3063_v57, %v3070_v7  ;;  %v2680_v28 = vrot.slane %v1922_v35, %v4811_v6  ;;  %v2567_v56 = vcombine.low %v5395_v59, %v5404_v45  ;;  %3358 = vrot.lane.b32.xlu1 %v2780_v43, %s4740_s11  ;;  %v1644_v57 = vpop.f32.mrf.mxu0 }
 0x13b   : > { %v3086_v20 = vcombine.low %v3077_v12, %v3084_v32  ;;  %v2136_v46 = vcombine.high %v2134_v38, %v2134_v38  ;;  %v5493_v30 = vrot.slane %v2135_v9, %v4811_v6  ;;  %v2566_v61 = vcombine.low %v5424_v24, %v5392_v42 }
 0x13c   : > { %v2784_v31 = vshll.u32 %v5479_v60, 16  ;;  %v3093_v0 = vrot.slane %v3085_v10, %v4811_v6  ;;  %v2583_v40 = vcombine.low %v2070_v26, %v5452_v25  ;;  %v2687_v59 = vrot.slane %v2680_v28, %v4811_v6 }
 0x13d   : > { %v3100_v18 = vrot.slane %v3086_v20, %v4811_v6  ;;  %v5505_v45 = vcombine.low %v2509_v39, %v2516_v5  ;;  %v5508_v44 = vrot.slane %v2134_v38, %v4811_v6  ;;  %v2165_v8 = vcombine.high %v5483_v13, %v5483_v13 }
 0x13e   : > { %v2694_v42 = vrot.slane %v5115_v33, %v4811_v6  ;;  %v2584_v24 = vcombine.low %v5409_v41, %v2116_v50  ;;  %v2786_v26 = vrot.slane %v2784_v31, 1  ;;  %v3103_v36 = vcombine.low %v5225_v54, %v5281_v27  ;;  %2845 = vrot.lane.b32.xlu1 %v2780_v43, %s4738_s9 }
 0x13f   : > { %v5515_v34 = vcombine.low %v3093_v0, %v3100_v18  ;;  %v5520_v39 = vrot.slane %v2136_v46, %v4811_v6  ;;  %v3265_v38 = vcombine.low %v5483_v13, %v5493_v30  ;;  %v4467_v9 = vcombine.high %v5483_v13, %v5493_v30 }
 0x140   : > { %v4463_v7 = vcombine.high %v5115_v33, %v5157_v19  ;;  %v2593_v12 = vrot.slane %v2583_v40, %v4811_v6  ;;  %v2782_v47 = vshrl.u32 %v5479_v60, 16  ;;  %v2789_v32 = vshll.u32 %v2687_v59, 16 }
 0x141   : > { %3427 = vrot.lane.b32.xlu0 %v5515_v34, %s4737_s8  ;;  %v4464_v35 = vcombine.high %v5225_v54, %v5281_v27  ;;  %v2701_v4 = vrot.slane %v2694_v42, %v4811_v6  ;;  %v2796_v22 = vshll.u32 %v5421_v48, 16  ;;  %v1666_v5 = vpack.c.bf16 %v5256_v51, %v5256_v51 }
 0x142   : > { %v1665_v33 = vpack.c.bf16 %v1644_v57, %v5278_v15  ;;  %v2600_v19 = vrot.slane %v2584_v24, %v4811_v6  ;;  %v2787_v50 = vor.u32 %v2786_v26, %v2782_v47  ;;  %v3119_v10 = vrot.slane %v3103_v36, %v4811_v6  ;;  %3528 = vrot.lane.b32.xlu1 %v2780_v43, %s4741_s12 }
 0x143   : > { %v4450_v20 = vpack.c.bf16 %v1644_v57, %v1644_v57  ;;  %v2794_v54 = vshrl.u32 %v5421_v48, 16  ;;  %v3112_v27 = vrot.slane %v4463_v7, %v4811_v6  ;;  %v2224_v28 = vrot.slane %v1666_v5, %v4811_v6 }
 0x144   : > { %v2176_v31 = vrot.slane %v1665_v33, %v4811_v6  ;;  %v2791_v51 = vrot.slane %v2789_v32, 1  ;;  %v3126_v15 = vrot.slane %v4464_v35, %v4811_v6  ;;  %v3133_v46 = vrot.slane %v3105_v53, %v4811_v6 }
 0x145   : > { %3257 = vrot.lane.b32.xlu0 %v5515_v34, %s4735_s6  ;;  %v2183_v43 = vrot.slane %v4450_v20, %v4811_v6  ;;  %v2798_v0 = vrot.slane %v2796_v22, 1  ;;  %v2801_v40 = vshll.u32 %v2701_v4, 16  ;;  %v2225_v18 = vcombine.high %v2224_v28, %v2224_v28 }
 0x146   : > { %v2184_v59 = vcombine.high %v2176_v31, %v2176_v31  ;;  %v2792_v42 = vsel %vm2744_vm1, %v2787_v50, %v2791_v51  ;;  %v3134_v24 = vcombine.low %v3112_v27, %v3119_v10  ;;  %v2574_v26 = vrot.slane %v2566_v61, %v4811_v6  ;;  %3488 = vrot.lane.b32.xlu1 %v5479_v60, %s4739_s10 }
 0x147   : > { %v2185_v36 = vcombine.high %v2183_v43, %v2183_v43  ;;  %v5560_v57 = vrot.slane %v2224_v28, %v4811_v6  ;;  %v5563_v58 = vrot.slane %v2225_v18, %v4811_v6  ;;  %v5566_v53 = vrot.slane %v2176_v31, %v4811_v6 }
 0x148   : > { %v5569_v7 = vrot.slane %v2184_v59, %v4811_v6  ;;  %v3135_v47 = vcombine.low %v3126_v15, %v3133_v46  ;;  %v2581_v61 = vrot.slane %v2567_v56, %v4811_v6  ;;  %v5574_v32 = vrot.slane %v2183_v43, %v4811_v6 }
 0x149   : > { %3530 = vrot.lane.b32.xlu0 %v2792_v42, %s4741_s12  ;;  %v5577_v35 = vrot.slane %v2185_v36, %v4811_v6  ;;  %v3267_v4 = vcombine.low %v5508_v44, %v5520_v39  ;;  %v5581_v22 = vcombine.low %v2593_v12, %v2600_v19  ;;  %v3547_v5 = vcombine.low %v5560_v57, %v5563_v58 }
 0x14a   : > { %v4469_v33 = vcombine.high %v5566_v53, %v5569_v7  ;;  %v4468_v56 = vcombine.high %v5508_v44, %v5520_v39  ;;  %v3275_v50 = vrot.slane %v3265_v38, %v4811_v6  ;;  %v2799_v10 = vor.u32 %v2798_v0, %v2794_v54  ;;  %3318 = vrot.lane.b32.xlu1 %v5479_v60, %s4736_s7 }
 0x14b   : > { %v3545_v20 = vcombine.low %v5574_v32, %v5577_v35  ;;  %v3282_v27 = vrot.slane %v4467_v9, %v4811_v6  ;;  %v2803_v12 = vrot.slane %v2801_v40, 1  ;;  %v4470_v19 = vcombine.high %v5574_v32, %v5577_v35 }
 0x14c   : > { %v6090_v28 = vrot.slane %v5170_v29, %v4811_v6  ;;  %v3142_v54 = vrot.slane %v3134_v24, %v4811_v6  ;;  %v3149_v9 = vrot.slane %v3135_v47, %v4811_v6  ;;  %v5606_v31 = vcombine.low %v2574_v26, %v2581_v61 }
 0x14d   : > { %3360 = vrot.lane.b32.xlu0 %v2792_v42, %s4740_s11  ;;  %v2722_v51 = vrot.slane %v5245_v2, %v4811_v6  ;;  %v2166_v15 = vcombine.high %v5508_v44, %v5508_v44  ;;  %v2623_v14 = vrot.slane %v5581_v22, %v4811_v6  ;;  %v2630_v29 = vrot.slane %v5466_v23, %v4811_v6 }
 0x14e   : > { %v2517_v38 = vcombine.low %v6090_v28, %v2502_v37  ;;  %v2532_v37 = vrot.slane %v5505_v45, %v4811_v6  ;;  %v2804_v46 = vsel %vm2744_vm1, %v2799_v10, %v2803_v12  ;;  %v2214_v43 = vcombine.high %v5566_v53, %v5566_v53  ;;  %3425 = vrot.lane.b32.xlu1 %v5363_v62, %s4737_s8 }
 0x14f   : > { %v2818_v0 = vshrl.u32 %v5606_v31, 16  ;;  %v3289_v40 = vrot.slane %v3267_v4, %v4811_v6  ;;  %v2215_v18 = vcombine.high %v5574_v32, %v5574_v32  ;;  %v2216_v23 = vcombine.high %v5569_v7, %v5569_v7 }
 0x150   : > { %v2525_v45 = vrot.slane %v2517_v38, %v4811_v6  ;;  %v3296_v59 = vrot.slane %v4468_v56, %v4811_v6  ;;  %v5632_v24 = vcombine.low %v3142_v54, %v3149_v9  ;;  %v5635_v26 = vrot.slane %v2722_v51, %v4811_v6 }
 0x151   : > { %2847 = vrot.lane.b32.xlu0 %v2792_v42, %s4738_s9  ;;  %v2820_v36 = vshll.u32 %v5606_v31, 16  ;;  %v3297_v47 = vcombine.low %v3275_v50, %v3282_v27  ;;  %v3508_v61 = vrot.slane %v5563_v58, %v4811_v6  ;;  %v2021_v22 = vcombine.high %v5294_v16, %v5294_v16 }
 0x152   : > { %v5640_v4 = vcombine.low %v2525_v45, %v2532_v37  ;;  %v3298_v10 = vcombine.low %v3289_v40, %v3296_v59  ;;  %v2217_v42 = vcombine.high %v5577_v35, %v5577_v35  ;;  %v3437_v56 = vcombine.low %v5569_v7, %v2214_v43  ;;  %3255 = vrot.lane.b32.xlu1 %v5363_v62, %s4735_s6 }
 0x153   : > { %v3305_v12 = vrot.slane %v3297_v47, %v4811_v6  ;;  %v3200_v28 = vcombine.low %v5452_v25, %v5409_v41  ;;  %v3438_v50 = vcombine.low %v2216_v23, %v5574_v32  ;;  %v5654_v27 = vcombine.low %v5577_v35, %v2215_v18  ;;  %v4638_v32 = vld [vmem:[%s6078_s2 + $0x28] sm:$0xff]  }
 0x154   : > { %v3312_v38 = vrot.slane %v3298_v10, %v4811_v6  ;;  %v4465_v54 = vcombine.high %v5452_v25, %v5409_v41  ;;  %v5660_v9 = vrot.slane %v2820_v36, 1  ;;  %v6091_v51 = vcombine.high %v5216_v11, %v5216_v11 }
 0x155   : > { %2849 = vrot.lane.b32.xlu0 %v2804_v46, %s4738_s9  ;;  %v3202_v62 = vcombine.low %v5389_v1, %v5412_v63  ;;  %v4466_v43 = vcombine.high %v5389_v1, %v5412_v63  ;;  %v3151_v40 = vcombine.low %v2021_v22, %v5216_v11  ;;  %v3154_v41 = vcombine.low %v5233_v21, %v5245_v2 }
 0x156   : > { %v3152_v37 = vcombine.low %v5222_v49, %v6091_v51  ;;  %v5673_v25 = vcombine.low %v3305_v12, %v3312_v38  ;;  %v3210_v18 = vrot.slane %v3200_v28, %v4811_v6  ;;  %v3440_v23 = vcombine.low %v2217_v42, %v5560_v57  ;;  %3532 = vrot.lane.b32.xlu1 %v2804_v46, %s4741_s12 }
 0x157   : > { %v3217_v45 = vrot.slane %v4465_v54, %v4811_v6  ;;  %v3224_v49 = vrot.slane %v3202_v62, %v4811_v6  ;;  %v3231_v59 = vrot.slane %v4466_v43, %v4811_v6  ;;  %v3447_v1 = vrot.slane %v3437_v56, %v4811_v6 }
 0x158   : > { %v3454_v11 = vrot.slane %v3438_v50, %v4811_v6  ;;  %v5683_v36 = vcombine.low %v2623_v14, %v2630_v29  ;;  %v2167_v21 = vcombine.high %v5493_v30, %v5493_v30  ;;  %v3175_v2 = vrot.slane %v5398_v52, %v4811_v6 }
 0x159   : > { %3429 = vrot.lane.b32.xlu0 %v5632_v24, %s4737_s8  ;;  %v3232_v47 = vcombine.low %v3210_v18, %v3217_v45  ;;  %v3233_v22 = vcombine.low %v3224_v49, %v3231_v59  ;;  %v2168_v10 = vcombine.high %v5520_v39, %v5520_v39  ;;  %v3161_v42 = vrot.slane %v3151_v40, %v4811_v6 }
 0x15a   : > { %v3168_v56 = vrot.slane %v3152_v37, %v4811_v6  ;;  %v3182_v14 = vrot.slane %v3154_v41, %v4811_v6  ;;  %v3372_v29 = vcombine.low %v5493_v30, %v2165_v8  ;;  %v3373_v28 = vcombine.low %v2167_v21, %v5508_v44  ;;  %3362 = vrot.lane.b32.xlu1 %v2804_v46, %s4740_s11 }
 0x15b   : > { %v3240_v12 = vrot.slane %v3232_v47, %v4811_v6  ;;  %v3247_v52 = vrot.slane %v3233_v22, %v4811_v6  ;;  %v3374_v50 = vcombine.low %v5520_v39, %v2166_v15  ;;  %v3461_v38 = vrot.slane %v5654_v27, %v4811_v6 }
 0x15c   : > { %v3469_v54 = vcombine.low %v3447_v1, %v3454_v11  ;;  %v3375_v51 = vcombine.low %v2168_v10, %v5566_v53  ;;  %v3382_v13 = vrot.slane %v3372_v29, %v4811_v6  ;;  %v3389_v8 = vrot.slane %v3373_v28, %v4811_v6  ;;  %v4636_v1 = vld [vmem:[%s6078_s2 + $0x38] sm:$0xff]   ;;  %v4637_v28 = vld [vmem:[%s6078_s2 + $0x30] sm:$0xff]  }
 0x15d   : > { %3494 = vrot.lane.b32.xlu0 %v5606_v31, %s4739_s10  ;;  %v5711_v30 = vcombine.low %v3240_v12, %v3247_v52  ;;  %v3396_v44 = vrot.slane %v3374_v50, %v4811_v6  ;;  %v3336_v39 = vrot.slane %v5566_v53, %v4811_v6  ;;  %v3183_v15 = vcombine.low %v3161_v42, %v3168_v56 }
 0x15e   : > { %v3184_v46 = vcombine.low %v3175_v2, %v3182_v14  ;;  %v3403_v27 = vrot.slane %v3375_v51, %v4811_v6  ;;  %v3345_v37 = vshrl.u32 %v5673_v25, 16  ;;  %v3404_v62 = vcombine.low %v3382_v13, %v3389_v8  ;;  %3324 = vrot.lane.b32.xlu1 %v5606_v31, %s4736_s7 }
 0x15f   : > { %v3343_v43 = vrot.slane %v3336_v39, %v4811_v6  ;;  %v3347_v40 = vshll.u32 %v5673_v25, 16  ;;  %v3468_v41 = vrot.slane %v3440_v23, %v4811_v6  ;;  %v2825_v18 = vshll.u32 %v5635_v26, 16 }
 0x160   : > { %v3405_v45 = vcombine.low %v3396_v44, %v3403_v27  ;;  %v3477_v49 = vrot.slane %v3469_v54, %v4811_v6  ;;  %v3515_v59 = vrot.slane %v3508_v61, %v4811_v6  ;;  %v3412_v23 = vrot.slane %v3404_v62, %v4811_v6 }
 0x161   : > { %3259 = vrot.lane.b32.xlu0 %v5632_v24, %s4735_s6  ;;  %v3349_v11 = vrot.slane %v3347_v40, 1  ;;  %v3352_v21 = vshll.u32 %v3343_v43, 16  ;;  %v3470_v26 = vcombine.low %v3461_v38, %v3468_v41  ;;  %v3191_v2 = vrot.slane %v3183_v15, %v4811_v6 }
 0x162   : > { %v3198_v47 = vrot.slane %v3184_v46, %v4811_v6  ;;  %v3419_v22 = vrot.slane %v3405_v45, %v4811_v6  ;;  %v2708_v61 = vrot.slane %v5294_v16, %v4811_v6  ;;  %v4742_v14 = vmov 0   ;;  %3492 = vrot.lane.b32.xlu1 %v5640_v4, %s4739_s10 }
 0x163   : > { %v3350_v10 = vor.u32 %v3349_v11, %v3345_v37  ;;  %v3354_v42 = vrot.slane %v3352_v21, 1  ;;  %v3484_v56 = vrot.slane %v3470_v26, %v4811_v6  ;;  %3815 = vmatprep.subr.bf16.mxu0 %v4742_v14  ;;  %4567 = vmatprep.subr.bf16.mxu1 %v4742_v14  ;;  %v3575_v29 = vrot.slane %v3547_v5, %v4811_v6  ;;  %v4639_v37 = vld [vmem:[%s6078_s2 + $0x20] sm:$0xff]   ;;  %v4641_v21 = vld [vmem:[%s6078_s2 + $0x10] sm:$0xff]  }
 0x164   : > { %v2823_v16 = vor.u32 %v5660_v9, %v2818_v0  ;;  %v2827_v12 = vrot.slane %v2825_v18, 1  ;;  %v5753_v52 = vcombine.low %v3412_v23, %v3419_v22  ;;  %3816 = vmatpush1.bf16.msra.mxu0 %v4636_v1  ;;  %v2808_v57 = vshll.u32 %v5640_v4, 16  ;;  %4576 = vmatpush1.bf16.msra.mxu1 %v4636_v1 }
 0x165   : > { %3322 = vrot.lane.b32.xlu0 %v5640_v4, %s4736_s7  ;;  %v5762_v58 = vsel %vm2744_vm1, %v3350_v10, %v3354_v42  ;;  %v5764_v5 = vcombine.low %v3477_v49, %v3484_v56  ;;  %v3524_v50 = vshll.u32 %v3515_v59, 16  ;;  %3817 = vmatprep.subr.bf16.mxu0 %v4742_v14  ;;  %v5767_v0 = vcombine.low %v3191_v2, %v3198_v47  ;;  %v4640_v59 = vld [vmem:[%s6078_s2 + $0x18] sm:$0xff]   ;;  %v4642_v47 = vld [vmem:[%s6078_s2 + $0x8] sm:$0xff]  }
 0x166   : > { %v3554_v9 = vrot.slane %v4469_v33, %v4811_v6  ;;  %v3561_v38 = vrot.slane %v3545_v20, %v4811_v6  ;;  %v3568_v54 = vrot.slane %v4470_v19, %v4811_v6  ;;  %v2715_v51 = vrot.slane %v2708_v61, %v4811_v6  ;;  %4568 = vmatprep.subr.bf16.mxu1 %v4742_v14  ;;  %v4644_v61 = vld [vmem:[%s6078_s2 + $0x40] sm:$0xff]  }
 0x167   : > { %v2119_v13 = vcombine.high %v5412_v63, %v5412_v63  ;;  %v3517_v8 = vshrl.u32 %v5764_v5, 16  ;;  %v3519_v53 = vshll.u32 %v5764_v5, 16  ;;  %v2828_v7 = vsel %vm2744_vm1, %v2823_v16, %v2827_v12  ;;  %3431 = vrot.lane.b32.xlu1 %v5767_v0, %s4737_s8 }
 0x168   : > { %3818 = vmatpush1.bf16.msra.mxu0 %v4637_v28  ;;  %v3576_v35 = vcombine.low %v3554_v9, %v3561_v38  ;;  %v3577_v33 = vcombine.low %v3568_v54, %v3575_v29  ;;  %v3526_v20 = vrot.slane %v3524_v50, 1  ;;  %4577 = vmatpush1.bf16.msra.mxu1 %v4637_v28  ;;  %v2810_v39 = vrot.slane %v2808_v57, 1 }
 0x169   : > { %3536 = vrot.lane.b32.xlu0 %v2828_v7, %s4741_s12  ;;  %v3521_v63 = vrot.slane %v3519_v53, 1  ;;  %3819 = vmatprep.subr.bf16.mxu0 %v4742_v14  ;;  %v2813_v15 = vshll.u32 %v2715_v51, 16  ;;  %v2736_v46 = vrot.slane %v2119_v13, %v4811_v6  ;;  %v2806_v43 = vshrl.u32 %v5640_v4, 16 }
 0x16a   : > { %v5796_v19 = vrot.slane %v3576_v35, %v4811_v6  ;;  %v5799_v44 = vrot.slane %v3577_v33, %v4811_v6  ;;  %4569 = vmatprep.subr.bf16.mxu1 %v4742_v14  ;;  %v2832_v49 = vshll.u32 %v5683_v36, 16 }
 0x16b   : > { %v3522_v27 = vor.u32 %v3521_v63, %v3517_v8  ;;  %3261 = vrot.lane.b32.xlu1 %v5767_v0, %s4735_s6  ;;  %v2811_v41 = vor.u32 %v2810_v39, %v2806_v43  ;;  %v2815_v18 = vrot.slane %v2813_v15, 1  ;;  %v2743_v45 = vrot.slane %v2736_v46, %v4811_v6 }
 0x16c   : > { %3820 = vmatpush1.bf16.msra.mxu0 %v4638_v32  ;;  %v3592_v62 = vcombine.low %v5796_v19, %v5799_v44  ;;  %4578 = vmatpush1.bf16.msra.mxu1 %v4638_v32  ;;  %v2830_v6 = vshrl.u32 %v5683_v36, 16  ;;  %v2834_v23 = vrot.slane %v2832_v49, 1 }
 0x16d   : > { %3366 = vrot.lane.b32.xlu0 %v2828_v7, %s4740_s11  ;;  %v3527_v40 = vsel %vm2744_vm1, %v3522_v27, %v3526_v20  ;;  %3821 = vmatprep.subr.bf16.mxu0 %v4742_v14  ;;  %v2816_v1 = vsel %vm2744_vm1, %v2811_v41, %v2815_v18  ;;  %v2837_v11 = vshll.u32 %v2743_v45, 16 }
 0x16e   : > { %4570 = vmatprep.subr.bf16.mxu1 %v4742_v14  ;;  %v2835_v26 = vor.u32 %v2834_v23, %v2830_v6 }
 0x16f   : > { %3498 = vrot.lane.b32.xlu1 %v5673_v25, %s4739_s10  ;;  %v2839_v2 = vrot.slane %v2837_v11, 1 }
 0x170   : > { %3822 = vmatpush1.bf16.msra.mxu0 %v4639_v37  ;;  %4579 = vmatpush1.bf16.msra.mxu1 %v4639_v37 }
 0x171   : > { %2853 = vrot.lane.b32.xlu0 %v2828_v7, %s4738_s9  ;;  %3823 = vmatprep.subr.bf16.mxu0 %v4742_v14  ;;  %v2840_v22 = vsel %vm2744_vm1, %v2835_v26, %v2839_v2 }
 0x172   : > { %4571 = vmatprep.subr.bf16.mxu1 %v4742_v14 }
 0x173   : > { %2851 = vrot.lane.b32.xlu1 %v2816_v1, %s4738_s9 }
 0x174   : > { %3824 = vmatpush1.bf16.msra.mxu0 %v4640_v59  ;;  %4580 = vmatpush1.bf16.msra.mxu1 %v4640_v59 }
 0x175   : > { %3534 = vrot.lane.b32.xlu0 %v2816_v1, %s4741_s12  ;;  %3825 = vmatprep.subr.bf16.mxu0 %v4742_v14 }
 0x176   : > { %4572 = vmatprep.subr.bf16.mxu1 %v4742_v14 }
 0x177   : > { %3328 = vrot.lane.b32.xlu1 %v5673_v25, %s4736_s7  ;;  %v4643_v25 = vld [vmem:[%s6078_s2] sm:$0xff]  }
 0x178   : > { %3826 = vmatpush1.bf16.msra.mxu0 %v4641_v21  ;;  %4581 = vmatpush1.bf16.msra.mxu1 %v4641_v21 }
 0x179   : > { %3364 = vrot.lane.b32.xlu0 %v2816_v1, %s4740_s11  ;;  %3827 = vmatprep.subr.bf16.mxu0 %v4742_v14 }
 0x17a   : > { %4573 = vmatprep.subr.bf16.mxu1 %v4742_v14 }
 0x17b   : > { %3538 = vrot.lane.b32.xlu1 %v2840_v22, %s4741_s12 }
 0x17c   : > { %3828 = vmatpush1.bf16.msra.mxu0 %v4642_v47  ;;  %4582 = vmatpush1.bf16.msra.mxu1 %v4642_v47 }
 0x17d   : > { %3433 = vrot.lane.b32.xlu0 %v5711_v30, %s4737_s8  ;;  %3829 = vmatprep.subr.bf16.mxu0 %v4742_v14 }
 0x17e   : > { %4574 = vmatprep.subr.bf16.mxu1 %v4742_v14  ;;  %v3250_v10 = vpop.permute.xlu1 %3249 }
 0x17f   : > { %3368 = vrot.lane.b32.xlu1 %v2840_v22, %s4740_s11 }
 0x180   : > { %3830 = vmatpush1.bf16.msra.mxu0 %v4643_v25  ;;  %4583 = vmatpush1.bf16.msra.mxu1 %v4643_v25 }
 0x181   : > { %3263 = vrot.lane.b32.xlu0 %v5711_v30, %s4735_s6  ;;  %3845 = vmatprep.subr.bf16.mxu0 %v4742_v14 }
 0x182   : > { %4575 = vmatprep.subr.bf16.mxu1 %v4742_v14 }
 0x183   : > { %2855 = vrot.lane.b32.xlu1 %v2840_v22, %s4738_s9  ;;  %s4406_s9 = sshll.u32 %s6105_s16, 5 }
 0x184   : > { %3846 = vmatpush2.bf16.msra.mxu0 %v4644_v61  ;;  %4584 = vmatpush2.bf16.msra.mxu1 %v4644_v61 }
 0x185   : > { %3496 = vrot.lane.b32.xlu0 %v5683_v36, %s4739_s10 }
 0x187   : > { %3435 = vrot.lane.b32.xlu1 %v5753_v52, %s4737_s8  ;;  %s4404_s8 = sshll.u32 %s4716_s15, 3 }
 0x188   : > { %p235_p6 = scmp.lt.s32.totalorder %s4404_s8, 15 }
 0x189   : > { %3326 = vrot.lane.b32.xlu0 %v5683_v36, %s4736_s7 }
 0x18a   : > { %s6107_s8 = smov (!%p235_p6, %s4404_s8), 15 }
 0x18b   : > { %3542 = vrot.lane.b32.xlu1 %v3527_v40, %s4741_s12  ;;  %v3315_v42 = vpop.permute.xlu1 %3314  ;;  %s4405_s15 = sshll.u32 %s6107_s8, 1 }
 0x18d   : > { %3540 = vrot.lane.b32.xlu0 %v5762_v58, %s4741_s12 }
 0x191   : > { %3370 = vrot.lane.b32.xlu0 %v5762_v58, %s4740_s11 }
 0x192   : > { %v3252_v56 = vpop.permute.xlu0 %3251 }
 0x195   : > { %3500 = vrot.lane.b32.xlu0 %v5764_v5, %s4739_s10  ;;  %s239_s10 = sadd.s32 %s4406_s9, %s4405_s15 }
 0x196   : > { %s4407_s16 = sshll.u32 %s239_s10, 3 }
 0x197   : > { %v3424_v14 = vpop.permute.xlu0 %3423  ;;  %s5983_s27 = scalar_lea.vmem %s6080_s4, %s4407_s16 }
 0x198   : > { %v2842_v29 = vpop.permute.xlu1 %2841 }
 0x199   : > { %v3594_v38 = vsel %vm1490_vm0, %v5298_v17, %v2842_v29 }
 0x19a   : > { %v3611_v58 = vsel %vm3609_vm2, %v3594_v38, %v3250_v10 }
 0x19b   : > { %v3254_v16 = vpop.permute.xlu0 %3253  ;;  %v3628_v13 = vsel %vm3626_vm3, %v3611_v58, %v3315_v42 }
 0x19c   : > { %v3317_v12 = vpop.permute.xlu1 %3316 }
 0x19f   : > { %v2844_v28 = vpop.permute.xlu0 %2843 }
 0x1a0   : > { %v3422_v57 = vpop.permute.xlu1 %3421  ;;  %v3596_v8 = vsel %vm1490_vm0, %v5250_v55, %v2844_v28 }
 0x1a1   : > { %v3613_v32 = vsel %vm3609_vm2, %v3596_v8, %v3252_v56 }
 0x1a2   : > { %v3630_v33 = vsel %vm3626_vm3, %v3613_v32, %v3317_v12 }
 0x1a4   : > { %v3487_v50 = vpop.permute.xlu1 %3486  ;;  %v3491_v9 = vpop.permute.xlu0 %3490 }
 0x1a8   : > { %v3357_v54 = vpop.permute.xlu1 %3356  ;;  %v3321_v51 = vpop.permute.xlu0 %3320 }
 0x1a9   : > { %v3645_v53 = vsel %vm3643_vm4, %v3628_v13, %v3357_v54 }
 0x1aa   : > { %v3662_v17 = vsel %vm3660_vm5, %v3645_v53, %v3422_v57 }
 0x1ab   : > { %v3679_v63 = vsel %vm3677_vm6, %v3662_v17, %v3487_v50 }
 0x1ac   : > { %v3359_v5 = vpop.permute.xlu1 %3358 }
 0x1ad   : > { %v3647_v39 = vsel %vm3643_vm4, %v3630_v33, %v3359_v5 }
 0x1ae   : > { %v3664_v46 = vsel %vm3660_vm5, %v3647_v39, %v3424_v14 }
 0x1b0   : > { %v2846_v7 = vpop.permute.xlu1 %2845 }
 0x1b1   : > { %v3598_v18 = vsel %vm1490_vm0, %v5352_v3, %v2846_v7 }
 0x1b2   : > { %v3615_v49 = vsel %vm3609_vm2, %v3598_v18, %v3254_v16 }
 0x1b3   : > { %v3428_v35 = vpop.permute.xlu0 %3427 }
 0x1b4   : > { %v3529_v20 = vpop.permute.xlu1 %3528 }
 0x1b5   : > { %v3696_v55 = vsel %vm3694_vm7, %v3679_v63, %v3529_v20 }
 0x1b6   : > { %3848 = vmatmul.mubr.bf16.vlgmr.msra.gmra.mxu0 %v3696_v55 }
 0x1b7   : > { %v3258_v15 = vpop.permute.xlu0 %3257 }
 0x1b8   : > { %v3489_v27 = vpop.permute.xlu1 %3488 }
 0x1b9   : > { %v3681_v43 = vsel %vm3677_vm6, %v3664_v46, %v3489_v27 }
 0x1bb   : > { %v3531_v37 = vpop.permute.xlu0 %3530 }
 0x1bc   : > { %v3699_v40 = vsel %vm3694_vm7, %v3681_v43, %v3531_v37  ;;  %v3319_v41 = vpop.permute.xlu1 %3318 }
 0x1bd   : > { %3856 = vmatmul.mubr.bf16.vlgmr.msra.gmra.mxu1 %v3699_v40  ;;  %v3632_v1 = vsel %vm3626_vm3, %v3615_v49, %v3319_v41 }
 0x1be   : > { %4482 = vmatprep.mubr.msk.bf16.mxu1 %vm1490_vm0, %v5515_v34 }
 0x1bf   : > { %v3361_v45 = vpop.permute.xlu0 %3360 }
 0x1c0   : > { %v3426_v59 = vpop.permute.xlu1 %3425  ;;  %v3649_v23 = vsel %vm3643_vm4, %v3632_v1, %v3361_v45 }
 0x1c1   : > { %v3666_v21 = vsel %vm3660_vm5, %v3649_v23, %v3426_v59 }
 0x1c2   : > { %v3683_v47 = vsel %vm3677_vm6, %v3666_v21, %v3491_v9 }
 0x1c3   : > { %v2848_v6 = vpop.permute.xlu0 %2847 }
 0x1c4   : > { %v3256_v11 = vpop.permute.xlu1 %3255  ;;  %v3600_v16 = vsel %vm1490_vm0, %v5479_v60, %v2848_v6 }
 0x1c5   : > { %v3617_v28 = vsel %vm3609_vm2, %v3600_v16, %v3256_v11  ;;  %v4645_v11 = vld [vmem:[%s6079_s3] sm:$0xff]  }
 0x1c6   : > { %v3634_v50 = vsel %vm3626_vm3, %v3617_v28, %v3321_v51  ;;  %4549 = vmatprep.subr.bf16.mxu0 %v4645_v11 }
 0x1c7   : > { %v2850_v26 = vpop.permute.xlu0 %2849  ;;  %4550 = vmatpush3.bf16.msra.mxu0 %v4645_v11 }
 0x1c8   : > { %v3533_v2 = vpop.permute.xlu1 %3532  ;;  %v3602_v5 = vsel %vm1490_vm0, %v5421_v48, %v2850_v26 }
 0x1c9   : > { %v3702_v22 = vsel %vm3694_vm7, %v3683_v47, %v3533_v2  ;;  %v3619_v53 = vsel %vm3609_vm2, %v3602_v5, %v3258_v15 }
 0x1ca   : > { %3864 = vmatmul.mubr.bf16.gmra.mxu1 %v3702_v22 }
 0x1cb   : > { %v3430_v34 = vpop.permute.xlu0 %3429  ;;  %4483 = vmatprep.mubr.msk.bf16.mxu1 %vm1490_vm0, %v5632_v24 }
 0x1cc   : > { %v3363_v3 = vpop.permute.xlu1 %3362 }
 0x1cd   : > { %v3651_v24 = vsel %vm3643_vm4, %v3634_v50, %v3363_v3 }
 0x1ce   : > { %v3668_v54 = vsel %vm3660_vm5, %v3651_v24, %v3428_v35 }
 0x1cf   : > { %v3495_v25 = vpop.permute.xlu0 %3494 }
 0x1d0   : > { %v3325_v61 = vpop.permute.xlu1 %3324 }
 0x1d3   : > { %v3260_v10 = vpop.permute.xlu0 %3259 }
 0x1d4   : > { %v3493_v42 = vpop.permute.xlu1 %3492 }
 0x1d5   : > { %v3685_v13 = vsel %vm3677_vm6, %v3668_v54, %v3493_v42 }
 0x1d7   : > { %v3323_v56 = vpop.permute.xlu0 %3322 }
 0x1d8   : > { %v3636_v7 = vsel %vm3626_vm3, %v3619_v53, %v3323_v56 }
 0x1d9   : > { %v3432_v14 = vpop.permute.xlu1 %3431 }
 0x1db   : > { %v3537_v29 = vpop.permute.xlu0 %3536 }
 0x1dd   : > { %v3262_v12 = vpop.permute.xlu1 %3261 }
 0x1df   : > { %v3367_v57 = vpop.permute.xlu0 %3366 }
 0x1e1   : > { %v3499_v9 = vpop.permute.xlu1 %3498 }
 0x1e3   : > { %v2854_v38 = vpop.permute.xlu0 %2853 }
 0x1e4   : > { %v3606_v43 = vsel %vm1490_vm0, %v5606_v31, %v2854_v38 }
 0x1e5   : > { %v2852_v58 = vpop.permute.xlu1 %2851  ;;  %v3623_v45 = vsel %vm3609_vm2, %v3606_v43, %v3262_v12  ;;  %v4646_v43 = vld [vmem:[%s4813_s5 + $0x18] sm:$0xf] }
 0x1e6   : > { %v3604_v32 = vsel %vm1490_vm0, %v5640_v4, %v2852_v58 }
 0x1e7   : > { %v3535_v8 = vpop.permute.xlu0 %3534  ;;  %v3621_v33 = vsel %vm3609_vm2, %v3604_v32, %v3260_v10 }
 0x1e8   : > { %v3705_v60 = vsel %vm3694_vm7, %v3685_v13, %v3535_v8 }
 0x1e9   : > { %3872 = vmatmul.mubr.bf16.gmra.mxu1 %v3705_v60  ;;  %v3329_v51 = vpop.permute.xlu1 %3328 }
 0x1ea   : > { %4484 = vmatprep.mubr.msk.bf16.mxu1 %vm1490_vm0, %v5767_v0  ;;  %v3638_v0 = vsel %vm3626_vm3, %v3621_v33, %v3325_v61 }
 0x1eb   : > { %v3365_v17 = vpop.permute.xlu0 %3364  ;;  %v3655_v46 = vsel %vm3643_vm4, %v3638_v0, %v3367_v57 }
 0x1ec   : > { %v3653_v48 = vsel %vm3643_vm4, %v3636_v7, %v3365_v17  ;;  %v3672_v27 = vsel %vm3660_vm5, %v3655_v46, %v3432_v14 }
 0x1ed   : > { %v3670_v35 = vsel %vm3660_vm5, %v3653_v48, %v3430_v34  ;;  %v3539_v20 = vpop.permute.xlu1 %3538 }
 0x1ee   : > { %v3687_v63 = vsel %vm3677_vm6, %v3670_v35, %v3495_v25 }
 0x1ef   : > { %v3434_v39 = vpop.permute.xlu0 %3433  ;;  %v3708_v15 = vsel %vm3694_vm7, %v3687_v63, %v3537_v29 }
 0x1f1   : > { %3880 = vmatmul.mubr.bf16.gmra.mxu1 %v3708_v15  ;;  %v3369_v55 = vpop.permute.xlu1 %3368 }
 0x1f2   : > { %4485 = vmatprep.mubr.msk.bf16.mxu1 %vm1490_vm0, %v5711_v30 }
 0x1f3   : > { %v3264_v4 = vpop.permute.xlu0 %3263 }
 0x1f5   : > { %v2856_v18 = vpop.permute.xlu1 %2855 }
 0x1f6   : > { %v3608_v59 = vsel %vm1490_vm0, %v5683_v36, %v2856_v18  ;;  %v4647_v18 = vld [vmem:[%s4813_s5 + $0xc] sm:$0xf] }
 0x1f7   : > { %v3497_v37 = vpop.permute.xlu0 %3496  ;;  %v3625_v21 = vsel %vm3609_vm2, %v3608_v59, %v3264_v4 }
 0x1f8   : > { %v3689_v40 = vsel %vm3677_vm6, %v3672_v27, %v3497_v37  ;;  %v3642_v36 = vsel %vm3626_vm3, %v3625_v21, %v3329_v51  ;;  %v4649_v21 = vld [vmem:[%s4813_s5 + $0x10] sm:$0xf] }
 0x1f9   : > { %v3711_v41 = vsel %vm3694_vm7, %v3689_v40, %v3539_v20  ;;  %v3436_v26 = vpop.permute.xlu1 %3435  ;;  %v3950_v40 = vshrl.u32 %v4646_v43, 16 }
 0x1fa   : > { %3888 = vmatmul.mubr.bf16.gmra.mxu1 %v3711_v41  ;;  %v3953_v41 = vshll.u32 %v4646_v43, 16  ;;  %v4655_v43 = vld [vmem:[%s4813_s5 + $0x28] sm:$0xf] }
 0x1fb   : > { %v3327_v49 = vpop.permute.xlu0 %3326  ;;  %4486 = vmatprep.mubr.msk.bf16.mxu1 %vm1490_vm0, %v5753_v52 }
 0x1fc   : > { %v3640_v30 = vsel %vm3626_vm3, %v3623_v45, %v3327_v49  ;;  %v3926_v45 = vshrl.u32 %v4647_v18, 16  ;;  %v3929_v49 = vshll.u32 %v4647_v18, 16  ;;  %v3955_v59 = vrot.slane %v3953_v41, 5 }
 0x1fd   : > { %v3657_v1 = vsel %vm3643_vm4, %v3640_v30, %v3369_v55  ;;  %v3543_v3 = vpop.permute.xlu1 %3542  ;;  %v3952_v30 = vrot.slane %v3950_v40, 4  ;;  %v3983_v40 = vshll.u32 %v4655_v43, 16  ;;  %v3987_v41 = vshrl.u32 %v4655_v43, 16 }
 0x1fe   : > { %v3674_v31 = vsel %vm3660_vm5, %v3657_v1, %v3434_v39  ;;  %v4648_v1 = vld [vmem:[%s4813_s5 + $0x1c] sm:$0xf]  ;;  %v3931_v11 = vrot.slane %v3929_v49, 5 }
 0x1ff   : > { %v3541_v6 = vpop.permute.xlu0 %3540  ;;  %v3691_v23 = vsel %vm3677_vm6, %v3674_v31, %v3499_v9  ;;  %v3959_v31 = vshll.u32 %v4648_v1, 16 }
 0x200   : > { %v3714_v52 = vsel %vm3694_vm7, %v3691_v23, %v3541_v6  ;;  %v3963_v6 = vshrl.u32 %v4648_v1, 16  ;;  %v3928_v23 = vrot.slane %v3926_v45, 4  ;;  %v3989_v1 = vrot.slane %v3987_v41, 4 }
 0x202   : > { %3896 = vmatmul.mubr.bf16.gmra.mxu1 %v3714_v52  ;;  %v3935_v52 = vshll.u32 %v4649_v21, 16 }
 0x203   : > { %v3371_v2 = vpop.permute.xlu0 %3370  ;;  %4487 = vmatprep.mubr.msk.bf16.mxu1 %vm1490_vm0, %v3592_v62 }
 0x204   : > { %v3659_v47 = vsel %vm3643_vm4, %v3642_v36, %v3371_v2  ;;  %v3956_v36 = vor.u32 %v3955_v59, %v3952_v30  ;;  %v3961_v2 = vrot.slane %v3959_v31, 5  ;;  %v3985_v59 = vrot.slane %v3983_v40, 5  ;;  %v4663_v40 = vld [vmem:[%s4813_s5 + $0x44] sm:$0x1] }
 0x205   : > { %v3676_v34 = vsel %vm3660_vm5, %v3659_v47, %v3436_v26  ;;  %v3939_v26 = vshrl.u32 %v4649_v21, 16  ;;  %v3965_v47 = vrot.slane %v3963_v6, 4  ;;  %v4041_v41 = vshll.u32 %v4663_v40, 16 }
 0x207   : > { %v3501_v22 = vpop.permute.xlu0 %3500 }
 0x208   : > { %v3693_v25 = vsel %vm3677_vm6, %v3676_v34, %v3501_v22  ;;  %v3932_v34 = vor.u32 %v3931_v11, %v3928_v23  ;;  %v3937_v22 = vrot.slane %v3935_v52, 5  ;;  %v4656_v23 = vld [vmem:[%s4813_s5 + $0x38] sm:$0x1]  ;;  %v3990_v52 = vor.u32 %v3989_v1, %v3985_v59 }
 0x209   : > { %v3717_v61 = vsel %vm3694_vm7, %v3693_v25, %v3543_v3  ;;  %v3941_v3 = vrot.slane %v3939_v26, 4  ;;  %v3957_v25 = vrot.slane %v3956_v36, 4  ;;  %v4017_v11 = vshll.u32 %v4656_v23, 16  ;;  %v4657_v26 = vld [vmem:[%s4813_s5 + $0x2c] sm:$0x1] }
 0x20a   : > { %3904 = vmatmul.mubr.bf16.gmra.mxu1 %v3717_v61  ;;  %v3966_v61 = vor.u32 %v3965_v47, %v3961_v2  ;;  %v3993_v36 = vshll.u32 %v4657_v26, 16  ;;  %v4043_v23 = vrot.slane %v4041_v41, 5 }
 0x276   : > { %v3849_v10 = vpop.f32.mrf.mxu0 }
 0x278   : > { %v3851_v42 = vpop.f32.mrf.mxu0 }
 0x27a   : > { %v3852_v56 = vpop.f32.mrf.mxu0 }
 0x27b   : > { %v3912_v14 = vpack.c.bf16 %v3852_v56, %v3849_v10  ;;  %v4650_v10 = vld [vmem:[%s4813_s5 + $0x20] sm:$0x1] }
 0x27c   : > { %v3854_v16 = vpop.f32.mrf.mxu0  ;;  %v3969_v42 = vshll.u32 %v4650_v10, 16  ;;  %v3991_v10 = vrot.slane %v3990_v52, 4 }
 0x27d   : > { %v3857_v29 = vpop.f32.mrf.mxu1  ;;  %4551 = vmatprep.mubr.msk.bf16.mxu0 %vm1490_vm0, %v3912_v14  ;;  %v3933_v14 = vrot.slane %v3932_v34, 4  ;;  %v4651_v16 = vld [vmem:[%s4813_s5 + $0x14] sm:$0x1]  ;;  %v4019_v34 = vrot.slane %v4017_v11, 5 }
 0x27f   : > { %v3859_v19 = vpop.f32.mrf.mxu1 }
 0x280   : > { %v3945_v19 = vshll.u32 %v4651_v16, 16 }
 0x281   : > { %v3860_v44 = vpop.f32.mrf.mxu1 }
 0x282   : > { %v3913_v62 = vpack.c.bf16 %v3860_v44, %v3857_v29  ;;  %v3942_v29 = vor.u32 %v3941_v3, %v3937_v22  ;;  %v3962_v44 = vsel %vm5969_vm10, %v3957_v25, %v3961_v2 }
 0x283   : > { %v3862_v12 = vpop.f32.mrf.mxu1 }
 0x284   : > { %4552 = vmatmul.mubr.msk.bf16.vlgmr.msra.gmra.mxu0 %vm1490_vm0, %v3913_v62  ;;  %v3967_v62 = vrot.slane %v3966_v61, 4  ;;  %v3971_v12 = vrot.slane %v3969_v42, 5  ;;  %v3995_v42 = vrot.slane %v3993_v36, 5 }
 0x28a   : > { %v3865_v28 = vpop.f32.mrf.mxu1 }
 0x28c   : > { %v3867_v57 = vpop.f32.mrf.mxu1 }
 0x28d   : > { %v3943_v57 = vrot.slane %v3942_v29, 4  ;;  %v4659_v29 = vld [vmem:[%s4813_s5 + $0x3c] sm:$0xf] }
 0x28e   : > { %v3868_v50 = vpop.f32.mrf.mxu1  ;;  %v4022_v16 = vshrl.u32 %v4659_v29, 16 }
 0x28f   : > { %v3914_v9 = vpack.c.bf16 %v3868_v50, %v3865_v28  ;;  %v3938_v28 = vsel %vm5969_vm10, %v3933_v14, %v3937_v22  ;;  %v3947_v50 = vrot.slane %v3945_v19, 5  ;;  %v4658_v22 = vld [vmem:[%s4813_s5 + $0x48] sm:$0xf]  ;;  %v4025_v19 = vshll.u32 %v4659_v29, 16 }
 0x290   : > { %v3870_v24 = vpop.f32.mrf.mxu1  ;;  %v4046_v3 = vshrl.u32 %v4658_v22, 16  ;;  %v4049_v25 = vshll.u32 %v4658_v22, 16 }
 0x291   : > { %4555 = vmatprep.mubr.msk.bf16.mxu0 %vm1490_vm0, %v3914_v9  ;;  %v4135_v9 = vunpack.c.l.bf16 %v3962_v44  ;;  %v3972_v24 = vsel %vm5969_vm10, %v3967_v62, %v3971_v12 }
 0x292   : > { %v4048_v62 = vrot.slane %v4046_v3, 4  ;;  %v4051_v12 = vrot.slane %v4049_v25, 5 }
 0x2a9   : > { %v3873_v38 = vpop.f32.mrf.mxu1 }
 0x2ab   : > { %v3875_v54 = vpop.f32.mrf.mxu1 }
 0x2ad   : > { %v3876_v58 = vpop.f32.mrf.mxu1 }
 0x2ae   : > { %v3915_v5 = vpack.c.bf16 %v3876_v58, %v3873_v38  ;;  %v4133_v38 = vunpack.c.l.bf16 %v3938_v28  ;;  %v3948_v58 = vsel %vm5969_vm10, %v3943_v57, %v3947_v50  ;;  %v4660_v57 = vld [vmem:[%s4813_s5 + $0x4c] sm:$0xf] }
 0x2af   : > { %v3878_v13 = vpop.f32.mrf.mxu1  ;;  %v4055_v50 = vshll.u32 %v4660_v57, 16 }
 0x2b0   : > { %4556 = vmatmul.mubr.msk.bf16.gmra.mxu0 %vm1490_vm0, %v3915_v5  ;;  %v4136_v13 = vunpack.c.l.bf16 %v3972_v24 }
 0x2b1   : > { %v3881_v8 = vpop.f32.mrf.mxu1 }
 0x2b3   : > { %v3883_v60 = vpop.f32.mrf.mxu1 }
 0x2b5   : > { %v3884_v53 = vpop.f32.mrf.mxu1 }
 0x2b6   : > { %v3916_v51 = vpack.c.bf16 %v3884_v53, %v3881_v8  ;;  %v4134_v53 = vunpack.c.l.bf16 %v3948_v58 }
 0x2b7   : > { %v3886_v7 = vpop.f32.mrf.mxu1 }
 0x2b8   : > { %4559 = vmatprep.mubr.msk.bf16.mxu0 %vm1490_vm0, %v3916_v51 }
 0x2ba   : > { %v3889_v32 = vpop.f32.mrf.mxu1 }
 0x2bc   : > { %v3891_v17 = vpop.f32.mrf.mxu1 }
 0x2be   : > { %v3892_v48 = vpop.f32.mrf.mxu1 }
 0x2bf   : > { %v3917_v35 = vpack.c.bf16 %v3892_v48, %v3889_v32  ;;  %v4652_v48 = vld [vmem:[%s4813_s5 + $0x30] sm:$0xf] }
 0x2c0   : > { %v3894_v33 = vpop.f32.mrf.mxu1 }
 0x2c1   : > { %4560 = vmatmul.mubr.msk.bf16.gmra.mxu0 %vm1490_vm0, %v3917_v35  ;;  %v3998_v35 = vshrl.u32 %v4652_v48, 16  ;;  %v4001_v33 = vshll.u32 %v4652_v48, 16  ;;  %v4057_v48 = vrot.slane %v4055_v50, 5 }
 0x2c2   : > { %v3897_v63 = vpop.f32.mrf.mxu1 }
 0x2c4   : > { %v3899_v20 = vpop.f32.mrf.mxu1 }
 0x2c6   : > { %v3900_v39 = vpop.f32.mrf.mxu1 }
 0x2c7   : > { %v3918_v15 = vpack.c.bf16 %v3900_v39, %v3897_v63  ;;  %v4653_v63 = vld [vmem:[%s4813_s5 + $0x24] sm:$0xf] }
 0x2c8   : > { %v3902_v0 = vpop.f32.mrf.mxu1  ;;  %v3974_v20 = vshrl.u32 %v4653_v63, 16  ;;  %v3977_v39 = vshll.u32 %v4653_v63, 16 }
 0x2c9   : > { %4563 = vmatprep.mubr.msk.bf16.mxu0 %vm1490_vm0, %v3918_v15  ;;  %v4000_v15 = vrot.slane %v3998_v35, 4  ;;  %v4003_v0 = vrot.slane %v4001_v33, 5 }
 0x2ca   : > { %v3905_v4 = vpop.f32.mrf.mxu1 }
 0x2cb   : > { %v4004_v18 = vor.u32 %v4003_v0, %v4000_v15 }
 0x2cc   : > { %v3907_v55 = vpop.f32.mrf.mxu1 }
 0x2cd   : > { %v4005_v31 = vrot.slane %v4004_v18, 4 }
 0x2ce   : > { %v3908_v46 = vpop.f32.mrf.mxu1 }
 0x2cf   : > { %v3919_v27 = vpack.c.bf16 %v3908_v46, %v3905_v4  ;;  %v4654_v4 = vld [vmem:[%s4813_s5 + $0x34] sm:$0xf] }
 0x2d0   : > { %v3910_v37 = vpop.f32.mrf.mxu1  ;;  %v4007_v55 = vshll.u32 %v4654_v4, 16  ;;  %v4011_v46 = vshrl.u32 %v4654_v4, 16 }
 0x2d1   : > { %4564 = vmatmul.mubr.msk.bf16.gmra.mxu0 %vm1490_vm0, %v3919_v27  ;;  %v3976_v27 = vrot.slane %v3974_v20, 4  ;;  %v3979_v37 = vrot.slane %v3977_v39, 5 }
 0x2d2   : > { %v4009_v45 = vrot.slane %v4007_v55, 5  ;;  %v4013_v49 = vrot.slane %v4011_v46, 4 }
 0x2d3   : > { %v3980_v30 = vor.u32 %v3979_v37, %v3976_v27  ;;  %v4662_v27 = vld [vmem:[%s4813_s5 + $0x50] sm:$0x1] }
 0x2d4   : > { %v4014_v6 = vor.u32 %v4013_v49, %v4009_v45  ;;  %v4010_v2 = vsel %vm5969_vm10, %v4005_v31, %v4009_v45  ;;  %v4065_v37 = vshll.u32 %v4662_v27, 16 }
 0x2d5   : > { %v3981_v21 = vrot.slane %v3980_v30, 4  ;;  %v4139_v14 = vunpack.c.l.bf16 %v4010_v2  ;;  %v4666_v2 = vld [vmem:[%s4813_s5 + $0x64] sm:$0xf] }
 0x2d6   : > { %v4015_v47 = vrot.slane %v4014_v6, 4  ;;  %v4067_v30 = vrot.slane %v4065_v37, 5  ;;  %v4107_v25 = vshrl.u32 %v4666_v2, 16 }
 0x2d7   : > { %v3986_v61 = vsel %vm5969_vm10, %v3981_v21, %v3985_v59  ;;  %v4664_v59 = vld [vmem:[%s4813_s5 + $0x60] sm:$0xf]  ;;  %v4665_v21 = vld [vmem:[%s4813_s5 + $0x54] sm:$0xf] }
 0x2d8   : > { %v4020_v44 = vsel %vm5969_vm10, %v4015_v47, %v4019_v34  ;;  %v4137_v28 = vunpack.c.l.bf16 %v3986_v61  ;;  %v4094_v1 = vshrl.u32 %v4664_v59, 16  ;;  %v4097_v31 = vshll.u32 %v4664_v59, 16 }
 0x2d9   : > { %v4070_v52 = vshrl.u32 %v4665_v21, 16  ;;  %v4073_v26 = vshll.u32 %v4665_v21, 16  ;;  %v4103_v47 = vshll.u32 %v4666_v2, 16 }
 0x2da   : > { %v4096_v22 = vrot.slane %v4094_v1, 4  ;;  %v4099_v3 = vrot.slane %v4097_v31, 5 }
 0x2db   : > { %v4075_v29 = vrot.slane %v4073_v26, 5  ;;  %v4105_v50 = vrot.slane %v4103_v47, 5 }
 0x344   : > { %v4553_v54 = vpop.f32.mrf.mxu0 }
 0x345   : > { %v4222_v5 = vadd.f32 %v4553_v54, %v4135_v9  ;;  %v4059_v9 = vshrl.u32 %v4660_v57, 16  ;;  %v4661_v54 = vld [vmem:[%s4813_s5 + $0x40] sm:$0xf]  ;;  %v4100_v57 = vor.u32 %v4099_v3, %v4096_v22 }
 0x346   : > { %v4213_v8 = vpop.f32.mrf.mxu0  ;;  %v4031_v58 = vshll.u32 %v4661_v54, 16 }
 0x347   : > { %4278 = vst.msk [vmem:[%s5983_s27 + $0x10] sm:$0xff] %vm1490_vm0, %v4222_v5  ;;  %v4214_v60 = vadd.f32 %v4213_v8, %v4133_v38  ;;  %v3996_v38 = vsel %vm5969_vm10, %v3991_v10, %v3995_v42  ;;  %v4035_v5 = vshrl.u32 %v4661_v54, 16  ;;  %v4140_v8 = vunpack.c.l.bf16 %v4020_v44 }
 0x348   : > { %v4554_v51 = vpop.f32.mrf.mxu0  ;;  %v4061_v35 = vrot.slane %v4059_v9, 4  ;;  %v4033_v63 = vrot.slane %v4031_v58, 5  ;;  %v4109_v9 = vrot.slane %v4107_v25, 4 }
 0x349   : > { %4276 = vst.msk [vmem:[%s5983_s27] sm:$0xff] %vm1490_vm0, %v4214_v60  ;;  %v4225_v7 = vadd.f32 %v4554_v51, %v4136_v13  ;;  %v4024_v60 = vrot.slane %v4022_v16, 4  ;;  %v4037_v20 = vrot.slane %v4035_v5, 4  ;;  %v4667_v16 = vld [vmem:[%s4813_s5 + $0x58] sm:$0xf] }
 0x34a   : > { %v4216_v32 = vpop.f32.mrf.mxu0  ;;  %v4062_v46 = vor.u32 %v4061_v35, %v4057_v48  ;;  %v4083_v44 = vshrl.u32 %v4667_v16, 16 }
 0x34b   : > { %4279 = vst.msk [vmem:[%s5983_s27 + $0x18] sm:$0xff] %vm1490_vm0, %v4225_v7  ;;  %v4217_v17 = vadd.f32 %v4216_v32, %v4134_v53  ;;  %v4027_v53 = vrot.slane %v4025_v19, 5  ;;  %v4052_v7 = vor.u32 %v4051_v12, %v4048_v62  ;;  %v4038_v43 = vor.u32 %v4037_v20, %v4033_v63 }
 0x34c   : > { %v4063_v49 = vrot.slane %v4062_v46, 4  ;;  %v4079_v19 = vshll.u32 %v4667_v16, 16 }
 0x34d   : > { %4277 = vst.msk [vmem:[%s5983_s27 + $0x8] sm:$0xff] %vm1490_vm0, %v4217_v17  ;;  %v4138_v17 = vunpack.c.l.bf16 %v3996_v38  ;;  %v4028_v15 = vor.u32 %v4027_v53, %v4024_v60  ;;  %v4053_v4 = vrot.slane %v4052_v7, 4  ;;  %v4039_v6 = vrot.slane %v4038_v43, 4  ;;  %v4668_v7 = vld [vmem:[%s4813_s5 + $0x68] sm:$0x1] }
 0x34e   : > { %v4068_v34 = vsel %vm5969_vm10, %v4063_v49, %v4067_v30  ;;  %v4081_v5 = vrot.slane %v4079_v19, 5  ;;  %v4101_v53 = vrot.slane %v4100_v57, 4 }
 0x34f   : > { %v4029_v18 = vrot.slane %v4028_v15, 4  ;;  %v4058_v45 = vsel %vm5969_vm10, %v4053_v4, %v4057_v48  ;;  %v4044_v10 = vsel %vm5969_vm10, %v4039_v6, %v4043_v23  ;;  %v4144_v12 = vunpack.c.l.bf16 %v4068_v34 }
 0x350   : > { %v4143_v36 = vunpack.c.l.bf16 %v4058_v45  ;;  %v4142_v38 = vunpack.c.l.bf16 %v4044_v10  ;;  %v4106_v20 = vsel %vm5969_vm10, %v4101_v53, %v4105_v50 }
 0x351   : > { %v4034_v11 = vsel %vm5969_vm10, %v4029_v18, %v4033_v63  ;;  %v4147_v46 = vunpack.c.l.bf16 %v4106_v20 }
 0x352   : > { %v4141_v61 = vunpack.c.l.bf16 %v4034_v11 }
 0x370   : > { %v4557_v24 = vpop.f32.mrf.mxu0 }
 0x371   : > { %v4238_v13 = vadd.f32 %v4557_v24, %v4139_v14  ;;  %v4072_v14 = vrot.slane %v4070_v52, 4 }
 0x372   : > { %v4229_v51 = vpop.f32.mrf.mxu0 }
 0x373   : > { %4282 = vst.msk [vmem:[%s5983_s27 + $0x30] sm:$0xff] %vm1490_vm0, %v4238_v13  ;;  %v4230_v32 = vadd.f32 %v4229_v51, %v4137_v28  ;;  %v4076_v58 = vor.u32 %v4075_v29, %v4072_v14  ;;  %v4085_v13 = vrot.slane %v4083_v44, 4  ;;  %v4110_v51 = vor.u32 %v4109_v9, %v4105_v50 }
 0x374   : > { %v4558_v33 = vpop.f32.mrf.mxu0 }
 0x375   : > { %4280 = vst.msk [vmem:[%s5983_s27 + $0x20] sm:$0xff] %vm1490_vm0, %v4230_v32  ;;  %v4241_v39 = vadd.f32 %v4558_v33, %v4140_v8  ;;  %v4113_v32 = vshll.u32 %v4668_v7, 16  ;;  %v4077_v48 = vrot.slane %v4076_v58, 4  ;;  %v4086_v35 = vor.u32 %v4085_v13, %v4081_v5  ;;  %v4669_v33 = vld [vmem:[%s4813_s5 + $0x5c] sm:$0x1] }
 0x376   : > { %v4232_v0 = vpop.f32.mrf.mxu0  ;;  %v4089_v63 = vshll.u32 %v4669_v33, 16 }
 0x377   : > { %4283 = vst.msk [vmem:[%s5983_s27 + $0x38] sm:$0xff] %vm1490_vm0, %v4241_v39  ;;  %v4233_v55 = vadd.f32 %v4232_v0, %v4138_v17  ;;  %v4111_v39 = vrot.slane %v4110_v51, 4  ;;  %v4115_v15 = vrot.slane %v4113_v32, 5  ;;  %v4082_v0 = vsel %vm5969_vm10, %v4077_v48, %v4081_v5 }
 0x378   : > { %v4087_v4 = vrot.slane %v4086_v35, 4  ;;  %v4145_v37 = vunpack.c.l.bf16 %v4082_v0 }
 0x379   : > { %4281 = vst.msk [vmem:[%s5983_s27 + $0x28] sm:$0xff] %vm1490_vm0, %v4233_v55  ;;  %v4091_v55 = vrot.slane %v4089_v63, 5  ;;  %v4116_v27 = vsel %vm5969_vm10, %v4111_v39, %v4115_v15 }
 0x37a   : > { %v4148_v18 = vunpack.c.l.bf16 %v4116_v27 }
 0x37b   : > { %v4092_v40 = vsel %vm5969_vm10, %v4087_v4, %v4091_v55 }
 0x37c   : > { %v4146_v30 = vunpack.c.l.bf16 %v4092_v40 }
 0x381   : > { %v4561_v42 = vpop.f32.mrf.mxu0 }
 0x382   : > { %v4254_v62 = vadd.f32 %v4561_v42, %v4143_v36 }
 0x383   : > { %v4245_v28 = vpop.f32.mrf.mxu0 }
 0x384   : > { %4286 = vst.msk [vmem:[%s5983_s27 + $0x50] sm:$0xff] %vm1490_vm0, %v4254_v62  ;;  %v4246_v24 = vadd.f32 %v4245_v28, %v4141_v61 }
 0x385   : > { %v4562_v54 = vpop.f32.mrf.mxu0 }
 0x386   : > { %4284 = vst.msk [vmem:[%s5983_s27 + $0x40] sm:$0xff] %vm1490_vm0, %v4246_v24  ;;  %v4257_v8 = vadd.f32 %v4562_v54, %v4144_v12 }
 0x387   : > { %v4248_v60 = vpop.f32.mrf.mxu0 }
 0x388   : > { %4287 = vst.msk [vmem:[%s5983_s27 + $0x58] sm:$0xff] %vm1490_vm0, %v4257_v8  ;;  %v4249_v17 = vadd.f32 %v4248_v60, %v4142_v38 }
 0x38a   : > { %4285 = vst.msk [vmem:[%s5983_s27 + $0x48] sm:$0xff] %vm1490_vm0, %v4249_v17 }
 0x391   : > { %v4565_v43 = vpop.f32.mrf.mxu0 }
 0x392   : > { %v4270_v41 = vadd.f32 %v4565_v43, %v4147_v46 }
 0x393   : > { %v4261_v45 = vpop.f32.mrf.mxu0 }
 0x394   : > { %4290 = vst.msk [vmem:[%s5983_s27 + $0x70] sm:$0xff] %vm1490_vm0, %v4270_v41  ;;  %v4262_v49 = vadd.f32 %v4261_v45, %v4145_v37 }
 0x395   : > { %v4566_v59 = vpop.f32.mrf.mxu0 }
 0x396   : > { %4288 = vst.msk [vmem:[%s5983_s27 + $0x60] sm:$0xff] %vm1490_vm0, %v4262_v49  ;;  %v4273_v1 = vadd.f32 %v4566_v59, %v4148_v18 }
 0x397   : > { %v4264_v31 = vpop.f32.mrf.mxu0 }
 0x398   : > { %4291 = vst.msk [vmem:[%s5983_s27 + $0x78] sm:$0xff] %vm1490_vm0, %v4273_v1  ;;  %v4265_v6 = vadd.f32 %v4264_v31, %v4146_v30 }
 0x39a   : > { %4289 = vst.msk [vmem:[%s5983_s27 + $0x68] sm:$0xff] %vm1490_vm0, %v4265_v6 }
 0x39b PF: > { %s14_s19 = sadd.s32 1, %s4732_s19   ;;  %s6094_s15 = smov %s4724_s17 }
 0x39c   : > { %p11_p7 = scmp.ge.s32.totalorder %s14_s19, 6   ;;  %s6095_s16 = smov %s4728_s18 }
 0x39d   : > { %s6096_s17 = smov %s6099_s20  ;;  %s6097_s18 = smov %s6103_s21 }
 0x39e   :  { %13 = sbr.rel (!%p11_p7) target bundleno = 3 (0x3), region = 70 }

// kernel: quantize_bottleneck_v2_forward.12
= control target key start
LH: loop header
LB: loop body
LE: loop exit
PB: predicated region body
PF: predicated region fallthrough
CT: control target
= control target key end

     0   :  { %9 = vsyncpa [#allocation3], 0  ;;  %s6243_s0 = inlined_call_operand.vmem [shape: bf16[2,18,18,64], index: 0, kind: input, shape index: {}]   ;;  %s6244_s1 = inlined_call_operand.vmem [shape: bf16[2,64,16], index: 1, kind: input, shape index: {}]   ;;  %s6245_s2 = inlined_call_operand.vmem [shape: bf16[144,16], index: 2, kind: input, shape index: {}]   ;;  %s6246_s3 = inlined_call_operand.vmem [shape: bf16[16,64], index: 3, kind: input, shape index: {}]   ;;  %s6247_s4 = inlined_call_operand.hbm [shape: f32[2,16,16,64], index: 4, kind: output, shape index: {}]  }
   0x1   :  { %11 = vsyncpa [#allocation3 + $0x1], 0  ;;  %s4873_s15 = smov 0   ;;  %s4875_s16 = smov 0  }
   0x2   :  { %s4877_s17 = smov 0   ;;  %s4879_s18 = smov 0  }
   0x3   :  { %s4881_s19 = smov 0   ;;  %s4883_s20 = smov 0  }
   0x4   :  { %s4885_s21 = smov 0   ;;  %s4887_s22 = smov 0  }
   0x5 LB: > { %s4411_s23 = sadd.s32 4294967295, %s4834_s22   ;;  %s4412_s24 = sadd.s32 4294967294, %s4834_s22   ;;  %s4834_s22 = sphi %s4887_s22, %s17_s22   ;;  %s4830_s21 = sphi %s4885_s21, %s6277_s21   ;;  %s4826_s20 = sphi %s4883_s20, %s6276_s20   ;;  %s4822_s19 = sphi %s4881_s19, %s6275_s19   ;;  %s4818_s18 = sphi %s4879_s18, %s6274_s18   ;;  %s4814_s17 = sphi %s4877_s17, %s6273_s17   ;;  %s4810_s16 = sphi %s4875_s16, %s6272_s16   ;;  %s4806_s15 = sphi %s4873_s15, %s6271_s15  }
   0x6   : > { %s26_s25 = sadd.s32 1, %s4826_s20  ;;  %s29_s26 = sadd.s32 1, %s4830_s21 }
   0x7   : > { %p27_p0 = scmp.ge.s32.totalorder %s26_s25, 2  ;;  %p142_p1 = scmp.ne.s32.totalorder %s4814_s17, %s4810_s16 }
   0x8   : > { %p143_p2 = scmp.eq.s32.totalorder %s4411_s23, 3  ;;  %p148_p5 = scmp.ne.s32.totalorder %s4810_s16, %s4806_s15 }
   0x9   : > { %s6279_s25 = smov (%p27_p0, %s26_s25), 0  ;;  %s6281_s26 = smov (!%p27_p0, %s29_s26), %s4830_s21 }
   0xa   : > { %s128_s27 = ssub.s32 %s4826_s20, %s6279_s25  ;;  %p4924_p3 = por %p143_p2, %p142_p1 }
   0xb   : > { %p31_p4 = scmp.ge.s32.totalorder %s6281_s26, 2  ;;  %p149_p6 = scmp.eq.s32.totalorder %s4412_s24, 3 }
   0xc   : > { %p4415_p7 = scmp.ge.s32.totalorder %s4834_s22, 1  ;;  %p189_p9 = scmp.lt.s32.totalorder %s4834_s22, 5 }
   0xd   : > { %s6283_s26 = smov (%p31_p4, %s6281_s26), 0  ;;  %p4933_p8 = por %p149_p6, %p148_p5 }
   0xe   : > { %s127_s30 = ssub.s32 %s4830_s21, %s6283_s26  ;;  %s132_s5 = sadd.s32 1, %s4814_s17 }
   0xf   : > { %s129_s6 = sor.u32 %s128_s27, %s127_s30  ;;  %p190_p10 = pnand %p4415_p7, %p189_p9 }
  0x10   : > { %p130_p11 = scmp.eq.s32.totalorder %s129_s6, 0 }
  0x11   : > { %193 = sbr.rel (%p190_p10) target bundleno = 936 (0x3a8), region = 36 }
  0x12   : > { %s4942_s7 = scalar_select %p130_p11, %s4814_s17, %s132_s5  }
  0x16   : > { %p220_p12 = scmp.lt.s32.totalorder %s4822_s19, 1  ;;  %s4520_s8 = smul.u32 96, %s4818_s18  ;;  %v307_v0 = vlaneseq  ;;  %v4836_v1 = vmov 1966171168   ;;  %vm1502_vm0 = vcmask 523264   ;;  %vm3605_vm2 = vcmask 130048  }
  0x17   : > { %v305_v2 = vunpack.c.l.s4 %v4836_v1  ;;  %s4837_s5 = smov 32   ;;  %s4838_s6 = smov 48   ;;  %vm2756_vm1 = vsmask.f32 7424  ;;  %vm3622_vm3 = vcmask 261120   ;;  %vm3639_vm4 = vcmask 392192  }
  0x18   : > { %s221_s9 = scalar_select %p220_p12, %s4822_s19, 1  ;;  %v308_v3 = vshrl.u32 %v307_v0, 7  ;;  %vm3672_vm5 = vcmask 654336   ;;  %vm3689_vm6 = vcmask 785408   ;;  %vm3706_vm7 = vcmask 916480  }
  0x19   : > { %v306_v4 = vunpack.c.0.s8 %v305_v2  ;;  %s4843_s12 = smov 112   ;;  %vm3934_vm8 = vsmask.f32 3328  ;;  %vm3935_vm9 = vsmask.f32 7440 }
  0x1a   : > { %s4597_s10 = smul.u32 216, %s221_s9  ;;  %s4519_s11 = sshll.u32 %s221_s9, 5  ;;  %vm6088_vm10 = vmor %vm3934_vm8, %vm3935_vm9 }
  0x1b   : > { %s229_s14 = scalar_lea.vmem %s6244_s1, %s4519_s11  ;;  %v4955_v7 = vsub.s32 %v306_v4, %v308_v3  ;;  %s4840_s9 = smov 96  }
  0x1c   : > { %s224_s27 = scalar_lea.vmem %s6243_s0, %s4597_s10  ;;  %v4680_v5 = vld [vmem:[%s229_s14 + $0x18] sm:$0xff]   ;;  %v4681_v6 = vld [vmem:[%s229_s14 + $0x10] sm:$0xff]   ;;  %v4682_v8 = vld [vmem:[%s229_s14 + $0x8] sm:$0xff]   ;;  %s4841_s10 = smov 80  }
  0x1d   : > { %s4953_s30 = scalar_lea.vmem %s224_s27, %s4520_s8  ;;  %4547 = vmatprep.subr.bf16.mxu0 %v4680_v5  ;;  %v4683_v23 = vld [vmem:[%s229_s14] sm:$0xff]   ;;  %s4839_s8 = smov 16  }
  0x1e   : > { %4548 = vmatpush3.bf16.msra.mxu0 %v4680_v5  ;;  %v4423_v9 = vld.sshfl [vmem:[%s4953_s30] sm:$0x33 pattern:$0x75316420]  ;;  %s4842_s11 = smov 64  }
  0x1f   : > { %4549 = vmatprep.subr.bf16.mxu0 %v4681_v6  ;;  %v4718_v10 = vld.sshfl [vmem:[%s4953_s30 + $0xc] sm:$0x33 pattern:$0x75316420]  ;;  %v303_v12 = vcombine.high %v4423_v9, %v4423_v9  ;;  %v310_v13 = vrot.slane %v4423_v9, %v4955_v7 }
  0x20   : > { %v4424_v11 = vld.sshfl [vmem:[%s4953_s30 + $0x4] sm:$0x33 pattern:$0x75316420]  ;;  %v365_v21 = vcombine.high %v4718_v10, %v4718_v10  ;;  %v372_v22 = vrot.slane %v4718_v10, %v4955_v7 }
  0x21   : > { %v4719_v14 = vld.sshfl [vmem:[%s4953_s30 + $0x10] sm:$0x33 pattern:$0x75316420]  ;;  %v327_v15 = vcombine.high %v4424_v11, %v4424_v11  ;;  %v334_v16 = vrot.slane %v4424_v11, %v4955_v7  ;;  %v317_v19 = vrot.slane %v303_v12, %v4955_v7 }
  0x22   : > { %v4425_v17 = vld.sshfl [vmem:[%s4953_s30 + $0x8] sm:$0x1 pattern:$0x75316420]  ;;  %4550 = vmatpush3.bf16.msra.mxu0 %v4681_v6  ;;  %v389_v25 = vcombine.high %v4719_v14, %v4719_v14  ;;  %v396_v26 = vrot.slane %v4719_v14, %v4955_v7  ;;  %v379_v29 = vrot.slane %v365_v21, %v4955_v7  ;;  %v380_v30 = vcombine.high %v372_v22, %v372_v22 }
  0x23   : > { %v4720_v18 = vld.sshfl [vmem:[%s4953_s30 + $0x14] sm:$0x1 pattern:$0x75316420]  ;;  %v357_v20 = vrot.slane %v4425_v17, %v4955_v7  ;;  %4551 = vmatprep.subr.bf16.mxu0 %v4682_v8  ;;  %v341_v24 = vrot.slane %v327_v15, %v4955_v7  ;;  %v924_v27 = vcombine.low %v310_v13, %v317_v19  ;;  %v4429_v28 = vcombine.high %v310_v13, %v317_v19 }
  0x24   : > { %v403_v33 = vrot.slane %v389_v25, %v4955_v7  ;;  %v404_v34 = vcombine.high %v396_v26, %v396_v26  ;;  %v381_v37 = vcombine.high %v379_v29, %v379_v29  ;;  %v974_v41 = vcombine.low %v379_v29, %v380_v30  ;;  %v4721_v43 = vld.sshfl [vmem:[%s4953_s30 + $0x18] sm:$0x33 pattern:$0x75316420] }
  0x25   : > { %v926_v31 = vcombine.low %v334_v16, %v341_v24  ;;  %v4430_v32 = vcombine.high %v334_v16, %v341_v24  ;;  %v934_v35 = vrot.slane %v924_v27, %v4955_v7  ;;  %v941_v36 = vrot.slane %v4429_v28, %v4955_v7  ;;  %v4722_v44 = vld.sshfl [vmem:[%s4953_s30 + $0x1c] sm:$0x33 pattern:$0x75316420] }
  0x26   : > { %4552 = vmatpush3.bf16.msra.mxu0 %v4682_v8  ;;  %v973_v38 = vcombine.low %v357_v20, %v372_v22  ;;  %v976_v42 = vcombine.low %v403_v33, %v404_v34  ;;  %v975_v46 = vcombine.low %v381_v37, %v396_v26  ;;  %v405_v48 = vcombine.high %v403_v33, %v403_v33  ;;  %v4723_v49 = vld.sshfl [vmem:[%s4953_s30 + $0x20] sm:$0x1 pattern:$0x75316420] }
  0x27   : > { %4553 = vmatprep.subr.bf16.mxu0 %v4683_v23  ;;  %v948_v39 = vrot.slane %v926_v31, %v4955_v7  ;;  %v955_v40 = vrot.slane %v4430_v32, %v4955_v7  ;;  %v956_v45 = vcombine.low %v934_v35, %v941_v36  ;;  %v990_v51 = vrot.slane %v974_v41, %v4955_v7  ;;  %v4724_v56 = vld.sshfl [vmem:[%s4953_s30 + $0x24] sm:$0x33 pattern:$0x75316420] }
  0x28   : > { %v983_v47 = vrot.slane %v973_v38, %v4955_v7  ;;  %v1004_v52 = vrot.slane %v976_v42, %v4955_v7  ;;  %v419_v53 = vrot.slane %v4720_v18, %v4955_v7  ;;  %v997_v55 = vrot.slane %v975_v46, %v4955_v7  ;;  %v4725_v57 = vld.sshfl [vmem:[%s4953_s30 + $0x28] sm:$0x33 pattern:$0x75316420] }
  0x29   : > { %v957_v50 = vcombine.low %v948_v39, %v955_v40  ;;  %v964_v54 = vrot.slane %v956_v45, %v4955_v7  ;;  %v4726_v61 = vld.sshfl [vmem:[%s4953_s30 + $0x2c] sm:$0x1 pattern:$0x75316420]  ;;  %v427_v0 = vcombine.high %v4721_v43, %v4721_v43  ;;  %v434_v1 = vrot.slane %v4721_v43, %v4955_v7 }
  0x2a   : > { %4554 = vmatpush3.bf16.msra.mxu0 %v4683_v23  ;;  %v1005_v59 = vcombine.low %v983_v47, %v990_v51  ;;  %v1022_v60 = vcombine.low %v405_v48, %v419_v53  ;;  %v4727_v62 = vld.sshfl [vmem:[%s4953_s30 + $0x30] sm:$0x33 pattern:$0x75316420]  ;;  %v1006_v63 = vcombine.low %v997_v55, %v1004_v52  ;;  %v451_v2 = vcombine.high %v4722_v44, %v4722_v44 }
  0x2b   : > { %v971_v58 = vrot.slane %v957_v50, %v4955_v7  ;;  %v458_v5 = vrot.slane %v4722_v44, %v4955_v7  ;;  %v441_v9 = vrot.slane %v427_v0, %v4955_v7  ;;  %v481_v11 = vrot.slane %v4723_v49, %v4955_v7  ;;  %v4728_v40 = vld.sshfl [vmem:[%s4953_s30 + $0x34] sm:$0x33 pattern:$0x75316420] }
  0x2c   : > { %v1013_v4 = vrot.slane %v1005_v59, %v4955_v7  ;;  %v1032_v6 = vrot.slane %v1022_v60, %v4955_v7  ;;  %v1020_v8 = vrot.slane %v1006_v63, %v4955_v7  ;;  %v465_v10 = vrot.slane %v451_v2, %v4955_v7  ;;  %v4729_v41 = vld.sshfl [vmem:[%s4953_s30 + $0x38] sm:$0x1 pattern:$0x75316420] }
  0x2d   : > { %v972_v3 = vcombine.low %v964_v54, %v971_v58  ;;  %v1023_v13 = vcombine.low %v434_v1, %v441_v9  ;;  %v4431_v14 = vcombine.high %v434_v1, %v441_v9  ;;  %v489_v16 = vcombine.high %v4724_v56, %v4724_v56  ;;  %v4730_v52 = vld.sshfl [vmem:[%s4953_s30 + $0x3c] sm:$0x33 pattern:$0x75316420] }
  0x2e   : > { %v1021_v12 = vcombine.low %v1013_v4, %v1020_v8  ;;  %v1025_v15 = vcombine.low %v458_v5, %v465_v10  ;;  %v496_v17 = vrot.slane %v4724_v56, %v4955_v7  ;;  %v520_v18 = vrot.slane %v4725_v57, %v4955_v7  ;;  %v4732_v58 = vld.sshfl [vmem:[%s4953_s30 + $0x44] sm:$0x1 pattern:$0x75316420] }
  0x2f   : > { %4555 = vmatprep.mubr.msk.bf16.mxu0 %vm1502_vm0, %v972_v3  ;;  %v4432_v19 = vcombine.high %v458_v5, %v465_v10  ;;  %v1039_v20 = vrot.slane %v1023_v13, %v4955_v7  ;;  %v1046_v21 = vrot.slane %v4431_v14, %v4955_v7  ;;  %v513_v23 = vcombine.high %v4725_v57, %v4725_v57  ;;  %v4731_v57 = vld.sshfl [vmem:[%s4953_s30 + $0x40] sm:$0x33 pattern:$0x75316420] }
  0x30   : > { %4556 = vmatmul.mubr.msk.bf16.vlgmr.msra.gmra.mxu0 %vm1502_vm0, %v1021_v12  ;;  %v1053_v22 = vrot.slane %v1025_v15, %v4955_v7  ;;  %v503_v24 = vrot.slane %v489_v16, %v4955_v7  ;;  %v504_v25 = vcombine.high %v496_v17, %v496_v17  ;;  %v1072_v26 = vcombine.low %v481_v11, %v496_v17 }
  0x31   : > { %v1081_v27 = vrot.slane %v4432_v19, %v4955_v7  ;;  %v1054_v28 = vcombine.low %v1032_v6, %v1039_v20  ;;  %v527_v30 = vrot.slane %v513_v23, %v4955_v7  ;;  %v528_v31 = vcombine.high %v520_v18, %v520_v18  ;;  %v4733_v19 = vld.sshfl [vmem:[%s4953_s30 + $0x48] sm:$0x33 pattern:$0x75316420] }
  0x32   : > { %v1055_v29 = vcombine.low %v1046_v21, %v1053_v22  ;;  %v505_v32 = vcombine.high %v503_v24, %v503_v24  ;;  %v1073_v33 = vcombine.low %v503_v24, %v504_v25  ;;  %v1088_v34 = vrot.slane %v1072_v26, %v4955_v7  ;;  %v4734_v22 = vld.sshfl [vmem:[%s4953_s30 + $0x4c] sm:$0x33 pattern:$0x75316420] }
  0x33   : > { %v543_v35 = vrot.slane %v4726_v61, %v4955_v7  ;;  %v1062_v36 = vrot.slane %v1054_v28, %v4955_v7  ;;  %v529_v38 = vcombine.high %v527_v30, %v527_v30  ;;  %v551_v39 = vcombine.high %v4727_v62, %v4727_v62 }
  0x34   : > { %v1069_v37 = vrot.slane %v1055_v29, %v4955_v7  ;;  %v1074_v42 = vcombine.low %v505_v32, %v520_v18  ;;  %v1095_v43 = vrot.slane %v1073_v33, %v4955_v7  ;;  %v1103_v44 = vcombine.low %v1081_v27, %v1088_v34  ;;  %v4735_v27 = vld.sshfl [vmem:[%s4953_s30 + $0x50] sm:$0x1 pattern:$0x75316420] }
  0x35   : > { %v558_v45 = vrot.slane %v4727_v62, %v4955_v7  ;;  %v565_v47 = vrot.slane %v551_v39, %v4955_v7  ;;  %v1120_v48 = vcombine.low %v527_v30, %v528_v31  ;;  %v1121_v49 = vcombine.low %v529_v38, %v543_v35 }
  0x36   : > { %v1070_v46 = vcombine.low %v1062_v36, %v1069_v37  ;;  %v1102_v50 = vrot.slane %v1074_v42, %v4955_v7  ;;  %v1111_v51 = vrot.slane %v1103_v44, %v4955_v7  ;;  %v575_v60 = vcombine.high %v4728_v40, %v4728_v40  ;;  %v4736_v37 = vld.sshfl [vmem:[%s4953_s30 + $0x54] sm:$0x33 pattern:$0x75316420] }
  0x37   : > { %v1122_v53 = vcombine.low %v558_v45, %v565_v47  ;;  %v4433_v54 = vcombine.high %v558_v45, %v565_v47  ;;  %v1130_v55 = vrot.slane %v1120_v48, %v4955_v7  ;;  %v1137_v56 = vrot.slane %v1121_v49, %v4955_v7  ;;  %v4737_v42 = vld.sshfl [vmem:[%s4953_s30 + $0x58] sm:$0x33 pattern:$0x75316420] }
  0x38   : > { %4559 = vmatprep.mubr.msk.bf16.mxu0 %vm1502_vm0, %v1070_v46  ;;  %v1104_v59 = vcombine.low %v1095_v43, %v1102_v50  ;;  %v582_v61 = vrot.slane %v4728_v40, %v4955_v7  ;;  %v605_v62 = vrot.slane %v4729_v41, %v4955_v7  ;;  %v589_v3 = vrot.slane %v575_v60, %v4955_v7  ;;  %v4738_v43 = vld.sshfl [vmem:[%s4953_s30 + $0x5c] sm:$0x1 pattern:$0x75316420] }
  0x39   : > { %v1144_v63 = vrot.slane %v1122_v53, %v4955_v7  ;;  %v1151_v0 = vrot.slane %v4433_v54, %v4955_v7  ;;  %v1152_v1 = vcombine.low %v1130_v55, %v1137_v56  ;;  %v613_v6 = vcombine.high %v4730_v52, %v4730_v52 }
  0x3a   : > { %v1118_v2 = vrot.slane %v1104_v59, %v4955_v7  ;;  %v620_v8 = vrot.slane %v4730_v52, %v4955_v7  ;;  %v1169_v10 = vcombine.low %v582_v61, %v589_v3  ;;  %v4434_v11 = vcombine.high %v582_v61, %v589_v3 }
  0x3b   : > { %v1153_v4 = vcombine.low %v1144_v63, %v1151_v0  ;;  %v1160_v5 = vrot.slane %v1152_v1, %v4955_v7  ;;  %v637_v12 = vcombine.high %v4731_v57, %v4731_v57  ;;  %v627_v14 = vrot.slane %v613_v6, %v4955_v7 }
  0x3c   : > { %v1119_v9 = vcombine.low %v1111_v51, %v1118_v2  ;;  %v628_v15 = vcombine.high %v620_v8, %v620_v8  ;;  %v1171_v16 = vcombine.low %v605_v62, %v620_v8  ;;  %v1179_v17 = vrot.slane %v1169_v10, %v4955_v7 }
  0x3d   : > { %v1167_v13 = vrot.slane %v1153_v4, %v4955_v7  ;;  %v1186_v18 = vrot.slane %v4434_v11, %v4955_v7  ;;  %v644_v20 = vrot.slane %v4731_v57, %v4955_v7  ;;  %v651_v21 = vrot.slane %v637_v12, %v4955_v7 }
  0x3e   : > { %4560 = vmatmul.mubr.msk.bf16.gmra.mxu0 %vm1502_vm0, %v1119_v9  ;;  %v1172_v24 = vcombine.low %v627_v14, %v628_v15  ;;  %v1193_v25 = vrot.slane %v1171_v16, %v4955_v7  ;;  %v629_v26 = vcombine.high %v627_v14, %v627_v14  ;;  %v667_v31 = vrot.slane %v4732_v58, %v4955_v7 }
  0x3f   : > { %v1168_v23 = vcombine.low %v1160_v5, %v1167_v13  ;;  %v1201_v28 = vcombine.low %v1179_v17, %v1186_v18  ;;  %v652_v29 = vcombine.high %v644_v20, %v644_v20  ;;  %v653_v30 = vcombine.high %v651_v21, %v651_v21  ;;  %v4739_v5 = vld.sshfl [vmem:[%s4953_s30 + $0x60] sm:$0x33 pattern:$0x75316420] }
  0x40   : > { %v1200_v32 = vrot.slane %v1172_v24, %v4955_v7  ;;  %v1218_v33 = vcombine.low %v629_v26, %v644_v20  ;;  %v675_v39 = vcombine.high %v4733_v19, %v4733_v19  ;;  %v682_v40 = vrot.slane %v4733_v19, %v4955_v7  ;;  %v4740_v18 = vld.sshfl [vmem:[%s4953_s30 + $0x64] sm:$0x33 pattern:$0x75316420] }
  0x41   : > { %4563 = vmatprep.mubr.msk.bf16.mxu0 %vm1502_vm0, %v1168_v23  ;;  %v1209_v34 = vrot.slane %v1201_v28, %v4955_v7  ;;  %v1219_v35 = vcombine.low %v651_v21, %v652_v29  ;;  %v1220_v36 = vcombine.low %v653_v30, %v667_v31  ;;  %v699_v46 = vcombine.high %v4734_v22, %v4734_v22  ;;  %v4741_v23 = vld.sshfl [vmem:[%s4953_s30 + $0x68] sm:$0x1 pattern:$0x75316420] }
  0x42   : > { %v1202_v38 = vcombine.low %v1193_v25, %v1200_v32  ;;  %v1228_v41 = vrot.slane %v1218_v33, %v4955_v7  ;;  %v706_v47 = vrot.slane %v4734_v22, %v4955_v7  ;;  %v689_v49 = vrot.slane %v675_v39, %v4955_v7  ;;  %v4426_v31 = vld.sshfl [vmem:[%s4953_s30 + $0x6c] sm:$0x33 pattern:$0x75316420] }
  0x43   : > { %v1235_v44 = vrot.slane %v1219_v35, %v4955_v7  ;;  %v1242_v45 = vrot.slane %v1220_v36, %v4955_v7  ;;  %v729_v50 = vrot.slane %v4735_v27, %v4955_v7  ;;  %v713_v52 = vrot.slane %v699_v46, %v4955_v7  ;;  %v4427_v39 = vld.sshfl [vmem:[%s4953_s30 + $0x70] sm:$0x33 pattern:$0x75316420] }
  0x44   : > { %v1216_v48 = vrot.slane %v1202_v38, %v4955_v7  ;;  %v1221_v54 = vcombine.low %v682_v40, %v689_v49  ;;  %v744_v55 = vrot.slane %v4736_v37, %v4955_v7  ;;  %v4435_v56 = vcombine.high %v682_v40, %v689_v49 }
  0x45   : > { %v1250_v51 = vcombine.low %v1228_v41, %v1235_v44  ;;  %v1268_v58 = vcombine.low %v706_v47, %v713_v52  ;;  %v4436_v59 = vcombine.high %v706_v47, %v713_v52  ;;  %v737_v60 = vcombine.high %v4736_v37, %v4736_v37 }
  0x46   : > { %v1217_v53 = vcombine.low %v1209_v34, %v1216_v48  ;;  %v1249_v61 = vrot.slane %v1221_v54, %v4955_v7  ;;  %v1270_v62 = vcombine.low %v729_v50, %v744_v55  ;;  %v1277_v63 = vrot.slane %v4435_v56, %v4955_v7 }
  0x47   : > { %v1258_v57 = vrot.slane %v1250_v51, %v4955_v7  ;;  %v752_v0 = vcombine.high %v744_v55, %v744_v55  ;;  %v1284_v1 = vrot.slane %v1268_v58, %v4955_v7  ;;  %v1291_v2 = vrot.slane %v4436_v59, %v4955_v7 }
  0x48   : > { %4564 = vmatmul.mubr.msk.bf16.gmra.mxu0 %vm1502_vm0, %v1217_v53  ;;  %v751_v3 = vrot.slane %v737_v60, %v4955_v7  ;;  %v761_v4 = vcombine.high %v4737_v42, %v4737_v42  ;;  %v1251_v6 = vcombine.low %v1242_v45, %v1249_v61  ;;  %v1298_v8 = vrot.slane %v1270_v62, %v4955_v7  ;;  %v4428_v60 = vld.sshfl [vmem:[%s4953_s30 + $0x74] sm:$0x1 pattern:$0x75316420] }
  0x49   : > { %v768_v9 = vrot.slane %v4737_v42, %v4955_v7  ;;  %v791_v10 = vrot.slane %v4738_v43, %v4955_v7  ;;  %v1299_v11 = vcombine.low %v1277_v63, %v1284_v1  ;;  %v799_v27 = vcombine.high %v4739_v5, %v4739_v5 }
  0x4a   : > { %v753_v12 = vcombine.high %v751_v3, %v751_v3  ;;  %v775_v13 = vrot.slane %v761_v4, %v4955_v7  ;;  %v1316_v14 = vcombine.low %v751_v3, %v752_v0  ;;  %v1265_v15 = vrot.slane %v1251_v6, %v4955_v7 }
  0x4b   : > { %v1300_v16 = vcombine.low %v1291_v2, %v1298_v8  ;;  %v776_v17 = vcombine.high %v768_v9, %v768_v9  ;;  %v1307_v19 = vrot.slane %v1299_v11, %v4955_v7  ;;  %v806_v30 = vrot.slane %v4739_v5, %v4955_v7 }
  0x4c   : > { %v777_v20 = vcombine.high %v775_v13, %v775_v13  ;;  %v1317_v21 = vcombine.low %v753_v12, %v768_v9  ;;  %v1326_v22 = vrot.slane %v1316_v14, %v4955_v7  ;;  %v1266_v24 = vcombine.low %v1258_v57, %v1265_v15 }
  0x4d   : > { %v1314_v25 = vrot.slane %v1300_v16, %v4955_v7  ;;  %v1318_v26 = vcombine.low %v775_v13, %v776_v17  ;;  %v813_v34 = vrot.slane %v799_v27, %v4955_v7  ;;  %v823_v37 = vcombine.high %v4740_v18, %v4740_v18 }
  0x4e   : > { %v1319_v28 = vcombine.low %v777_v20, %v791_v10  ;;  %v1333_v29 = vrot.slane %v1317_v21, %v4955_v7  ;;  %4567 = vmatprep.mubr.msk.bf16.mxu0 %vm1502_vm0, %v1266_v24  ;;  %v830_v38 = vrot.slane %v4740_v18, %v4955_v7  ;;  %v853_v42 = vrot.slane %v4741_v23, %v4955_v7 }
  0x4f   : > { %v1315_v32 = vcombine.low %v1307_v19, %v1314_v25  ;;  %v1340_v33 = vrot.slane %v1318_v26, %v4955_v7  ;;  %v1365_v40 = vcombine.low %v806_v30, %v813_v34  ;;  %v4437_v41 = vcombine.high %v806_v30, %v813_v34 }
  0x50   : > { %v1347_v35 = vrot.slane %v1319_v28, %v4955_v7  ;;  %v1348_v36 = vcombine.low %v1326_v22, %v1333_v29  ;;  %v861_v43 = vcombine.high %v4426_v31, %v4426_v31  ;;  %v837_v46 = vrot.slane %v823_v37, %v4955_v7 }
  0x51   : > { %4568 = vmatmul.mubr.msk.bf16.gmra.mxu0 %vm1502_vm0, %v1315_v32  ;;  %v868_v47 = vrot.slane %v4426_v31, %v4955_v7  ;;  %v1375_v48 = vrot.slane %v1365_v40, %v4955_v7  ;;  %v1382_v49 = vrot.slane %v4437_v41, %v4955_v7  ;;  %v885_v51 = vcombine.high %v4427_v39, %v4427_v39 }
  0x52   : > { %v1349_v44 = vcombine.low %v1340_v33, %v1347_v35  ;;  %v1356_v45 = vrot.slane %v1348_v36, %v4955_v7  ;;  %v875_v50 = vrot.slane %v861_v43, %v4955_v7  ;;  %v1367_v53 = vcombine.low %v830_v38, %v837_v46 }
  0x53   : > { %v4438_v54 = vcombine.high %v830_v38, %v837_v46  ;;  %v876_v55 = vcombine.high %v868_v47, %v868_v47  ;;  %v1397_v56 = vcombine.low %v1375_v48, %v1382_v49  ;;  %v892_v58 = vrot.slane %v4427_v39, %v4955_v7 }
  0x54   : > { %v1363_v52 = vrot.slane %v1349_v44, %v4955_v7  ;;  %v877_v57 = vcombine.high %v875_v50, %v875_v50  ;;  %v899_v59 = vrot.slane %v885_v51, %v4955_v7  ;;  %v1389_v62 = vrot.slane %v1367_v53, %v4955_v7 }
  0x55   : > { %v1396_v63 = vrot.slane %v4438_v54, %v4955_v7  ;;  %v1414_v0 = vcombine.low %v853_v42, %v868_v47  ;;  %v1405_v1 = vrot.slane %v1397_v56, %v4955_v7  ;;  %v900_v2 = vcombine.high %v892_v58, %v892_v58 }
  0x56   : > { %v1364_v61 = vcombine.low %v1356_v45, %v1363_v52  ;;  %v1415_v3 = vcombine.low %v875_v50, %v876_v55  ;;  %v1416_v4 = vcombine.low %v877_v57, %v892_v58  ;;  %v901_v8 = vcombine.high %v899_v59, %v899_v59 }
  0x57   : > { %v1398_v5 = vcombine.low %v1389_v62, %v1396_v63  ;;  %v1424_v6 = vrot.slane %v1414_v0, %v4955_v7  ;;  %v915_v9 = vrot.slane %v4428_v60, %v4955_v7  ;;  %v1417_v10 = vcombine.low %v899_v59, %v900_v2 }
  0x58   : > { %4571 = vmatprep.mubr.msk.bf16.mxu0 %vm1502_vm0, %v1364_v61  ;;  %v1431_v11 = vrot.slane %v1415_v3, %v4955_v7  ;;  %v1438_v12 = vrot.slane %v1416_v4, %v4955_v7 }
  0x59   : > { %v1412_v13 = vrot.slane %v1398_v5, %v4955_v7  ;;  %v1463_v14 = vcombine.low %v901_v8, %v915_v9  ;;  %v1445_v15 = vrot.slane %v1417_v10, %v4955_v7 }
  0x5a   : > { %v1446_v16 = vcombine.low %v1424_v6, %v1431_v11 }
  0x5b   : > { %v1413_v17 = vcombine.low %v1405_v1, %v1412_v13  ;;  %v1447_v18 = vcombine.low %v1438_v12, %v1445_v15  ;;  %v1470_v20 = vrot.slane %v1463_v14, %v4955_v7 }
  0x5c   : > { %v1454_v19 = vrot.slane %v1446_v16, %v4955_v7 }
  0x5d   : > { %4572 = vmatmul.mubr.msk.bf16.gmra.mxu0 %vm1502_vm0, %v1413_v17  ;;  %v1461_v21 = vrot.slane %v1447_v18, %v4955_v7  ;;  %v1477_v23 = vrot.slane %v1470_v20, %v4955_v7 }
  0x5f   : > { %v1462_v22 = vcombine.low %v1454_v19, %v1461_v21 }
  0x61   : > { %4575 = vmatprep.mubr.msk.bf16.mxu0 %vm1502_vm0, %v1462_v22 }
  0x65   : > { %4576 = vmatmul.mubr.msk.bf16.gmra.mxu0 %vm1502_vm0, %v1477_v23 }
  0xf0   : > { %v4557_v24 = vpop.f32.mrf.mxu0 }
  0xf2   : > { %v1573_v25 = vpop.f32.mrf.mxu0 }
  0xf4   : > { %v4558_v26 = vpop.f32.mrf.mxu0 }
  0xf5   : > { %v1668_v27 = vpack.c.bf16 %v4558_v26, %v4557_v24  ;;  %v4456_v28 = vpack.c.bf16 %v4558_v26, %v4558_v26 }
  0xf6   : > { %v1576_v29 = vpop.f32.mrf.mxu0 }
  0xf7   : > { %v1747_v30 = vrot.slane %v1668_v27, %v4955_v7  ;;  %v1667_v31 = vpack.c.bf16 %v1576_v29, %v1573_v25  ;;  %v4455_v32 = vpack.c.bf16 %v1576_v29, %v1576_v29  ;;  %v1754_v33 = vrot.slane %v4456_v28, %v4955_v7 }
  0xf9   : > { %v1698_v34 = vrot.slane %v1667_v31, %v4955_v7  ;;  %v1705_v35 = vrot.slane %v4455_v32, %v4955_v7  ;;  %v1755_v36 = vcombine.high %v1747_v30, %v1747_v30  ;;  %v5122_v37 = vrot.slane %v1747_v30, %v4955_v7 }
  0xfa   : > { %v1756_v42 = vcombine.high %v1754_v33, %v1754_v33  ;;  %v5127_v43 = vrot.slane %v1754_v33, %v4955_v7 }
  0xfb   : > { %v1706_v38 = vcombine.high %v1698_v34, %v1698_v34  ;;  %v1707_v39 = vcombine.high %v1705_v35, %v1705_v35  ;;  %v1714_v40 = vrot.slane %v1698_v34, %v4955_v7  ;;  %v1721_v41 = vrot.slane %v1705_v35, %v4955_v7 }
  0xfc   : > { %v5132_v48 = vrot.slane %v1755_v36, %v4955_v7  ;;  %v1785_v49 = vcombine.high %v5122_v37, %v5122_v37  ;;  %v5137_v56 = vrot.slane %v1756_v42, %v4955_v7  ;;  %v1786_v57 = vcombine.high %v5127_v43, %v5127_v43 }
  0xfd   : > { %v1728_v44 = vrot.slane %v1706_v38, %v4955_v7  ;;  %v1735_v45 = vrot.slane %v1707_v39, %v4955_v7  ;;  %v1736_v46 = vcombine.high %v1714_v40, %v1714_v40  ;;  %v1737_v47 = vcombine.high %v1721_v41, %v1721_v41 }
  0xfe   : > { %v4561_v50 = vpop.f32.mrf.mxu0  ;;  %v1787_v58 = vcombine.high %v5132_v48, %v5132_v48  ;;  %v5144_v59 = vcombine.low %v5132_v48, %v1785_v49  ;;  %v1788_v19 = vcombine.high %v5137_v56, %v5137_v56  ;;  %v2303_v20 = vcombine.low %v5137_v56, %v1786_v57 }
  0xff   : > { %v1738_v52 = vcombine.high %v1728_v44, %v1728_v44  ;;  %v1739_v53 = vcombine.high %v1735_v45, %v1735_v45  ;;  %v2869_v54 = vcombine.low %v1728_v44, %v1736_v46  ;;  %v2871_v55 = vcombine.low %v1735_v45, %v1737_v47 }
 0x100   : > { %v1589_v51 = vpop.f32.mrf.mxu0  ;;  %v2252_v63 = vcombine.low %v1714_v40, %v1728_v44  ;;  %v4466_v0 = vcombine.high %v1714_v40, %v1728_v44  ;;  %v2254_v13 = vcombine.low %v1721_v41, %v1735_v45  ;;  %v4467_v14 = vcombine.high %v1721_v41, %v1735_v45 }
 0x101   : > { %v2870_v61 = vcombine.low %v1738_v52, %v1721_v41  ;;  %v2872_v62 = vcombine.low %v1739_v53, %v5122_v37  ;;  %v2879_v4 = vrot.slane %v2869_v54, %v4955_v7  ;;  %v2893_v6 = vrot.slane %v2871_v55, %v4955_v7 }
 0x102   : > { %v4562_v60 = vpop.f32.mrf.mxu0  ;;  %v2302_v17 = vcombine.low %v1787_v58, %v5127_v43  ;;  %v2262_v21 = vrot.slane %v2252_v63, %v4955_v7  ;;  %v2269_v22 = vrot.slane %v4466_v0, %v4955_v7  ;;  %v5167_v30 = vrot.slane %v2254_v13, %v4955_v7 }
 0x103   : > { %v1670_v1 = vpack.c.bf16 %v4562_v60, %v4561_v50  ;;  %v4458_v2 = vpack.c.bf16 %v4562_v60, %v4562_v60  ;;  %v2886_v5 = vrot.slane %v2870_v61, %v4955_v7  ;;  %v2900_v8 = vrot.slane %v2872_v62, %v4955_v7 }
 0x104   : > { %v1592_v3 = vpop.f32.mrf.mxu0  ;;  %v5170_v31 = vrot.slane %v4467_v14, %v4955_v7  ;;  %v2650_v33 = vrot.slane %v5122_v37, %v4955_v7  ;;  %v2284_v38 = vcombine.low %v2262_v21, %v2269_v22  ;;  %v2311_v40 = vrot.slane %v5144_v59, %v4955_v7 }
 0x105   : > { %v1845_v9 = vrot.slane %v1670_v1, %v4955_v7  ;;  %v1852_v10 = vrot.slane %v4458_v2, %v4955_v7  ;;  %v1669_v11 = vpack.c.bf16 %v1592_v3, %v1589_v51  ;;  %v4457_v12 = vpack.c.bf16 %v1592_v3, %v1592_v3 }
 0x106   : > { %v2901_v15 = vcombine.low %v2879_v4, %v2886_v5  ;;  %v2902_v16 = vcombine.low %v2893_v6, %v2900_v8  ;;  %v2325_v41 = vrot.slane %v2303_v20, %v4955_v7  ;;  %v2318_v50 = vrot.slane %v2302_v17, %v4955_v7 }
 0x107   : > { %v1853_v18 = vcombine.high %v1845_v9, %v1845_v9  ;;  %v1854_v23 = vcombine.high %v1852_v10, %v1852_v10  ;;  %v1796_v24 = vrot.slane %v1669_v11, %v4955_v7  ;;  %v5161_v25 = vrot.slane %v1852_v10, %v4955_v7 }
 0x108   : > { %v1803_v26 = vrot.slane %v4457_v12, %v4955_v7  ;;  %v4565_v27 = vpop.f32.mrf.mxu0  ;;  %v2909_v28 = vrot.slane %v2901_v15, %v4955_v7  ;;  %v2916_v29 = vrot.slane %v2902_v16, %v4955_v7  ;;  %v5190_v49 = vrot.slane %v1845_v9, %v4955_v7 }
 0x109   : > { %v5173_v32 = vrot.slane %v1796_v24, %v4955_v7  ;;  %v5178_v34 = vrot.slane %v1853_v18, %v4955_v7  ;;  %v1804_v35 = vcombine.high %v1796_v24, %v1796_v24  ;;  %v5185_v42 = vrot.slane %v1854_v23, %v4955_v7 }
 0x10a   : > { %v1605_v36 = vpop.f32.mrf.mxu0  ;;  %v1884_v44 = vcombine.high %v5161_v25, %v5161_v25  ;;  %v1805_v45 = vcombine.high %v1803_v26, %v1803_v26  ;;  %v2917_v47 = vcombine.low %v2909_v28, %v2916_v29  ;;  %v2285_v51 = vcombine.low %v5167_v30, %v5170_v31 }
 0x10b   : > { %v2304_v39 = vcombine.low %v1788_v19, %v5173_v32  ;;  %v5196_v52 = vrot.slane %v2650_v33, %v4955_v7  ;;  %v1885_v53 = vcombine.high %v5178_v34, %v5178_v34  ;;  %v5201_v54 = vrot.slane %v1804_v35, %v4955_v7 }
 0x10c   : > { %v4566_v46 = vpop.f32.mrf.mxu0  ;;  %3261 = vrot.lane.b32.xlu0 %v2917_v47, %s4837_s5  ;;  %v2353_v59 = vcombine.low %v5190_v49, %v5178_v34  ;;  %v5207_v60 = vrot.slane %v1803_v26, %v4955_v7  ;;  %v5211_v63 = vcombine.low %v5185_v42, %v1884_v44  ;;  %v5214_v0 = vrot.slane %v1805_v45, %v4955_v7 }
 0x10d   : > { %v1672_v55 = vpack.c.bf16 %v4566_v46, %v4565_v27  ;;  %v4460_v57 = vpack.c.bf16 %v4566_v46, %v4566_v46  ;;  %v2332_v61 = vrot.slane %v2304_v39, %v4955_v7  ;;  %v5219_v3 = vcombine.high %v5190_v49, %v5190_v49 }
 0x10e   : > { %v1608_v58 = vpop.f32.mrf.mxu0  ;;  %v2333_v5 = vcombine.low %v2311_v40, %v2318_v50  ;;  %v2292_v6 = vrot.slane %v2284_v38, %v4955_v7  ;;  %v5224_v8 = vcombine.low %v1885_v53, %v5161_v25  ;;  %v4468_v9 = vcombine.high %v5173_v32, %v5201_v54 }
 0x10f   : > { %v1671_v62 = vpack.c.bf16 %v1608_v58, %v1605_v36  ;;  %v1943_v1 = vrot.slane %v1672_v55, %v4955_v7  ;;  %v4459_v2 = vpack.c.bf16 %v1608_v58, %v1608_v58  ;;  %v1950_v10 = vrot.slane %v4460_v57, %v4955_v7 }
 0x110   : > { %v1886_v11 = vcombine.high %v5185_v42, %v5185_v42  ;;  %v5232_v13 = vrot.slane %v2353_v59, %v4955_v7  ;;  %v2334_v16 = vcombine.low %v2325_v41, %v2332_v61  ;;  %v2351_v18 = vcombine.low %v5207_v60, %v5214_v0 }
 0x111   : > { %v1894_v4 = vrot.slane %v1671_v62, %v4955_v7  ;;  %v4569_v12 = vpop.f32.mrf.mxu0  ;;  %v1901_v15 = vrot.slane %v4459_v2, %v4955_v7  ;;  %v1951_v19 = vcombine.high %v1943_v1, %v1943_v1  ;;  %v5242_v20 = vrot.slane %v1950_v10, %v4955_v7 }
 0x112   : > { %v4469_v28 = vcombine.high %v5207_v60, %v5214_v0  ;;  %v5255_v29 = vrot.slane %v4468_v9, %v4955_v7  ;;  %v1952_v33 = vcombine.high %v1950_v10, %v1950_v10  ;;  %v2341_v36 = vrot.slane %v2333_v5, %v4955_v7 }
 0x113   : > { %v1621_v21 = vpop.f32.mrf.mxu0  ;;  %v1902_v22 = vcombine.high %v1894_v4, %v1894_v4  ;;  %v1903_v23 = vcombine.high %v1901_v15, %v1901_v15  ;;  %v5245_v24 = vrot.slane %v1894_v4, %v4955_v7  ;;  %v5248_v26 = vrot.slane %v1901_v15, %v4955_v7 }
 0x114   : > { %v2348_v38 = vrot.slane %v2334_v16, %v4955_v7  ;;  %v5265_v39 = vrot.slane %v1943_v1, %v4955_v7  ;;  %v5268_v40 = vrot.slane %v1951_v19, %v4955_v7  ;;  %v2299_v45 = vrot.slane %v2285_v51, %v4955_v7 }
 0x115   : > { %v4570_v31 = vpop.f32.mrf.mxu0  ;;  %v5260_v35 = vrot.slane %v1903_v23, %v4955_v7  ;;  %v1982_v46 = vcombine.high %v5242_v20, %v5242_v20  ;;  %v5274_v47 = vrot.slane %v1902_v22, %v4955_v7  ;;  %v1932_v50 = vcombine.high %v5245_v24, %v5245_v24 }
 0x116   : > { %v1674_v41 = vpack.c.bf16 %v4570_v31, %v4569_v12  ;;  %v4462_v57 = vpack.c.bf16 %v4570_v31, %v4570_v31  ;;  %v2367_v51 = vrot.slane %v2351_v18, %v4955_v7  ;;  %v5285_v61 = vrot.slane %v1952_v33, %v4955_v7 }
 0x117   : > { %v1624_v44 = vpop.f32.mrf.mxu0  ;;  %v2448_v53 = vcombine.low %v5248_v26, %v5260_v35  ;;  %v4470_v55 = vcombine.high %v5248_v26, %v5260_v35  ;;  %v5287_v1 = vcombine.low %v2341_v36, %v2348_v38  ;;  %v2374_v2 = vrot.slane %v4469_v28, %v4955_v7 }
 0x118   : > { %v2041_v58 = vrot.slane %v1674_v41, %v4955_v7  ;;  %v1673_v59 = vpack.c.bf16 %v1624_v44, %v1621_v21  ;;  %v4461_v62 = vpack.c.bf16 %v1624_v44, %v1624_v44  ;;  %v2450_v4 = vcombine.low %v5265_v39, %v5268_v40 }
 0x119   : > { %v2048_v5 = vrot.slane %v4462_v57, %v4955_v7  ;;  %v5293_v9 = vcombine.low %v2292_v6, %v2299_v45  ;;  %v4471_v10 = vcombine.high %v5265_v39, %v5268_v40  ;;  %v5298_v12 = vcombine.low %v5285_v61, %v1982_v46  ;;  %3326 = vrot.lane.b32.xlu1 %v5287_v1, %s4838_s6 }
 0x11a   : > { %v5301_v15 = vcombine.low %v1886_v11, %v5245_v24  ;;  %v2049_v16 = vcombine.high %v2041_v58, %v2041_v58  ;;  %v5306_v18 = vcombine.low %v5274_v47, %v1932_v50  ;;  %v5309_v6 = vrot.slane %v2448_v53, %v4955_v7 }
 0x11b   : > { %6251 = vst [vmem:[#allocation5_spill] sm:$0xff] %v5293_v9  ;;  %v5312_v19 = vrot.slane %v4470_v55, %v4955_v7  ;;  %v1992_v21 = vrot.slane %v1673_v59, %v4955_v7  ;;  %v2382_v11 = vcombine.low %v5255_v29, %v2367_v51  ;;  %v1999_v28 = vrot.slane %v4461_v62, %v4955_v7 }
 0x11c   : > { %v5324_v33 = vrot.slane %v2450_v4, %v4955_v7  ;;  %v2050_v38 = vcombine.high %v2048_v5, %v2048_v5  ;;  %v2760_v41 = vshll.u32 %v5293_v9, 16  ;;  %v5330_v29 = vrot.slane %v4471_v10, %v4955_v7 }
 0x11d   : > { %v5321_v31 = vpop.f32.mrf.mxu0  ;;  %v5335_v45 = vrot.slane %v2041_v58, %v4955_v7  ;;  %v5338_v46 = vrot.slane %v2049_v16, %v4955_v7  ;;  %v2000_v59 = vcombine.high %v1992_v21, %v1992_v21  ;;  %v5349_v51 = vrot.slane %v2048_v5, %v4955_v7 }
 0x11e   : > { %v2001_v62 = vcombine.high %v1999_v28, %v1999_v28  ;;  %v2758_v4 = vshrl.u32 %v5293_v9, 16  ;;  %v5357_v16 = vrot.slane %v2050_v38, %v4955_v7  ;;  %v5360_v44 = vrot.slane %v1992_v21, %v4955_v7 }
 0x11f   : > { %v5340_v50 = vpop.f32.mrf.mxu0  ;;  %v5363_v22 = vrot.slane %v1999_v28, %v4955_v7  ;;  %v2762_v36 = vrot.slane %v2760_v41, 1  ;;  %v5367_v5 = vcombine.high %v5349_v51, %v5349_v51  ;;  %v2081_v58 = vcombine.high %v5338_v46, %v5338_v46 }
 0x120   : > { %v2547_v57 = vcombine.low %v5335_v45, %v5338_v46  ;;  %v2765_v38 = vshll.u32 %v5196_v52, 16  ;;  %v4473_v21 = vcombine.high %v5335_v45, %v5338_v46  ;;  %v5379_v28 = vrot.slane %v2000_v59, %v4955_v7 }
 0x121   : > { %v5354_v10 = vpop.f32.mrf.mxu0  ;;  %v2763_v41 = vor.u32 %v2762_v36, %v2758_v4  ;;  %v2383_v55 = vcombine.low %v2374_v2, %v5232_v13  ;;  %v5383_v27 = vrot.slane %v2001_v62, %v4955_v7  ;;  %v2390_v23 = vrot.slane %v2382_v11, %v4955_v7 }
 0x122   : > { %v2767_v17 = vrot.slane %v2765_v38, 1  ;;  %v1836_v52 = vcombine.high %v5201_v54, %v5201_v54  ;;  %v2030_v14 = vcombine.high %v5360_v44, %v5360_v44  ;;  %v1837_v36 = vcombine.high %v5214_v0, %v5214_v0 }
 0x123   : > { %v5374_v53 = vpop.f32.mrf.mxu0  ;;  %v2397_v59 = vrot.slane %v2383_v55, %v4955_v7  ;;  %v6252_v13 = vcombine.high %v5207_v60, %v5207_v60  ;;  %v2082_v11 = vcombine.high %v5357_v16, %v5357_v16  ;;  %v2970_v38 = vcombine.low %v5178_v34, %v5219_v3 }
 0x124   : > { %v2768_v62 = vsel %vm2756_vm1, %v2763_v41, %v2767_v17  ;;  %v2967_v4 = vcombine.low %v1836_v52, %v5207_v60  ;;  %v4474_v17 = vcombine.high %v5122_v37, %v5132_v48  ;;  %v2919_v34 = vcombine.low %v5127_v43, %v5137_v56 }
 0x125   : > { %v5388_v30 = vpop.f32.mrf.mxu0  ;;  %v2968_v2 = vcombine.low %v5214_v0, %v6252_v13  ;;  %2853 = vrot.lane.b32.xlu0 %v2768_v62, %s4839_s8  ;;  %v5408_v9 = vcombine.low %v2390_v23, %v2397_v59  ;;  %v2969_v0 = vcombine.low %v1837_v36, %v5190_v49  ;;  %v2998_v41 = vrot.slane %v2970_v38, %v4955_v7 }
 0x126   : > { %v2977_v60 = vrot.slane %v2967_v4, %v4955_v7  ;;  %v4475_v52 = vcombine.high %v5127_v43, %v5137_v56  ;;  %v2928_v23 = vrot.slane %v4474_v17, %v4955_v7  ;;  %v6253_v37 = vcombine.low %v5173_v32, %v5201_v54 }
 0x127   : > { %v5405_v55 = vpop.f32.mrf.mxu0  ;;  %v2984_v13 = vrot.slane %v2968_v2, %v4955_v7  ;;  %3498 = vrot.lane.b32.xlu1 %v5408_v9, %s4840_s9  ;;  %v2991_v49 = vrot.slane %v2969_v0, %v4955_v7  ;;  %v2678_v59 = vrot.slane %v5219_v3, %v4955_v7  ;;  %v2549_v43 = vcombine.low %v5349_v51, %v5357_v16 }
 0x128   : > { %v2949_v48 = vrot.slane %v6253_v37, %v4955_v7  ;;  %v2935_v36 = vrot.slane %v2919_v34, %v4955_v7  ;;  %v2942_v2 = vrot.slane %v4475_v52, %v4955_v7  ;;  %v5435_v4 = vrot.slane %v2547_v57, %v4955_v7 }
 0x129   : > { %v4578_v62 = vpop.f32.mrf.mxu0  ;;  %v2999_v56 = vcombine.low %v2977_v60, %v2984_v13  ;;  %v3000_v38 = vcombine.low %v2991_v49, %v2998_v41  ;;  %v2784_v0 = vshll.u32 %v5408_v9, 16  ;;  %v2664_v32 = vrot.slane %v5201_v54, %v4955_v7 }
 0x12a   : > { %v5441_v17 = vcombine.low %v2081_v58, %v5349_v51  ;;  %v2950_v62 = vcombine.low %v2928_v23, %v2935_v36  ;;  %v2951_v13 = vcombine.low %v2942_v2, %v2949_v48  ;;  %v5445_v60 = vrot.slane %v4473_v21, %v4955_v7 }
 0x12b   : > { %v3007_v3 = vrot.slane %v2999_v56, %v4955_v7  ;;  %v2032_v57 = vcombine.high %v5379_v28, %v5379_v28  ;;  %v3014_v41 = vrot.slane %v3000_v38, %v4955_v7  ;;  %3328 = vrot.lane.b32.xlu1 %v5408_v9, %s4838_s6  ;;  %v2685_v54 = vrot.slane %v2678_v59, %v4955_v7 }
 0x12c   : > { %v2958_v51 = vrot.slane %v2950_v62, %v4955_v7  ;;  %v2965_v58 = vrot.slane %v2951_v13, %v4955_v7  ;;  %v2671_v34 = vrot.slane %v2664_v32, %v4955_v7  ;;  %v2772_v52 = vshll.u32 %v5287_v1, 16 }
 0x12d   : > { %v6254_v21 = vcombine.high %v5285_v61, %v5285_v61  ;;  %v2499_v23 = vcombine.low %v5379_v28, %v2030_v14  ;;  %v3015_v37 = vcombine.low %v3007_v3, %v3014_v41  ;;  %v2786_v48 = vrot.slane %v2784_v0, 1 }
 0x12e   : > { %v5465_v59 = vrot.slane %v2549_v43, %v4955_v7  ;;  %v4472_v56 = vcombine.high %v5363_v22, %v5383_v27  ;;  %v2966_v36 = vcombine.low %v2958_v51, %v2965_v58  ;;  %v2774_v2 = vrot.slane %v2772_v52, 1 }
 0x12f   : > { %v5461_v49 = vcombine.low %v6254_v21, %v5360_v44  ;;  %4495 = vmatprep.mubr.msk.bf16.mxu1 %vm3605_vm2, %v3015_v37  ;;  %3435 = vrot.lane.b32.xlu1 %v3015_v37, %s4841_s10  ;;  %v2782_v38 = vshrl.u32 %v5408_v9, 16  ;;  %v2789_v32 = vshll.u32 %v2685_v54, 16  ;;  %v1676_v14 = vpack.c.bf16 %v5354_v10, %v5321_v31 }
 0x130   : > { %v4464_v43 = vpack.c.bf16 %v5354_v10, %v5354_v10  ;;  %v2500_v0 = vcombine.low %v2032_v57, %v5363_v22  ;;  %v3117_v3 = vcombine.low %v5363_v22, %v5383_v27  ;;  %3433 = vrot.lane.b32.xlu0 %v2966_v36, %s4841_s10  ;;  %v2770_v62 = vshrl.u32 %v5287_v1, 16 }
 0x131   : > { %v2777_v13 = vshll.u32 %v2671_v34, 16  ;;  %v2787_v41 = vor.u32 %v2786_v48, %v2782_v38  ;;  %v6255_v54 = vrot.slane %v5211_v63, %v4955_v7  ;;  %v6256_v31 = vrot.slane %v5224_v8, %v4955_v7 }
 0x132   : > { %v6257_v10 = vrot.slane %v5306_v18, %v4955_v7  ;;  %v6258_v57 = vrot.slane %v5301_v15, %v4955_v7  ;;  %v1675_v52 = vpack.c.bf16 %v5374_v53, %v5340_v50  ;;  %v2514_v34 = vrot.slane %v5461_v49, %v4955_v7 }
 0x133   : > { %v2431_v51 = vcombine.low %v6256_v31, %v6255_v54  ;;  %v2775_v21 = vor.u32 %v2774_v2, %v2770_v62  ;;  %v2139_v63 = vrot.slane %v1676_v14, %v4955_v7  ;;  %v4463_v8 = vpack.c.bf16 %v5374_v53, %v5374_v53  ;;  %3265 = vrot.lane.b32.xlu1 %v3015_v37, %s4837_s5 }
 0x134   : > { %v2432_v58 = vcombine.low %v6258_v57, %v6257_v10  ;;  %v2521_v48 = vrot.slane %v2499_v23, %v4955_v7  ;;  %v2791_v38 = vrot.slane %v2789_v32, 1  ;;  %v2146_v15 = vrot.slane %v4464_v43, %v4955_v7  ;;  %3263 = vrot.lane.b32.xlu0 %v2966_v36, %s4837_s5 }
 0x135   : > { %v2481_v18 = vcombine.low %v5324_v33, %v5330_v29  ;;  %v2528_v50 = vrot.slane %v2500_v0, %v4955_v7  ;;  %v5507_v54 = vrot.slane %v4472_v56, %v4955_v7  ;;  %v2779_v2 = vrot.slane %v2777_v13, 1 }
 0x136   : > { %v2090_v53 = vrot.slane %v1675_v52, %v4955_v7  ;;  %v2792_v23 = vsel %vm2756_vm1, %v2787_v41, %v2791_v38  ;;  %v2439_v32 = vrot.slane %v2431_v51, %v4955_v7  ;;  %v2446_v37 = vrot.slane %v2432_v58, %v4955_v7 }
 0x137   : > { %v6259_v33 = vcombine.low %v5309_v6, %v5312_v19  ;;  %v2780_v14 = vsel %vm2756_vm1, %v2775_v21, %v2779_v2  ;;  %v2147_v56 = vcombine.high %v2139_v63, %v2139_v63  ;;  %v2097_v43 = vrot.slane %v4463_v8, %v4955_v7 }
 0x138   : > { %v2098_v36 = vcombine.high %v2090_v53, %v2090_v53  ;;  %3368 = vrot.lane.b32.xlu1 %v2780_v14, %s4842_s11  ;;  %v2148_v0 = vcombine.high %v2146_v15, %v2146_v15  ;;  %v2495_v62 = vrot.slane %v2481_v18, %v4955_v7  ;;  %v3016_v13 = vcombine.low %v5161_v25, %v5185_v42 }
 0x139   : > { %v2488_v29 = vrot.slane %v6259_v33, %v4955_v7  ;;  %v4476_v41 = vcombine.high %v5161_v25, %v5185_v42  ;;  %v2579_v6 = vcombine.low %v5445_v60, %v5465_v59  ;;  %v2578_v19 = vcombine.low %v5507_v54, %v5435_v4  ;;  %3540 = vrot.lane.b32.xlu0 %v2792_v23, %s4843_s12 }
 0x13a   : > { %v5532_v31 = vrot.slane %v2139_v63, %v4955_v7  ;;  %v5535_v51 = vrot.slane %v2098_v36, %v4955_v7  ;;  %v5537_v10 = vcombine.low %v2521_v48, %v2528_v50  ;;  %v5539_v57 = vcombine.low %v2439_v32, %v2446_v37 }
 0x13b   : > { %v5542_v25 = vrot.slane %v2146_v15, %v4955_v7  ;;  %v3018_v42 = vcombine.low %v5245_v24, %v5274_v47  ;;  %v5547_v58 = vrot.slane %v2147_v56, %v4955_v7  ;;  %v5550_v52 = vrot.slane %v2097_v43, %v4955_v7 }
 0x13c   : > { %v2130_v21 = vcombine.high %v5535_v51, %v5535_v51  ;;  %v4477_v63 = vcombine.high %v5245_v24, %v5274_v47  ;;  %2855 = vrot.lane.b32.xlu1 %v2780_v14, %s4839_s8  ;;  %v5558_v8 = vrot.slane %v2148_v0, %v4955_v7  ;;  %v5560_v48 = vcombine.low %v2488_v29, %v2495_v62 }
 0x13d   : > { %v3026_v38 = vrot.slane %v3016_v13, %v4955_v7  ;;  %v3033_v15 = vrot.slane %v4476_v41, %v4955_v7  ;;  %3370 = vrot.lane.b32.xlu0 %v2792_v23, %s4842_s11  ;;  %v3040_v24 = vrot.slane %v3018_v42, %v4955_v7  ;;  %v1935_v37 = vcombine.high %v5260_v35, %v5260_v35 }
 0x13e   : > { %v5568_v50 = vcombine.low %v2130_v21, %v5550_v52  ;;  %v3047_v2 = vrot.slane %v4477_v63, %v4955_v7  ;;  %v1983_v33 = vcombine.high %v5268_v40, %v5268_v40  ;;  %v6260_v29 = vcombine.high %v5248_v26, %v5248_v26 }
 0x13f   : > { %v3277_v56 = vcombine.low %v5532_v31, %v5547_v58  ;;  %v2099_v36 = vcombine.high %v2097_v43, %v2097_v43  ;;  %v5585_v0 = vrot.slane %v2090_v53, %v4955_v7  ;;  %v6261_v62 = vcombine.high %v5265_v39, %v5265_v39 }
 0x140   : > { %v3065_v14 = vcombine.low %v5260_v35, %v6260_v29  ;;  %3502 = vrot.lane.b32.xlu1 %v5560_v48, %s4840_s9  ;;  %v3048_v41 = vcombine.low %v3026_v38, %v3033_v15  ;;  %v3066_v26 = vcombine.low %v1935_v37, %v5265_v39  ;;  %v3068_v35 = vcombine.low %v1983_v33, %v5242_v20 }
 0x141   : > { %v3067_v13 = vcombine.low %v5268_v40, %v6261_v62  ;;  %2857 = vrot.lane.b32.xlu0 %v2792_v23, %s4839_s8  ;;  %v4482_v53 = vcombine.high %v5532_v31, %v5547_v58  ;;  %v3049_v21 = vcombine.low %v3040_v24, %v3047_v2  ;;  %v2706_v39 = vrot.slane %v5242_v20, %v4955_v7  ;;  %v1656_v23 = vpop.f32.mrf.mxu0 }
 0x142   : > { %v3075_v42 = vrot.slane %v3065_v14, %v4955_v7  ;;  %v3082_v63 = vrot.slane %v3066_v26, %v4955_v7  ;;  %v3096_v38 = vrot.slane %v3068_v35, %v4955_v7  ;;  %v1678_v15 = vpack.c.bf16 %v5388_v30, %v5388_v30 }
 0x143   : > { %v3089_v40 = vrot.slane %v3067_v13, %v4955_v7  ;;  %v5611_v33 = vrot.slane %v2099_v36, %v4955_v7  ;;  %v2128_v24 = vcombine.high %v5585_v0, %v5585_v0  ;;  %v1934_v2 = vcombine.high %v5274_v47, %v5274_v47 }
 0x144   : > { %3332 = vrot.lane.b32.xlu1 %v5560_v48, %s4838_s6  ;;  %v3056_v29 = vrot.slane %v3048_v41, %v4955_v7  ;;  %v3097_v14 = vcombine.low %v3075_v42, %v3082_v63  ;;  %v2236_v62 = vrot.slane %v1678_v15, %v4955_v7  ;;  %v3063_v36 = vrot.slane %v3049_v21, %v4955_v7 }
 0x145   : > { %v3098_v30 = vcombine.low %v3089_v40, %v3096_v38  ;;  %3500 = vrot.lane.b32.xlu0 %v5539_v57, %s4840_s9  ;;  %v2692_v13 = vrot.slane %v1934_v2, %v4955_v7  ;;  %v2796_v26 = vshll.u32 %v5539_v57, 16  ;;  %v1677_v47 = vpack.c.bf16 %v1656_v23, %v5405_v55 }
 0x146   : > { %v3105_v35 = vrot.slane %v3097_v14, %v4955_v7  ;;  %v2713_v41 = vrot.slane %v2706_v39, %v4955_v7  ;;  %v2237_v42 = vcombine.high %v2236_v62, %v2236_v62  ;;  %v2808_v40 = vshll.u32 %v5560_v48, 16 }
 0x147   : > { %v3112_v32 = vrot.slane %v3098_v30, %v4955_v7  ;;  %v2699_v63 = vrot.slane %v2692_v13, %v4955_v7  ;;  %v2798_v38 = vrot.slane %v2796_v26, 1  ;;  %v4465_v15 = vpack.c.bf16 %v1656_v23, %v1656_v23 }
 0x148   : > { %v5635_v2 = vrot.slane %v2236_v62, %v4955_v7  ;;  %v5638_v55 = vrot.slane %v2237_v42, %v4955_v7  ;;  %v2188_v14 = vrot.slane %v1677_v47, %v4955_v7  ;;  %v2129_v39 = vcombine.high %v5550_v52, %v5550_v52 }
 0x149   : > { %v5632_v21 = vcombine.low %v3105_v35, %v3112_v32  ;;  %3330 = vrot.lane.b32.xlu0 %v5539_v57, %s4838_s6  ;;  %v2794_v30 = vshrl.u32 %v5539_v57, 16  ;;  %v2801_v13 = vshll.u32 %v2699_v63, 16  ;;  %v2195_v32 = vrot.slane %v4465_v15, %v4955_v7 }
 0x14a   : > { %v5647_v23 = vcombine.low %v3056_v29, %v3063_v36  ;;  %v2806_v62 = vshrl.u32 %v5560_v48, 16  ;;  %v3559_v26 = vcombine.low %v5635_v2, %v5638_v55  ;;  %v2196_v47 = vcombine.high %v2188_v14, %v2188_v14 }
 0x14b   : > { %3439 = vrot.lane.b32.xlu1 %v5632_v21, %s4841_s10  ;;  %v2810_v35 = vrot.slane %v2808_v40, 1  ;;  %v2813_v42 = vshll.u32 %v2713_v41, 16  ;;  %v2799_v18 = vor.u32 %v2798_v38, %v2794_v30  ;;  %v2197_v37 = vcombine.high %v2195_v32, %v2195_v32 }
 0x14c   : > { %v2803_v43 = vrot.slane %v2801_v13, 1  ;;  %v5655_v63 = vrot.slane %v2188_v14, %v4955_v7  ;;  %v5658_v29 = vrot.slane %v2196_v47, %v4955_v7  ;;  %v4478_v36 = vcombine.high %v5242_v20, %v5285_v61 }
 0x14d   : > { %3437 = vrot.lane.b32.xlu0 %v5647_v23, %s4841_s10  ;;  %v5665_v15 = vrot.slane %v2195_v32, %v4955_v7  ;;  %v5668_v41 = vrot.slane %v2197_v37, %v4955_v7  ;;  %v3115_v40 = vcombine.low %v5360_v44, %v5379_v28  ;;  %v4479_v38 = vcombine.high %v5360_v44, %v5379_v28 }
 0x14e   : > { %v5678_v20 = vcombine.low %v2082_v11, %v5585_v0  ;;  %v5681_v61 = vcombine.low %v5535_v51, %v2128_v24  ;;  %v5684_v14 = vcombine.low %v5611_v33, %v2129_v39  ;;  %v4484_v37 = vcombine.high %v5655_v63, %v5658_v29 }
 0x14f   : > { %3269 = vrot.lane.b32.xlu1 %v5632_v21, %s4837_s5  ;;  %v3287_v44 = vrot.slane %v3277_v56, %v4955_v7  ;;  %v3294_v28 = vrot.slane %v4482_v53, %v4955_v7  ;;  %v3557_v11 = vcombine.low %v5665_v15, %v5668_v41  ;;  %v4485_v24 = vcombine.high %v5665_v15, %v5668_v41 }
 0x150   : > { %v2811_v39 = vor.u32 %v2810_v35, %v2806_v62  ;;  %v2815_v30 = vrot.slane %v2813_v42, 1  ;;  %v2804_v13 = vsel %vm2756_vm1, %v2799_v18, %v2803_v43  ;;  %v3124_v32 = vrot.slane %v4478_v36, %v4955_v7 }
 0x151   : > { %3267 = vrot.lane.b32.xlu0 %v5647_v23, %s4837_s5  ;;  %v3131_v56 = vrot.slane %v3115_v40, %v4955_v7  ;;  %v3138_v47 = vrot.slane %v4479_v38, %v4955_v7  ;;  %v3145_v53 = vrot.slane %v3117_v3, %v4955_v7  ;;  %v2033_v62 = vcombine.high %v5383_v27, %v5383_v27 }
 0x152   : > { %v2605_v18 = vrot.slane %v5678_v20, %v4955_v7  ;;  %v2612_v43 = vrot.slane %v5681_v61, %v4955_v7  ;;  %v2626_v35 = vrot.slane %v5684_v14, %v4955_v7  ;;  %v3166_v42 = vcombine.low %v5357_v16, %v5367_v5 }
 0x153   : > { %3542 = vrot.lane.b32.xlu1 %v2804_v13, %s4843_s12  ;;  %v2619_v22 = vrot.slane %v5568_v50, %v4955_v7  ;;  %v6262_v3 = vrot.slane %v5298_v12, %v4955_v7  ;;  %v3163_v40 = vcombine.low %v2033_v62, %v5335_v45  ;;  %v6263_v38 = vcombine.high %v5335_v45, %v5335_v45 }
 0x154   : > { %v2816_v61 = vsel %vm2756_vm1, %v2811_v39, %v2815_v30  ;;  %v3520_v16 = vrot.slane %v5638_v55, %v4955_v7  ;;  %v2586_v49 = vrot.slane %v2578_v19, %v4955_v7  ;;  %v2593_v12 = vrot.slane %v2579_v6, %v4955_v7 }
 0x155   : > { %v2529_v36 = vcombine.low %v6262_v3, %v2514_v34  ;;  %v3164_v20 = vcombine.low %v5338_v46, %v6263_v38  ;;  %3544 = vrot.lane.b32.xlu0 %v2816_v61, %s4843_s12  ;;  %v2226_v45 = vcombine.high %v5655_v63, %v5655_v63  ;;  %v3146_v46 = vcombine.low %v3124_v32, %v3131_v56 }
 0x156   : > { %v3147_v34 = vcombine.low %v3138_v47, %v3145_v53  ;;  %v6264_v50 = vcombine.low %v5542_v25, %v5558_v8  ;;  %v3187_v4 = vrot.slane %v5441_v17, %v4955_v7  ;;  %v3194_v60 = vrot.slane %v3166_v42, %v4955_v7 }
 0x157   : > { %3372 = vrot.lane.b32.xlu1 %v2804_v13, %s4842_s11  ;;  %v6265_v59 = vcombine.high %v5542_v25, %v5558_v8  ;;  %v3309_v6 = vcombine.low %v3287_v44, %v3294_v28  ;;  %v2537_v19 = vrot.slane %v2529_v36, %v4955_v7  ;;  %v2544_v39 = vrot.slane %v5537_v10, %v4955_v7 }
 0x158   : > { %v3301_v14 = vrot.slane %v6264_v50, %v4955_v7  ;;  %v3173_v30 = vrot.slane %v3163_v40, %v4955_v7  ;;  %v3180_v32 = vrot.slane %v3164_v20, %v4955_v7  ;;  %v2227_v17 = vcombine.high %v5665_v15, %v5665_v15 }
 0x159   : > { %v3308_v54 = vrot.slane %v6265_v59, %v4955_v7  ;;  %v2228_v56 = vcombine.high %v5658_v29, %v5658_v29  ;;  %v5771_v47 = vcombine.low %v2586_v49, %v2593_v12  ;;  %3374 = vrot.lane.b32.xlu0 %v2816_v61, %s4842_s11  ;;  %v3154_v44 = vrot.slane %v3146_v46, %v4955_v7 }
 0x15a   : > { %v3161_v28 = vrot.slane %v3147_v34, %v4955_v7  ;;  %v3317_v10 = vrot.slane %v3309_v6, %v4955_v7  ;;  %v3212_v62 = vcombine.low %v5585_v0, %v5535_v51  ;;  %v3196_v42 = vcombine.low %v3187_v4, %v3194_v60 }
 0x15b   : > { %v3310_v53 = vcombine.low %v3301_v14, %v3308_v54  ;;  %2859 = vrot.lane.b32.xlu1 %v2804_v13, %s4839_s8  ;;  %v4480_v36 = vcombine.high %v5585_v0, %v5535_v51  ;;  %v3214_v40 = vcombine.low %v5550_v52, %v5611_v33  ;;  %v5785_v38 = vcombine.low %v2537_v19, %v2544_v39  ;;  %v4684_v39 = vld [vmem:[%s6245_s2 + $0x38] sm:$0xff]  }
 0x15c   : > { %v3195_v20 = vcombine.low %v3173_v30, %v3180_v32  ;;  %v2734_v49 = vrot.slane %v5367_v5, %v4955_v7  ;;  %v4481_v12 = vcombine.high %v5550_v52, %v5611_v33  ;;  %v2830_v13 = vshrl.u32 %v5771_v47, 16 }
 0x15d   : > { %v3324_v3 = vrot.slane %v3310_v53, %v4955_v7  ;;  %v2832_v46 = vshll.u32 %v5771_v47, 16  ;;  %v3222_v34 = vrot.slane %v3212_v62, %v4955_v7  ;;  %v3229_v51 = vrot.slane %v4480_v36, %v4955_v7  ;;  %2861 = vrot.lane.b32.xlu0 %v2816_v61, %s4839_s8 }
 0x15e   : > { %v5796_v0 = vcombine.low %v3154_v44, %v3161_v28  ;;  %v3236_v14 = vrot.slane %v3214_v40, %v4955_v7  ;;  %v3243_v5 = vrot.slane %v4481_v12, %v4955_v7  ;;  %v3210_v52 = vrot.slane %v3196_v42, %v4955_v7 }
 0x15f   : > { %v5798_v50 = vcombine.low %v3317_v10, %v3324_v3  ;;  %3506 = vrot.lane.b32.xlu1 %v5771_v47, %s4840_s9  ;;  %v3244_v4 = vcombine.low %v3222_v34, %v3229_v51  ;;  %v2627_v60 = vcombine.low %v2605_v18, %v2612_v43  ;;  %v2628_v59 = vcombine.low %v2619_v22, %v2626_v35 }
 0x160   : > { %v3203_v54 = vrot.slane %v3195_v20, %v4955_v7  ;;  %v2720_v61 = vrot.slane %v5383_v27, %v4955_v7  ;;  %v3245_v6 = vcombine.low %v3236_v14, %v3243_v5  ;;  %v3348_v19 = vrot.slane %v5655_v63, %v4955_v7  ;;  %v4685_v20 = vld [vmem:[%s6245_s2 + $0x30] sm:$0xff]  }
 0x161   : > { %v3252_v30 = vrot.slane %v3244_v4, %v4955_v7  ;;  %v2635_v32 = vrot.slane %v2627_v60, %v4955_v7  ;;  %v2642_v18 = vrot.slane %v2628_v59, %v4955_v7  ;;  %v3357_v43 = vshrl.u32 %v5798_v50, 16  ;;  %3441 = vrot.lane.b32.xlu0 %v5796_v0, %s4841_s10 }
 0x162   : > { %v3259_v27 = vrot.slane %v3245_v6, %v4955_v7  ;;  %v3355_v35 = vrot.slane %v3348_v19, %v4955_v7  ;;  %v3359_v22 = vshll.u32 %v5798_v50, 16  ;;  %v2741_v53 = vrot.slane %v2734_v49, %v4955_v7 }
 0x163   : > { %3336 = vrot.lane.b32.xlu1 %v5771_v47, %s4838_s6  ;;  %v2834_v44 = vrot.slane %v2832_v46, 1  ;;  %v5825_v28 = vcombine.low %v2635_v32, %v2642_v18  ;;  %v4844_v10 = vmov 0   ;;  %v2179_v62 = vcombine.high %v5547_v58, %v5547_v58 }
 0x164   : > { %3827 = vmatprep.subr.bf16.mxu1 %v4844_v10  ;;  %v5830_v42 = vcombine.low %v3252_v30, %v3259_v27  ;;  %v3361_v3 = vrot.slane %v3359_v22, 1  ;;  %v3364_v36 = vshll.u32 %v3355_v35, 16  ;;  %v2180_v40 = vcombine.high %v5558_v8, %v5558_v8 }
 0x165   : > { %3828 = vmatpush1.bf16.msra.mxu1 %v4684_v39  ;;  %v5837_v49 = vcombine.low %v3203_v54, %v3210_v52  ;;  %v2727_v12 = vrot.slane %v2720_v61, %v4955_v7  ;;  %v2820_v46 = vshll.u32 %v5785_v38, 16  ;;  %v6266_v34 = vcombine.high %v5532_v31, %v5532_v31  ;;  %3271 = vrot.lane.b32.xlu0 %v5796_v0, %s4837_s5 }
 0x166   : > { %3829 = vmatprep.subr.bf16.mxu1 %v4844_v10  ;;  %v3362_v14 = vor.u32 %v3361_v3, %v3357_v43  ;;  %v3366_v5 = vrot.slane %v3364_v36, 1  ;;  %v3385_v4 = vcombine.low %v2179_v62, %v5542_v25  ;;  %v6267_v52 = vcombine.high %v5542_v25, %v5542_v25 }
 0x167   : > { %v3384_v51 = vcombine.low %v5547_v58, %v6266_v34  ;;  %3443 = vrot.lane.b32.xlu1 %v5837_v49, %s4841_s10  ;;  %v2837_v31 = vshll.u32 %v2741_v53, 16  ;;  %v2818_v58 = vshrl.u32 %v5785_v38, 16  ;;  %v3387_v59 = vcombine.low %v2180_v40, %v5655_v63 }
 0x168   : > { %v3386_v60 = vcombine.low %v5558_v8, %v6267_v52  ;;  %v5859_v61 = vsel %vm2756_vm1, %v3362_v14, %v3366_v5  ;;  %v3401_v6 = vrot.slane %v3385_v4, %v4955_v7  ;;  %v2229_v25 = vcombine.high %v5668_v41, %v5668_v41  ;;  %v4686_v8 = vld [vmem:[%s6245_s2 + $0x28] sm:$0xff]  }
 0x169   : > { %v3394_v54 = vrot.slane %v3384_v51, %v4955_v7  ;;  %3830 = vmatpush1.bf16.msra.mxu1 %v4685_v20  ;;  %v2822_v39 = vrot.slane %v2820_v46, 1  ;;  %v3415_v30 = vrot.slane %v3387_v59, %v4955_v7  ;;  %v3449_v32 = vcombine.low %v5658_v29, %v2226_v45  ;;  %3504 = vrot.lane.b32.xlu0 %v5785_v38, %s4840_s9 }
 0x16a   : > { %v3408_v19 = vrot.slane %v3386_v60, %v4955_v7  ;;  %v3450_v18 = vcombine.low %v2228_v56, %v5665_v15  ;;  %3831 = vmatprep.subr.bf16.mxu1 %v4844_v10  ;;  %v2825_v43 = vshll.u32 %v2727_v12, 16  ;;  %v3451_v35 = vcombine.low %v5668_v41, %v2227_v17 }
 0x16b   : > { %v3416_v27 = vcombine.low %v3394_v54, %v3401_v6  ;;  %v3452_v22 = vcombine.low %v2229_v25, %v5635_v2  ;;  %v3587_v45 = vrot.slane %v3559_v26, %v4955_v7  ;;  %3273 = vrot.lane.b32.xlu1 %v5837_v49, %s4837_s5  ;;  %v3459_v53 = vrot.slane %v3449_v32, %v4955_v7  ;;  %v4687_v2 = vld [vmem:[%s6245_s2 + $0x20] sm:$0xff]   ;;  %v4690_v32 = vld [vmem:[%s6245_s2 + $0x8] sm:$0xff]  }
 0x16c   : > { %v3417_v56 = vcombine.low %v3408_v19, %v3415_v30  ;;  %v3466_v62 = vrot.slane %v3450_v18, %v4955_v7  ;;  %v2835_v3 = vor.u32 %v2834_v44, %v2830_v13  ;;  %v3473_v36 = vrot.slane %v3451_v35, %v4955_v7  ;;  %v4691_v35 = vld [vmem:[%s6245_s2] sm:$0xff]  }
 0x16d   : > { %v3424_v17 = vrot.slane %v3416_v27, %v4955_v7  ;;  %v3480_v40 = vrot.slane %v3452_v22, %v4955_v7  ;;  %3832 = vmatpush1.bf16.msra.mxu1 %v4686_v8  ;;  %v2839_v26 = vrot.slane %v2837_v31, 1  ;;  %v2131_v20 = vcombine.high %v5611_v33, %v5611_v33  ;;  %3334 = vrot.lane.b32.xlu0 %v5785_v38, %s4838_s6 }
 0x16e   : > { %v3431_v12 = vrot.slane %v3417_v56, %v4955_v7  ;;  %v3481_v46 = vcombine.low %v3459_v53, %v3466_v62  ;;  %3833 = vmatprep.subr.bf16.mxu1 %v4844_v10  ;;  %v2823_v13 = vor.u32 %v2822_v39, %v2818_v58  ;;  %v2827_v44 = vrot.slane %v2825_v43, 1  ;;  %v4692_v56 = vld [vmem:[%s6245_s2 + $0x40] sm:$0xff]  }
 0x16f   : > { %v3482_v34 = vcombine.low %v3473_v36, %v3480_v40  ;;  %v3527_v51 = vrot.slane %v3520_v16, %v4955_v7  ;;  %3510 = vrot.lane.b32.xlu1 %v5798_v50, %s4840_s9  ;;  %v3566_v5 = vrot.slane %v4484_v37, %v4955_v7  ;;  %v3573_v4 = vrot.slane %v3557_v11, %v4955_v7  ;;  %v4688_v16 = vld [vmem:[%s6245_s2 + $0x18] sm:$0xff]  }
 0x170   : > { %v5913_v33 = vcombine.low %v3424_v17, %v3431_v12  ;;  %v3489_v14 = vrot.slane %v3481_v46, %v4955_v7  ;;  %v3580_v52 = vrot.slane %v4485_v24, %v4955_v7  ;;  %v2840_v63 = vsel %vm2756_vm1, %v2835_v3, %v2839_v26  ;;  %v4689_v24 = vld [vmem:[%s6245_s2 + $0x10] sm:$0xff]  }
 0x171   : > { %v3496_v55 = vrot.slane %v3482_v34, %v4955_v7  ;;  %3834 = vmatpush1.bf16.msra.mxu1 %v4687_v2  ;;  %v2748_v29 = vrot.slane %v2131_v20, %v4955_v7  ;;  %v3588_v37 = vcombine.low %v3566_v5, %v3573_v4  ;;  %3548 = vrot.lane.b32.xlu0 %v2840_v63, %s4843_s12  ;;  %v3536_v31 = vshll.u32 %v3527_v51, 16  ;;  %v6268_v2 = vld [vmem:[#allocation5_spill] sm:$0xff] }
 0x172   : > { %3835 = vmatprep.subr.bf16.mxu1 %v4844_v10  ;;  %v2828_v11 = vsel %vm2756_vm1, %v2823_v13, %v2827_v44  ;;  %v3589_v58 = vcombine.low %v3580_v52, %v3587_v45  ;;  %v2844_v19 = vshll.u32 %v5825_v28, 16 }
 0x173   : > { %v3497_v60 = vcombine.low %v3489_v14, %v3496_v55  ;;  %3546 = vrot.lane.b32.xlu1 %v2828_v11, %s4843_s12  ;;  %v5939_v59 = vrot.slane %v3588_v37, %v4955_v7  ;;  %v2755_v6 = vrot.slane %v2748_v29, %v4955_v7  ;;  %v3538_v8 = vrot.slane %v3536_v31, 1 }
 0x174   : > { %v5945_v54 = vrot.slane %v3589_v58, %v4955_v7  ;;  %v2842_v7 = vshrl.u32 %v5825_v28, 16  ;;  %v2846_v18 = vrot.slane %v2844_v19, 1 }
 0x175   : > { %v3531_v15 = vshll.u32 %v3497_v60, 16  ;;  %v3529_v41 = vshrl.u32 %v3497_v60, 16  ;;  %3836 = vmatpush1.bf16.msra.mxu1 %v4688_v16  ;;  %3378 = vrot.lane.b32.xlu0 %v2840_v63, %s4842_s11  ;;  %v2849_v43 = vshll.u32 %v2755_v6, 16 }
 0x176   : > { %3837 = vmatprep.subr.bf16.mxu1 %v4844_v10  ;;  %v3604_v39 = vcombine.low %v5939_v59, %v5945_v54  ;;  %v2847_v22 = vor.u32 %v2846_v18, %v2842_v7 }
 0x177   : > { %v3533_v25 = vrot.slane %v3531_v15, 1  ;;  %3376 = vrot.lane.b32.xlu1 %v2828_v11, %s4842_s11  ;;  %v2851_v45 = vrot.slane %v2849_v43, 1 }
 0x179   : > { %v3534_v30 = vor.u32 %v3533_v25, %v3529_v41  ;;  %3838 = vmatpush1.bf16.msra.mxu1 %v4689_v24  ;;  %2865 = vrot.lane.b32.xlu0 %v2840_v63, %s4839_s8  ;;  %v2852_v53 = vsel %vm2756_vm1, %v2847_v22, %v2851_v45 }
 0x17a   : > { %3839 = vmatprep.subr.bf16.mxu1 %v4844_v10 }
 0x17b   : > { %v3539_v27 = vsel %vm2756_vm1, %v3534_v30, %v3538_v8  ;;  %2863 = vrot.lane.b32.xlu1 %v2828_v11, %s4839_s8 }
 0x17d   : > { %3840 = vmatpush1.bf16.msra.mxu1 %v4690_v32  ;;  %3445 = vrot.lane.b32.xlu0 %v5830_v42, %s4841_s10 }
 0x17e   : > { %3841 = vmatprep.subr.bf16.mxu1 %v4844_v10 }
 0x17f   : > { %3340 = vrot.lane.b32.xlu1 %v5798_v50, %s4838_s6 }
 0x181   : > { %3842 = vmatpush1.bf16.msra.mxu1 %v4691_v35  ;;  %3275 = vrot.lane.b32.xlu0 %v5830_v42, %s4837_s5  ;;  %s4845_s5 = smov [#allocation2]  }
 0x182   : > { %3857 = vmatprep.subr.bf16.mxu1 %v4844_v10  ;;  %v3262_v10 = vpop.permute.xlu0 %3261 }
 0x183   : > { %3550 = vrot.lane.b32.xlu1 %v2852_v53, %s4843_s12 }
 0x185   : > { %3858 = vmatpush2.bf16.msra.mxu1 %v4692_v56  ;;  %3508 = vrot.lane.b32.xlu0 %v5825_v28, %s4840_s9 }
 0x187   : > { %3380 = vrot.lane.b32.xlu1 %v2852_v53, %s4842_s11 }
 0x189   : > { %3338 = vrot.lane.b32.xlu0 %v5825_v28, %s4838_s6  ;;  %s4746_s6 = sshll.u32 %s4845_s5, 4  ;;  %s4747_s6 = int_to_ptr.vmem [resolvable:$false] %s4746_s6 }
 0x18b   : > { %2867 = vrot.lane.b32.xlu1 %v2852_v53, %s4839_s8  ;;  %v3327_v50 = vpop.permute.xlu1 %3326  ;;  %s217_s8 = sand.u32 1, %s4810_s16  }
 0x18c   : > { %s6192_s14 = scalar_lea.sflag [#allocation3], %s217_s8 }
 0x18d   : > { %3552 = vrot.lane.b32.xlu0 %v5859_v61, %s4843_s12 }
 0x18f   : > { %3447 = vrot.lane.b32.xlu1 %v5913_v33, %s4841_s10 }
 0x191   : > { %3382 = vrot.lane.b32.xlu0 %v5859_v61, %s4842_s11  ;;  %s4521_s11 = sshll.u32 %s4818_s18, 4 }
 0x193   : > { %3554 = vrot.lane.b32.xlu1 %v3539_v27, %s4843_s12  ;;  %s4515_s12 = sshll.u32 %s4822_s19, 5 }
 0x195   : > { %3512 = vrot.lane.b32.xlu0 %v3497_v60, %s4840_s9  ;;  %s4416_s9 = sshll.u32 %s217_s8, 7 }
 0x196   : > { %s6104_s10 = scalar_lea.vmem [#allocation2], %s4416_s9  ;;  %s4748_s9 = scalar_lea.vmem %s4747_s6, 4096 }
 0x197   : > { %v2854_v3 = vpop.permute.xlu0 %2853  ;;  %s4321_s19 = sshll.u32 %s6104_s10, 4  ;;  %s6184_s19 = int_to_ptr.vmem [resolvable:$true] %s4321_s19 }
 0x198   : > { %v3607_v26 = vsel %vm3605_vm2, %v6268_v2, %v2854_v3  ;;  %s4742_s23 = scalar_lea.vmem %s6184_s19, 2048  ;;  %p4749_p2 = scmp.lt.s32.totalorder %s6184_s19, %s4747_s6 }
 0x199   : > { %v3499_v62 = vpop.permute.xlu1 %3498  ;;  %v3624_v12 = vsel %vm3622_vm3, %v3607_v26, %v3262_v10  ;;  %p4743_p13 = scmp.ne.s32.totalorder %s6184_s19, %s4742_s23  ;;  %p4750_p4 = scmp.lt.s32.totalorder %s4748_s9, %s4742_s23 }
 0x19a   : > { %v3641_v61 = vsel %vm3639_vm4, %v3624_v12, %v3327_v50 }
 0x19b   : > { %p4744_p0 = pnand %p4743_p13, %p4924_p3  ;;  %p4751_p5 = por %p4750_p4, %p4749_p2 }
 0x19d   : > { %v3329_v17 = vpop.permute.xlu1 %3328  ;;  %p4745_p1 = pneg %p4744_p0 }
 0x19f   : > { %p4752_p6 = pnand %p4751_p5, %p4745_p1 }
 0x1a1   : > { %v3436_v36 = vpop.permute.xlu1 %3435 }
 0x1a2   : > { %v3434_v40 = vpop.permute.xlu0 %3433 }
 0x1a5   : > { %v3266_v20 = vpop.permute.xlu1 %3265 }
 0x1a6   : > { %v3264_v46 = vpop.permute.xlu0 %3263 }
 0x1aa   : > { %v3369_v13 = vpop.permute.xlu1 %3368 }
 0x1ab   : > { %v3541_v44 = vpop.permute.xlu0 %3540  ;;  %v3657_v34 = vsel %vm1502_vm0, %v3641_v61, %v3369_v13 }
 0x1ac   : > { %v3674_v51 = vsel %vm3672_vm5, %v3657_v34, %v3434_v40 }
 0x1ad   : > { %v3691_v14 = vsel %vm3689_vm6, %v3674_v51, %v3499_v62 }
 0x1ae   : > { %v2856_v5 = vpop.permute.xlu1 %2855  ;;  %v3708_v4 = vsel %vm3706_vm7, %v3691_v14, %v3541_v44 }
 0x1af   : > { %v3371_v55 = vpop.permute.xlu0 %3370  ;;  %3860 = vmatmul.mubr.bf16.vlgmr.msra.gmra.mxu1 %v3708_v4  ;;  %v3609_v63 = vsel %vm3605_vm2, %v5287_v1, %v2856_v5 }
 0x1b0   : > { %4496 = vmatprep.mubr.msk.bf16.mxu1 %vm3605_vm2, %v5647_v23  ;;  %v3626_v11 = vsel %vm3622_vm3, %v3609_v63, %v3264_v46 }
 0x1b1   : > { %v3643_v60 = vsel %vm3639_vm4, %v3626_v11, %v3329_v17 }
 0x1b2   : > { %v3503_v16 = vpop.permute.xlu1 %3502  ;;  %v3659_v15 = vsel %vm1502_vm0, %v3643_v60, %v3371_v55 }
 0x1b3   : > { %v2858_v52 = vpop.permute.xlu0 %2857  ;;  %v3676_v6 = vsel %vm3672_vm5, %v3659_v15, %v3436_v36 }
 0x1b4   : > { %v3611_v19 = vsel %vm3605_vm2, %v5408_v9, %v2858_v52 }
 0x1b5   : > { %v3628_v30 = vsel %vm3622_vm3, %v3611_v19, %v3266_v20 }
 0x1b6   : > { %v3333_v29 = vpop.permute.xlu1 %3332 }
 0x1b7   : > { %v3501_v37 = vpop.permute.xlu0 %3500 }
 0x1b8   : > { %v3693_v1 = vsel %vm3689_vm6, %v3676_v6, %v3501_v37 }
 0x1bb   : > { %v3331_v31 = vpop.permute.xlu0 %3330 }
 0x1bc   : > { %v3645_v7 = vsel %vm3639_vm4, %v3628_v30, %v3331_v31 }
 0x1bd   : > { %v3440_v58 = vpop.permute.xlu1 %3439 }
 0x1bf   : > { %v3438_v41 = vpop.permute.xlu0 %3437 }
 0x1c1   : > { %v3270_v24 = vpop.permute.xlu1 %3269 }
 0x1c3   : > { %v3268_v23 = vpop.permute.xlu0 %3267 }
 0x1c5   : > { %v3543_v25 = vpop.permute.xlu1 %3542 }
 0x1c6   : > { %v3711_v8 = vsel %vm3706_vm7, %v3693_v1, %v3543_v25 }
 0x1c7   : > { %3868 = vmatmul.mubr.bf16.gmra.mxu1 %v3711_v8  ;;  %v3545_v32 = vpop.permute.xlu0 %3544 }
 0x1c8   : > { %4497 = vmatprep.mubr.msk.bf16.mxu1 %vm3605_vm2, %v5632_v21 }
 0x1c9   : > { %v3373_v18 = vpop.permute.xlu1 %3372 }
 0x1ca   : > { %v3661_v43 = vsel %vm1502_vm0, %v3645_v7, %v3373_v18 }
 0x1cb   : > { %v3678_v27 = vsel %vm3672_vm5, %v3661_v43, %v3438_v41  ;;  %v3375_v9 = vpop.permute.xlu0 %3374 }
 0x1cc   : > { %v3695_v35 = vsel %vm3689_vm6, %v3678_v27, %v3503_v16 }
 0x1cd   : > { %v2860_v22 = vpop.permute.xlu1 %2859  ;;  %v3714_v45 = vsel %vm3706_vm7, %v3695_v35, %v3545_v32 }
 0x1ce   : > { %v3613_v10 = vsel %vm3605_vm2, %v5539_v57, %v2860_v22 }
 0x1cf   : > { %3876 = vmatmul.mubr.bf16.gmra.mxu1 %v3714_v45  ;;  %v2862_v56 = vpop.permute.xlu0 %2861  ;;  %v3630_v17 = vsel %vm3622_vm3, %v3613_v10, %v3268_v23 }
 0x1d0   : > { %4498 = vmatprep.mubr.msk.bf16.mxu1 %vm3605_vm2, %v5796_v0  ;;  %v3647_v2 = vsel %vm3639_vm4, %v3630_v17, %v3333_v29  ;;  %v3615_v61 = vsel %vm3605_vm2, %v5560_v48, %v2862_v56 }
 0x1d1   : > { %v3507_v53 = vpop.permute.xlu1 %3506  ;;  %v3663_v20 = vsel %vm1502_vm0, %v3647_v2, %v3375_v9  ;;  %v3632_v34 = vsel %vm3622_vm3, %v3615_v61, %v3270_v24 }
 0x1d2   : > { %v3680_v0 = vsel %vm3672_vm5, %v3663_v20, %v3440_v58 }
 0x1d3   : > { %v3442_v21 = vpop.permute.xlu0 %3441 }
 0x1d5   : > { %v3337_v50 = vpop.permute.xlu1 %3336 }
 0x1d7   : > { %v3272_v62 = vpop.permute.xlu0 %3271 }
 0x1d9   : > { %v3444_v3 = vpop.permute.xlu1 %3443 }
 0x1db   : > { %v3505_v36 = vpop.permute.xlu0 %3504 }
 0x1dc   : > { %v3697_v57 = vsel %vm3689_vm6, %v3680_v0, %v3505_v36 }
 0x1dd   : > { %v3274_v40 = vpop.permute.xlu1 %3273 }
 0x1df   : > { %v3335_v26 = vpop.permute.xlu0 %3334 }
 0x1e0   : > { %v3649_v14 = vsel %vm3639_vm4, %v3632_v34, %v3335_v26 }
 0x1e1   : > { %v3511_v12 = vpop.permute.xlu1 %3510 }
 0x1e3   : > { %v3549_v46 = vpop.permute.xlu0 %3548 }
 0x1e5   : > { %v3547_v13 = vpop.permute.xlu1 %3546 }
 0x1e6   : > { %v3717_v44 = vsel %vm3706_vm7, %v3697_v57, %v3547_v13 }
 0x1e7   : > { %3884 = vmatmul.mubr.bf16.gmra.mxu1 %v3717_v44  ;;  %v3379_v51 = vpop.permute.xlu0 %3378 }
 0x1e8   : > { %4499 = vmatprep.mubr.msk.bf16.mxu1 %vm3605_vm2, %v5837_v49 }
 0x1e9   : > { %v3377_v5 = vpop.permute.xlu1 %3376 }
 0x1ea   : > { %v3665_v4 = vsel %vm1502_vm0, %v3649_v14, %v3377_v5 }
 0x1eb   : > { %v3682_v55 = vsel %vm3672_vm5, %v3665_v4, %v3442_v21  ;;  %v2866_v48 = vpop.permute.xlu0 %2865 }
 0x1ec   : > { %v3699_v16 = vsel %vm3689_vm6, %v3682_v55, %v3507_v53  ;;  %v3619_v6 = vsel %vm3605_vm2, %v5771_v47, %v2866_v48 }
 0x1ed   : > { %v2864_v52 = vpop.permute.xlu1 %2863  ;;  %v3720_v63 = vsel %vm3706_vm7, %v3699_v16, %v3549_v46  ;;  %v3636_v1 = vsel %vm3622_vm3, %v3619_v6, %v3274_v40  ;;  %v4694_v6 = vld [vmem:[%s4953_s30 + $0x18] sm:$0xf] }
 0x1ee   : > { %v3617_v29 = vsel %vm3605_vm2, %v5785_v38, %v2864_v52  ;;  %v4693_v38 = vld [vmem:[%s6246_s3] sm:$0xff]  }
 0x1ef   : > { %v3634_v37 = vsel %vm3622_vm3, %v3617_v29, %v3272_v62  ;;  %3892 = vmatmul.mubr.bf16.gmra.mxu1 %v3720_v63  ;;  %v3446_v49 = vpop.permute.xlu0 %3445  ;;  %4579 = vmatprep.subr.bf16.mxu0 %v4693_v38 }
 0x1f0   : > { %v3651_v11 = vsel %vm3639_vm4, %v3634_v37, %v3337_v50  ;;  %4500 = vmatprep.mubr.msk.bf16.mxu1 %vm3605_vm2, %v5830_v42  ;;  %4580 = vmatpush3.bf16.msra.mxu0 %v4693_v38 }
 0x1f1   : > { %v3341_v60 = vpop.permute.xlu1 %3340  ;;  %v3667_v31 = vsel %vm1502_vm0, %v3651_v11, %v3379_v51 }
 0x1f2   : > { %v3684_v41 = vsel %vm3672_vm5, %v3667_v31, %v3444_v3 }
 0x1f3   : > { %v3276_v58 = vpop.permute.xlu0 %3275 }
 0x1f5   : > { %v3551_v15 = vpop.permute.xlu1 %3550 }
 0x1f7   : > { %v3509_v24 = vpop.permute.xlu0 %3508 }
 0x1f8   : > { %v3701_v23 = vsel %vm3689_vm6, %v3684_v41, %v3509_v24 }
 0x1f9   : > { %v3381_v19 = vpop.permute.xlu1 %3380  ;;  %v3723_v42 = vsel %vm3706_vm7, %v3701_v23, %v3551_v15  ;;  %v3962_v23 = vshrl.u32 %v4694_v6, 16 }
 0x1fa   : > { %3900 = vmatmul.mubr.bf16.gmra.mxu1 %v3723_v42  ;;  %v4695_v42 = vld [vmem:[%s4953_s30 + $0xc] sm:$0xf] }
 0x1fb   : > { %v3339_v25 = vpop.permute.xlu0 %3338  ;;  %4501 = vmatprep.mubr.msk.bf16.mxu1 %vm3605_vm2, %v5913_v33 }
 0x1fc   : > { %v3653_v8 = vsel %vm3639_vm4, %v3636_v1, %v3339_v25  ;;  %v3938_v1 = vshrl.u32 %v4695_v42, 16  ;;  %v3941_v25 = vshll.u32 %v4695_v42, 16 }
 0x1fd   : > { %v2868_v30 = vpop.permute.xlu1 %2867  ;;  %v3669_v32 = vsel %vm1502_vm0, %v3653_v8, %v3381_v19  ;;  %v3965_v19 = vshll.u32 %v4694_v6, 16  ;;  %v3964_v8 = vrot.slane %v3962_v23, 4  ;;  %v4703_v6 = vld [vmem:[%s4953_s30 + $0x28] sm:$0xf] }
 0x1fe   : > { %v3621_v47 = vsel %vm3605_vm2, %v5825_v28, %v2868_v30  ;;  %v3686_v7 = vsel %vm3672_vm5, %v3669_v32, %v3446_v49  ;;  %v4696_v32 = vld [vmem:[%s4953_s30 + $0x1c] sm:$0xf]  ;;  %v3995_v23 = vshll.u32 %v4703_v6, 16 }
 0x1ff   : > { %v3638_v18 = vsel %vm3622_vm3, %v3621_v47, %v3276_v58  ;;  %v3553_v43 = vpop.permute.xlu0 %3552  ;;  %v3703_v27 = vsel %vm3689_vm6, %v3686_v7, %v3511_v12  ;;  %v3967_v30 = vrot.slane %v3965_v19, 5  ;;  %v3971_v47 = vshll.u32 %v4696_v32, 16 }
 0x200   : > { %v3726_v9 = vsel %vm3706_vm7, %v3703_v27, %v3553_v43  ;;  %v3655_v33 = vsel %vm3639_vm4, %v3638_v18, %v3341_v60  ;;  %v3975_v7 = vshrl.u32 %v4696_v32, 16  ;;  %v3940_v18 = vrot.slane %v3938_v1, 4  ;;  %v4697_v27 = vld [vmem:[%s4953_s30 + $0x10] sm:$0xf] }
 0x201   : > { %v3448_v35 = vpop.permute.xlu1 %3447  ;;  %v3943_v43 = vrot.slane %v3941_v25, 5  ;;  %v3999_v19 = vshrl.u32 %v4703_v6, 16 }
 0x202   : > { %3908 = vmatmul.mubr.bf16.gmra.mxu1 %v3726_v9  ;;  %v3947_v9 = vshll.u32 %v4697_v27, 16 }
 0x203   : > { %v3383_v22 = vpop.permute.xlu0 %3382  ;;  %4502 = vmatprep.mubr.msk.bf16.mxu1 %vm3605_vm2, %v3604_v39  ;;  %v4001_v32 = vrot.slane %v3999_v19, 4 }
 0x204   : > { %v3671_v28 = vsel %vm1502_vm0, %v3655_v33, %v3383_v22  ;;  %v3968_v33 = vor.u32 %v3967_v30, %v3964_v8  ;;  %v3973_v22 = vrot.slane %v3971_v47, 5  ;;  %v3997_v30 = vrot.slane %v3995_v23, 5  ;;  %v4711_v23 = vld [vmem:[%s4953_s30 + $0x44] sm:$0x1] }
 0x205   : > { %v3688_v45 = vsel %vm3672_vm5, %v3671_v28, %v3448_v35  ;;  %v3555_v56 = vpop.permute.xlu1 %3554  ;;  %v3951_v35 = vshrl.u32 %v4697_v27, 16  ;;  %v3977_v28 = vrot.slane %v3975_v7, 4  ;;  %v4053_v19 = vshll.u32 %v4711_v23, 16 }
 0x207   : > { %v3513_v53 = vpop.permute.xlu0 %3512 }
 0x208   : > { %v3705_v21 = vsel %vm3689_vm6, %v3688_v45, %v3513_v53  ;;  %v3944_v45 = vor.u32 %v3943_v43, %v3940_v18  ;;  %v3953_v53 = vrot.slane %v3951_v35, 4  ;;  %v4704_v18 = vld [vmem:[%s4953_s30 + $0x38] sm:$0x1]  ;;  %v4705_v35 = vld [vmem:[%s4953_s30 + $0x2c] sm:$0x1] }
 0x209   : > { %v3729_v50 = vsel %vm3706_vm7, %v3705_v21, %v3555_v56  ;;  %v3949_v56 = vrot.slane %v3947_v9, 5  ;;  %v3969_v21 = vrot.slane %v3968_v33, 4  ;;  %v4029_v43 = vshll.u32 %v4704_v18, 16 }
 0x20a   : > { %3916 = vmatmul.mubr.bf16.gmra.mxu1 %v3729_v50  ;;  %v3978_v50 = vor.u32 %v3977_v28, %v3973_v22  ;;  %v4002_v9 = vor.u32 %v4001_v32, %v3997_v30  ;;  %v4005_v33 = vshll.u32 %v4705_v35, 16  ;;  %v4055_v18 = vrot.slane %v4053_v19, 5 }
 0x26f   : > { %v3861_v10 = vpop.f32.mrf.mxu1 }
 0x271   : > { %v3863_v62 = vpop.f32.mrf.mxu1 }
 0x273   : > { %v3864_v3 = vpop.f32.mrf.mxu1 }
 0x274   : > { %v3924_v17 = vpack.c.bf16 %v3864_v3, %v3861_v10  ;;  %v4698_v10 = vld [vmem:[%s4953_s30 + $0x20] sm:$0x1] }
 0x275   : > { %v3866_v36 = vpop.f32.mrf.mxu1  ;;  %v3981_v62 = vshll.u32 %v4698_v10, 16  ;;  %v4706_v10 = vld [vmem:[%s4953_s30 + $0x48] sm:$0xf] }
 0x276   : > { %4581 = vmatprep.mubr.msk.bf16.mxu0 %vm3605_vm2, %v3924_v17  ;;  %v3945_v17 = vrot.slane %v3944_v45, 4  ;;  %v3954_v36 = vor.u32 %v3953_v53, %v3949_v56  ;;  %v4031_v45 = vrot.slane %v4029_v43, 5  ;;  %v4003_v53 = vrot.slane %v4002_v9, 4 }
 0x287   : > { %v3869_v59 = vpop.f32.mrf.mxu1 }
 0x289   : > { %v3871_v54 = vpop.f32.mrf.mxu1 }
 0x28b   : > { %v3872_v39 = vpop.f32.mrf.mxu1 }
 0x28c   : > { %v3925_v40 = vpack.c.bf16 %v3872_v39, %v3869_v59  ;;  %v4699_v59 = vld [vmem:[%s4953_s30 + $0x14] sm:$0x1]  ;;  %v3974_v39 = vsel %vm6088_vm10, %v3969_v21, %v3973_v22  ;;  %v4007_v21 = vrot.slane %v4005_v33, 5 }
 0x28d   : > { %v3874_v2 = vpop.f32.mrf.mxu1  ;;  %v3957_v54 = vshll.u32 %v4699_v59, 16 }
 0x28e   : > { %4582 = vmatmul.mubr.msk.bf16.vlgmr.msra.gmra.mxu0 %vm3605_vm2, %v3925_v40  ;;  %v3979_v40 = vrot.slane %v3978_v50, 4  ;;  %v3983_v2 = vrot.slane %v3981_v62, 5  ;;  %v4058_v62 = vshrl.u32 %v4706_v10, 16 }
 0x28f   : > { %v3877_v26 = vpop.f32.mrf.mxu1 }
 0x291   : > { %v3879_v20 = vpop.f32.mrf.mxu1 }
 0x292   : > { %v3955_v20 = vrot.slane %v3954_v36, 4 }
 0x293   : > { %v3880_v12 = vpop.f32.mrf.mxu1 }
 0x294   : > { %v3926_v0 = vpack.c.bf16 %v3880_v12, %v3877_v26  ;;  %v3950_v26 = vsel %vm6088_vm10, %v3945_v17, %v3949_v56  ;;  %v3959_v12 = vrot.slane %v3957_v54, 5  ;;  %v4061_v17 = vshll.u32 %v4706_v10, 16 }
 0x295   : > { %v3882_v46 = vpop.f32.mrf.mxu1 }
 0x296   : > { %4585 = vmatprep.mubr.msk.bf16.mxu0 %vm3605_vm2, %v3926_v0  ;;  %v4147_v0 = vunpack.c.l.bf16 %v3974_v39  ;;  %v3984_v46 = vsel %vm6088_vm10, %v3979_v40, %v3983_v2  ;;  %v4008_v39 = vsel %vm6088_vm10, %v4003_v53, %v4007_v21  ;;  %v4707_v40 = vld [vmem:[%s4953_s30 + $0x3c] sm:$0xf] }
 0x297   : > { %v4034_v2 = vshrl.u32 %v4707_v40, 16 }
 0x2a7   : > { %v3885_v61 = vpop.f32.mrf.mxu1 }
 0x2a9   : > { %v3887_v57 = vpop.f32.mrf.mxu1 }
 0x2ab   : > { %v3888_v13 = vpop.f32.mrf.mxu1 }
 0x2ac   : > { %v3927_v44 = vpack.c.bf16 %v3888_v13, %v3885_v61  ;;  %v4145_v61 = vunpack.c.l.bf16 %v3950_v26  ;;  %v3960_v13 = vsel %vm6088_vm10, %v3955_v20, %v3959_v12  ;;  %v4037_v26 = vshll.u32 %v4707_v40, 16 }
 0x2ad   : > { %v3890_v34 = vpop.f32.mrf.mxu1 }
 0x2ae   : > { %4586 = vmatmul.mubr.msk.bf16.gmra.mxu0 %vm3605_vm2, %v3927_v44  ;;  %v4148_v34 = vunpack.c.l.bf16 %v3984_v46  ;;  %v4063_v46 = vrot.slane %v4061_v17, 5 }
 0x2af   : > { %v3893_v51 = vpop.f32.mrf.mxu1 }
 0x2b1   : > { %v3895_v14 = vpop.f32.mrf.mxu1 }
 0x2b3   : > { %v3896_v5 = vpop.f32.mrf.mxu1 }
 0x2b4   : > { %v3928_v4 = vpack.c.bf16 %v3896_v5, %v3893_v51  ;;  %v4146_v5 = vunpack.c.l.bf16 %v3960_v13 }
 0x2b5   : > { %v3898_v55 = vpop.f32.mrf.mxu1 }
 0x2b6   : > { %4589 = vmatprep.mubr.msk.bf16.mxu0 %vm3605_vm2, %v3928_v4 }
 0x2ba   : > { %v3901_v48 = vpop.f32.mrf.mxu1 }
 0x2bc   : > { %v3903_v16 = vpop.f32.mrf.mxu1 }
 0x2be   : > { %v3904_v52 = vpop.f32.mrf.mxu1 }
 0x2bf   : > { %v3929_v63 = vpack.c.bf16 %v3904_v52, %v3901_v48  ;;  %v4700_v52 = vld [vmem:[%s4953_s30 + $0x30] sm:$0xf] }
 0x2c0   : > { %v3906_v29 = vpop.f32.mrf.mxu1 }
 0x2c1   : > { %4590 = vmatmul.mubr.msk.bf16.gmra.mxu0 %vm3605_vm2, %v3929_v63  ;;  %v4010_v63 = vshrl.u32 %v4700_v52, 16  ;;  %v4013_v29 = vshll.u32 %v4700_v52, 16 }
 0x2c2   : > { %v3909_v37 = vpop.f32.mrf.mxu1 }
 0x2c4   : > { %v3911_v49 = vpop.f32.mrf.mxu1 }
 0x2c6   : > { %v3912_v11 = vpop.f32.mrf.mxu1 }
 0x2c7   : > { %v3930_v60 = vpack.c.bf16 %v3912_v11, %v3909_v37  ;;  %v4701_v37 = vld [vmem:[%s4953_s30 + $0x24] sm:$0xf] }
 0x2c8   : > { %v3914_v31 = vpop.f32.mrf.mxu1  ;;  %v3986_v49 = vshrl.u32 %v4701_v37, 16  ;;  %v3989_v11 = vshll.u32 %v4701_v37, 16 }
 0x2c9   : > { %4593 = vmatprep.mubr.msk.bf16.mxu0 %vm3605_vm2, %v3930_v60  ;;  %v4012_v60 = vrot.slane %v4010_v63, 4  ;;  %v4015_v31 = vrot.slane %v4013_v29, 5 }
 0x2ca   : > { %v3917_v58 = vpop.f32.mrf.mxu1 }
 0x2cb   : > { %v4016_v42 = vor.u32 %v4015_v31, %v4012_v60 }
 0x2cc   : > { %v3919_v15 = vpop.f32.mrf.mxu1 }
 0x2cd   : > { %v4017_v47 = vrot.slane %v4016_v42, 4 }
 0x2ce   : > { %v3920_v41 = vpop.f32.mrf.mxu1 }
 0x2cf   : > { %v3931_v38 = vpack.c.bf16 %v3920_v41, %v3917_v58  ;;  %v4702_v58 = vld [vmem:[%s4953_s30 + $0x34] sm:$0xf] }
 0x2d0   : > { %v3922_v24 = vpop.f32.mrf.mxu1  ;;  %v4019_v15 = vshll.u32 %v4702_v58, 16  ;;  %v4023_v41 = vshrl.u32 %v4702_v58, 16 }
 0x2d1   : > { %4594 = vmatmul.mubr.msk.bf16.gmra.mxu0 %vm3605_vm2, %v3931_v38  ;;  %v3988_v38 = vrot.slane %v3986_v49, 4  ;;  %v3991_v24 = vrot.slane %v3989_v11, 5 }
 0x2d2   : > { %v4021_v1 = vrot.slane %v4019_v15, 5  ;;  %v4025_v25 = vrot.slane %v4023_v41, 4 }
 0x2d3   : > { %v3992_v8 = vor.u32 %v3991_v24, %v3988_v38  ;;  %v4710_v38 = vld [vmem:[%s4953_s30 + $0x50] sm:$0x1] }
 0x2d4   : > { %v4026_v7 = vor.u32 %v4025_v25, %v4021_v1  ;;  %v4022_v22 = vsel %vm6088_vm10, %v4017_v47, %v4021_v1  ;;  %v4077_v24 = vshll.u32 %v4710_v38, 16 }
 0x2d5   : > { %v3993_v27 = vrot.slane %v3992_v8, 4  ;;  %v4151_v50 = vunpack.c.l.bf16 %v4022_v22  ;;  %v4714_v22 = vld [vmem:[%s4953_s30 + $0x64] sm:$0xf] }
 0x2d6   : > { %v4027_v28 = vrot.slane %v4026_v7, 4  ;;  %v4079_v8 = vrot.slane %v4077_v24, 5  ;;  %v4119_v21 = vshrl.u32 %v4714_v22, 16 }
 0x2d7   : > { %v3998_v56 = vsel %vm6088_vm10, %v3993_v27, %v3997_v30  ;;  %v4712_v30 = vld [vmem:[%s4953_s30 + $0x60] sm:$0xf]  ;;  %v4713_v27 = vld [vmem:[%s4953_s30 + $0x54] sm:$0xf] }
 0x2d8   : > { %v4032_v36 = vsel %vm6088_vm10, %v4027_v28, %v4031_v45  ;;  %v4149_v59 = vunpack.c.l.bf16 %v3998_v56  ;;  %v4106_v32 = vshrl.u32 %v4712_v30, 16  ;;  %v4109_v47 = vshll.u32 %v4712_v30, 16 }
 0x2d9   : > { %v4152_v12 = vunpack.c.l.bf16 %v4032_v36  ;;  %v4082_v9 = vshrl.u32 %v4713_v27, 16  ;;  %v4085_v35 = vshll.u32 %v4713_v27, 16  ;;  %v4115_v28 = vshll.u32 %v4714_v22, 16 }
 0x2da   : > { %v4108_v56 = vrot.slane %v4106_v32, 4  ;;  %v4111_v53 = vrot.slane %v4109_v47, 5 }
 0x2db   : > { %v4084_v17 = vrot.slane %v4082_v9, 4  ;;  %v4087_v36 = vrot.slane %v4085_v35, 5 }
 0x34e   : > { %v4583_v57 = vpop.f32.mrf.mxu0 }
 0x34f   : > { %v4234_v44 = vadd.f32 %v4583_v57, %v4147_v0  ;;  %v4060_v0 = vrot.slane %v4058_v62, 4  ;;  %v4708_v57 = vld [vmem:[%s4953_s30 + $0x4c] sm:$0xf] }
 0x350   : > { %v4225_v51 = vpop.f32.mrf.mxu0  ;;  %v4067_v13 = vshll.u32 %v4708_v57, 16 }
 0x351   : > { %4290 = vst.msk [vmem:[%s6104_s10 + $0x10] sm:$0xff] %vm1502_vm0, %v4234_v44  ;;  %v4226_v14 = vadd.f32 %v4225_v51, %v4145_v61  ;;  %v4071_v44 = vshrl.u32 %v4708_v57, 16  ;;  %v4150_v51 = vunpack.c.l.bf16 %v4008_v39  ;;  %v4064_v63 = vor.u32 %v4063_v46, %v4060_v0 }
 0x352   : > { %v4584_v4 = vpop.f32.mrf.mxu0  ;;  %v4069_v37 = vrot.slane %v4067_v13, 5  ;;  %v4121_v0 = vrot.slane %v4119_v21, 4  ;;  %v4088_v13 = vor.u32 %v4087_v36, %v4084_v17 }
 0x353   : > { %4288 = vst.msk [vmem:[%s6104_s10] sm:$0xff] %vm1502_vm0, %v4226_v14  ;;  %v4237_v55 = vadd.f32 %v4584_v4, %v4148_v34  ;;  %v4709_v14 = vld [vmem:[%s4953_s30 + $0x40] sm:$0xf]  ;;  %v4073_v49 = vrot.slane %v4071_v44, 4  ;;  %v4065_v15 = vrot.slane %v4064_v63, 4 }
 0x354   : > { %v4228_v48 = vpop.f32.mrf.mxu0  ;;  %v4047_v4 = vshrl.u32 %v4709_v14, 16 }
 0x355   : > { %4291 = vst.msk [vmem:[%s6104_s10 + $0x18] sm:$0xff] %vm1502_vm0, %v4237_v55  ;;  %v4229_v16 = vadd.f32 %v4228_v48, %v4146_v5  ;;  %v4043_v5 = vshll.u32 %v4709_v14, 16  ;;  %v4036_v48 = vrot.slane %v4034_v2, 4  ;;  %v4074_v41 = vor.u32 %v4073_v49, %v4069_v37 }
 0x356   : > { %v4049_v31 = vrot.slane %v4047_v4, 4  ;;  %v4070_v1 = vsel %vm6088_vm10, %v4065_v15, %v4069_v37 }
 0x357   : > { %4289 = vst.msk [vmem:[%s6104_s10 + $0x8] sm:$0xff] %vm1502_vm0, %v4229_v16  ;;  %v4039_v16 = vrot.slane %v4037_v26, 5  ;;  %v4045_v60 = vrot.slane %v4043_v5, 5  ;;  %v4075_v25 = vrot.slane %v4074_v41, 4  ;;  %v4155_v33 = vunpack.c.l.bf16 %v4070_v1 }
 0x359   : > { %v4040_v58 = vor.u32 %v4039_v16, %v4036_v48  ;;  %v4050_v6 = vor.u32 %v4049_v31, %v4045_v60  ;;  %v4080_v45 = vsel %vm6088_vm10, %v4075_v25, %v4079_v8 }
 0x35a   : > { %v4156_v2 = vunpack.c.l.bf16 %v4080_v45 }
 0x35b   : > { %v4041_v42 = vrot.slane %v4040_v58, 4  ;;  %v4051_v7 = vrot.slane %v4050_v6, 4 }
 0x35d   : > { %v4046_v43 = vsel %vm6088_vm10, %v4041_v42, %v4045_v60  ;;  %v4056_v10 = vsel %vm6088_vm10, %v4051_v7, %v4055_v18 }
 0x36e   : > { %v4587_v54 = vpop.f32.mrf.mxu0 }
 0x36f   : > { %v4250_v20 = vadd.f32 %v4587_v54, %v4151_v50  ;;  %v4153_v50 = vunpack.c.l.bf16 %v4046_v43 }
 0x370   : > { %v4241_v61 = vpop.f32.mrf.mxu0 }
 0x371   : > { %4294 = vst.msk [vmem:[%s6104_s10 + $0x30] sm:$0xff] %vm1502_vm0, %v4250_v20  ;;  %v4242_v34 = vadd.f32 %v4241_v61, %v4149_v59  ;;  %v4715_v59 = vld [vmem:[%s4953_s30 + $0x58] sm:$0xf]  ;;  %v4112_v20 = vor.u32 %v4111_v53, %v4108_v56  ;;  %v4154_v61 = vunpack.c.l.bf16 %v4056_v10 }
 0x372   : > { %v4588_v55 = vpop.f32.mrf.mxu0  ;;  %v4091_v54 = vshll.u32 %v4715_v59, 16  ;;  %v4095_v39 = vshrl.u32 %v4715_v59, 16 }
 0x373   : > { %4292 = vst.msk [vmem:[%s6104_s10 + $0x20] sm:$0xff] %vm1502_vm0, %v4242_v34  ;;  %v4253_v52 = vadd.f32 %v4588_v55, %v4152_v12  ;;  %v4117_v12 = vrot.slane %v4115_v28, 5  ;;  %v4113_v5 = vrot.slane %v4112_v20, 4  ;;  %v4716_v55 = vld [vmem:[%s4953_s30 + $0x68] sm:$0x1] }
 0x374   : > { %v4244_v29 = vpop.f32.mrf.mxu0  ;;  %v4093_v44 = vrot.slane %v4091_v54, 5  ;;  %v4097_v34 = vrot.slane %v4095_v39, 4  ;;  %v4125_v48 = vshll.u32 %v4716_v55, 16 }
 0x375   : > { %4295 = vst.msk [vmem:[%s6104_s10 + $0x38] sm:$0xff] %vm1502_vm0, %v4253_v52  ;;  %v4245_v11 = vadd.f32 %v4244_v29, %v4150_v51  ;;  %v4122_v4 = vor.u32 %v4121_v0, %v4117_v12  ;;  %v4089_v52 = vrot.slane %v4088_v13, 4  ;;  %v4717_v29 = vld [vmem:[%s4953_s30 + $0x5c] sm:$0x1]  ;;  %v4118_v49 = vsel %vm6088_vm10, %v4113_v5, %v4117_v12  ;;  %s4318_s30 = sadd.s32 %s4521_s11, %s4515_s12 }
 0x376   : > { %v4098_v63 = vor.u32 %v4097_v34, %v4093_v44  ;;  %v4101_v37 = vshll.u32 %v4717_v29, 16  ;;  %v4127_v60 = vrot.slane %v4125_v48, 5  ;;  %v4159_v41 = vunpack.c.l.bf16 %v4118_v49  ;;  %s4516_s18 = sshll.u32 %s4318_s30, 7 }
 0x377   : > { %4293 = vst.msk [vmem:[%s6104_s10 + $0x28] sm:$0xff] %vm1502_vm0, %v4245_v11  ;;  %v4123_v11 = vrot.slane %v4122_v4, 4  ;;  %v4094_v31 = vsel %vm6088_vm10, %v4089_v52, %v4093_v44  ;;  %s6182_s13 = scalar_lea.hbm %s6247_s4, %s4516_s18 }
 0x378   : > { %v4099_v58 = vrot.slane %v4098_v63, 4  ;;  %v4103_v15 = vrot.slane %v4101_v37, 5  ;;  %v4157_v24 = vunpack.c.l.bf16 %v4094_v31 }
 0x379   : > { %v4128_v38 = vsel %vm6088_vm10, %v4123_v11, %v4127_v60 }
 0x37a   : > { %v4104_v23 = vsel %vm6088_vm10, %v4099_v58, %v4103_v15  ;;  %v4160_v42 = vunpack.c.l.bf16 %v4128_v38 }
 0x37b   : > { %v4158_v8 = vunpack.c.l.bf16 %v4104_v23 }
 0x381   : > { %v4591_v62 = vpop.f32.mrf.mxu0 }
 0x382   : > { %v4266_v40 = vadd.f32 %v4591_v62, %v4155_v33 }
 0x383   : > { %v4257_v26 = vpop.f32.mrf.mxu0 }
 0x384   : > { %4298 = vst.msk [vmem:[%s6104_s10 + $0x50] sm:$0xff] %vm1502_vm0, %v4266_v40  ;;  %v4258_v46 = vadd.f32 %v4257_v26, %v4153_v50 }
 0x385   : > { %v4592_v57 = vpop.f32.mrf.mxu0 }
 0x386   : > { %4296 = vst.msk [vmem:[%s6104_s10 + $0x40] sm:$0xff] %vm1502_vm0, %v4258_v46  ;;  %v4269_v51 = vadd.f32 %v4592_v57, %v4156_v2 }
 0x387   : > { %v4260_v14 = vpop.f32.mrf.mxu0 }
 0x388   : > { %4299 = vst.msk [vmem:[%s6104_s10 + $0x58] sm:$0xff] %vm1502_vm0, %v4269_v51  ;;  %v4261_v16 = vadd.f32 %v4260_v14, %v4154_v61 }
 0x38a   : > { %4297 = vst.msk [vmem:[%s6104_s10 + $0x48] sm:$0xff] %vm1502_vm0, %v4261_v16 }
 0x391   : > { %v4595_v6 = vpop.f32.mrf.mxu0 }
 0x392   : > { %v4282_v19 = vadd.f32 %v4595_v6, %v4159_v41 }
 0x393   : > { %v4273_v1 = vpop.f32.mrf.mxu0 }
 0x394   : > { %4302 = vst.msk [vmem:[%s6104_s10 + $0x70] sm:$0xff] %vm1502_vm0, %v4282_v19  ;;  %v4274_v25 = vadd.f32 %v4273_v1, %v4157_v24 }
 0x395   : > { %v4596_v30 = vpop.f32.mrf.mxu0 }
 0x396   : > { %4300 = vst.msk [vmem:[%s6104_s10 + $0x60] sm:$0xff] %vm1502_vm0, %v4274_v25  ;;  %v4285_v32 = vadd.f32 %v4596_v30, %v4160_v42 }
 0x397   : > { %v4276_v3 = vpop.f32.mrf.mxu0 }
 0x398   : > { %4303 = vst.msk [vmem:[%s6104_s10 + $0x78] sm:$0xff] %vm1502_vm0, %v4285_v32  ;;  %v4277_v47 = vadd.f32 %v4276_v3, %v4158_v8 }
 0x39a   : > { %4301 = vst.msk [vmem:[%s6104_s10 + $0x68] sm:$0xff] %vm1502_vm0, %v4277_v47 }
 0x39b   : > { %4755 = shalt.err (!%p4752_p6)
}
 0x39c   : > { %s4756_s8 = scalar_lea.hbm %s6182_s13, 2048  ;;  %s4760_s12 = scalar_lea.hbm %s6247_s4, 8192 }
 0x39d   : > { %p4757_p7 = scmp.ne.s32.totalorder %s6182_s13, %s4756_s8  ;;  %p4761_p11 = scmp.lt.s32.totalorder %s6182_s13, %s6247_s4 }
 0x39e   : > { %p4762_p12 = scmp.lt.s32.totalorder %s4760_s12, %s4756_s8 }
 0x39f   : > { %p4758_p9 = pnand %p4757_p7, %p4924_p3 }
 0x3a0   : > { %p4763_p13 = por %p4762_p12, %p4761_p11 }
 0x3a1   : > { %p4759_p10 = pneg %p4758_p9 }
 0x3a3   : > { %p4764_p0 = pnand %p4763_p13, %p4759_p10 }
 0x3a5   : > { %4767 = shalt.err (!%p4764_p0)
}
 0x3a6   : > { %s4846_s24 = smov 128   ;;  %s4847_s27 = smov 8  }
 0x3a7   : > { %4598 = dma.vmem_to_hbm [thread:$0]  (%p4924_p3), %s6184_s19, 2048, %s6182_s13, %s6192_s14, %s4846_s24, %s4846_s24, %s4847_s27  }
 0x3a8 PF: > { %p4604_p1 = scmp.ge.s32.totalorder %s4834_s22, 2  ;;  %s4336_s23 = sand.u32 1, %s4806_s15  }
 0x3a9   : > { %s4337_s5 = scalar_lea.sflag [#allocation3], %s4336_s23 }
 0x3aa   : > { %p4601_p2 = pnand %p4604_p1, %p4933_p8 }
 0x3ac   : > { %p4602_p4 = pneg %p4601_p2 }
 0x3ae   : > { %4801 = dma.done.wait (%p4602_p4), %s4337_s5, 2048  }
 0x3af   : > { %4803 = vsyncadd (%p4602_p4), %s4337_s5, 4294965248  ;;  %s17_s22 = sadd.s32 1, %s4834_s22   ;;  %s6271_s15 = smov %s4810_s16 }
 0x3b0   : > { %p14_p5 = scmp.ge.s32.totalorder %s17_s22, 6   ;;  %s6272_s16 = smov %s4814_s17 }
 0x3b1   : > { %s6273_s17 = smov %s4942_s7  ;;  %s6274_s18 = smov %s4826_s20 }
 0x3b2   : > { %s6275_s19 = smov %s4830_s21  ;;  %s6276_s20 = smov %s6279_s25 }
 0x3b3   : > { %s6277_s21 = smov %s6283_s26  ;;  %16 = sbr.rel (!%p14_p5) target bundleno = 5 (0x5), region = 75 }
 0x3b8   :  { %4342 = vsyncpa [#allocation3], 1 }
 0x3b9   :  { %4344 = vsyncpa [#allocation3 + $0x1], 1 }

</bundles_post_ra>
